<compile_context>
chip_gen: v5e
topology: v5e:2x2
jax: 0.10.0
libtpu: 0.0.40
codegen_flags: <defaults>
</compile_context>

<pallas_src>
import jax
import jax.numpy as jnp
from jax.experimental import pallas as pl
from jax.experimental.pallas import tpu as pltpu

# ----- model dims -----
CIN = 4                  # input channels (RNA bases)
L = 16                   # seq_length
D = 64                   # d_model / conv out channels
H, HD = 4, 16            # heads, head dim
FF = 128                 # feed-forward dim
NLAYERS = 2
OUT = 3                  # 3D coordinates
EPS = 1e-5
KIM = 16                 # im2col contraction dim (3*CIN=12, padded to 16)

# ----- kernel tiling -----
G = 8                    # sequences per grid step
ROWS = G * L             # 128 activation rows per grid step (= NR per attention tile)
NEG = -1e30              # masked-score value (finite; avoids NaN risk)

# ----- packed weight-slab row offsets (single bf16 slab, 192 lanes) -----
R_CONV = 0
R_FC1 = 16
R_FC2 = R_FC1 + D                      # 80
R_LAYER0 = R_FC2 + D                   # 144
LAYER_ROWS = 4 * D                     # 256: Wqkv(64) + [W1|Wo](64) + W2(128)
WROWS = R_LAYER0 + NLAYERS * LAYER_ROWS  # 656

# ----- bias-slab row offsets (f32, 192 lanes) -----
R_LBIAS = 3
R_FC1B = R_LBIAS + 8 * NLAYERS         # 19
R_FC2B = R_FC1B + 1                    # 20
BIAS_ROWS = 24


def _layernorm(h, g, b):
    m = jnp.mean(h, axis=-1, keepdims=True)
    v = jnp.mean((h - m) ** 2, axis=-1, keepdims=True)
    return (h - m) * jax.lax.rsqrt(v + EPS) * g + b


def model_kernel(xim_ref, w_ref, b_ref, o_ref):
    f32, bf16 = jnp.float32, jnp.bfloat16
    bs = b_ref[...]                                    # (24, 192) f32 (small)

    # ---- Conv1d(4->64, k=3, pad=1): one im2col matmul + bias + ReLU ----
    xim = xim_ref[...].astype(bf16)                    # (ROWS, 16)
    conv_w = w_ref[R_CONV:R_CONV + KIM, 0:D]           # (16, 64); rows 12:16 zero pad
    y = jnp.dot(xim, conv_w, preferred_element_type=f32) + bs[0:1, 0:D]
    y = jnp.maximum(y, 0.0)

    # ---- BatchNorm1d (eval mode), folded to per-channel affine at pack time ----
    h = y * bs[1:2, 0:D] + bs[2:3, 0:D]

    # ---- same-sequence boolean mask, rebuilt from iotas (no persistent f32 mask) ----
    ri = jax.lax.broadcasted_iota(jnp.int32, (ROWS, ROWS), 0)
    ci = jax.lax.broadcasted_iota(jnp.int32, (ROWS, ROWS), 1)
    same_seq = (ri ^ ci) < L                           # block-diag, L is a power of 2

    # ---- 2x TransformerEncoderLayer (post-LN, ReLU FFN, dropout=identity) ----
    for i in range(NLAYERS):
        base = R_LAYER0 + i * LAYER_ROWS
        r = R_LBIAS + 8 * i
        bqkv = bs[r:r + 1, :]                          # (1, 192); q part pre-scaled
        bo = bs[r + 1:r + 2, 0:D]
        b1 = bs[r + 2:r + 3, 0:FF]
        b2 = bs[r + 3:r + 4, 0:D]
        g1, be1 = bs[r + 4:r + 5, 0:D], bs[r + 5:r + 6, 0:D]
        g2, be2 = bs[r + 6:r + 7, 0:D], bs[r + 7:r + 8, 0:D]

        # joint QKV projection (1/sqrt(HD) folded into Wq/bq), cast to bf16 once
        qkv = (jnp.dot(h.astype(bf16), w_ref[base:base + D, :],
                       preferred_element_type=f32) + bqkv).astype(bf16)

        # per-head attention: rows stay in (seq, pos) order so q/k/v are plain
        # 16-lane column slices; out-projection accumulated head-by-head.
        attn = jnp.zeros((ROWS, D), f32) + bo
        for hh in range(H):
            q_h = qkv[:, hh * HD:(hh + 1) * HD]                          # (ROWS, 16)
            k_h = qkv[:, D + hh * HD:D + (hh + 1) * HD]
            v_h = qkv[:, 2 * D + hh * HD:2 * D + (hh + 1) * HD]
            wo_h = w_ref[base + D + hh * HD:base + D + (hh + 1) * HD,
                         FF:FF + D]                                      # (16, 64)

            s = jnp.einsum('nd,md->nm', q_h, k_h,
                           preferred_element_type=f32)                   # (ROWS, ROWS)
            s = jnp.where(same_seq, s, NEG)
            s = s - jnp.max(s, axis=-1, keepdims=True)
            p = jnp.exp(s)
            p = p * pl.reciprocal(jnp.sum(p, axis=-1, keepdims=True), approx=True)
            ctx = jnp.dot(p.astype(bf16), v_h, preferred_element_type=f32)  # (ROWS, 16)
            attn = attn + jnp.dot(ctx.astype(bf16), wo_h,
                                  preferred_element_type=f32)
        h = _layernorm(h + attn, g1, be1)

        ff = jnp.dot(h.astype(bf16), w_ref[base + D:base + 2 * D, 0:FF],
                     preferred_element_type=f32) + b1
        ff = jnp.maximum(ff, 0.0)
        ff = jnp.dot(ff.astype(bf16), w_ref[base + 2 * D:base + 2 * D + FF, 0:D],
                     preferred_element_type=f32) + b2
        h = _layernorm(h + ff, g2, be2)

    # ---- head: fc1 + ReLU, fc2 -> lane-dense (ROWS, 128) output slab ----
    h = jnp.dot(h.astype(bf16), w_ref[R_FC1:R_FC1 + D, 0:D],
                preferred_element_type=f32) + bs[R_FC1B:R_FC1B + 1, 0:D]
    h = jnp.maximum(h, 0.0)
    o_ref[...] = jnp.dot(h.astype(bf16), w_ref[R_FC2:R_FC2 + D, 0:128],
                         preferred_element_type=f32) + bs[R_FC2B:R_FC2B + 1, 0:128]


def init_params(key):
    """Parameters in PyTorch-native layouts (Linear: (out,in); Conv1d: (out,in,k))."""
    ks = iter(jax.random.split(key, 16))

    def w(shape, s=0.05):
        return (s * jax.random.normal(next(ks), shape)).astype(jnp.float32)

    return dict(
        conv_w=w((D, CIN, 3)), conv_b=w((D,), 0.02),
        bn_g=jnp.ones((D,), jnp.float32), bn_b=jnp.zeros((D,), jnp.float32),
        bn_rm=jnp.zeros((D,), jnp.float32), bn_rv=jnp.ones((D,), jnp.float32),
        in_proj_w=w((NLAYERS, 3 * D, D)), in_proj_b=w((NLAYERS, 3 * D), 0.02),
        out_proj_w=w((NLAYERS, D, D)), out_proj_b=w((NLAYERS, D), 0.02),
        lin1_w=w((NLAYERS, FF, D)), lin1_b=w((NLAYERS, FF), 0.02),
        lin2_w=w((NLAYERS, D, FF)), lin2_b=w((NLAYERS, D), 0.02),
        ln1_g=jnp.ones((NLAYERS, D), jnp.float32), ln1_b=jnp.zeros((NLAYERS, D), jnp.float32),
        ln2_g=jnp.ones((NLAYERS, D), jnp.float32), ln2_b=jnp.zeros((NLAYERS, D), jnp.float32),
        fc1_w=w((D, D)), fc1_b=w((D,), 0.02),
        fc2_w=w((OUT, D)), fc2_b=w((OUT,), 0.02),
    )


def pack_params(p):
    """PyTorch layouts -> one bf16 weight slab + one f32 bias slab (3 input DMAs total)."""
    scale = 1.0 / (HD ** 0.5)

    W = jnp.zeros((WROWS, 3 * D), jnp.float32)
    # conv im2col weight: row = tap*CIN + channel
    conv_im = jnp.transpose(p['conv_w'], (2, 1, 0)).reshape(3 * CIN, D)
    W = W.at[R_CONV:R_CONV + 3 * CIN, 0:D].set(conv_im)
    W = W.at[R_FC1:R_FC1 + D, 0:D].set(p['fc1_w'].T)
    W = W.at[R_FC2:R_FC2 + D, 0:OUT].set(p['fc2_w'].T)        # cols 3:192 stay zero
    for i in range(NLAYERS):
        base = R_LAYER0 + i * LAYER_ROWS
        wqkv = p['in_proj_w'][i].T.at[:, 0:D].multiply(scale)  # fold 1/sqrt(HD) into Wq
        W = W.at[base:base + D, :].set(wqkv)
        W = W.at[base + D:base + 2 * D, 0:FF].set(p['lin1_w'][i].T)
        W = W.at[base + D:base + 2 * D, FF:FF + D].set(p['out_proj_w'][i].T)
        W = W.at[base + 2 * D:base + 2 * D + FF, 0:D].set(p['lin2_w'][i].T)

    bs = jnp.zeros((BIAS_ROWS, 3 * D), jnp.float32)
    bs = bs.at[0, 0:D].set(p['conv_b'])
    bn_scale = p['bn_g'] * jax.lax.rsqrt(p['bn_rv'] + EPS)     # eval-mode BN folded
    bs = bs.at[1, 0:D].set(bn_scale)
    bs = bs.at[2, 0:D].set(p['bn_b'] - p['bn_rm'] * bn_scale)
    for i in range(NLAYERS):
        r = R_LBIAS + 8 * i
        bs = bs.at[r, :].set(p['in_proj_b'][i].at[0:D].multiply(scale))
        bs = bs.at[r + 1, 0:D].set(p['out_proj_b'][i])
        bs = bs.at[r + 2, 0:FF].set(p['lin1_b'][i])
        bs = bs.at[r + 3, 0:D].set(p['lin2_b'][i])
        bs = bs.at[r + 4, 0:D].set(p['ln1_g'][i])
        bs = bs.at[r + 5, 0:D].set(p['ln1_b'][i])
        bs = bs.at[r + 6, 0:D].set(p['ln2_g'][i])
        bs = bs.at[r + 7, 0:D].set(p['ln2_b'][i])
    bs = bs.at[R_FC1B, 0:D].set(p['fc1_b'])
    bs = bs.at[R_FC2B, 0:OUT].set(p['fc2_b'])

    return W.astype(jnp.bfloat16), bs


@jax.jit
def rna3d_forward(x, w_slab, b_slab):
    batch = x.shape[0]
    pad_b = (-batch) % G
    xp = jnp.pad(x, ((0, pad_b), (0, 0), (0, 0)))
    nb = batch + pad_b

    # im2col for the k=3, pad=1 conv (wrapper-side layout plumbing only)
    xz = jnp.pad(xp, ((0, 0), (1, 1), (0, 0)))
    xim = jnp.concatenate([xz[:, t:t + L, :] for t in range(3)], axis=-1)   # (nb, L, 12)
    xim = jnp.pad(xim, ((0, 0), (0, 0), (0, KIM - 3 * CIN)))                # (nb, L, 16)
    xim = xim.reshape(nb * L, KIM)

    out = pl.pallas_call(
        model_kernel,
        out_shape=jax.ShapeDtypeStruct((nb * L, 128), jnp.float32),
        grid=(nb // G,),
        in_specs=[
            pl.BlockSpec((ROWS, KIM), lambda i: (i, 0)),        # streamed input tile
            pl.BlockSpec((WROWS, 3 * D), lambda i: (0, 0)),     # weights: VMEM-resident
            pl.BlockSpec((BIAS_ROWS, 3 * D), lambda i: (0, 0)),
        ],
        out_specs=pl.BlockSpec((ROWS, 128), lambda i: (i, 0)),
        compiler_params=pltpu.CompilerParams(
            dimension_semantics=("parallel",)),                 # v7x: both TensorCores
    )(xim, w_slab, b_slab)

    # lane-dense (nb*L, 128) slab -> (batch, L, 3)
    return out[:batch * L, :OUT].reshape(batch, L, OUT)


if __name__ == "__main__":
    key = jax.random.PRNGKey(0)
    kx, kp = jax.random.split(key)

    BATCH = 16   # 16 sequences of length 16 -> 2 grid steps of G=8 sequences each
    x = jax.random.normal(kx, (BATCH, L, CIN), dtype=jnp.float32)
    w_slab, b_slab = pack_params(init_params(kp))

    out = rna3d_forward(x, w_slab, b_slab)
    out = jax.block_until_ready(out)

    assert out.shape == (BATCH, L, OUT), out.shape
    assert bool(jnp.all(jnp.isfinite(out)))
    print("KERNEL_OK")
</pallas_src>

<mosaic_0001>
module attributes {stable_mosaic.version = 11 : i64} {
  func.func @model_kernel(%arg0: i32, %arg1: memref<128x16xf32, #tpu.memory_space<vmem>>, %arg2: memref<656x192xbf16, #tpu.memory_space<vmem>>, %arg3: memref<24x192xf32, #tpu.memory_space<vmem>>, %arg4: memref<128x128xf32, #tpu.memory_space<vmem>>) attributes {dimension_semantics = [#tpu.dimension_semantics<parallel>], iteration_bounds = array<i64: 2>, scalar_prefetch = 0 : i64, scratch_operands = 0 : i64, tpu.core_type = #tpu.core_type<tc>, window_params = [{transform_indices = @transform_0, window_bounds = array<i64: 128, 16>}, {pipeline_mode = #tpu.pipeline_mode<synchronous>, transform_indices = @transform_1, window_bounds = array<i64: 656, 192>}, {pipeline_mode = #tpu.pipeline_mode<synchronous>, transform_indices = @transform_2, window_bounds = array<i64: 24, 192>}, {transform_indices = @transform_3, window_bounds = array<i64: 128, 128>}]} {
    %c0 = arith.constant 0 : index
    %c0_0 = arith.constant 0 : index
    %0 = vector.load %arg3[%c0, %c0_0] : memref<24x192xf32, #tpu.memory_space<vmem>>, vector<24x192xf32>
    %c0_1 = arith.constant 0 : index
    %c0_2 = arith.constant 0 : index
    %1 = vector.load %arg1[%c0_1, %c0_2] : memref<128x16xf32, #tpu.memory_space<vmem>>, vector<128x16xf32>
    %2 = arith.truncf %1 : vector<128x16xf32> to vector<128x16xbf16>
    %c0_3 = arith.constant 0 : index
    %c0_4 = arith.constant 0 : index
    %3 = vector.load %arg2[%c0_3, %c0_4] : memref<656x192xbf16, #tpu.memory_space<vmem>>, vector<16x64xbf16>
    %cst = arith.constant dense<0.000000e+00> : vector<128x64xf32>
    %4 = tpu.matmul %2, %3, %cst {dimension_numbers = #tpu.dot_dimension_numbers<[1], [0], [0], [1], [0, 0, 1, 1], [], []>} : vector<128x16xbf16>, vector<16x64xbf16>, vector<128x64xf32> -> vector<128x64xf32>
    %5 = vector.extract_strided_slice %0 {offsets = [0, 0], sizes = [1, 64], strides = [1, 1]} : vector<24x192xf32> to vector<1x64xf32>
    %6 = vector.broadcast %5 : vector<1x64xf32> to vector<128x64xf32>
    %7 = arith.addf %4, %6 : vector<128x64xf32>
    %cst_5 = arith.constant 0.000000e+00 : f32
    %8 = vector.broadcast %cst_5 : f32 to vector<128x64xf32>
    %9 = arith.maximumf %7, %8 : vector<128x64xf32>
    %10 = vector.extract_strided_slice %0 {offsets = [1, 0], sizes = [1, 64], strides = [1, 1]} : vector<24x192xf32> to vector<1x64xf32>
    %11 = vector.broadcast %10 : vector<1x64xf32> to vector<128x64xf32>
    %12 = arith.mulf %9, %11 : vector<128x64xf32>
    %13 = vector.extract_strided_slice %0 {offsets = [2, 0], sizes = [1, 64], strides = [1, 1]} : vector<24x192xf32> to vector<1x64xf32>
    %14 = vector.broadcast %13 : vector<1x64xf32> to vector<128x64xf32>
    %15 = arith.addf %12, %14 : vector<128x64xf32>
    %16 = tpu.iota {dimensions = array<i32: 0>} : vector<128x128xi32>
    %17 = tpu.iota {dimensions = array<i32: 1>} : vector<128x128xi32>
    %18 = arith.xori %16, %17 : vector<128x128xi32>
    %c16_i32 = arith.constant 16 : i32
    %19 = vector.broadcast %c16_i32 : i32 to vector<128x128xi32>
    %20 = arith.cmpi slt, %18, %19 : vector<128x128xi32>
    %21 = vector.extract_strided_slice %0 {offsets = [3, 0], sizes = [1, 192], strides = [1, 1]} : vector<24x192xf32> to vector<1x192xf32>
    %22 = vector.extract_strided_slice %0 {offsets = [4, 0], sizes = [1, 64], strides = [1, 1]} : vector<24x192xf32> to vector<1x64xf32>
    %23 = vector.extract_strided_slice %0 {offsets = [5, 0], sizes = [1, 128], strides = [1, 1]} : vector<24x192xf32> to vector<1x128xf32>
    %24 = vector.extract_strided_slice %0 {offsets = [6, 0], sizes = [1, 64], strides = [1, 1]} : vector<24x192xf32> to vector<1x64xf32>
    %25 = vector.extract_strided_slice %0 {offsets = [7, 0], sizes = [1, 64], strides = [1, 1]} : vector<24x192xf32> to vector<1x64xf32>
    %26 = vector.extract_strided_slice %0 {offsets = [8, 0], sizes = [1, 64], strides = [1, 1]} : vector<24x192xf32> to vector<1x64xf32>
    %27 = vector.extract_strided_slice %0 {offsets = [9, 0], sizes = [1, 64], strides = [1, 1]} : vector<24x192xf32> to vector<1x64xf32>
    %28 = vector.extract_strided_slice %0 {offsets = [10, 0], sizes = [1, 64], strides = [1, 1]} : vector<24x192xf32> to vector<1x64xf32>
    %29 = arith.truncf %15 : vector<128x64xf32> to vector<128x64xbf16>
    %c144 = arith.constant 144 : index
    %c0_6 = arith.constant 0 : index
    %30 = vector.load %arg2[%c144, %c0_6] : memref<656x192xbf16, #tpu.memory_space<vmem>>, vector<64x192xbf16>
    %cst_7 = arith.constant dense<0.000000e+00> : vector<128x192xf32>
    %31 = tpu.matmul %29, %30, %cst_7 {dimension_numbers = #tpu.dot_dimension_numbers<[1], [0], [0], [1], [0, 0, 1, 1], [], []>} : vector<128x64xbf16>, vector<64x192xbf16>, vector<128x192xf32> -> vector<128x192xf32>
    %32 = vector.broadcast %21 : vector<1x192xf32> to vector<128x192xf32>
    %33 = arith.addf %31, %32 : vector<128x192xf32>
    %34 = arith.truncf %33 : vector<128x192xf32> to vector<128x192xbf16>
    %cst_8 = arith.constant 0.000000e+00 : f32
    %35 = vector.broadcast %cst_8 : f32 to vector<128x64xf32>
    %36 = vector.broadcast %22 : vector<1x64xf32> to vector<128x64xf32>
    %37 = arith.addf %35, %36 : vector<128x64xf32>
    %38 = vector.extract_strided_slice %34 {offsets = [0, 0], sizes = [128, 16], strides = [1, 1]} : vector<128x192xbf16> to vector<128x16xbf16>
    %39 = vector.extract_strided_slice %34 {offsets = [0, 64], sizes = [128, 16], strides = [1, 1]} : vector<128x192xbf16> to vector<128x16xbf16>
    %40 = vector.extract_strided_slice %34 {offsets = [0, 128], sizes = [128, 16], strides = [1, 1]} : vector<128x192xbf16> to vector<128x16xbf16>
    %c208 = arith.constant 208 : index
    %c128 = arith.constant 128 : index
    %41 = vector.load %arg2[%c208, %c128] : memref<656x192xbf16, #tpu.memory_space<vmem>>, vector<16x64xbf16>
    "tpu.trace_start"() <{level = 10 : i32, message = "nd,md->nm"}> : () -> ()
    %cst_9 = arith.constant dense<0.000000e+00> : vector<128x128xf32>
    %42 = tpu.matmul %38, %39, %cst_9 {dimension_numbers = #tpu.dot_dimension_numbers<[1], [1], [0], [0], [0, 0, 1, 0], [], []>} : vector<128x16xbf16>, vector<128x16xbf16>, vector<128x128xf32> -> vector<128x128xf32>
    %cst_10 = arith.constant -1.000000e+30 : f32
    "tpu.trace_stop"() : () -> ()
    %43 = vector.broadcast %cst_10 : f32 to vector<128x128xf32>
    %44 = arith.select %20, %42, %43 : vector<128x128xi1>, vector<128x128xf32>
    %cst_11 = arith.constant dense<0xFF800000> : vector<128xf32>
    %45 = vector.multi_reduction <maximumf>, %44, %cst_11 [1] : vector<128x128xf32> to vector<128xf32>
    %46 = vector.shape_cast %45 : vector<128xf32> to vector<128x1xf32>
    %47 = vector.broadcast %46 : vector<128x1xf32> to vector<128x128xf32>
    %48 = arith.subf %44, %47 : vector<128x128xf32>
    %49 = math.exp %48 : vector<128x128xf32>
    %cst_12 = arith.constant dense<0.000000e+00> : vector<128xf32>
    %50 = vector.multi_reduction <add>, %49, %cst_12 [1] : vector<128x128xf32> to vector<128xf32>
    %51 = vector.shape_cast %50 : vector<128xf32> to vector<128x1xf32>
    %52 = tpu.reciprocal %51 {approx = true} : vector<128x1xf32> -> vector<128x1xf32>
    %53 = vector.broadcast %52 : vector<128x1xf32> to vector<128x128xf32>
    %54 = arith.mulf %49, %53 : vector<128x128xf32>
    %55 = arith.truncf %54 : vector<128x128xf32> to vector<128x128xbf16>
    %cst_13 = arith.constant dense<0.000000e+00> : vector<128x16xf32>
    %56 = tpu.matmul %55, %40, %cst_13 {dimension_numbers = #tpu.dot_dimension_numbers<[1], [0], [0], [1], [0, 0, 1, 1], [], []>} : vector<128x128xbf16>, vector<128x16xbf16>, vector<128x16xf32> -> vector<128x16xf32>
    %57 = arith.truncf %56 : vector<128x16xf32> to vector<128x16xbf16>
    %cst_14 = arith.constant dense<0.000000e+00> : vector<128x64xf32>
    %58 = tpu.matmul %57, %41, %cst_14 {dimension_numbers = #tpu.dot_dimension_numbers<[1], [0], [0], [1], [0, 0, 1, 1], [], []>} : vector<128x16xbf16>, vector<16x64xbf16>, vector<128x64xf32> -> vector<128x64xf32>
    %59 = arith.addf %37, %58 : vector<128x64xf32>
    %60 = vector.extract_strided_slice %34 {offsets = [0, 16], sizes = [128, 16], strides = [1, 1]} : vector<128x192xbf16> to vector<128x16xbf16>
    %61 = vector.extract_strided_slice %34 {offsets = [0, 80], sizes = [128, 16], strides = [1, 1]} : vector<128x192xbf16> to vector<128x16xbf16>
    %62 = vector.extract_strided_slice %34 {offsets = [0, 144], sizes = [128, 16], strides = [1, 1]} : vector<128x192xbf16> to vector<128x16xbf16>
    %c224 = arith.constant 224 : index
    %c128_15 = arith.constant 128 : index
    %63 = vector.load %arg2[%c224, %c128_15] : memref<656x192xbf16, #tpu.memory_space<vmem>>, vector<16x64xbf16>
    "tpu.trace_start"() <{level = 10 : i32, message = "nd,md->nm"}> : () -> ()
    %cst_16 = arith.constant dense<0.000000e+00> : vector<128x128xf32>
    %64 = tpu.matmul %60, %61, %cst_16 {dimension_numbers = #tpu.dot_dimension_numbers<[1], [1], [0], [0], [0, 0, 1, 0], [], []>} : vector<128x16xbf16>, vector<128x16xbf16>, vector<128x128xf32> -> vector<128x128xf32>
    %cst_17 = arith.constant -1.000000e+30 : f32
    "tpu.trace_stop"() : () -> ()
    %65 = vector.broadcast %cst_17 : f32 to vector<128x128xf32>
    %66 = arith.select %20, %64, %65 : vector<128x128xi1>, vector<128x128xf32>
    %cst_18 = arith.constant dense<0xFF800000> : vector<128xf32>
    %67 = vector.multi_reduction <maximumf>, %66, %cst_18 [1] : vector<128x128xf32> to vector<128xf32>
    %68 = vector.shape_cast %67 : vector<128xf32> to vector<128x1xf32>
    %69 = vector.broadcast %68 : vector<128x1xf32> to vector<128x128xf32>
    %70 = arith.subf %66, %69 : vector<128x128xf32>
    %71 = math.exp %70 : vector<128x128xf32>
    %cst_19 = arith.constant dense<0.000000e+00> : vector<128xf32>
    %72 = vector.multi_reduction <add>, %71, %cst_19 [1] : vector<128x128xf32> to vector<128xf32>
    %73 = vector.shape_cast %72 : vector<128xf32> to vector<128x1xf32>
    %74 = tpu.reciprocal %73 {approx = true} : vector<128x1xf32> -> vector<128x1xf32>
    %75 = vector.broadcast %74 : vector<128x1xf32> to vector<128x128xf32>
    %76 = arith.mulf %71, %75 : vector<128x128xf32>
    %77 = arith.truncf %76 : vector<128x128xf32> to vector<128x128xbf16>
    %cst_20 = arith.constant dense<0.000000e+00> : vector<128x16xf32>
    %78 = tpu.matmul %77, %62, %cst_20 {dimension_numbers = #tpu.dot_dimension_numbers<[1], [0], [0], [1], [0, 0, 1, 1], [], []>} : vector<128x128xbf16>, vector<128x16xbf16>, vector<128x16xf32> -> vector<128x16xf32>
    %79 = arith.truncf %78 : vector<128x16xf32> to vector<128x16xbf16>
    %cst_21 = arith.constant dense<0.000000e+00> : vector<128x64xf32>
    %80 = tpu.matmul %79, %63, %cst_21 {dimension_numbers = #tpu.dot_dimension_numbers<[1], [0], [0], [1], [0, 0, 1, 1], [], []>} : vector<128x16xbf16>, vector<16x64xbf16>, vector<128x64xf32> -> vector<128x64xf32>
    %81 = arith.addf %59, %80 : vector<128x64xf32>
    %82 = vector.extract_strided_slice %34 {offsets = [0, 32], sizes = [128, 16], strides = [1, 1]} : vector<128x192xbf16> to vector<128x16xbf16>
    %83 = vector.extract_strided_slice %34 {offsets = [0, 96], sizes = [128, 16], strides = [1, 1]} : vector<128x192xbf16> to vector<128x16xbf16>
    %84 = vector.extract_strided_slice %34 {offsets = [0, 160], sizes = [128, 16], strides = [1, 1]} : vector<128x192xbf16> to vector<128x16xbf16>
    %c240 = arith.constant 240 : index
    %c128_22 = arith.constant 128 : index
    %85 = vector.load %arg2[%c240, %c128_22] : memref<656x192xbf16, #tpu.memory_space<vmem>>, vector<16x64xbf16>
    "tpu.trace_start"() <{level = 10 : i32, message = "nd,md->nm"}> : () -> ()
    %cst_23 = arith.constant dense<0.000000e+00> : vector<128x128xf32>
    %86 = tpu.matmul %82, %83, %cst_23 {dimension_numbers = #tpu.dot_dimension_numbers<[1], [1], [0], [0], [0, 0, 1, 0], [], []>} : vector<128x16xbf16>, vector<128x16xbf16>, vector<128x128xf32> -> vector<128x128xf32>
    %cst_24 = arith.constant -1.000000e+30 : f32
    "tpu.trace_stop"() : () -> ()
    %87 = vector.broadcast %cst_24 : f32 to vector<128x128xf32>
    %88 = arith.select %20, %86, %87 : vector<128x128xi1>, vector<128x128xf32>
    %cst_25 = arith.constant dense<0xFF800000> : vector<128xf32>
    %89 = vector.multi_reduction <maximumf>, %88, %cst_25 [1] : vector<128x128xf32> to vector<128xf32>
    %90 = vector.shape_cast %89 : vector<128xf32> to vector<128x1xf32>
    %91 = vector.broadcast %90 : vector<128x1xf32> to vector<128x128xf32>
    %92 = arith.subf %88, %91 : vector<128x128xf32>
    %93 = math.exp %92 : vector<128x128xf32>
    %cst_26 = arith.constant dense<0.000000e+00> : vector<128xf32>
    %94 = vector.multi_reduction <add>, %93, %cst_26 [1] : vector<128x128xf32> to vector<128xf32>
    %95 = vector.shape_cast %94 : vector<128xf32> to vector<128x1xf32>
    %96 = tpu.reciprocal %95 {approx = true} : vector<128x1xf32> -> vector<128x1xf32>
    %97 = vector.broadcast %96 : vector<128x1xf32> to vector<128x128xf32>
    %98 = arith.mulf %93, %97 : vector<128x128xf32>
    %99 = arith.truncf %98 : vector<128x128xf32> to vector<128x128xbf16>
    %cst_27 = arith.constant dense<0.000000e+00> : vector<128x16xf32>
    %100 = tpu.matmul %99, %84, %cst_27 {dimension_numbers = #tpu.dot_dimension_numbers<[1], [0], [0], [1], [0, 0, 1, 1], [], []>} : vector<128x128xbf16>, vector<128x16xbf16>, vector<128x16xf32> -> vector<128x16xf32>
    %101 = arith.truncf %100 : vector<128x16xf32> to vector<128x16xbf16>
    %cst_28 = arith.constant dense<0.000000e+00> : vector<128x64xf32>
    %102 = tpu.matmul %101, %85, %cst_28 {dimension_numbers = #tpu.dot_dimension_numbers<[1], [0], [0], [1], [0, 0, 1, 1], [], []>} : vector<128x16xbf16>, vector<16x64xbf16>, vector<128x64xf32> -> vector<128x64xf32>
    %103 = arith.addf %81, %102 : vector<128x64xf32>
    %104 = vector.extract_strided_slice %34 {offsets = [0, 48], sizes = [128, 16], strides = [1, 1]} : vector<128x192xbf16> to vector<128x16xbf16>
    %105 = vector.extract_strided_slice %34 {offsets = [0, 112], sizes = [128, 16], strides = [1, 1]} : vector<128x192xbf16> to vector<128x16xbf16>
    %106 = vector.extract_strided_slice %34 {offsets = [0, 176], sizes = [128, 16], strides = [1, 1]} : vector<128x192xbf16> to vector<128x16xbf16>
    %c256 = arith.constant 256 : index
    %c128_29 = arith.constant 128 : index
    %107 = vector.load %arg2[%c256, %c128_29] : memref<656x192xbf16, #tpu.memory_space<vmem>>, vector<16x64xbf16>
    "tpu.trace_start"() <{level = 10 : i32, message = "nd,md->nm"}> : () -> ()
    %cst_30 = arith.constant dense<0.000000e+00> : vector<128x128xf32>
    %108 = tpu.matmul %104, %105, %cst_30 {dimension_numbers = #tpu.dot_dimension_numbers<[1], [1], [0], [0], [0, 0, 1, 0], [], []>} : vector<128x16xbf16>, vector<128x16xbf16>, vector<128x128xf32> -> vector<128x128xf32>
    %cst_31 = arith.constant -1.000000e+30 : f32
    "tpu.trace_stop"() : () -> ()
    %109 = vector.broadcast %cst_31 : f32 to vector<128x128xf32>
    %110 = arith.select %20, %108, %109 : vector<128x128xi1>, vector<128x128xf32>
    %cst_32 = arith.constant dense<0xFF800000> : vector<128xf32>
    %111 = vector.multi_reduction <maximumf>, %110, %cst_32 [1] : vector<128x128xf32> to vector<128xf32>
    %112 = vector.shape_cast %111 : vector<128xf32> to vector<128x1xf32>
    %113 = vector.broadcast %112 : vector<128x1xf32> to vector<128x128xf32>
    %114 = arith.subf %110, %113 : vector<128x128xf32>
    %115 = math.exp %114 : vector<128x128xf32>
    %cst_33 = arith.constant dense<0.000000e+00> : vector<128xf32>
    %116 = vector.multi_reduction <add>, %115, %cst_33 [1] : vector<128x128xf32> to vector<128xf32>
    %117 = vector.shape_cast %116 : vector<128xf32> to vector<128x1xf32>
    %118 = tpu.reciprocal %117 {approx = true} : vector<128x1xf32> -> vector<128x1xf32>
    %119 = vector.broadcast %118 : vector<128x1xf32> to vector<128x128xf32>
    %120 = arith.mulf %115, %119 : vector<128x128xf32>
    %121 = arith.truncf %120 : vector<128x128xf32> to vector<128x128xbf16>
    %cst_34 = arith.constant dense<0.000000e+00> : vector<128x16xf32>
    %122 = tpu.matmul %121, %106, %cst_34 {dimension_numbers = #tpu.dot_dimension_numbers<[1], [0], [0], [1], [0, 0, 1, 1], [], []>} : vector<128x128xbf16>, vector<128x16xbf16>, vector<128x16xf32> -> vector<128x16xf32>
    %123 = arith.truncf %122 : vector<128x16xf32> to vector<128x16xbf16>
    %cst_35 = arith.constant dense<0.000000e+00> : vector<128x64xf32>
    %124 = tpu.matmul %123, %107, %cst_35 {dimension_numbers = #tpu.dot_dimension_numbers<[1], [0], [0], [1], [0, 0, 1, 1], [], []>} : vector<128x16xbf16>, vector<16x64xbf16>, vector<128x64xf32> -> vector<128x64xf32>
    %125 = arith.addf %103, %124 : vector<128x64xf32>
    %126 = arith.addf %15, %125 : vector<128x64xf32>
    %cst_36 = arith.constant dense<0.000000e+00> : vector<128xf32>
    %127 = vector.multi_reduction <add>, %126, %cst_36 [1] : vector<128x64xf32> to vector<128xf32>
    %128 = vector.shape_cast %127 : vector<128xf32> to vector<128x1xf32>
    %cst_37 = arith.constant 6.400000e+01 : f32
    %129 = vector.broadcast %cst_37 : f32 to vector<128x1xf32>
    %130 = arith.divf %128, %129 : vector<128x1xf32>
    %131 = vector.broadcast %130 : vector<128x1xf32> to vector<128x64xf32>
    %132 = arith.subf %126, %131 : vector<128x64xf32>
    %133 = arith.mulf %132, %132 : vector<128x64xf32>
    %cst_38 = arith.constant dense<0.000000e+00> : vector<128xf32>
    %134 = vector.multi_reduction <add>, %133, %cst_38 [1] : vector<128x64xf32> to vector<128xf32>
    %135 = vector.shape_cast %134 : vector<128xf32> to vector<128x1xf32>
    %cst_39 = arith.constant 6.400000e+01 : f32
    %136 = vector.broadcast %cst_39 : f32 to vector<128x1xf32>
    %137 = arith.divf %135, %136 : vector<128x1xf32>
    %138 = vector.broadcast %130 : vector<128x1xf32> to vector<128x64xf32>
    %139 = arith.subf %126, %138 : vector<128x64xf32>
    %cst_40 = arith.constant 9.99999974E-6 : f32
    %140 = vector.broadcast %cst_40 : f32 to vector<128x1xf32>
    %141 = arith.addf %137, %140 : vector<128x1xf32>
    %142 = math.rsqrt %141 : vector<128x1xf32>
    %143 = vector.broadcast %142 : vector<128x1xf32> to vector<128x64xf32>
    %144 = arith.mulf %139, %143 : vector<128x64xf32>
    %145 = vector.broadcast %25 : vector<1x64xf32> to vector<128x64xf32>
    %146 = arith.mulf %144, %145 : vector<128x64xf32>
    %147 = vector.broadcast %26 : vector<1x64xf32> to vector<128x64xf32>
    %148 = arith.addf %146, %147 : vector<128x64xf32>
    %149 = arith.truncf %148 : vector<128x64xf32> to vector<128x64xbf16>
    %c208_41 = arith.constant 208 : index
    %c0_42 = arith.constant 0 : index
    %150 = vector.load %arg2[%c208_41, %c0_42] : memref<656x192xbf16, #tpu.memory_space<vmem>>, vector<64x128xbf16>
    %cst_43 = arith.constant dense<0.000000e+00> : vector<128x128xf32>
    %151 = tpu.matmul %149, %150, %cst_43 {dimension_numbers = #tpu.dot_dimension_numbers<[1], [0], [0], [1], [0, 0, 1, 1], [], []>} : vector<128x64xbf16>, vector<64x128xbf16>, vector<128x128xf32> -> vector<128x128xf32>
    %152 = vector.broadcast %23 : vector<1x128xf32> to vector<128x128xf32>
    %153 = arith.addf %151, %152 : vector<128x128xf32>
    %cst_44 = arith.constant 0.000000e+00 : f32
    %154 = vector.broadcast %cst_44 : f32 to vector<128x128xf32>
    %155 = arith.maximumf %153, %154 : vector<128x128xf32>
    %156 = arith.truncf %155 : vector<128x128xf32> to vector<128x128xbf16>
    %c272 = arith.constant 272 : index
    %c0_45 = arith.constant 0 : index
    %157 = vector.load %arg2[%c272, %c0_45] : memref<656x192xbf16, #tpu.memory_space<vmem>>, vector<128x64xbf16>
    %cst_46 = arith.constant dense<0.000000e+00> : vector<128x64xf32>
    %158 = tpu.matmul %156, %157, %cst_46 {dimension_numbers = #tpu.dot_dimension_numbers<[1], [0], [0], [1], [0, 0, 1, 1], [], []>} : vector<128x128xbf16>, vector<128x64xbf16>, vector<128x64xf32> -> vector<128x64xf32>
    %159 = vector.broadcast %24 : vector<1x64xf32> to vector<128x64xf32>
    %160 = arith.addf %158, %159 : vector<128x64xf32>
    %161 = arith.addf %148, %160 : vector<128x64xf32>
    %cst_47 = arith.constant dense<0.000000e+00> : vector<128xf32>
    %162 = vector.multi_reduction <add>, %161, %cst_47 [1] : vector<128x64xf32> to vector<128xf32>
    %163 = vector.shape_cast %162 : vector<128xf32> to vector<128x1xf32>
    %cst_48 = arith.constant 6.400000e+01 : f32
    %164 = vector.broadcast %cst_48 : f32 to vector<128x1xf32>
    %165 = arith.divf %163, %164 : vector<128x1xf32>
    %166 = vector.broadcast %165 : vector<128x1xf32> to vector<128x64xf32>
    %167 = arith.subf %161, %166 : vector<128x64xf32>
    %168 = arith.mulf %167, %167 : vector<128x64xf32>
    %cst_49 = arith.constant dense<0.000000e+00> : vector<128xf32>
    %169 = vector.multi_reduction <add>, %168, %cst_49 [1] : vector<128x64xf32> to vector<128xf32>
    %170 = vector.shape_cast %169 : vector<128xf32> to vector<128x1xf32>
    %cst_50 = arith.constant 6.400000e+01 : f32
    %171 = vector.broadcast %cst_50 : f32 to vector<128x1xf32>
    %172 = arith.divf %170, %171 : vector<128x1xf32>
    %173 = vector.broadcast %165 : vector<128x1xf32> to vector<128x64xf32>
    %174 = arith.subf %161, %173 : vector<128x64xf32>
    %cst_51 = arith.constant 9.99999974E-6 : f32
    %175 = vector.broadcast %cst_51 : f32 to vector<128x1xf32>
    %176 = arith.addf %172, %175 : vector<128x1xf32>
    %177 = math.rsqrt %176 : vector<128x1xf32>
    %178 = vector.broadcast %177 : vector<128x1xf32> to vector<128x64xf32>
    %179 = arith.mulf %174, %178 : vector<128x64xf32>
    %180 = vector.broadcast %27 : vector<1x64xf32> to vector<128x64xf32>
    %181 = arith.mulf %179, %180 : vector<128x64xf32>
    %182 = vector.broadcast %28 : vector<1x64xf32> to vector<128x64xf32>
    %183 = arith.addf %181, %182 : vector<128x64xf32>
    %184 = vector.extract_strided_slice %0 {offsets = [11, 0], sizes = [1, 192], strides = [1, 1]} : vector<24x192xf32> to vector<1x192xf32>
    %185 = vector.extract_strided_slice %0 {offsets = [12, 0], sizes = [1, 64], strides = [1, 1]} : vector<24x192xf32> to vector<1x64xf32>
    %186 = vector.extract_strided_slice %0 {offsets = [13, 0], sizes = [1, 128], strides = [1, 1]} : vector<24x192xf32> to vector<1x128xf32>
    %187 = vector.extract_strided_slice %0 {offsets = [14, 0], sizes = [1, 64], strides = [1, 1]} : vector<24x192xf32> to vector<1x64xf32>
    %188 = vector.extract_strided_slice %0 {offsets = [15, 0], sizes = [1, 64], strides = [1, 1]} : vector<24x192xf32> to vector<1x64xf32>
    %189 = vector.extract_strided_slice %0 {offsets = [16, 0], sizes = [1, 64], strides = [1, 1]} : vector<24x192xf32> to vector<1x64xf32>
    %190 = vector.extract_strided_slice %0 {offsets = [17, 0], sizes = [1, 64], strides = [1, 1]} : vector<24x192xf32> to vector<1x64xf32>
    %191 = vector.extract_strided_slice %0 {offsets = [18, 0], sizes = [1, 64], strides = [1, 1]} : vector<24x192xf32> to vector<1x64xf32>
    %192 = arith.truncf %183 : vector<128x64xf32> to vector<128x64xbf16>
    %c400 = arith.constant 400 : index
    %c0_52 = arith.constant 0 : index
    %193 = vector.load %arg2[%c400, %c0_52] : memref<656x192xbf16, #tpu.memory_space<vmem>>, vector<64x192xbf16>
    %cst_53 = arith.constant dense<0.000000e+00> : vector<128x192xf32>
    %194 = tpu.matmul %192, %193, %cst_53 {dimension_numbers = #tpu.dot_dimension_numbers<[1], [0], [0], [1], [0, 0, 1, 1], [], []>} : vector<128x64xbf16>, vector<64x192xbf16>, vector<128x192xf32> -> vector<128x192xf32>
    %195 = vector.broadcast %184 : vector<1x192xf32> to vector<128x192xf32>
    %196 = arith.addf %194, %195 : vector<128x192xf32>
    %197 = arith.truncf %196 : vector<128x192xf32> to vector<128x192xbf16>
    %cst_54 = arith.constant 0.000000e+00 : f32
    %198 = vector.broadcast %cst_54 : f32 to vector<128x64xf32>
    %199 = vector.broadcast %185 : vector<1x64xf32> to vector<128x64xf32>
    %200 = arith.addf %198, %199 : vector<128x64xf32>
    %201 = vector.extract_strided_slice %197 {offsets = [0, 0], sizes = [128, 16], strides = [1, 1]} : vector<128x192xbf16> to vector<128x16xbf16>
    %202 = vector.extract_strided_slice %197 {offsets = [0, 64], sizes = [128, 16], strides = [1, 1]} : vector<128x192xbf16> to vector<128x16xbf16>
    %203 = vector.extract_strided_slice %197 {offsets = [0, 128], sizes = [128, 16], strides = [1, 1]} : vector<128x192xbf16> to vector<128x16xbf16>
    %c464 = arith.constant 464 : index
    %c128_55 = arith.constant 128 : index
    %204 = vector.load %arg2[%c464, %c128_55] : memref<656x192xbf16, #tpu.memory_space<vmem>>, vector<16x64xbf16>
    "tpu.trace_start"() <{level = 10 : i32, message = "nd,md->nm"}> : () -> ()
    %cst_56 = arith.constant dense<0.000000e+00> : vector<128x128xf32>
    %205 = tpu.matmul %201, %202, %cst_56 {dimension_numbers = #tpu.dot_dimension_numbers<[1], [1], [0], [0], [0, 0, 1, 0], [], []>} : vector<128x16xbf16>, vector<128x16xbf16>, vector<128x128xf32> -> vector<128x128xf32>
    %cst_57 = arith.constant -1.000000e+30 : f32
    "tpu.trace_stop"() : () -> ()
    %206 = vector.broadcast %cst_57 : f32 to vector<128x128xf32>
    %207 = arith.select %20, %205, %206 : vector<128x128xi1>, vector<128x128xf32>
    %cst_58 = arith.constant dense<0xFF800000> : vector<128xf32>
    %208 = vector.multi_reduction <maximumf>, %207, %cst_58 [1] : vector<128x128xf32> to vector<128xf32>
    %209 = vector.shape_cast %208 : vector<128xf32> to vector<128x1xf32>
    %210 = vector.broadcast %209 : vector<128x1xf32> to vector<128x128xf32>
    %211 = arith.subf %207, %210 : vector<128x128xf32>
    %212 = math.exp %211 : vector<128x128xf32>
    %cst_59 = arith.constant dense<0.000000e+00> : vector<128xf32>
    %213 = vector.multi_reduction <add>, %212, %cst_59 [1] : vector<128x128xf32> to vector<128xf32>
    %214 = vector.shape_cast %213 : vector<128xf32> to vector<128x1xf32>
    %215 = tpu.reciprocal %214 {approx = true} : vector<128x1xf32> -> vector<128x1xf32>
    %216 = vector.broadcast %215 : vector<128x1xf32> to vector<128x128xf32>
    %217 = arith.mulf %212, %216 : vector<128x128xf32>
    %218 = arith.truncf %217 : vector<128x128xf32> to vector<128x128xbf16>
    %cst_60 = arith.constant dense<0.000000e+00> : vector<128x16xf32>
    %219 = tpu.matmul %218, %203, %cst_60 {dimension_numbers = #tpu.dot_dimension_numbers<[1], [0], [0], [1], [0, 0, 1, 1], [], []>} : vector<128x128xbf16>, vector<128x16xbf16>, vector<128x16xf32> -> vector<128x16xf32>
    %220 = arith.truncf %219 : vector<128x16xf32> to vector<128x16xbf16>
    %cst_61 = arith.constant dense<0.000000e+00> : vector<128x64xf32>
    %221 = tpu.matmul %220, %204, %cst_61 {dimension_numbers = #tpu.dot_dimension_numbers<[1], [0], [0], [1], [0, 0, 1, 1], [], []>} : vector<128x16xbf16>, vector<16x64xbf16>, vector<128x64xf32> -> vector<128x64xf32>
    %222 = arith.addf %200, %221 : vector<128x64xf32>
    %223 = vector.extract_strided_slice %197 {offsets = [0, 16], sizes = [128, 16], strides = [1, 1]} : vector<128x192xbf16> to vector<128x16xbf16>
    %224 = vector.extract_strided_slice %197 {offsets = [0, 80], sizes = [128, 16], strides = [1, 1]} : vector<128x192xbf16> to vector<128x16xbf16>
    %225 = vector.extract_strided_slice %197 {offsets = [0, 144], sizes = [128, 16], strides = [1, 1]} : vector<128x192xbf16> to vector<128x16xbf16>
    %c480 = arith.constant 480 : index
    %c128_62 = arith.constant 128 : index
    %226 = vector.load %arg2[%c480, %c128_62] : memref<656x192xbf16, #tpu.memory_space<vmem>>, vector<16x64xbf16>
    "tpu.trace_start"() <{level = 10 : i32, message = "nd,md->nm"}> : () -> ()
    %cst_63 = arith.constant dense<0.000000e+00> : vector<128x128xf32>
    %227 = tpu.matmul %223, %224, %cst_63 {dimension_numbers = #tpu.dot_dimension_numbers<[1], [1], [0], [0], [0, 0, 1, 0], [], []>} : vector<128x16xbf16>, vector<128x16xbf16>, vector<128x128xf32> -> vector<128x128xf32>
    %cst_64 = arith.constant -1.000000e+30 : f32
    "tpu.trace_stop"() : () -> ()
    %228 = vector.broadcast %cst_64 : f32 to vector<128x128xf32>
    %229 = arith.select %20, %227, %228 : vector<128x128xi1>, vector<128x128xf32>
    %cst_65 = arith.constant dense<0xFF800000> : vector<128xf32>
    %230 = vector.multi_reduction <maximumf>, %229, %cst_65 [1] : vector<128x128xf32> to vector<128xf32>
    %231 = vector.shape_cast %230 : vector<128xf32> to vector<128x1xf32>
    %232 = vector.broadcast %231 : vector<128x1xf32> to vector<128x128xf32>
    %233 = arith.subf %229, %232 : vector<128x128xf32>
    %234 = math.exp %233 : vector<128x128xf32>
    %cst_66 = arith.constant dense<0.000000e+00> : vector<128xf32>
    %235 = vector.multi_reduction <add>, %234, %cst_66 [1] : vector<128x128xf32> to vector<128xf32>
    %236 = vector.shape_cast %235 : vector<128xf32> to vector<128x1xf32>
    %237 = tpu.reciprocal %236 {approx = true} : vector<128x1xf32> -> vector<128x1xf32>
    %238 = vector.broadcast %237 : vector<128x1xf32> to vector<128x128xf32>
    %239 = arith.mulf %234, %238 : vector<128x128xf32>
    %240 = arith.truncf %239 : vector<128x128xf32> to vector<128x128xbf16>
    %cst_67 = arith.constant dense<0.000000e+00> : vector<128x16xf32>
    %241 = tpu.matmul %240, %225, %cst_67 {dimension_numbers = #tpu.dot_dimension_numbers<[1], [0], [0], [1], [0, 0, 1, 1], [], []>} : vector<128x128xbf16>, vector<128x16xbf16>, vector<128x16xf32> -> vector<128x16xf32>
    %242 = arith.truncf %241 : vector<128x16xf32> to vector<128x16xbf16>
    %cst_68 = arith.constant dense<0.000000e+00> : vector<128x64xf32>
    %243 = tpu.matmul %242, %226, %cst_68 {dimension_numbers = #tpu.dot_dimension_numbers<[1], [0], [0], [1], [0, 0, 1, 1], [], []>} : vector<128x16xbf16>, vector<16x64xbf16>, vector<128x64xf32> -> vector<128x64xf32>
    %244 = arith.addf %222, %243 : vector<128x64xf32>
    %245 = vector.extract_strided_slice %197 {offsets = [0, 32], sizes = [128, 16], strides = [1, 1]} : vector<128x192xbf16> to vector<128x16xbf16>
    %246 = vector.extract_strided_slice %197 {offsets = [0, 96], sizes = [128, 16], strides = [1, 1]} : vector<128x192xbf16> to vector<128x16xbf16>
    %247 = vector.extract_strided_slice %197 {offsets = [0, 160], sizes = [128, 16], strides = [1, 1]} : vector<128x192xbf16> to vector<128x16xbf16>
    %c496 = arith.constant 496 : index
    %c128_69 = arith.constant 128 : index
    %248 = vector.load %arg2[%c496, %c128_69] : memref<656x192xbf16, #tpu.memory_space<vmem>>, vector<16x64xbf16>
    "tpu.trace_start"() <{level = 10 : i32, message = "nd,md->nm"}> : () -> ()
    %cst_70 = arith.constant dense<0.000000e+00> : vector<128x128xf32>
    %249 = tpu.matmul %245, %246, %cst_70 {dimension_numbers = #tpu.dot_dimension_numbers<[1], [1], [0], [0], [0, 0, 1, 0], [], []>} : vector<128x16xbf16>, vector<128x16xbf16>, vector<128x128xf32> -> vector<128x128xf32>
    %cst_71 = arith.constant -1.000000e+30 : f32
    "tpu.trace_stop"() : () -> ()
    %250 = vector.broadcast %cst_71 : f32 to vector<128x128xf32>
    %251 = arith.select %20, %249, %250 : vector<128x128xi1>, vector<128x128xf32>
    %cst_72 = arith.constant dense<0xFF800000> : vector<128xf32>
    %252 = vector.multi_reduction <maximumf>, %251, %cst_72 [1] : vector<128x128xf32> to vector<128xf32>
    %253 = vector.shape_cast %252 : vector<128xf32> to vector<128x1xf32>
    %254 = vector.broadcast %253 : vector<128x1xf32> to vector<128x128xf32>
    %255 = arith.subf %251, %254 : vector<128x128xf32>
    %256 = math.exp %255 : vector<128x128xf32>
    %cst_73 = arith.constant dense<0.000000e+00> : vector<128xf32>
    %257 = vector.multi_reduction <add>, %256, %cst_73 [1] : vector<128x128xf32> to vector<128xf32>
    %258 = vector.shape_cast %257 : vector<128xf32> to vector<128x1xf32>
    %259 = tpu.reciprocal %258 {approx = true} : vector<128x1xf32> -> vector<128x1xf32>
    %260 = vector.broadcast %259 : vector<128x1xf32> to vector<128x128xf32>
    %261 = arith.mulf %256, %260 : vector<128x128xf32>
    %262 = arith.truncf %261 : vector<128x128xf32> to vector<128x128xbf16>
    %cst_74 = arith.constant dense<0.000000e+00> : vector<128x16xf32>
    %263 = tpu.matmul %262, %247, %cst_74 {dimension_numbers = #tpu.dot_dimension_numbers<[1], [0], [0], [1], [0, 0, 1, 1], [], []>} : vector<128x128xbf16>, vector<128x16xbf16>, vector<128x16xf32> -> vector<128x16xf32>
    %264 = arith.truncf %263 : vector<128x16xf32> to vector<128x16xbf16>
    %cst_75 = arith.constant dense<0.000000e+00> : vector<128x64xf32>
    %265 = tpu.matmul %264, %248, %cst_75 {dimension_numbers = #tpu.dot_dimension_numbers<[1], [0], [0], [1], [0, 0, 1, 1], [], []>} : vector<128x16xbf16>, vector<16x64xbf16>, vector<128x64xf32> -> vector<128x64xf32>
    %266 = arith.addf %244, %265 : vector<128x64xf32>
    %267 = vector.extract_strided_slice %197 {offsets = [0, 48], sizes = [128, 16], strides = [1, 1]} : vector<128x192xbf16> to vector<128x16xbf16>
    %268 = vector.extract_strided_slice %197 {offsets = [0, 112], sizes = [128, 16], strides = [1, 1]} : vector<128x192xbf16> to vector<128x16xbf16>
    %269 = vector.extract_strided_slice %197 {offsets = [0, 176], sizes = [128, 16], strides = [1, 1]} : vector<128x192xbf16> to vector<128x16xbf16>
    %c512 = arith.constant 512 : index
    %c128_76 = arith.constant 128 : index
    %270 = vector.load %arg2[%c512, %c128_76] : memref<656x192xbf16, #tpu.memory_space<vmem>>, vector<16x64xbf16>
    "tpu.trace_start"() <{level = 10 : i32, message = "nd,md->nm"}> : () -> ()
    %cst_77 = arith.constant dense<0.000000e+00> : vector<128x128xf32>
    %271 = tpu.matmul %267, %268, %cst_77 {dimension_numbers = #tpu.dot_dimension_numbers<[1], [1], [0], [0], [0, 0, 1, 0], [], []>} : vector<128x16xbf16>, vector<128x16xbf16>, vector<128x128xf32> -> vector<128x128xf32>
    %cst_78 = arith.constant -1.000000e+30 : f32
    "tpu.trace_stop"() : () -> ()
    %272 = vector.broadcast %cst_78 : f32 to vector<128x128xf32>
    %273 = arith.select %20, %271, %272 : vector<128x128xi1>, vector<128x128xf32>
    %cst_79 = arith.constant dense<0xFF800000> : vector<128xf32>
    %274 = vector.multi_reduction <maximumf>, %273, %cst_79 [1] : vector<128x128xf32> to vector<128xf32>
    %275 = vector.shape_cast %274 : vector<128xf32> to vector<128x1xf32>
    %276 = vector.broadcast %275 : vector<128x1xf32> to vector<128x128xf32>
    %277 = arith.subf %273, %276 : vector<128x128xf32>
    %278 = math.exp %277 : vector<128x128xf32>
    %cst_80 = arith.constant dense<0.000000e+00> : vector<128xf32>
    %279 = vector.multi_reduction <add>, %278, %cst_80 [1] : vector<128x128xf32> to vector<128xf32>
    %280 = vector.shape_cast %279 : vector<128xf32> to vector<128x1xf32>
    %281 = tpu.reciprocal %280 {approx = true} : vector<128x1xf32> -> vector<128x1xf32>
    %282 = vector.broadcast %281 : vector<128x1xf32> to vector<128x128xf32>
    %283 = arith.mulf %278, %282 : vector<128x128xf32>
    %284 = arith.truncf %283 : vector<128x128xf32> to vector<128x128xbf16>
    %cst_81 = arith.constant dense<0.000000e+00> : vector<128x16xf32>
    %285 = tpu.matmul %284, %269, %cst_81 {dimension_numbers = #tpu.dot_dimension_numbers<[1], [0], [0], [1], [0, 0, 1, 1], [], []>} : vector<128x128xbf16>, vector<128x16xbf16>, vector<128x16xf32> -> vector<128x16xf32>
    %286 = arith.truncf %285 : vector<128x16xf32> to vector<128x16xbf16>
    %cst_82 = arith.constant dense<0.000000e+00> : vector<128x64xf32>
    %287 = tpu.matmul %286, %270, %cst_82 {dimension_numbers = #tpu.dot_dimension_numbers<[1], [0], [0], [1], [0, 0, 1, 1], [], []>} : vector<128x16xbf16>, vector<16x64xbf16>, vector<128x64xf32> -> vector<128x64xf32>
    %288 = arith.addf %266, %287 : vector<128x64xf32>
    %289 = arith.addf %183, %288 : vector<128x64xf32>
    %cst_83 = arith.constant dense<0.000000e+00> : vector<128xf32>
    %290 = vector.multi_reduction <add>, %289, %cst_83 [1] : vector<128x64xf32> to vector<128xf32>
    %291 = vector.shape_cast %290 : vector<128xf32> to vector<128x1xf32>
    %cst_84 = arith.constant 6.400000e+01 : f32
    %292 = vector.broadcast %cst_84 : f32 to vector<128x1xf32>
    %293 = arith.divf %291, %292 : vector<128x1xf32>
    %294 = vector.broadcast %293 : vector<128x1xf32> to vector<128x64xf32>
    %295 = arith.subf %289, %294 : vector<128x64xf32>
    %296 = arith.mulf %295, %295 : vector<128x64xf32>
    %cst_85 = arith.constant dense<0.000000e+00> : vector<128xf32>
    %297 = vector.multi_reduction <add>, %296, %cst_85 [1] : vector<128x64xf32> to vector<128xf32>
    %298 = vector.shape_cast %297 : vector<128xf32> to vector<128x1xf32>
    %cst_86 = arith.constant 6.400000e+01 : f32
    %299 = vector.broadcast %cst_86 : f32 to vector<128x1xf32>
    %300 = arith.divf %298, %299 : vector<128x1xf32>
    %301 = vector.broadcast %293 : vector<128x1xf32> to vector<128x64xf32>
    %302 = arith.subf %289, %301 : vector<128x64xf32>
    %cst_87 = arith.constant 9.99999974E-6 : f32
    %303 = vector.broadcast %cst_87 : f32 to vector<128x1xf32>
    %304 = arith.addf %300, %303 : vector<128x1xf32>
    %305 = math.rsqrt %304 : vector<128x1xf32>
    %306 = vector.broadcast %305 : vector<128x1xf32> to vector<128x64xf32>
    %307 = arith.mulf %302, %306 : vector<128x64xf32>
    %308 = vector.broadcast %188 : vector<1x64xf32> to vector<128x64xf32>
    %309 = arith.mulf %307, %308 : vector<128x64xf32>
    %310 = vector.broadcast %189 : vector<1x64xf32> to vector<128x64xf32>
    %311 = arith.addf %309, %310 : vector<128x64xf32>
    %312 = arith.truncf %311 : vector<128x64xf32> to vector<128x64xbf16>
    %c464_88 = arith.constant 464 : index
    %c0_89 = arith.constant 0 : index
    %313 = vector.load %arg2[%c464_88, %c0_89] : memref<656x192xbf16, #tpu.memory_space<vmem>>, vector<64x128xbf16>
    %cst_90 = arith.constant dense<0.000000e+00> : vector<128x128xf32>
    %314 = tpu.matmul %312, %313, %cst_90 {dimension_numbers = #tpu.dot_dimension_numbers<[1], [0], [0], [1], [0, 0, 1, 1], [], []>} : vector<128x64xbf16>, vector<64x128xbf16>, vector<128x128xf32> -> vector<128x128xf32>
    %315 = vector.broadcast %186 : vector<1x128xf32> to vector<128x128xf32>
    %316 = arith.addf %314, %315 : vector<128x128xf32>
    %cst_91 = arith.constant 0.000000e+00 : f32
    %317 = vector.broadcast %cst_91 : f32 to vector<128x128xf32>
    %318 = arith.maximumf %316, %317 : vector<128x128xf32>
    %319 = arith.truncf %318 : vector<128x128xf32> to vector<128x128xbf16>
    %c528 = arith.constant 528 : index
    %c0_92 = arith.constant 0 : index
    %320 = vector.load %arg2[%c528, %c0_92] : memref<656x192xbf16, #tpu.memory_space<vmem>>, vector<128x64xbf16>
    %cst_93 = arith.constant dense<0.000000e+00> : vector<128x64xf32>
    %321 = tpu.matmul %319, %320, %cst_93 {dimension_numbers = #tpu.dot_dimension_numbers<[1], [0], [0], [1], [0, 0, 1, 1], [], []>} : vector<128x128xbf16>, vector<128x64xbf16>, vector<128x64xf32> -> vector<128x64xf32>
    %322 = vector.broadcast %187 : vector<1x64xf32> to vector<128x64xf32>
    %323 = arith.addf %321, %322 : vector<128x64xf32>
    %324 = arith.addf %311, %323 : vector<128x64xf32>
    %cst_94 = arith.constant dense<0.000000e+00> : vector<128xf32>
    %325 = vector.multi_reduction <add>, %324, %cst_94 [1] : vector<128x64xf32> to vector<128xf32>
    %326 = vector.shape_cast %325 : vector<128xf32> to vector<128x1xf32>
    %cst_95 = arith.constant 6.400000e+01 : f32
    %327 = vector.broadcast %cst_95 : f32 to vector<128x1xf32>
    %328 = arith.divf %326, %327 : vector<128x1xf32>
    %329 = vector.broadcast %328 : vector<128x1xf32> to vector<128x64xf32>
    %330 = arith.subf %324, %329 : vector<128x64xf32>
    %331 = arith.mulf %330, %330 : vector<128x64xf32>
    %cst_96 = arith.constant dense<0.000000e+00> : vector<128xf32>
    %332 = vector.multi_reduction <add>, %331, %cst_96 [1] : vector<128x64xf32> to vector<128xf32>
    %333 = vector.shape_cast %332 : vector<128xf32> to vector<128x1xf32>
    %cst_97 = arith.constant 6.400000e+01 : f32
    %334 = vector.broadcast %cst_97 : f32 to vector<128x1xf32>
    %335 = arith.divf %333, %334 : vector<128x1xf32>
    %336 = vector.broadcast %328 : vector<128x1xf32> to vector<128x64xf32>
    %337 = arith.subf %324, %336 : vector<128x64xf32>
    %cst_98 = arith.constant 9.99999974E-6 : f32
    %338 = vector.broadcast %cst_98 : f32 to vector<128x1xf32>
    %339 = arith.addf %335, %338 : vector<128x1xf32>
    %340 = math.rsqrt %339 : vector<128x1xf32>
    %341 = vector.broadcast %340 : vector<128x1xf32> to vector<128x64xf32>
    %342 = arith.mulf %337, %341 : vector<128x64xf32>
    %343 = vector.broadcast %190 : vector<1x64xf32> to vector<128x64xf32>
    %344 = arith.mulf %342, %343 : vector<128x64xf32>
    %345 = vector.broadcast %191 : vector<1x64xf32> to vector<128x64xf32>
    %346 = arith.addf %344, %345 : vector<128x64xf32>
    %347 = arith.truncf %346 : vector<128x64xf32> to vector<128x64xbf16>
    %c16 = arith.constant 16 : index
    %c0_99 = arith.constant 0 : index
    %348 = vector.load %arg2[%c16, %c0_99] : memref<656x192xbf16, #tpu.memory_space<vmem>>, vector<64x64xbf16>
    %cst_100 = arith.constant dense<0.000000e+00> : vector<128x64xf32>
    %349 = tpu.matmul %347, %348, %cst_100 {dimension_numbers = #tpu.dot_dimension_numbers<[1], [0], [0], [1], [0, 0, 1, 1], [], []>} : vector<128x64xbf16>, vector<64x64xbf16>, vector<128x64xf32> -> vector<128x64xf32>
    %350 = vector.extract_strided_slice %0 {offsets = [19, 0], sizes = [1, 64], strides = [1, 1]} : vector<24x192xf32> to vector<1x64xf32>
    %351 = vector.broadcast %350 : vector<1x64xf32> to vector<128x64xf32>
    %352 = arith.addf %349, %351 : vector<128x64xf32>
    %cst_101 = arith.constant 0.000000e+00 : f32
    %353 = vector.broadcast %cst_101 : f32 to vector<128x64xf32>
    %354 = arith.maximumf %352, %353 : vector<128x64xf32>
    %355 = arith.truncf %354 : vector<128x64xf32> to vector<128x64xbf16>
    %c80 = arith.constant 80 : index
    %c0_102 = arith.constant 0 : index
    %356 = vector.load %arg2[%c80, %c0_102] : memref<656x192xbf16, #tpu.memory_space<vmem>>, vector<64x128xbf16>
    %cst_103 = arith.constant dense<0.000000e+00> : vector<128x128xf32>
    %357 = tpu.matmul %355, %356, %cst_103 {dimension_numbers = #tpu.dot_dimension_numbers<[1], [0], [0], [1], [0, 0, 1, 1], [], []>} : vector<128x64xbf16>, vector<64x128xbf16>, vector<128x128xf32> -> vector<128x128xf32>
    %358 = vector.extract_strided_slice %0 {offsets = [20, 0], sizes = [1, 128], strides = [1, 1]} : vector<24x192xf32> to vector<1x128xf32>
    %359 = vector.broadcast %358 : vector<1x128xf32> to vector<128x128xf32>
    %360 = arith.addf %357, %359 : vector<128x128xf32>
    %c0_104 = arith.constant 0 : index
    %c0_105 = arith.constant 0 : index
    %361 = vector.load %arg4[%c0_104, %c0_105] : memref<128x128xf32, #tpu.memory_space<vmem>>, vector<128x128xf32>
    tpu.vector_store %arg4[%c0_104, %c0_105], %360 {strides = array<i32>} : memref<128x128xf32, #tpu.memory_space<vmem>>, vector<128x128xf32>,
    return
  }
  func.func @transform_0(%arg0: i32) -> (i32, i32) {
    %c0_i32 = arith.constant 0 : i32
    %c0_i32_0 = arith.constant 0 : i32
    return %arg0, %c0_i32 : i32, i32
  }
  func.func @transform_1(%arg0: i32) -> (i32, i32) {
    %c0_i32 = arith.constant 0 : i32
    %c0_i32_0 = arith.constant 0 : i32
    %c0_i32_1 = arith.constant 0 : i32
    return %c0_i32, %c0_i32_0 : i32, i32
  }
  func.func @transform_2(%arg0: i32) -> (i32, i32) {
    %c0_i32 = arith.constant 0 : i32
    %c0_i32_0 = arith.constant 0 : i32
    %c0_i32_1 = arith.constant 0 : i32
    return %c0_i32, %c0_i32_0 : i32, i32
  }
  func.func @transform_3(%arg0: i32) -> (i32, i32) {
    %c0_i32 = arith.constant 0 : i32
    %c0_i32_0 = arith.constant 0 : i32
    return %arg0, %c0_i32 : i32, i32
  }
}

</mosaic_0001>

<bundles_post_ra>
// kernel: rna3d_forward.1
= control target key start
LH: loop header
LB: loop body
LE: loop exit
PB: predicated region body
PF: predicated region fallthrough
CT: control target
= control target key end

     0   :  { %s8293_s12 = smov 0   ;;  %s12685_s0 = inlined_call_operand.vmem [shape: f32[256,16], index: 0, kind: input, shape index: {}]   ;;  %s12686_s1 = inlined_call_operand.vmem [shape: bf16[656,192], index: 1, kind: input, shape index: {}]   ;;  %s12687_s2 = inlined_call_operand.vmem [shape: f32[24,192], index: 2, kind: input, shape index: {}]   ;;  %s12688_s3 = inlined_call_operand.vmem [shape: f32[256,128], index: 3, kind: output, shape index: {}]  }
   0x1 LB: > { %s7084_s13 = sadd.s32 4294967295, %s8263_s12   ;;  %p7088_p0 = scmp.ge.s32.totalorder %s8263_s12, 1  ;;  %s8263_s12 = sphi %s8293_s12, %s13_s12  }
   0x2   : > { %p138_p1 = scmp.lt.s32.totalorder %s8263_s12, 3 }
   0x4   : > { %p139_p2 = pnand %p7088_p0, %p138_p1 }
   0x6   : > { %142 = sbr.rel (%p139_p2) target bundleno = 6369 (0x18e1), region = 32 }
   0xb   : > { %v7095_v0 = vld [vmem:[%s12686_s1] sm:$0xf]  ;;  %v7523_v1 = vld [vmem:[%s12686_s1 + $0x4] sm:$0xf0]  ;;  %s7089_s18 = sshll.u32 %s7084_s13, 4  ;;  %vm12718_vm0 = vcmask 130048  }
   0xc   : > { %v7096_v2 = vor.u32 %v7523_v1, %v7095_v0  ;;  %p163_p3 = scmp.lt.s32.totalorder %s7089_s18, 31  ;;  %v7131_v27 = vld [vmem:[%s12686_s1 + $0xc0] sm:$0xf]  ;;  %v7531_v28 = vld [vmem:[%s12686_s1 + $0xc4] sm:$0xf0]  ;;  %vm12717_vm1 = vcmask 523264  }
   0xd   : > { %v7132_v29 = vor.u32 %v7531_v28, %v7131_v27  ;;  %v7123_v30 = vld [vmem:[%s12686_s1 + $0xb0] sm:$0xf]  ;;  %v7529_v31 = vld [vmem:[%s12686_s1 + $0xb4] sm:$0xf0]  ;;  %v7115_v33 = vld [vmem:[%s12686_s1 + $0xa0] sm:$0xf] }
   0xe   : > { %245 = vmatpush.bf16.msra.mxu0 %v7096_v2  ;;  %s13325_s18 = smov (!%p163_p3, %s7089_s18), 31  ;;  %7580 = vmatpush.bf16.msra.mxu2 %v7096_v2  ;;  %v7124_v32 = vor.u32 %v7529_v31, %v7123_v30  ;;  %v7527_v34 = vld [vmem:[%s12686_s1 + $0xa4] sm:$0xf0]  ;;  %v7107_v36 = vld [vmem:[%s12686_s1 + $0x90] sm:$0xf]  ;;  %v8386_v48 = vld [vmem:[%s12687_s2] sm:$0xff] }
   0xf   : > { %s7090_s19 = sshll.u32 %s13325_s18, 3  ;;  %475 = vmatpush.bf16.msra.mxu1 %v7132_v29  ;;  %7582 = vmatpush.bf16.msra.mxu3 %v7132_v29  ;;  %v7116_v35 = vor.u32 %v7527_v34, %v7115_v33  ;;  %v7525_v37 = vld [vmem:[%s12686_s1 + $0x94] sm:$0xf0]  ;;  %v7530_v39 = vld [vmem:[%s12686_s1 + $0xc4] sm:$0xf]  ;;  %v8395_v52 = vperm.slane %v8386_v48, 0 }
  0x10   : > { %s8315_s22 = scalar_lea.vmem %s12685_s0, %s7090_s19  ;;  %v7108_v38 = vor.u32 %v7525_v37, %v7107_v36  ;;  %v7133_v40 = vld [vmem:[%s12686_s1 + $0xc8] sm:$0xf0]  ;;  %v7528_v42 = vld [vmem:[%s12686_s1 + $0xb4] sm:$0xf]  ;;  %v7125_v43 = vld [vmem:[%s12686_s1 + $0xb8] sm:$0xf0] }
  0x11   : > { %v180_v3 = vld [vmem:[%s8315_s22] sm:$0xff]  ;;  %v181_v4 = vld [vmem:[%s8315_s22 + $0x8] sm:$0xff]  ;;  %v182_v6 = vld [vmem:[%s8315_s22 + $0x10] sm:$0xff]  ;;  %v7136_v41 = vor.u32 %v7530_v39, %v7133_v40  ;;  %v7128_v44 = vor.u32 %v7528_v42, %v7125_v43  ;;  %v8399_v56 = vperm.slane %v8386_v48, 1  ;;  %v8404_v60 = vperm.slane %v8386_v48, 2  ;;  %s8265_s8 = smov 64  }
  0x12   : > { %v196_v5 = vpack.c.bf16 %v181_v4, %v180_v3  ;;  %v183_v7 = vld [vmem:[%s8315_s22 + $0x18] sm:$0xff]  ;;  %v184_v9 = vld [vmem:[%s8315_s22 + $0x20] sm:$0xff]  ;;  %v185_v10 = vld [vmem:[%s8315_s22 + $0x28] sm:$0xff]  ;;  %7581 = vmatpush.bf16.msrb.mxu2 %v7132_v29  ;;  %s8266_s9 = smov 48   ;;  %s8267_s10 = smov 112  }
  0x13   : > { %v197_v8 = vpack.c.bf16 %v183_v7, %v182_v6  ;;  %v198_v11 = vpack.c.bf16 %v185_v10, %v184_v9  ;;  %v186_v12 = vld [vmem:[%s8315_s22 + $0x30] sm:$0xff]  ;;  %v187_v13 = vld [vmem:[%s8315_s22 + $0x38] sm:$0xff]  ;;  %v188_v15 = vld [vmem:[%s8315_s22 + $0x40] sm:$0xff]  ;;  %476 = vmatpush.bf16.msra.mxu1 %v7124_v32  ;;  %7584 = vmatpush.bf16.msra.mxu3 %v7124_v32  ;;  %s8268_s11 = smov 32   ;;  %s8269_s13 = smov 16  }
  0x14   : > { %7097 = vmatmul.msk.bf16.vlgmr.msra.gmra.mxu0 %vm12718_vm0, %v196_v5  ;;  %v199_v14 = vpack.c.bf16 %v187_v13, %v186_v12  ;;  %v189_v16 = vld [vmem:[%s8315_s22 + $0x48] sm:$0xff]  ;;  %v194_v18 = vld [vmem:[%s8315_s22 + $0x70] sm:$0xff]  ;;  %v195_v19 = vld [vmem:[%s8315_s22 + $0x78] sm:$0xff]  ;;  %s8270_s20 = smov 96   ;;  %s8271_s25 = smov 80  }
  0x15   : > { %v200_v17 = vpack.c.bf16 %v189_v16, %v188_v15  ;;  %v203_v20 = vpack.c.bf16 %v195_v19, %v194_v18  ;;  %v190_v21 = vld [vmem:[%s8315_s22 + $0x50] sm:$0xff]  ;;  %v191_v22 = vld [vmem:[%s8315_s22 + $0x58] sm:$0xff]  ;;  %v192_v24 = vld [vmem:[%s8315_s22 + $0x60] sm:$0xff] }
  0x16   : > { %v201_v23 = vpack.c.bf16 %v191_v22, %v190_v21  ;;  %v193_v25 = vld [vmem:[%s8315_s22 + $0x68] sm:$0xff]  ;;  %7583 = vmatpush.bf16.msrb.mxu2 %v7124_v32  ;;  %v7526_v45 = vld [vmem:[%s12686_s1 + $0xa4] sm:$0xf]  ;;  %v7524_v49 = vld [vmem:[%s12686_s1 + $0x94] sm:$0xf] }
  0x17   : > { %7104 = vmatmul.msk.bf16.vlgmr.msra.gmra.mxu2 %vm12718_vm0, %v203_v20  ;;  %v202_v26 = vpack.c.bf16 %v193_v25, %v192_v24  ;;  %477 = vmatpush.bf16.msra.mxu1 %v7116_v35  ;;  %v7117_v46 = vld [vmem:[%s12686_s1 + $0xa8] sm:$0xf0]  ;;  %v7109_v50 = vld [vmem:[%s12686_s1 + $0x98] sm:$0xf0] }
  0x18   : > { %7586 = vmatpush.bf16.msra.mxu3 %v7116_v35  ;;  %v7120_v47 = vor.u32 %v7526_v45, %v7117_v46  ;;  %v7112_v51 = vor.u32 %v7524_v49, %v7109_v50 }
  0x1a   : > { %7585 = vmatpush.bf16.msrb.mxu2 %v7116_v35 }
  0x1b   : > { %478 = vmatpush.bf16.msra.mxu1 %v7108_v38 }
  0x1c   : > { %7588 = vmatpush.bf16.msra.mxu3 %v7108_v38 }
  0x1e   : > { %7587 = vmatpush.bf16.msrb.mxu2 %v7108_v38 }
  0x1f   : > { %524 = vmatpush.bf16.msrb.mxu1 %v7136_v41 }
  0x22   : > { %7589 = vmatpush.bf16.msra.mxu2 %v7136_v41 }
  0x23   : > { %525 = vmatpush.bf16.msrb.mxu1 %v7128_v44 }
  0x24   : > { %7098 = vmatmul.msk.bf16.gmra.mxu0 %vm12718_vm0, %v197_v8 }
  0x26   : > { %7590 = vmatpush.bf16.msra.mxu2 %v7128_v44 }
  0x27   : > { %526 = vmatpush.bf16.msrb.mxu1 %v7120_v47 }
  0x2a   : > { %7591 = vmatpush.bf16.msra.mxu2 %v7120_v47 }
  0x2b   : > { %527 = vmatpush.bf16.msrb.mxu1 %v7112_v51 }
  0x2e   : > { %7592 = vmatpush.bf16.msra.mxu2 %v7112_v51 }
  0x34   : > { %7099 = vmatmul.msk.bf16.gmra.mxu0 %vm12718_vm0, %v198_v11 }
  0x44   : > { %7100 = vmatmul.msk.bf16.gmra.mxu0 %vm12718_vm0, %v199_v14 }
  0x54   : > { %7101 = vmatmul.msk.bf16.gmra.mxu0 %vm12718_vm0, %v200_v17 }
  0x64   : > { %7102 = vmatmul.msk.bf16.gmra.mxu0 %vm12718_vm0, %v201_v23 }
  0x74   : > { %7103 = vmatmul.msk.bf16.gmra.mxu0 %vm12718_vm0, %v202_v26 }
  0x91   : > { %v247_v53 = vpop.f32.mrf.mxu0 }
  0x92   : > { %v248_v54 = vadd.f32 %v247_v53, %v8395_v52 }
  0x94   : > { %v287_v55 = vmax.f32 %v248_v54, 0.0 }
  0x96   : > { %v304_v59 = vmul.f32 %v8399_v56, %v287_v55 }
  0x98   : > { %v8408_v63 = vadd.f32 %v8404_v60, %v304_v59 }
  0x99   : > { %v249_v57 = vpop.f32.mrf.mxu0 }
  0x9a   : > { %v250_v58 = vadd.f32 %v249_v57, %v8395_v52  ;;  %12817 = vst [vmem:[#allocation2_spill] sm:$0xff] %v8408_v63 }
  0x9c   : > { %v288_v61 = vmax.f32 %v250_v58, 0.0 }
  0x9e   : > { %v305_v62 = vmul.f32 %v8399_v56, %v288_v61 }
  0xa0   : > { %v8411_v0 = vadd.f32 %v8404_v60, %v305_v62 }
  0xa1   : > { %v252_v1 = vpop.f32.mrf.mxu0 }
  0xa2   : > { %12818 = vst [vmem:[#allocation3_spill] sm:$0xff] %v8411_v0  ;;  %v388_v2 = vpack.c.bf16 %v8411_v0, %v8408_v63  ;;  %v253_v3 = vadd.f32 %v252_v1, %v8395_v52  ;;  %v282_v1 = vpop.f32.mrf.mxu2 }
  0xa4   : > { %7137 = vmatmul.msk.bf16.vlgmr.msra.gmra.mxu1 %vm12717_vm1, %v388_v2  ;;  %v289_v4 = vmax.f32 %v253_v3, 0.0 }
  0xa6   : > { %v306_v7 = vmul.f32 %v8399_v56, %v289_v4 }
  0xa8   : > { %v8421_v10 = vadd.f32 %v8404_v60, %v306_v7 }
  0xa9   : > { %v254_v5 = vpop.f32.mrf.mxu0 }
  0xaa   : > { %v255_v6 = vadd.f32 %v254_v5, %v8395_v52  ;;  %12819 = vst [vmem:[#allocation4_spill] sm:$0xff] %v8421_v10 }
  0xac   : > { %v290_v8 = vmax.f32 %v255_v6, 0.0 }
  0xae   : > { %v307_v9 = vmul.f32 %v8399_v56, %v290_v8  ;;  %v284_v8 = vpop.f32.mrf.mxu2 }
  0xb0   : > { %v8424_v11 = vadd.f32 %v8404_v60, %v307_v9 }
  0xb1   : > { %v257_v12 = vpop.f32.mrf.mxu0 }
  0xb2   : > { %12820 = vst [vmem:[#allocation5_spill] sm:$0xff] %v8424_v11  ;;  %v389_v13 = vpack.c.bf16 %v8424_v11, %v8421_v10  ;;  %v258_v14 = vadd.f32 %v257_v12, %v8395_v52 }
  0xb4   : > { %7138 = vmatmul.msk.bf16.vlgmr.msrb.gmra.mxu2 %vm12717_vm1, %v389_v13  ;;  %7145 = vmatmul.msk.bf16.vlgmr.msrb.gmra.mxu1 %vm12717_vm1, %v388_v2  ;;  %v291_v15 = vmax.f32 %v258_v14, 0.0  ;;  %v285_v14 = vadd.f32 %v284_v8, %v8395_v52 }
  0xb6   : > { %v308_v18 = vmul.f32 %v8399_v56, %v291_v15 }
  0xb8   : > { %v8435_v21 = vadd.f32 %v8404_v60, %v308_v18 }
  0xb9   : > { %v259_v16 = vpop.f32.mrf.mxu0 }
  0xba   : > { %v260_v17 = vadd.f32 %v259_v16, %v8395_v52  ;;  %12821 = vst [vmem:[#allocation6_spill] sm:$0xff] %v8435_v21 }
  0xbc   : > { %v292_v19 = vmax.f32 %v260_v17, 0.0  ;;  %v302_v17 = vmax.f32 %v285_v14, 0.0 }
  0xbe   : > { %v309_v20 = vmul.f32 %v8399_v56, %v292_v19  ;;  %v319_v19 = vmul.f32 %v8399_v56, %v302_v17 }
  0xc0   : > { %v8438_v22 = vadd.f32 %v8404_v60, %v309_v20 }
  0xc1   : > { %v262_v23 = vpop.f32.mrf.mxu0 }
  0xc2   : > { %12822 = vst [vmem:[#allocation7_spill] sm:$0xff] %v8438_v22  ;;  %v390_v24 = vpack.c.bf16 %v8438_v22, %v8435_v21  ;;  %v263_v25 = vadd.f32 %v262_v23, %v8395_v52  ;;  %v8509_v23 = vadd.f32 %v8404_v60, %v319_v19 }
  0xc4   : > { %7139 = vmatmul.msk.bf16.vlgmr.msra.gmra.mxu3 %vm12717_vm1, %v390_v24  ;;  %7146 = vmatmul.msk.bf16.gmra.mxu1 %vm12717_vm1, %v389_v13  ;;  %v293_v26 = vmax.f32 %v263_v25, 0.0  ;;  %v283_v13 = vadd.f32 %v282_v1, %v8395_v52  ;;  %12832 = vst [vmem:[#allocation17_spill] sm:$0xff] %v8509_v23 }
  0xc6   : > { %v310_v29 = vmul.f32 %v8399_v56, %v293_v26  ;;  %v301_v16 = vmax.f32 %v283_v13, 0.0  ;;  %v8521_v26 = vperm.slane %v8386_v48, 3 }
  0xc8   : > { %v8449_v32 = vadd.f32 %v8404_v60, %v310_v29  ;;  %v318_v18 = vmul.f32 %v8399_v56, %v301_v16 }
  0xc9   : > { %v264_v27 = vpop.f32.mrf.mxu0 }
  0xca   : > { %v265_v28 = vadd.f32 %v264_v27, %v8395_v52  ;;  %12823 = vst [vmem:[#allocation8_spill] sm:$0xff] %v8449_v32  ;;  %v8506_v20 = vadd.f32 %v8404_v60, %v318_v18 }
  0xcc   : > { %v294_v30 = vmax.f32 %v265_v28, 0.0  ;;  %12831 = vst [vmem:[#allocation16_spill] sm:$0xff] %v8506_v20 }
  0xce   : > { %v311_v31 = vmul.f32 %v8399_v56, %v294_v30 }
  0xd0   : > { %v8452_v33 = vadd.f32 %v8404_v60, %v311_v31 }
  0xd1   : > { %v267_v34 = vpop.f32.mrf.mxu0 }
  0xd2   : > { %12824 = vst [vmem:[#allocation9_spill] sm:$0xff] %v8452_v33  ;;  %v391_v35 = vpack.c.bf16 %v8452_v33, %v8449_v32  ;;  %v268_v36 = vadd.f32 %v267_v34, %v8395_v52 }
  0xd4   : > { %7140 = vmatmul.msk.bf16.gmra.mxu3 %vm12717_vm1, %v391_v35  ;;  %7147 = vmatmul.msk.bf16.gmra.mxu1 %vm12717_vm1, %v390_v24  ;;  %v295_v37 = vmax.f32 %v268_v36, 0.0 }
  0xd6   : > { %v312_v40 = vmul.f32 %v8399_v56, %v295_v37 }
  0xd8   : > { %v8463_v43 = vadd.f32 %v8404_v60, %v312_v40 }
  0xd9   : > { %v269_v38 = vpop.f32.mrf.mxu0 }
  0xda   : > { %v270_v39 = vadd.f32 %v269_v38, %v8395_v52  ;;  %12825 = vst [vmem:[#allocation10_spill] sm:$0xff] %v8463_v43 }
  0xdc   : > { %v296_v41 = vmax.f32 %v270_v39, 0.0 }
  0xde   : > { %v313_v42 = vmul.f32 %v8399_v56, %v296_v41 }
  0xe0   : > { %v8466_v44 = vadd.f32 %v8404_v60, %v313_v42 }
  0xe1   : > { %v272_v45 = vpop.f32.mrf.mxu0 }
  0xe2   : > { %12826 = vst [vmem:[#allocation11_spill] sm:$0xff] %v8466_v44  ;;  %v392_v46 = vpack.c.bf16 %v8466_v44, %v8463_v43  ;;  %v273_v47 = vadd.f32 %v272_v45, %v8395_v52  ;;  %v12863_v44 = vmov 0  ;;  %v12866_v43 = vmov 0 }
  0xe4   : > { %7141 = vmatmul.msk.bf16.gmra.mxu3 %vm12717_vm1, %v392_v46  ;;  %7148 = vmatmul.msk.bf16.gmra.mxu1 %vm12717_vm1, %v391_v35  ;;  %v297_v49 = vmax.f32 %v273_v47, 0.0 }
  0xe5   : > { %7149 = vmatmul.msk.bf16.vlgmr.msra.gmra.mxu2 %vm12717_vm1, %v392_v46 }
  0xe6   : > { %v314_v53 = vmul.f32 %v8399_v56, %v297_v49 }
  0xe8   : > { %v8478_v57 = vadd.f32 %v8404_v60, %v314_v53 }
  0xe9   : > { %v274_v50 = vpop.f32.mrf.mxu0 }
  0xea   : > { %v275_v51 = vadd.f32 %v274_v50, %v8395_v52  ;;  %12827 = vst [vmem:[#allocation12_spill] sm:$0xff] %v8478_v57 }
  0xec   : > { %v298_v54 = vmax.f32 %v275_v51, 0.0 }
  0xee   : > { %v315_v55 = vmul.f32 %v8399_v56, %v298_v54 }
  0xf0   : > { %v8481_v58 = vadd.f32 %v8404_v60, %v315_v55 }
  0xf1   : > { %v277_v59 = vpop.f32.mrf.mxu0 }
  0xf2   : > { %12828 = vst [vmem:[#allocation13_spill] sm:$0xff] %v8481_v58  ;;  %v393_v61 = vpack.c.bf16 %v8481_v58, %v8478_v57  ;;  %v278_v62 = vadd.f32 %v277_v59, %v8395_v52 }
  0xf4   : > { %7142 = vmatmul.msk.bf16.gmra.mxu3 %vm12717_vm1, %v393_v61  ;;  %v299_v2 = vmax.f32 %v278_v62, 0.0 }
  0xf5   : > { %7150 = vmatmul.msk.bf16.gmra.mxu2 %vm12717_vm1, %v393_v61 }
  0xf6   : > { %v316_v5 = vmul.f32 %v8399_v56, %v299_v2 }
  0xf8   : > { %v8492_v9 = vadd.f32 %v8404_v60, %v316_v5 }
  0xf9   : > { %v279_v3 = vpop.f32.mrf.mxu0 }
  0xfa   : > { %v280_v4 = vadd.f32 %v279_v3, %v8395_v52  ;;  %12829 = vst [vmem:[#allocation14_spill] sm:$0xff] %v8492_v9  ;;  %v395_v52 = vpack.c.bf16 %v8509_v23, %v8506_v20 }
  0xfc   : > { %v300_v6 = vmax.f32 %v280_v4, 0.0 }
  0xfe   : > { %v317_v7 = vmul.f32 %v8399_v56, %v300_v6  ;;  %v176_v56 = vld [vmem:[%s12687_s2 + $0x8] sm:$0xff] }
  0xff   : > { %v8523_v27 = vperm.slane %v176_v56, 3 }
 0x100   : > { %v8495_v12 = vadd.f32 %v8404_v60, %v317_v7 }
 0x102   : > { %12830 = vst [vmem:[#allocation15_spill] sm:$0xff] %v8495_v12  ;;  %v394_v15 = vpack.c.bf16 %v8495_v12, %v8492_v9 }
 0x104   : > { %7143 = vmatmul.msk.bf16.gmra.mxu3 %vm12717_vm1, %v394_v15 }
 0x105   : > { %7151 = vmatmul.msk.bf16.gmra.mxu2 %vm12717_vm1, %v394_v15 }
 0x114   : > { %7144 = vmatmul.msk.bf16.gmra.mxu3 %vm12717_vm1, %v395_v52 }
 0x115   : > { %7152 = vmatmul.msk.bf16.gmra.mxu2 %vm12717_vm1, %v395_v52 }
 0x121   : > { %v480_v24 = vpop.f32.mrf.mxu1 }
 0x122   : > { %v481_v28 = vadd.f32 %v480_v24, %v8521_v26 }
 0x129   : > { %v8515_v25 = vpop.f32.mrf.mxu1 }
 0x131   : > { %v529_v60 = vpop.f32.mrf.mxu1 }
 0x132   : > { %v530_v29 = vadd.f32 %v529_v60, %v8523_v27 }
 0x134   : > { %v8527_v30 = vpack.c.bf16 %v530_v29, %v481_v28 }
 0x137   : > { %v485_v34 = vpop.f32.mrf.mxu2 }
 0x138   : > { %v486_v36 = vadd.f32 %v485_v34, %v8521_v26 }
 0x139   : > { %v8529_v31 = vpop.f32.mrf.mxu1 }
 0x13f   : > { %v8535_v42 = vpop.f32.mrf.mxu2 }
 0x141   : > { %v534_v35 = vpop.f32.mrf.mxu1 }
 0x142   : > { %v535_v37 = vadd.f32 %v534_v35, %v8523_v27 }
 0x144   : > { %v8533_v38 = vpack.c.bf16 %v535_v37, %v486_v36 }
 0x147   : > { %v490_v48 = vpop.f32.mrf.mxu3 }
 0x149   : > { %v8537_v45 = vpop.f32.mrf.mxu1 }
 0x14f   : > { %v492_v39 = vpop.f32.mrf.mxu3 }
 0x151   : > { %v539_v49 = vpop.f32.mrf.mxu1 }
 0x157   : > { %v495_v40 = vpop.f32.mrf.mxu3 }
 0x158   : > { %v496_v56 = vadd.f32 %v495_v40, %v8521_v26 }
 0x159   : > { %v541_v53 = vpop.f32.mrf.mxu1 }
 0x15f   : > { %v497_v41 = vpop.f32.mrf.mxu3 }
 0x160   : > { %v498_v18 = vadd.f32 %v497_v41, %v8521_v26  ;;  %v542_v41 = vadd.f32 %v541_v53, %v8523_v27 }
 0x161   : > { %v544_v62 = vpop.f32.mrf.mxu1 }
 0x162   : > { %v545_v19 = vadd.f32 %v544_v62, %v8523_v27 }
 0x164   : > { %v8566_v35 = vpack.c.bf16 %v545_v19, %v496_v56  ;;  %v483_v19 = vadd.f32 %v8515_v25, %v8521_v26 }
 0x167   : > { %v8539_v46 = vpop.f32.mrf.mxu3 }
 0x168   : > { %v8541_v47 = vpop.f32.mrf.mxu2 }
 0x169   : > { %v546_v15 = vpop.f32.mrf.mxu1 }
 0x16a   : > { %v547_v17 = vadd.f32 %v546_v15, %v8523_v27 }
 0x16c   : > { %v8563_v60 = vpack.c.bf16 %v547_v17, %v498_v18 }
 0x16e   : > { %v612_v40 = vunpack.c.l.b16 %v8563_v60 }
 0x16f   : > { %v502_v50 = vpop.f32.mrf.mxu3 }
 0x170   : > { %v551_v51 = vpop.f32.mrf.mxu2 }
 0x171   : > { %v552_v15 = vadd.f32 %v551_v51, %v8523_v27 }
 0x177   : > { %v505_v54 = vpop.f32.mrf.mxu3 }
 0x178   : > { %v554_v55 = vpop.f32.mrf.mxu2  ;;  %v506_v59 = vadd.f32 %v505_v54, %v8521_v26 }
 0x179   : > { %v555_v61 = vadd.f32 %v554_v55, %v8523_v27  ;;  %v493_v55 = vadd.f32 %v492_v39, %v8521_v26 }
 0x17b   : > { %v8546_v4 = vpack.c.bf16 %v555_v61, %v506_v59  ;;  %v540_v59 = vadd.f32 %v539_v49, %v8523_v27  ;;  %v611_v61 = vunpack.c.l.b16 %v8566_v35  ;;  %v503_v49 = vadd.f32 %v502_v50, %v8521_v26 }
 0x17d   : > { %v615_v7 = vunpack.c.l.b16 %v8546_v4  ;;  %v578_v51 = vpack.c.bf16 %v552_v15, %v503_v49 }
 0x17f   : > { %v507_v1 = vpop.f32.mrf.mxu3 }
 0x180   : > { %v508_v2 = vadd.f32 %v507_v1, %v8521_v26  ;;  %v556_v3 = vpop.f32.mrf.mxu2 }
 0x181   : > { %v557_v5 = vadd.f32 %v556_v3, %v8523_v27  ;;  %v8580_v3 = vpack.c.bf16 %v542_v41, %v493_v55  ;;  %v537_v41 = vadd.f32 %v8537_v45, %v8523_v27 }
 0x183   : > { %v8549_v6 = vpack.c.bf16 %v557_v5, %v508_v2  ;;  %v491_v2 = vadd.f32 %v490_v48, %v8521_v26  ;;  %v8582_v5 = vpack.c.b16 %v612_v40, %v611_v61  ;;  %v610_v39 = vunpack.c.l.b16 %v8580_v3 }
 0x184   : > { %v532_v48 = vadd.f32 %v8529_v31, %v8523_v27  ;;  %v614_v40 = vunpack.c.l.b16 %v578_v51 }
 0x185   : > { %v616_v8 = vunpack.c.l.b16 %v8549_v6 }
 0x186   : > { %v8608_v56 = vpack.c.bf16 %v532_v48, %v483_v19 }
 0x187   : > { %v8553_v13 = vpack.c.b16 %v616_v8, %v615_v7  ;;  %v510_v14 = vpop.f32.mrf.mxu3 }
 0x188   : > { %v559_v16 = vpop.f32.mrf.mxu2  ;;  %v511_v52 = vadd.f32 %v510_v14, %v8521_v26  ;;  %v8586_v14 = vpack.c.bf16 %v540_v59, %v491_v2  ;;  %v488_v2 = vadd.f32 %v8535_v42, %v8521_v26 }
 0x189   : > { %639 = vrot.lane.b32.xlu2 %v8553_v13, %s8265_s8  ;;  %v560_v24 = vadd.f32 %v559_v16, %v8523_v27 }
 0x18a   : > { %v609_v16 = vunpack.c.l.b16 %v8586_v14  ;;  %v572_v15 = vpack.c.bf16 %v537_v41, %v488_v2 }
 0x18b   : > { %v8568_v36 = vpack.c.bf16 %v560_v24, %v511_v52  ;;  %v501_v52 = vadd.f32 %v8539_v46, %v8521_v26  ;;  %v550_v24 = vadd.f32 %v8541_v47, %v8523_v27  ;;  %v606_v47 = vunpack.c.l.b16 %v8608_v56 }
 0x18c   : > { %v8606_v31 = vpack.c.b16 %v610_v39, %v609_v16  ;;  %v920_v16 = vunpack.c.h.b16 %v8546_v4  ;;  %v917_v4 = vunpack.c.h.b16 %v8563_v60  ;;  %v913_v60 = vunpack.c.h.b16 %v572_v15 }
 0x18d   : > { %v617_v62 = vunpack.c.l.b16 %v8568_v36  ;;  %v577_v25 = vpack.c.bf16 %v550_v24, %v501_v52  ;;  %v922_v45 = vunpack.c.h.b16 %v8568_v36  ;;  %v607_v36 = vunpack.c.l.b16 %v8533_v38 }
 0x18e   : > { %v916_v24 = vunpack.c.h.b16 %v8566_v35 }
 0x18f   : > { %v512_v28 = vpop.f32.mrf.mxu3  ;;  %v918_v52 = vunpack.c.h.b16 %v577_v25 }
 0x190   : > { %v513_v29 = vadd.f32 %v512_v28, %v8521_v26  ;;  %v561_v34 = vpop.f32.mrf.mxu2 }
 0x191   : > { %v562_v37 = vadd.f32 %v561_v34, %v8523_v27  ;;  %1122 = vrot.lane.b32.xlu2 %v8553_v13, %s8266_s9 }
 0x193   : > { %v582_v54 = vpack.c.bf16 %v562_v37, %v513_v29 }
 0x195   : > { %v618_v1 = vunpack.c.l.b16 %v582_v54 }
 0x197   : > { %v8584_v7 = vpack.c.b16 %v618_v1, %v617_v62  ;;  %v515_v53 = vpop.f32.mrf.mxu3  ;;  %v605_v1 = vunpack.c.l.b16 %v8527_v30 }
 0x198   : > { %v564_v8 = vpop.f32.mrf.mxu2  ;;  %v516_v17 = vadd.f32 %v515_v53, %v8521_v26  ;;  %v613_v53 = vunpack.c.l.b16 %v577_v25 }
 0x199   : > { %641 = vrot.lane.b32.xlu1 %v8584_v7, %s8265_s8  ;;  %635 = vrot.lane.b32.xlu2 %v8582_v5, %s8265_s8  ;;  %v565_v18 = vadd.f32 %v564_v8, %v8523_v27  ;;  %v923_v8 = vunpack.c.h.b16 %v582_v54  ;;  %v8626_v49 = vpack.c.b16 %v606_v47, %v605_v1  ;;  %v608_v54 = vunpack.c.l.b16 %v572_v15 }
 0x19b   : > { %v583_v34 = vpack.c.bf16 %v565_v18, %v516_v17  ;;  %v8639_v42 = vpack.c.b16 %v923_v8, %v922_v45  ;;  %v919_v17 = vunpack.c.h.b16 %v578_v51  ;;  %v8646_v19 = vpack.c.b16 %v608_v54, %v607_v36 }
 0x19c   : > { %v8661_v51 = vpack.c.b16 %v917_v4, %v916_v24 }
 0x19d   : > { %v619_v55 = vunpack.c.l.b16 %v583_v34  ;;  %v924_v59 = vunpack.c.h.b16 %v583_v34  ;;  %v910_v34 = vunpack.c.h.b16 %v8527_v30 }
 0x19f   : > { %v517_v50 = vpop.f32.mrf.mxu3 }
 0x1a0   : > { %v518_v28 = vadd.f32 %v517_v50, %v8521_v26  ;;  %v566_v29 = vpop.f32.mrf.mxu2  ;;  %v921_v26 = vunpack.c.h.b16 %v8549_v6  ;;  %v8656_v6 = vpack.c.b16 %v919_v17, %v918_v52  ;;  %v915_v50 = vunpack.c.h.b16 %v8580_v3 }
 0x1a1   : > { %v567_v37 = vadd.f32 %v566_v29, %v8523_v27  ;;  %1124 = vrot.lane.b32.xlu1 %v8584_v7, %s8266_s9  ;;  %1116 = vrot.lane.b32.xlu2 %v8606_v31, %s8266_s9  ;;  %v8628_v27 = vpack.c.b16 %v614_v40, %v613_v53  ;;  %v912_v3 = vunpack.c.h.b16 %v8533_v38 }
 0x1a2   : > { %v8644_v18 = vpack.c.b16 %v921_v26, %v920_v16 }
 0x1a3   : > { %v584_v46 = vpack.c.bf16 %v567_v37, %v518_v28  ;;  %v914_v28 = vunpack.c.h.b16 %v8586_v14  ;;  %v911_v14 = vunpack.c.h.b16 %v8608_v56  ;;  %v8676_v29 = vpack.c.b16 %v913_v60, %v912_v3 }
 0x1a5   : > { %v620_v61 = vunpack.c.l.b16 %v584_v46  ;;  %v925_v62 = vunpack.c.h.b16 %v584_v46  ;;  %v8671_v35 = vpack.c.b16 %v915_v50, %v914_v28  ;;  %v8686_v38 = vpack.c.b16 %v911_v14, %v910_v34 }
 0x1a7   : > { %v8622_v39 = vpack.c.b16 %v620_v61, %v619_v55  ;;  %v8624_v48 = vpack.c.b16 %v925_v62, %v924_v59 }
 0x1a9   : > { %942 = vmatpush.bf16.msrb.mxu0 %v8624_v48  ;;  %643 = vrot.lane.b32.xlu0 %v8622_v39, %s8265_s8 }
 0x1aa   : > { %1120 = vrot.lane.b32.xlu1 %v8628_v27, %s8266_s9  ;;  %629 = vrot.lane.b32.xlu2 %v8626_v49, %s8265_s8 }
 0x1ad   : > { %943 = vmatpush.bf16.msrb.mxu0 %v8639_v42 }
 0x1b1   : > { %1126 = vrot.lane.b32.xlu0 %v8622_v39, %s8266_s9  ;;  %944 = vmatpush.bf16.msrb.mxu0 %v8644_v18 }
 0x1b2   : > { %633 = vrot.lane.b32.xlu1 %v8606_v31, %s8265_s8  ;;  %1098 = vrot.lane.b32.xlu2 %v8646_v19, %s8267_s10 }
 0x1b5   : > { %945 = vmatpush.bf16.msrb.mxu0 %v8656_v6 }
 0x1b9   : > { %637 = vrot.lane.b32.xlu0 %v8628_v27, %s8265_s8  ;;  %946 = vmatpush.bf16.msrb.mxu0 %v8661_v51 }
 0x1ba   : > { %1114 = vrot.lane.b32.xlu1 %v8646_v19, %s8266_s9  ;;  %1104 = vrot.lane.b32.xlu2 %v8628_v27, %s8267_s10 }
 0x1bd   : > { %947 = vmatpush.bf16.msrb.mxu0 %v8671_v35 }
 0x1c1   : > { %1118 = vrot.lane.b32.xlu0 %v8582_v5, %s8266_s9  ;;  %948 = vmatpush.bf16.msrb.mxu0 %v8676_v29 }
 0x1c2   : > { %1096 = vrot.lane.b32.xlu1 %v8626_v49, %s8267_s10  ;;  %1110 = vrot.lane.b32.xlu2 %v8622_v39, %s8267_s10 }
 0x1c5   : > { %949 = vmatpush.bf16.msrb.mxu0 %v8686_v38 }
 0x1c9   : > { %631 = vrot.lane.b32.xlu0 %v8646_v19, %s8265_s8 }
 0x1ca   : > { %1102 = vrot.lane.b32.xlu1 %v8582_v5, %s8267_s10  ;;  %1395 = vrot.lane.b32.xlu2 %v8676_v29, %s8267_s10 }
 0x1d1   : > { %1112 = vrot.lane.b32.xlu0 %v8626_v49, %s8266_s9 }
 0x1d2   : > { %1108 = vrot.lane.b32.xlu1 %v8584_v7, %s8267_s10  ;;  %1407 = vrot.lane.b32.xlu2 %v8624_v48, %s8267_s10 }
 0x1d9   : > { %1100 = vrot.lane.b32.xlu0 %v8606_v31, %s8267_s10 }
 0x1da   : > { %1403 = vrot.lane.b32.xlu1 %v8644_v18, %s8267_s10 }
 0x1e1   : > { %1106 = vrot.lane.b32.xlu0 %v8553_v13, %s8267_s10 }
 0x1e2   : > { %1399 = vrot.lane.b32.xlu1 %v8661_v51, %s8267_s10 }
 0x1e3   : > { %v640_v30 = vpop.permute.xlu2 %639 }
 0x1e4   : > { %v685_v8 = vsel %vm12718_vm0, %v640_v30, 0 }
 0x1e9   : > { %1405 = vrot.lane.b32.xlu0 %v8639_v42, %s8267_s10 }
 0x1ea   : > { %1393 = vrot.lane.b32.xlu1 %v8686_v38, %s8267_s10 }
 0x1eb   : > { %v1123_v56 = vpop.permute.xlu2 %1122 }
 0x1ec   : > { %v1168_v16 = vsel %vm12718_vm0, %v1123_v56, 0 }
 0x1f1   : > { %1401 = vrot.lane.b32.xlu0 %v8656_v6, %s8267_s10 }
 0x1f3   : > { %v636_v25 = vpop.permute.xlu2 %635 }
 0x1f4   : > { %v679_v4 = vsel %vm12718_vm0, %v636_v25, 0 }
 0x1f9   : > { %1397 = vrot.lane.b32.xlu0 %v8671_v35, %s8267_s10 }
 0x1fb   : > { %v1117_v47 = vpop.permute.xlu2 %1116 }
 0x1fc   : > { %v1159_v25 = vsel %vm12718_vm0, %v1117_v47, 0 }
 0x204   : > { %v630_v59 = vpop.permute.xlu2 %629 }
 0x20b   : > { %v642_v37 = vpop.permute.xlu1 %641 }
 0x20c   : > { %v688_v1 = vsel %vm12718_vm0, %v642_v37, 0  ;;  %v1099_v45 = vpop.permute.xlu2 %1098 }
 0x213   : > { %v1125_v46 = vpop.permute.xlu1 %1124 }
 0x214   : > { %v1171_v15 = vsel %vm12718_vm0, %v1125_v46, 0  ;;  %v1105_v17 = vpop.permute.xlu2 %1104 }
 0x21b   : > { %v644_v41 = vpop.permute.xlu0 %643 }
 0x21c   : > { %v691_v40 = vsel %vm12718_vm0, %v644_v41, 0  ;;  %v1121_v55 = vpop.permute.xlu1 %1120  ;;  %v1111_v28 = vpop.permute.xlu2 %1110 }
 0x21d   : > { %693 = vmatpush.bf16.xpose.msrb.mxu3 %v691_v40  ;;  %v1165_v24 = vsel %vm12718_vm0, %v1121_v55, 0  ;;  %v670_v40 = vsel %vm12718_vm0, %v630_v59, 0 }
 0x223   : > { %v1127_v61 = vpop.permute.xlu0 %1126 }
 0x224   : > { %v1174_v62 = vsel %vm12718_vm0, %v1127_v61, 0  ;;  %v634_v53 = vpop.permute.xlu1 %633  ;;  %v1396_v30 = vpop.permute.xlu2 %1395 }
 0x225   : > { %694 = vmatpush.bf16.xpose.msrb.mxu3 %v688_v1  ;;  %1176 = vmatpush.bf16.xpose.msrb.mxu2 %v1174_v62  ;;  %v676_v3 = vsel %vm12718_vm0, %v634_v53, 0 }
 0x22b   : > { %v638_v2 = vpop.permute.xlu0 %637 }
 0x22c   : > { %v682_v54 = vsel %vm12718_vm0, %v638_v2, 0  ;;  %v1115_v36 = vpop.permute.xlu1 %1114  ;;  %v1408_v61 = vpop.permute.xlu2 %1407 }
 0x22d   : > { %695 = vmatpush.bf16.xpose.msrb.mxu3 %v685_v8  ;;  %1177 = vmatpush.bf16.xpose.msrb.mxu2 %v1171_v15  ;;  %v1156_v55 = vsel %vm12718_vm0, %v1115_v36, 0  ;;  %v337_v15 = vlaneseq }
 0x233   : > { %v1119_v26 = vpop.permute.xlu0 %1118 }
 0x234   : > { %v1097_v50 = vpop.permute.xlu1 %1096  ;;  %v1162_v14 = vsel %vm12718_vm0, %v1119_v26, 0  ;;  %v8759_v26 = vand.u32 127, %v337_v15 }
 0x235   : > { %696 = vmatpush.bf16.xpose.msrb.mxu3 %v682_v54  ;;  %1178 = vmatpush.bf16.xpose.msrb.mxu2 %v1168_v16  ;;  %v12833_v16 = vmov 0 }
 0x23b   : > { %v632_v52 = vpop.permute.xlu0 %631 }
 0x23c   : > { %v1103_v34 = vpop.permute.xlu1 %1102  ;;  %v673_v37 = vsel %vm12718_vm0, %v632_v52, 0 }
 0x23d   : > { %697 = vmatpush.bf16.xpose.msrb.mxu3 %v679_v4  ;;  %1179 = vmatpush.bf16.xpose.msrb.mxu2 %v1165_v24  ;;  %v12836_v24 = vmov 0 }
 0x243   : > { %v1113_v60 = vpop.permute.xlu0 %1112 }
 0x244   : > { %v1109_v41 = vpop.permute.xlu1 %1108  ;;  %v1153_v1 = vsel %vm12718_vm0, %v1113_v60, 0 }
 0x245   : > { %698 = vmatpush.bf16.xpose.msrb.mxu3 %v676_v3  ;;  %1180 = vmatpush.bf16.xpose.msrb.mxu2 %v1162_v14 }
 0x24b   : > { %v1101_v56 = vpop.permute.xlu0 %1100 }
 0x24c   : > { %v1404_v47 = vpop.permute.xlu1 %1403 }
 0x24d   : > { %699 = vmatpush.bf16.xpose.msrb.mxu3 %v673_v37  ;;  %1181 = vmatpush.bf16.xpose.msrb.mxu2 %v1159_v25 }
 0x253   : > { %v1107_v46 = vpop.permute.xlu0 %1106 }
 0x254   : > { %v1400_v59 = vpop.permute.xlu1 %1399 }
 0x255   : > { %700 = vmatpush.bf16.xpose.msrb.mxu3 %v670_v40  ;;  %1182 = vmatpush.bf16.xpose.msrb.mxu2 %v1156_v55  ;;  %v12842_v55 = vmov 0 }
 0x25b   : > { %v1406_v62 = vpop.permute.xlu0 %1405 }
 0x25c   : > { %7153 = vmatmul.msk.bf16.vlgmr.msrb.gmra.mxu3 %vm12718_vm0, %v8626_v49  ;;  %v1394_v8 = vpop.permute.xlu1 %1393 }
 0x25d   : > { %1417 = vmatpush.bf16.msra.mxu3 %v1408_v61  ;;  %1183 = vmatpush.bf16.xpose.msrb.mxu2 %v1153_v1 }
 0x261   : > { %1418 = vmatpush.bf16.msra.mxu3 %v1406_v62 }
 0x263   : > { %v1402_v2 = vpop.permute.xlu0 %1401 }
 0x264   : > { %7173 = vmatmul.msk.bf16.vlgmr.msrb.gmra.mxu2 %vm12718_vm0, %v1097_v50 }
 0x265   : > { %1419 = vmatpush.bf16.msra.mxu3 %v1404_v47 }
 0x269   : > { %1420 = vmatpush.bf16.msra.mxu3 %v1402_v2 }
 0x26b   : > { %v1398_v53 = vpop.permute.xlu0 %1397 }
 0x26c   : > { %7154 = vmatmul.msk.bf16.gmra.mxu3 %vm12718_vm0, %v8646_v19 }
 0x26d   : > { %1421 = vmatpush.bf16.msra.mxu3 %v1400_v59 }
 0x271   : > { %1422 = vmatpush.bf16.msra.mxu3 %v1398_v53  ;;  %v12845_v53 = vmov 0 }
 0x274   : > { %7174 = vmatmul.msk.bf16.gmra.mxu2 %vm12718_vm0, %v1099_v45  ;;  %v8757_v45 = vshrl.u32 %v337_v15, 7 }
 0x275   : > { %1423 = vmatpush.bf16.msra.mxu3 %v1396_v30  ;;  %v12839_v30 = vmov 0 }
 0x276   : > { %v356_v54 = vxor.u32 %v8759_v26, %v8757_v45  ;;  %v339_v36 = vadd.s32 8, %v8757_v45  ;;  %v340_v50 = vadd.s32 16, %v8757_v45  ;;  %v342_v61 = vadd.s32 32, %v8757_v45 }
 0x277   : > { %v350_v33 = vadd.s32 96, %v8757_v45 }
 0x278   : > { %vm8763_vm2 = vcmp.lt.s32.totalorder %v356_v54, 16  ;;  %v357_v4 = vxor.u32 %v8759_v26, %v339_v36  ;;  %v360_v59 = vxor.u32 %v8759_v26, %v342_v61  ;;  %v345_v61 = vadd.s32 56, %v8757_v45 }
 0x279   : > { %1424 = vmatpush.bf16.msra.mxu3 %v1394_v8  ;;  %v12834_v16 = vsel %vm8763_vm2, 4294967295, %v12833_v16  ;;  %v343_v8 = vadd.s32 40, %v8757_v45 }
 0x27a   : > { %12835 = vst [vmem:[#allocation18_spill] sm:$0xff] %v12834_v16  ;;  %vm8774_vm3 = vcmp.lt.s32.totalorder %v357_v4, 16  ;;  %vm8822_vm6 = vcmp.lt.s32.totalorder %v360_v59, 16 }
 0x27b   : > { %v12837_v24 = vsel %vm8774_vm3, 4294967295, %v12836_v24  ;;  %v12846_v53 = vsel %vm8822_vm6, 4294967295, %v12845_v53  ;;  %v361_v4 = vxor.u32 %v8759_v26, %v343_v8 }
 0x27c   : > { %7155 = vmatmul.msk.bf16.gmra.mxu3 %vm12718_vm0, %v8606_v31  ;;  %12838 = vst [vmem:[#allocation19_spill] sm:$0xff] %v12837_v24 }
 0x27d   : > { %12847 = vst [vmem:[#allocation22_spill] sm:$0xff] %v12846_v53  ;;  %vm8838_vm7 = vcmp.lt.s32.totalorder %v361_v4, 16  ;;  %v346_v4 = vadd.s32 64, %v8757_v45 }
 0x284   : > { %7175 = vmatmul.msk.bf16.gmra.mxu2 %vm12718_vm0, %v1101_v56  ;;  %v341_v56 = vadd.s32 24, %v8757_v45 }
 0x286   : > { %v359_v40 = vxor.u32 %v8759_v26, %v341_v56 }
 0x288   : > { %vm8806_vm5 = vcmp.lt.s32.totalorder %v359_v40, 16  ;;  %v12851_v40 = vmov 0 }
 0x289   : > { %v12843_v55 = vsel %vm8806_vm5, 4294967295, %v12842_v55 }
 0x28a   : > { %12844 = vst [vmem:[#allocation21_spill] sm:$0xff] %v12843_v55 }
 0x28c   : > { %7156 = vmatmul.msk.bf16.gmra.mxu3 %vm12718_vm0, %v8582_v5 }
 0x294   : > { %7176 = vmatmul.msk.bf16.gmra.mxu2 %vm12718_vm0, %v1103_v34  ;;  %v358_v34 = vxor.u32 %v8759_v26, %v340_v50  ;;  %v12848_v50 = vmov 0 }
 0x295   : > { %v12849_v50 = vsel %vm8838_vm7, 4294967295, %v12848_v50 }
 0x296   : > { %vm8790_vm4 = vcmp.lt.s32.totalorder %v358_v34, 16  ;;  %12850 = vst [vmem:[#allocation23_spill] sm:$0xff] %v12849_v50 }
 0x297   : > { %v12840_v30 = vsel %vm8790_vm4, 4294967295, %v12839_v30 }
 0x298   : > { %12841 = vst [vmem:[#allocation20_spill] sm:$0xff] %v12840_v30 }
 0x29c   : > { %7157 = vmatmul.msk.bf16.gmra.mxu3 %vm12718_vm0, %v8628_v27 }
 0x2a4   : > { %7177 = vmatmul.msk.bf16.gmra.mxu2 %vm12718_vm0, %v1105_v17 }
 0x2ac   : > { %7158 = vmatmul.msk.bf16.gmra.mxu3 %vm12718_vm0, %v8553_v13 }
 0x2b4   : > { %7178 = vmatmul.msk.bf16.gmra.mxu2 %vm12718_vm0, %v1107_v46 }
 0x2bc   : > { %7159 = vmatmul.msk.bf16.gmra.mxu3 %vm12718_vm0, %v8584_v7 }
 0x2c4   : > { %7179 = vmatmul.msk.bf16.gmra.mxu2 %vm12718_vm0, %v1109_v41 }
 0x2cc   : > { %7160 = vmatmul.msk.bf16.gmra.mxu3 %vm12718_vm0, %v8622_v39 }
 0x2d4   : > { %7180 = vmatmul.msk.bf16.gmra.mxu2 %vm12718_vm0, %v1111_v28 }
 0x2df   : > { %v702_v17 = vpop.f32.mrf.mxu3 }
 0x2e0   : > { %v8770_v52 = vsel %vm8763_vm2, %v702_v17, -1e+30 }
 0x2e1   : > { %758 = vmax.xlane.f32.xlu0 %v8770_v52 }
 0x2e7   : > { %v704_v28 = vpop.f32.mrf.mxu3  ;;  %v1185_v60 = vpop.f32.mrf.mxu2 }
 0x2e8   : > { %v8781_v3 = vsel %vm8763_vm2, %v1185_v60, -1e+30  ;;  %v8785_v14 = vsel %vm8774_vm3, %v704_v28, -1e+30  ;;  %v344_v28 = vadd.s32 48, %v8757_v45 }
 0x2e9   : > { %1241 = vmax.xlane.f32.xlu2 %v8781_v3  ;;  %760 = vmax.xlane.f32.xlu1 %v8785_v14 }
 0x2ef   : > { %v707_v37 = vpop.f32.mrf.mxu3  ;;  %v1187_v25 = vpop.f32.mrf.mxu2 }
 0x2f0   : > { %v8797_v46 = vsel %vm8774_vm3, %v1187_v25, -1e+30  ;;  %v8801_v41 = vsel %vm8790_vm4, %v707_v37, -1e+30  ;;  %v362_v25 = vxor.u32 %v8759_v26, %v344_v28 }
 0x2f1   : > { %1243 = vmax.xlane.f32.xlu2 %v8797_v46  ;;  %762 = vmax.xlane.f32.xlu0 %v8801_v41 }
 0x2f2   : > { %vm8854_vm8 = vcmp.lt.s32.totalorder %v362_v25, 16 }
 0x2f3   : > { %v12852_v40 = vsel %vm8854_vm8, 4294967295, %v12851_v40 }
 0x2f4   : > { %12853 = vst [vmem:[#allocation24_spill] sm:$0xff] %v12852_v40 }
 0x2f7   : > { %v709_v62 = vpop.f32.mrf.mxu3  ;;  %v1190_v1 = vpop.f32.mrf.mxu2 }
 0x2f8   : > { %v8813_v47 = vsel %vm8806_vm5, %v709_v62, -1e+30  ;;  %v8817_v2 = vsel %vm8790_vm4, %v1190_v1, -1e+30 }
 0x2f9   : > { %764 = vmax.xlane.f32.xlu1 %v8813_v47  ;;  %1245 = vmax.xlane.f32.xlu2 %v8817_v2 }
 0x2ff   : > { %v712_v15 = vpop.f32.mrf.mxu3  ;;  %v1192_v54 = vpop.f32.mrf.mxu2 }
 0x300   : > { %v8829_v36 = vsel %vm8822_vm6, %v712_v15, -1e+30  ;;  %v8833_v17 = vsel %vm8806_vm5, %v1192_v54, -1e+30  ;;  %v363_v15 = vxor.u32 %v8759_v26, %v345_v61  ;;  %v12854_v54 = vmov 0 }
 0x301   : > { %766 = vmax.xlane.f32.xlu1 %v8829_v36  ;;  %1247 = vmax.xlane.f32.xlu0 %v8833_v17  ;;  %v364_v61 = vxor.u32 %v8759_v26, %v346_v4 }
 0x302   : > { %vm8870_vm9 = vcmp.lt.s32.totalorder %v363_v15, 16 }
 0x303   : > { %v12855_v54 = vsel %vm8870_vm9, 4294967295, %v12854_v54  ;;  %vm8886_vm10 = vcmp.lt.s32.totalorder %v364_v61, 16  ;;  %v12860_v61 = vmov 0 }
 0x304   : > { %12856 = vst [vmem:[#allocation25_spill] sm:$0xff] %v12855_v54 }
 0x307   : > { %v714_v60 = vpop.f32.mrf.mxu3  ;;  %v1195_v34 = vpop.f32.mrf.mxu2 }
 0x308   : > { %v8845_v56 = vsel %vm8838_vm7, %v714_v60, -1e+30  ;;  %v8849_v37 = vsel %vm8822_vm6, %v1195_v34, -1e+30 }
 0x309   : > { %768 = vmax.xlane.f32.xlu2 %v8845_v56  ;;  %1249 = vmax.xlane.f32.xlu0 %v8849_v37 }
 0x30f   : > { %v717_v62 = vpop.f32.mrf.mxu3  ;;  %v1197_v1 = vpop.f32.mrf.mxu2 }
 0x310   : > { %v8861_v59 = vsel %vm8854_vm8, %v717_v62, -1e+30  ;;  %v8865_v8 = vsel %vm8838_vm7, %v1197_v1, -1e+30  ;;  %v12857_v62 = vmov 0  ;;  %v347_v1 = vadd.s32 72, %v8757_v45 }
 0x311   : > { %770 = vmax.xlane.f32.xlu2 %v8861_v59  ;;  %1251 = vmax.xlane.f32.xlu1 %v8865_v8  ;;  %v12858_v62 = vsel %vm8886_vm10, 4294967295, %v12857_v62 }
 0x312   : > { %12859 = vst [vmem:[#allocation26_spill] sm:$0xff] %v12858_v62  ;;  %v365_v4 = vxor.u32 %v8759_v26, %v347_v1  ;;  %v349_v1 = vadd.s32 88, %v8757_v45 }
 0x314   : > { %vm8902_vm11 = vcmp.lt.s32.totalorder %v365_v4, 16  ;;  %v348_v4 = vadd.s32 80, %v8757_v45 }
 0x315   : > { %v12861_v61 = vsel %vm8902_vm11, 4294967295, %v12860_v61 }
 0x316   : > { %12862 = vst [vmem:[#allocation27_spill] sm:$0xff] %v12861_v61 }
 0x317   : > { %v719_v28 = vpop.f32.mrf.mxu3  ;;  %v1200_v60 = vpop.f32.mrf.mxu2 }
 0x318   : > { %v8877_v34 = vsel %vm8870_vm9, %v719_v28, -1e+30  ;;  %v8881_v25 = vsel %vm8854_vm8, %v1200_v60, -1e+30 }
 0x319   : > { %772 = vmax.xlane.f32.xlu1 %v8877_v34  ;;  %1253 = vmax.xlane.f32.xlu0 %v8881_v25 }
 0x31f   : > { %v722_v15 = vpop.f32.mrf.mxu3  ;;  %v1202_v23 = vpop.f32.mrf.mxu2 }
 0x320   : > { %v8893_v28 = vsel %vm8886_vm10, %v722_v15, -1e+30  ;;  %v8897_v60 = vsel %vm8870_vm9, %v1202_v23, -1e+30 }
 0x321   : > { %774 = vmax.xlane.f32.xlu1 %v8893_v28  ;;  %1255 = vmax.xlane.f32.xlu2 %v8897_v60 }
 0x327   : > { %v724_v20 = vpop.f32.mrf.mxu3  ;;  %v1205_v12 = vpop.f32.mrf.mxu2 }
 0x328   : > { %v8908_v15 = vsel %vm8902_vm11, %v724_v20, -1e+30  ;;  %v8912_v23 = vsel %vm8886_vm10, %v1205_v12, -1e+30  ;;  %v367_v20 = vxor.u32 %v8759_v26, %v349_v1  ;;  %v366_v12 = vxor.u32 %v8759_v26, %v348_v4 }
 0x329   : > { %776 = vmax.xlane.f32.xlu0 %v8908_v15  ;;  %1257 = vmax.xlane.f32.xlu2 %v8912_v23 }
 0x32a   : > { %vm8925_vm12 = vcmp.lt.s32.totalorder %v367_v20, 16  ;;  %vm8929_vm13 = vcmp.lt.s32.totalorder %v366_v12, 16  ;;  %v368_v20 = vxor.u32 %v8759_v26, %v350_v33  ;;  %v12869_v12 = vmov 0 }
 0x32b   : > { %v12864_v44 = vsel %vm8925_vm12, 4294967295, %v12863_v44  ;;  %v12867_v43 = vsel %vm8929_vm13, 4294967295, %v12866_v43 }
 0x32c   : > { %12865 = vst [vmem:[#allocation28_spill] sm:$0xff] %v12864_v44  ;;  %vm8950_vm14 = vcmp.lt.s32.totalorder %v368_v20, 16 }
 0x32d   : > { %12868 = vst [vmem:[#allocation29_spill] sm:$0xff] %v12867_v43  ;;  %v12870_v12 = vsel %vm8950_vm14, 4294967295, %v12869_v12 }
 0x32e   : > { %12871 = vst [vmem:[#allocation30_spill] sm:$0xff] %v12870_v12 }
 0x32f   : > { %v727_v9 = vpop.f32.mrf.mxu3  ;;  %v1207_v58 = vpop.f32.mrf.mxu2 }
 0x330   : > { %v8920_v57 = vsel %vm8902_vm11, %v1207_v58, -1e+30  ;;  %v8940_v1 = vsel %vm8929_vm13, %v727_v9, -1e+30 }
 0x331   : > { %1259 = vmax.xlane.f32.xlu1 %v8920_v57 }
 0x337   : > { %v729_v32 = vpop.f32.mrf.mxu3  ;;  %v1210_v22 = vpop.f32.mrf.mxu2 }
 0x338   : > { %v8936_v58 = vsel %vm8925_vm12, %v729_v32, -1e+30  ;;  %v8944_v4 = vsel %vm8929_vm13, %v1210_v22, -1e+30 }
 0x339   : > { %780 = vmax.xlane.f32.xlu2 %v8936_v58  ;;  %778 = vmax.xlane.f32.xlu1 %v8940_v1 }
 0x33a   : > { %1261 = vmax.xlane.f32.xlu0 %v8944_v4 }
 0x33f   : > { %v732_v32 = vpop.f32.mrf.mxu3  ;;  %v1212_v21 = vpop.f32.mrf.mxu2 }
 0x340   : > { %v8956_v9 = vsel %vm8950_vm14, %v732_v32, -1e+30  ;;  %v8960_v22 = vsel %vm8925_vm12, %v1212_v21, -1e+30 }
 0x341   : > { %1263 = vmax.xlane.f32.xlu1 %v8960_v22 }
 0x342   : > { %782 = vmax.xlane.f32.xlu0 %v8956_v9 }
 0x354   : > { %v759_v33 = vpop.xlane.xlu0 %758 }
 0x355   : > { %v790_v20 = vsub.f32 %v8770_v52, %v759_v33 }
 0x357   : > { %v806_v11 = vmul.f32 1.442695, %v790_v20 }
 0x359   : > { %7609 = vpow2.f32 %v806_v11 }
 0x35c   : > { %v761_v10 = vpop.xlane.xlu1 %760  ;;  %v1242_v0 = vpop.xlane.xlu2 %1241 }
 0x35d   : > { %v791_v63 = vsub.f32 %v8785_v14, %v761_v10  ;;  %v1273_v32 = vsub.f32 %v8781_v3, %v1242_v0 }
 0x35f   : > { %v8967_v43 = vpop.eup %7609  ;;  %v808_v44 = vmul.f32 1.442695, %v791_v63  ;;  %v1289_v21 = vmul.f32 1.442695, %v1273_v32 }
 0x360   : > { %838 = vadd.xlane.f32.xlu0 %v8967_v43 }
 0x361   : > { %7611 = vpow2.f32 %v808_v44 }
 0x362   : > { %7613 = vpow2.f32 %v1289_v21  ;;  %v351_v21 = vadd.s32 104, %v8757_v45 }
 0x364   : > { %v763_v61 = vpop.xlane.xlu0 %762  ;;  %v1244_v62 = vpop.xlane.xlu2 %1243 }
 0x365   : > { %v792_v52 = vsub.f32 %v8801_v41, %v763_v61  ;;  %v1274_v11 = vsub.f32 %v8797_v46, %v1244_v62 }
 0x367   : > { %v8972_v33 = vpop.eup %7611  ;;  %v810_v20 = vmul.f32 1.442695, %v792_v52  ;;  %v1291_v10 = vmul.f32 1.442695, %v1274_v11 }
 0x368   : > { %v8974_v14 = vpop.eup %7613  ;;  %840 = vadd.xlane.f32.xlu2 %v8972_v33 }
 0x369   : > { %7615 = vpow2.f32 %v810_v20  ;;  %1321 = vadd.xlane.f32.xlu0 %v8974_v14 }
 0x36a   : > { %7617 = vpow2.f32 %v1291_v10 }
 0x36c   : > { %v765_v63 = vpop.xlane.xlu1 %764  ;;  %v1246_v0 = vpop.xlane.xlu2 %1245 }
 0x36d   : > { %v793_v44 = vsub.f32 %v8813_v47, %v765_v63  ;;  %v1275_v3 = vsub.f32 %v8817_v2, %v1246_v0  ;;  %v369_v63 = vxor.u32 %v8759_v26, %v351_v21  ;;  %v734_v0 = vpop.f32.mrf.mxu3 }
 0x36f   : > { %v8980_v41 = vpop.eup %7615  ;;  %v812_v46 = vmul.f32 1.442695, %v793_v44  ;;  %v1293_v62 = vmul.f32 1.442695, %v1275_v3  ;;  %vm8996_vm15 = vcmp.lt.s32.totalorder %v369_v63, 16 }
 0x370   : > { %v8982_v61 = vpop.eup %7617  ;;  %v9004_v21 = vsel %vm8996_vm15, %v734_v0, -1e+30 }
 0x371   : > { %7619 = vpow2.f32 %v812_v46  ;;  %842 = vadd.xlane.f32.xlu0 %v8980_v41  ;;  %1323 = vadd.xlane.f32.xlu2 %v8982_v61 }
 0x372   : > { %7621 = vpow2.f32 %v1293_v62  ;;  %v1215_v62 = vpop.f32.mrf.mxu2 }
 0x374   : > { %v1248_v32 = vpop.xlane.xlu0 %1247  ;;  %v767_v52 = vpop.xlane.xlu1 %766 }
 0x375   : > { %v1276_v47 = vsub.f32 %v8833_v17, %v1248_v32  ;;  %v794_v10 = vsub.f32 %v8829_v36, %v767_v52  ;;  %v12872_v17 = vmov 0 }
 0x376   : > { %v12873_v17 = vsel %vm8996_vm15, 4294967295, %v12872_v17 }
 0x377   : > { %v8988_v11 = vpop.eup %7619  ;;  %v1295_v2 = vmul.f32 1.442695, %v1276_v47  ;;  %v814_v44 = vmul.f32 1.442695, %v794_v10  ;;  %12874 = vst [vmem:[#allocation31_spill] sm:$0xff] %v12873_v17 }
 0x378   : > { %v8990_v20 = vpop.eup %7621  ;;  %844 = vadd.xlane.f32.xlu1 %v8988_v11  ;;  %v9011_v10 = vsel %vm8950_vm14, %v1215_v62, -1e+30 }
 0x379   : > { %1325 = vadd.xlane.f32.xlu2 %v8990_v20  ;;  %7623 = vpow2.f32 %v1295_v2 }
 0x37a   : > { %7625 = vpow2.f32 %v814_v44 }
 0x37c   : > { %v1250_v3 = vpop.xlane.xlu0 %1249  ;;  %v769_v46 = vpop.xlane.xlu2 %768 }
 0x37d   : > { %v1277_v32 = vsub.f32 %v8849_v37, %v1250_v3  ;;  %v795_v36 = vsub.f32 %v8845_v56, %v769_v46 }
 0x37f   : > { %v1297_v52 = vmul.f32 1.442695, %v1277_v32  ;;  %v816_v47 = vmul.f32 1.442695, %v795_v36  ;;  %v9006_v2 = vpop.eup %7623 }
 0x380   : > { %784 = vmax.xlane.f32.xlu1 %v9004_v21  ;;  %1327 = vadd.xlane.f32.xlu0 %v9006_v2  ;;  %v9017_v3 = vpop.eup %7625 }
 0x381   : > { %7627 = vpow2.f32 %v1297_v52  ;;  %1265 = vmax.xlane.f32.xlu2 %v9011_v10  ;;  %v1217_v52 = vpop.f32.mrf.mxu2 }
 0x382   : > { %7629 = vpow2.f32 %v816_v47 }
 0x384   : > { %v1252_v56 = vpop.xlane.xlu1 %1251  ;;  %v771_v37 = vpop.xlane.xlu2 %770 }
 0x385   : > { %v1278_v63 = vsub.f32 %v8865_v8, %v1252_v56  ;;  %v796_v0 = vsub.f32 %v8861_v59, %v771_v37 }
 0x387   : > { %v9019_v44 = vpop.eup %7627  ;;  %v1299_v46 = vmul.f32 1.442695, %v1278_v63  ;;  %v818_v32 = vmul.f32 1.442695, %v796_v0 }
 0x388   : > { %v9021_v62 = vpop.eup %7629  ;;  %1329 = vadd.xlane.f32.xlu1 %v9019_v44 }
 0x389   : > { %7631 = vpow2.f32 %v1299_v46  ;;  %846 = vadd.xlane.f32.xlu2 %v9017_v3  ;;  %848 = vadd.xlane.f32.xlu0 %v9021_v62  ;;  %v9034_v46 = vsel %vm8996_vm15, %v1217_v52, -1e+30 }
 0x38a   : > { %7633 = vpow2.f32 %v818_v32 }
 0x38c   : > { %v773_v36 = vpop.xlane.xlu1 %772  ;;  %v1254_v8 = vpop.xlane.xlu0 %1253 }
 0x38d   : > { %v797_v59 = vsub.f32 %v8877_v34, %v773_v36  ;;  %v1279_v47 = vsub.f32 %v8881_v25, %v1254_v8  ;;  %v737_v34 = vpop.f32.mrf.mxu3  ;;  %v352_v36 = vadd.s32 112, %v8757_v45  ;;  %v353_v8 = vadd.s32 120, %v8757_v45 }
 0x38e   : > { %v12875_v45 = vmov 0 }
 0x38f   : > { %v9028_v56 = vpop.eup %7631  ;;  %v820_v37 = vmul.f32 1.442695, %v797_v59  ;;  %v1301_v63 = vmul.f32 1.442695, %v1279_v47  ;;  %v371_v17 = vxor.u32 %v8759_v26, %v353_v8 }
 0x390   : > { %v9030_v0 = vpop.eup %7633 }
 0x391   : > { %7635 = vpow2.f32 %v820_v37  ;;  %1331 = vadd.xlane.f32.xlu2 %v9028_v56  ;;  %1267 = vmax.xlane.f32.xlu0 %v9034_v46  ;;  %vm9055_vm0 = vcmp.lt.s32.totalorder %v371_v17, 16 }
 0x392   : > { %7637 = vpow2.f32 %v1301_v63  ;;  %850 = vadd.xlane.f32.xlu1 %v9030_v0  ;;  %v370_v63 = vxor.u32 %v8759_v26, %v352_v36 }
 0x394   : > { %v1256_v25 = vpop.xlane.xlu2 %1255  ;;  %v775_v52 = vpop.xlane.xlu1 %774  ;;  %vm9051_vm1 = vcmp.lt.s32.totalorder %v370_v63, 16 }
 0x395   : > { %v1280_v32 = vsub.f32 %v8897_v60, %v1256_v25  ;;  %v798_v60 = vsub.f32 %v8893_v28, %v775_v52  ;;  %v1220_v25 = vpop.f32.mrf.mxu2  ;;  %v739_v12 = vpop.f32.mrf.mxu3  ;;  %v12876_v45 = vsel %vm9051_vm1, 4294967295, %v12875_v45  ;;  %v9063_v26 = vsel %vm9051_vm1, %v737_v34, -1e+30 }
 0x396   : > { %12877 = vst [vmem:[#allocation32_spill] sm:$0xff] %v12876_v45  ;;  %v9067_v28 = vsel %vm9055_vm0, %v739_v12, -1e+30 }
 0x397   : > { %v9042_v59 = vpop.eup %7635  ;;  %v1303_v47 = vmul.f32 1.442695, %v1280_v32  ;;  %v12878_v32 = vmov 0  ;;  %v822_v54 = vmul.f32 1.442695, %v798_v60 }
 0x398   : > { %v9044_v37 = vpop.eup %7637  ;;  %v12879_v32 = vsel %vm9055_vm0, 4294967295, %v12878_v32 }
 0x399   : > { %852 = vadd.xlane.f32.xlu2 %v9042_v59  ;;  %1333 = vadd.xlane.f32.xlu0 %v9044_v37  ;;  %7639 = vpow2.f32 %v1303_v47  ;;  %12880 = vst [vmem:[#allocation33_spill] sm:$0xff] %v12879_v32 }
 0x39a   : > { %7641 = vpow2.f32 %v822_v54 }
 0x39c   : > { %v1258_v40 = vpop.xlane.xlu2 %1257  ;;  %v777_v36 = vpop.xlane.xlu0 %776 }
 0x39d   : > { %v1281_v17 = vsub.f32 %v8912_v23, %v1258_v40  ;;  %v799_v8 = vsub.f32 %v8908_v15, %v777_v36  ;;  %v1222_v47 = vpop.f32.mrf.mxu2  ;;  %v9085_v40 = vsel %vm9051_vm1, %v1220_v25, -1e+30 }
 0x39e   : > { %v9079_v55 = vsel %vm9055_vm0, %v1222_v47, -1e+30  ;;  %vm12881_vm0 = vcmask 130048  }
 0x39f   : > { %v9059_v50 = vpop.eup %7639  ;;  %v1305_v63 = vmul.f32 1.442695, %v1281_v17  ;;  %v824_v60 = vmul.f32 1.442695, %v799_v8  ;;  %vm12882_vm1 = vmmov %vm12881_vm0 }
 0x3a0   : > { %1335 = vadd.xlane.f32.xlu1 %v9059_v50  ;;  %v9075_v12 = vpop.eup %7641  ;;  %vm12883_vm15 = vmmov %vm12881_vm0 }
 0x3a1   : > { %786 = vmax.xlane.f32.xlu2 %v9063_v26  ;;  %788 = vmax.xlane.f32.xlu0 %v9067_v28  ;;  %vm12884_vm14 = vmmov %vm12881_vm0 }
 0x3a2   : > { %vm12887_vm12 = vmmov %vm12881_vm0 }
 0x3a3   : > { %vm12891_vm13 = vmmov %vm12881_vm0 }
 0x3a4   : > { %v1260_v52 = vpop.xlane.xlu1 %1259 }
 0x3a5   : > { %v1282_v34 = vsub.f32 %v8920_v57, %v1260_v52 }
 0x3a7   : > { %v1307_v53 = vmul.f32 1.442695, %v1282_v34 }
 0x3a8   : > { %1269 = vmax.xlane.f32.xlu1 %v9085_v40 }
 0x3a9   : > { %7643 = vpow2.f32 %v1307_v53  ;;  %1271 = vmax.xlane.f32.xlu2 %v9079_v55  ;;  %854 = vadd.xlane.f32.xlu0 %v9075_v12 }
 0x3aa   : > { %7645 = vpow2.f32 %v1305_v63 }
 0x3ab   : > { %7647 = vpow2.f32 %v824_v60 }
 0x3ac   : > { %v779_v57 = vpop.xlane.xlu1 %778  ;;  %v781_v54 = vpop.xlane.xlu2 %780 }
 0x3ad   : > { %v800_v15 = vsub.f32 %v8940_v1, %v779_v57  ;;  %v1262_v23 = vpop.xlane.xlu0 %1261  ;;  %v801_v36 = vsub.f32 %v8936_v58, %v781_v54 }
 0x3ae   : > { %v1283_v53 = vsub.f32 %v8944_v4, %v1262_v23 }
 0x3af   : > { %v9091_v17 = vpop.eup %7643  ;;  %v826_v8 = vmul.f32 1.442695, %v800_v15  ;;  %v828_v52 = vmul.f32 1.442695, %v801_v36 }
 0x3b0   : > { %v9093_v47 = vpop.eup %7645  ;;  %v1309_v25 = vmul.f32 1.442695, %v1283_v53 }
 0x3b1   : > { %v9095_v34 = vpop.eup %7647  ;;  %7649 = vpow2.f32 %v826_v8  ;;  %1339 = vadd.xlane.f32.xlu0 %v9091_v17  ;;  %1337 = vadd.xlane.f32.xlu2 %v9093_v47 }
 0x3b2   : > { %7651 = vpow2.f32 %v1309_v25  ;;  %856 = vadd.xlane.f32.xlu1 %v9095_v34 }
 0x3b3   : > { %7653 = vpow2.f32 %v828_v52 }
 0x3b4   : > { %v1264_v58 = vpop.xlane.xlu1 %1263 }
 0x3b5   : > { %v783_v1 = vpop.xlane.xlu0 %782  ;;  %v1284_v4 = vsub.f32 %v8960_v22, %v1264_v58 }
 0x3b6   : > { %v802_v63 = vsub.f32 %v8956_v9, %v783_v1 }
 0x3b7   : > { %v9102_v60 = vpop.eup %7649  ;;  %v1311_v57 = vmul.f32 1.442695, %v1284_v4 }
 0x3b8   : > { %v9104_v54 = vpop.eup %7651  ;;  %v830_v15 = vmul.f32 1.442695, %v802_v63 }
 0x3b9   : > { %v9106_v23 = vpop.eup %7653  ;;  %7655 = vpow2.f32 %v1311_v57  ;;  %1341 = vadd.xlane.f32.xlu0 %v9104_v54 }
 0x3ba   : > { %7657 = vpow2.f32 %v830_v15  ;;  %858 = vadd.xlane.f32.xlu1 %v9102_v60  ;;  %860 = vadd.xlane.f32.xlu2 %v9106_v23 }
 0x3bf   : > { %v9111_v36 = vpop.eup %7655 }
 0x3c0   : > { %v9113_v22 = vpop.eup %7657 }
 0x3c2   : > { %1343 = vadd.xlane.f32.xlu1 %v9111_v36  ;;  %862 = vadd.xlane.f32.xlu2 %v9113_v22 }
 0x3d3   : > { %v839_v9 = vpop.xlane.xlu0 %838 }
 0x3d4   : > { %7659 = vrcp.f32 %v839_v9 }
 0x3da   : > { %v7660_v52 = vpop.eup %7659 }
 0x3db   : > { %v841_v53 = vpop.xlane.xlu2 %840  ;;  %v886_v58 = vmul.f32 %v7660_v52, %v8967_v43 }
 0x3dc   : > { %7661 = vrcp.f32 %v841_v53  ;;  %v1322_v8 = vpop.xlane.xlu0 %1321 }
 0x3dd   : > { %7663 = vrcp.f32 %v1322_v8 }
 0x3e2   : > { %v7662_v25 = vpop.eup %7661 }
 0x3e3   : > { %v887_v1 = vmul.f32 %v7662_v25, %v8972_v33  ;;  %v7664_v15 = vpop.eup %7663 }
 0x3e4   : > { %v1324_v4 = vpop.xlane.xlu2 %1323  ;;  %v843_v57 = vpop.xlane.xlu0 %842  ;;  %v1369_v53 = vmul.f32 %v7664_v15, %v8974_v14 }
 0x3e5   : > { %v902_v63 = vpack.c.bf16 %v887_v1, %v886_v58  ;;  %7665 = vrcp.f32 %v1324_v4 }
 0x3e6   : > { %7667 = vrcp.f32 %v843_v57 }
 0x3e7   : > { %950 = vmatmul.bf16.vlgmr.msrb.gmra.mxu0 %v902_v63 }
 0x3eb   : > { %v845_v32 = vpop.xlane.xlu1 %844  ;;  %v7666_v45 = vpop.eup %7665 }
 0x3ec   : > { %7669 = vrcp.f32 %v845_v32  ;;  %v1326_v9 = vpop.xlane.xlu2 %1325  ;;  %v1370_v30 = vmul.f32 %v7666_v45, %v8982_v61  ;;  %v7668_v43 = vpop.eup %7667 }
 0x3ed   : > { %7671 = vrcp.f32 %v1326_v9  ;;  %v888_v52 = vmul.f32 %v7668_v43, %v8980_v41 }
 0x3ee   : > { %v1385_v24 = vpack.c.bf16 %v1370_v30, %v1369_v53 }
 0x3f0   : > { %1425 = vmatmul.bf16.vlgmr.msra.gmra.mxu3 %v1385_v24 }
 0x3f2   : > { %v7670_v33 = vpop.eup %7669 }
 0x3f3   : > { %v785_v8 = vpop.xlane.xlu1 %784  ;;  %v889_v25 = vmul.f32 %v7670_v33, %v8988_v11  ;;  %v1328_v1 = vpop.xlane.xlu0 %1327 }
 0x3f4   : > { %v803_v58 = vsub.f32 %v9004_v21, %v785_v8  ;;  %v1266_v4 = vpop.xlane.xlu2 %1265  ;;  %7673 = vrcp.f32 %v1328_v1  ;;  %v7672_v24 = vpop.eup %7671 }
 0x3f5   : > { %v1285_v32 = vsub.f32 %v9011_v10, %v1266_v4  ;;  %v903_v14 = vpack.c.bf16 %v889_v25, %v888_v52  ;;  %v1371_v41 = vmul.f32 %v7672_v24, %v8990_v20 }
 0x3f6   : > { %v832_v63 = vmul.f32 1.442695, %v803_v58 }
 0x3f7   : > { %v1313_v61 = vmul.f32 1.442695, %v1285_v32  ;;  %955 = vmatmul.bf16.gmra.mxu0 %v903_v14 }
 0x3f8   : > { %7675 = vpow2.f32 %v832_v63 }
 0x3f9   : > { %7677 = vpow2.f32 %v1313_v61 }
 0x3fa   : > { %v7674_v30 = vpop.eup %7673 }
 0x3fb   : > { %v1372_v11 = vmul.f32 %v7674_v30, %v9006_v2  ;;  %v1330_v9 = vpop.xlane.xlu1 %1329 }
 0x3fc   : > { %v849_v45 = vpop.xlane.xlu0 %848  ;;  %v847_v57 = vpop.xlane.xlu2 %846 }
 0x3fd   : > { %7679 = vrcp.f32 %v849_v45  ;;  %v1386_v15 = vpack.c.bf16 %v1372_v11, %v1371_v41 }
 0x3fe   : > { %v9127_v21 = vpop.eup %7675  ;;  %7681 = vrcp.f32 %v847_v57 }
 0x3ff   : > { %v9129_v10 = vpop.eup %7677  ;;  %864 = vadd.xlane.f32.xlu0 %v9127_v21  ;;  %7683 = vrcp.f32 %v1330_v9 }
 0x400   : > { %1345 = vadd.xlane.f32.xlu1 %v9129_v10  ;;  %1430 = vmatmul.bf16.gmra.mxu3 %v1386_v15 }
 0x403   : > { %v7680_v53 = vpop.eup %7679 }
 0x404   : > { %v7682_v43 = vpop.eup %7681  ;;  %v1268_v33 = vpop.xlane.xlu0 %1267  ;;  %v891_v2 = vmul.f32 %v7680_v53, %v9021_v62 }
 0x405   : > { %v1332_v20 = vpop.xlane.xlu2 %1331  ;;  %v1286_v8 = vsub.f32 %v9034_v46, %v1268_v33  ;;  %v890_v52 = vmul.f32 %v7682_v43, %v9017_v3  ;;  %v7684_v1 = vpop.eup %7683 }
 0x406   : > { %7685 = vrcp.f32 %v1332_v20  ;;  %v851_v4 = vpop.xlane.xlu1 %850  ;;  %v1373_v61 = vmul.f32 %v7684_v1, %v9019_v44 }
 0x407   : > { %v1315_v25 = vmul.f32 1.442695, %v1286_v8  ;;  %v904_v58 = vpack.c.bf16 %v891_v2, %v890_v52 }
 0x409   : > { %7687 = vpow2.f32 %v1315_v25  ;;  %960 = vmatmul.bf16.gmra.mxu0 %v904_v58 }
 0x40a   : > { %7689 = vrcp.f32 %v851_v4 }
 0x40c   : > { %v7686_v32 = vpop.eup %7685  ;;  %v1334_v14 = vpop.xlane.xlu0 %1333 }
 0x40d   : > { %v853_v63 = vpop.xlane.xlu2 %852  ;;  %v1374_v24 = vmul.f32 %v7686_v32, %v9028_v56 }
 0x40e   : > { %7691 = vrcp.f32 %v853_v63 }
 0x40f   : > { %v1387_v62 = vpack.c.bf16 %v1374_v24, %v1373_v61  ;;  %v9138_v46 = vpop.eup %7687  ;;  %7693 = vrcp.f32 %v1334_v14 }
 0x410   : > { %1347 = vadd.xlane.f32.xlu2 %v9138_v46  ;;  %v7690_v3 = vpop.eup %7689 }
 0x411   : > { %1435 = vmatmul.bf16.gmra.mxu3 %v1387_v62  ;;  %v892_v44 = vmul.f32 %v7690_v3, %v9030_v0 }
 0x413   : > { %v1336_v11 = vpop.xlane.xlu1 %1335 }
 0x414   : > { %v7692_v30 = vpop.eup %7691  ;;  %v789_v45 = vpop.xlane.xlu0 %788  ;;  %7695 = vrcp.f32 %v1336_v11 }
 0x415   : > { %v787_v57 = vpop.xlane.xlu2 %786  ;;  %v805_v41 = vsub.f32 %v9067_v28, %v789_v45  ;;  %v893_v56 = vmul.f32 %v7692_v30, %v9042_v59  ;;  %v7694_v33 = vpop.eup %7693 }
 0x416   : > { %v804_v15 = vsub.f32 %v9063_v26, %v787_v57  ;;  %v1375_v26 = vmul.f32 %v7694_v33, %v9044_v37 }
 0x417   : > { %v836_v9 = vmul.f32 1.442695, %v805_v41  ;;  %v905_v43 = vpack.c.bf16 %v893_v56, %v892_v44 }
 0x418   : > { %v834_v53 = vmul.f32 1.442695, %v804_v15 }
 0x419   : > { %7697 = vpow2.f32 %v836_v9  ;;  %965 = vmatmul.bf16.gmra.mxu0 %v905_v43 }
 0x41a   : > { %7699 = vpow2.f32 %v834_v53  ;;  %v7696_v20 = vpop.eup %7695 }
 0x41b   : > { %v1270_v52 = vpop.xlane.xlu1 %1269  ;;  %v1376_v0 = vmul.f32 %v7696_v20, %v9059_v50 }
 0x41c   : > { %v855_v2 = vpop.xlane.xlu0 %854  ;;  %v1287_v59 = vsub.f32 %v9085_v40, %v1270_v52  ;;  %v7183_v52 = vld [vmem:[%s12686_s1 + $0xe4] sm:$0xf] }
 0x41d   : > { %v1272_v8 = vpop.xlane.xlu2 %1271  ;;  %v1388_v1 = vpack.c.bf16 %v1376_v0, %v1375_v26 }
 0x41e   : > { %v1288_v28 = vsub.f32 %v9079_v55, %v1272_v8  ;;  %v1317_v32 = vmul.f32 1.442695, %v1287_v59 }
 0x41f   : > { %v9149_v25 = vpop.eup %7697 }
 0x420   : > { %v1319_v58 = vmul.f32 1.442695, %v1288_v28  ;;  %v9151_v4 = vpop.eup %7699  ;;  %868 = vadd.xlane.f32.xlu1 %v9149_v25  ;;  %v7533_v28 = vld [vmem:[%s12686_s1 + $0xe8] sm:$0xf0] }
 0x421   : > { %1440 = vmatmul.bf16.gmra.mxu3 %v1388_v1  ;;  %866 = vadd.xlane.f32.xlu0 %v9151_v4  ;;  %v7184_v26 = vor.u32 %v7533_v28, %v7183_v52 }
 0x422   : > { %7701 = vpow2.f32 %v1319_v58 }
 0x423   : > { %7703 = vpow2.f32 %v1317_v32  ;;  %1511 = vmatpush.bf16.msra.mxu0 %v7184_v26 }
 0x424   : > { %7705 = vrcp.f32 %v855_v2  ;;  %v1340_v55 = vpop.xlane.xlu0 %1339 }
 0x425   : > { %v1338_v37 = vpop.xlane.xlu2 %1337  ;;  %7707 = vrcp.f32 %v1340_v55  ;;  %v857_v50 = vpop.xlane.xlu1 %856 }
 0x426   : > { %7709 = vrcp.f32 %v857_v50 }
 0x427   : > { %7711 = vrcp.f32 %v1338_v37 }
 0x428   : > { %v9155_v40 = vpop.eup %7701 }
 0x429   : > { %v9157_v14 = vpop.eup %7703  ;;  %1351 = vadd.xlane.f32.xlu0 %v9155_v40 }
 0x42a   : > { %1349 = vadd.xlane.f32.xlu2 %v9157_v14  ;;  %v7706_v63 = vpop.eup %7705 }
 0x42b   : > { %v7708_v61 = vpop.eup %7707  ;;  %v894_v45 = vmul.f32 %v7706_v63, %v9075_v12 }
 0x42c   : > { %v7710_v24 = vpop.eup %7709  ;;  %v1378_v62 = vmul.f32 %v7708_v61, %v9091_v17  ;;  %v1342_v56 = vpop.xlane.xlu0 %1341 }
 0x42d   : > { %v7712_v3 = vpop.eup %7711  ;;  %v859_v30 = vpop.xlane.xlu1 %858  ;;  %v895_v57 = vmul.f32 %v7710_v24, %v9095_v34 }
 0x42e   : > { %v1377_v41 = vmul.f32 %v7712_v3, %v9093_v47  ;;  %v861_v11 = vpop.xlane.xlu2 %860  ;;  %7713 = vrcp.f32 %v859_v30 }
 0x42f   : > { %v906_v15 = vpack.c.bf16 %v895_v57, %v894_v45  ;;  %7715 = vrcp.f32 %v861_v11 }
 0x430   : > { %v1389_v44 = vpack.c.bf16 %v1378_v62, %v1377_v41  ;;  %7717 = vrcp.f32 %v1342_v56 }
 0x431   : > { %970 = vmatmul.bf16.gmra.mxu0 %v906_v15 }
 0x432   : > { %1445 = vmatmul.bf16.gmra.mxu3 %v1389_v44 }
 0x434   : > { %v7714_v17 = vpop.eup %7713 }
 0x435   : > { %v1344_v9 = vpop.xlane.xlu1 %1343  ;;  %v7716_v53 = vpop.eup %7715  ;;  %v896_v47 = vmul.f32 %v7714_v17, %v9102_v60  ;;  %v7163_v60 = vld [vmem:[%s12686_s1 + $0xd4] sm:$0xf] }
 0x436   : > { %7719 = vrcp.f32 %v1344_v9  ;;  %v7718_v12 = vpop.eup %7717  ;;  %v897_v34 = vmul.f32 %v7716_v53, %v9106_v23  ;;  %v863_v58 = vpop.xlane.xlu2 %862 }
 0x437   : > { %v1379_v33 = vmul.f32 %v7718_v12, %v9104_v54  ;;  %v7532_v54 = vld [vmem:[%s12686_s1 + $0xd8] sm:$0xf0]  ;;  %7721 = vrcp.f32 %v863_v58 }
 0x438   : > { %v907_v2 = vpack.c.bf16 %v897_v34, %v896_v47  ;;  %v7164_v23 = vor.u32 %v7532_v54, %v7163_v60 }
 0x439   : > { %1601 = vrot.lane.b32.xlu1 %v8622_v39, %s8268_s11 }
 0x43a   : > { %1036 = vmatpush.bf16.msra.mxu1 %v7164_v23 }
 0x43c   : > { %v7720_v43 = vpop.eup %7719 }
 0x43d   : > { %2076 = vrot.lane.b32.xlu0 %v8622_v39, %s8269_s13  ;;  %v1380_v20 = vmul.f32 %v7720_v43, %v9111_v36  ;;  %v7722_v32 = vpop.eup %7721 }
 0x43f   : > { %v1390_v8 = vpack.c.bf16 %v1380_v20, %v1379_v33 }
 0x441   : > { %975 = vmatmul.bf16.gmra.mxu0 %v907_v2  ;;  %1597 = vrot.lane.b32.xlu1 %v8553_v13, %s8268_s11 }
 0x442   : > { %1599 = vrot.lane.b32.xlu2 %v8584_v7, %s8268_s11  ;;  %1450 = vmatmul.bf16.gmra.mxu3 %v1390_v8 }
 0x445   : > { %2074 = vrot.lane.b32.xlu0 %v8584_v7, %s8269_s13 }
 0x449   : > { %2072 = vrot.lane.b32.xlu1 %v8553_v13, %s8269_s13 }
 0x44a   : > { %1595 = vrot.lane.b32.xlu2 %v8628_v27, %s8268_s11 }
 0x44d   : > { %1593 = vrot.lane.b32.xlu0 %v8582_v5, %s8268_s11 }
 0x451   : > { %1591 = vrot.lane.b32.xlu1 %v8606_v31, %s8268_s11 }
 0x452   : > { %2070 = vrot.lane.b32.xlu2 %v8628_v27, %s8269_s13 }
 0x455   : > { %2068 = vrot.lane.b32.xlu0 %v8582_v5, %s8269_s13 }
 0x459   : > { %2066 = vrot.lane.b32.xlu1 %v8606_v31, %s8269_s13 }
 0x45a   : > { %1589 = vrot.lane.b32.xlu2 %v8646_v19, %s8268_s11 }
 0x45d   : > { %1587 = vrot.lane.b32.xlu0 %v8626_v49, %s8268_s11 }
 0x461   : > { %1571 = vrot.lane.b32.xlu1 %v8626_v49, %s8270_s20 }
 0x462   : > { %2064 = vrot.lane.b32.xlu2 %v8646_v19, %s8269_s13 }
 0x464   : > { %v951_v36 = vpop.f32.mrf.mxu0 }
 0x465   : > { %2062 = vrot.lane.b32.xlu0 %v8626_v49, %s8269_s13 }
 0x469   : > { %1573 = vrot.lane.b32.xlu1 %v8646_v19, %s8270_s20 }
 0x46a   : > { %2046 = vrot.lane.b32.xlu2 %v8626_v49, %s8271_s25 }
 0x46c   : > { %v953_v0 = vpop.f32.mrf.mxu0 }
 0x46d   : > { %2048 = vrot.lane.b32.xlu0 %v8646_v19, %s8271_s25  ;;  %v991_v59 = vpack.c.bf16 %v953_v0, %v951_v36  ;;  %v898_v19 = vmul.f32 %v7722_v32, %v9113_v22 }
 0x46f   : > { %7165 = vmatmul.msk.bf16.vlgmr.msra.gmra.mxu1 %vm12881_vm0, %v991_v59 }
 0x471   : > { %2050 = vrot.lane.b32.xlu1 %v8606_v31, %s8271_s25 }
 0x472   : > { %1575 = vrot.lane.b32.xlu2 %v8606_v31, %s8270_s20  ;;  %v865_v49 = vpop.xlane.xlu0 %864 }
 0x473   : > { %7723 = vrcp.f32 %v865_v49  ;;  %v1346_v61 = vpop.xlane.xlu1 %1345  ;;  %v1426_v3 = vpop.f32.mrf.mxu3 }
 0x474   : > { %v956_v1 = vpop.f32.mrf.mxu0  ;;  %7725 = vrcp.f32 %v1346_v61 }
 0x475   : > { %1577 = vrot.lane.b32.xlu0 %v8582_v5, %s8270_s20 }
 0x479   : > { %v7724_v55 = vpop.eup %7723  ;;  %1579 = vrot.lane.b32.xlu1 %v8628_v27, %s8270_s20 }
 0x47a   : > { %2052 = vrot.lane.b32.xlu2 %v8582_v5, %s8271_s25  ;;  %v899_v37 = vmul.f32 %v7724_v55, %v9127_v21  ;;  %v7726_v21 = vpop.eup %7725 }
 0x47b   : > { %v1381_v24 = vmul.f32 %v7726_v21, %v9129_v10 }
 0x47c   : > { %v958_v50 = vpop.f32.mrf.mxu0  ;;  %v908_v31 = vpack.c.bf16 %v899_v37, %v898_v19 }
 0x47d   : > { %2054 = vrot.lane.b32.xlu0 %v8628_v27, %s8271_s25  ;;  %v992_v63 = vpack.c.bf16 %v958_v50, %v956_v1 }
 0x47e   : > { %980 = vmatmul.bf16.gmra.mxu0 %v908_v31 }
 0x47f   : > { %7166 = vmatmul.msk.bf16.gmra.mxu1 %vm12881_vm0, %v992_v63 }
 0x481   : > { %2056 = vrot.lane.b32.xlu1 %v8553_v13, %s8271_s25 }
 0x482   : > { %1581 = vrot.lane.b32.xlu2 %v8553_v13, %s8270_s20 }
 0x483   : > { %v1348_v5 = vpop.xlane.xlu2 %1347 }
 0x484   : > { %7727 = vrcp.f32 %v1348_v5 }
 0x485   : > { %1583 = vrot.lane.b32.xlu0 %v8584_v7, %s8270_s20 }
 0x486   : > { %v961_v22 = vpop.f32.mrf.mxu0 }
 0x489   : > { %1585 = vrot.lane.b32.xlu1 %v8622_v39, %s8270_s20 }
 0x48a   : > { %2058 = vrot.lane.b32.xlu2 %v8584_v7, %s8271_s25  ;;  %v7728_v27 = vpop.eup %7727 }
 0x48b   : > { %v1382_v62 = vmul.f32 %v7728_v27, %v9138_v46  ;;  %v1428_v46 = vpop.f32.mrf.mxu3 }
 0x48d   : > { %2060 = vrot.lane.b32.xlu0 %v8622_v39, %s8271_s25  ;;  %v1391_v13 = vpack.c.bf16 %v1382_v62, %v1381_v24 }
 0x48e   : > { %v963_v30 = vpop.f32.mrf.mxu0 }
 0x48f   : > { %v993_v45 = vpack.c.bf16 %v963_v30, %v961_v22  ;;  %1455 = vmatmul.bf16.gmra.mxu3 %v1391_v13 }
 0x491   : > { %7167 = vmatmul.msk.bf16.gmra.mxu1 %vm12881_vm0, %v993_v45  ;;  %1882 = vrot.lane.b32.xlu1 %v8624_v48, %s8270_s20 }
 0x492   : > { %1878 = vrot.lane.b32.xlu2 %v8644_v18, %s8270_s20 }
 0x493   : > { %v869_v7 = vpop.xlane.xlu1 %868 }
 0x494   : > { %7729 = vrcp.f32 %v869_v7  ;;  %v867_v10 = vpop.xlane.xlu0 %866 }
 0x495   : > { %7731 = vrcp.f32 %v867_v10  ;;  %1880 = vrot.lane.b32.xlu0 %v8639_v42, %s8270_s20 }
 0x496   : > { %v966_v39 = vpop.f32.mrf.mxu0 }
 0x499   : > { %1874 = vrot.lane.b32.xlu1 %v8661_v51, %s8270_s20 }
 0x49a   : > { %2357 = vrot.lane.b32.xlu2 %v8624_v48, %s8271_s25  ;;  %v7730_v57 = vpop.eup %7729  ;;  %v1431_v48 = vpop.f32.mrf.mxu3 }
 0x49b   : > { %v7732_v41 = vpop.eup %7731  ;;  %v901_v11 = vmul.f32 %v7730_v57, %v9149_v25 }
 0x49c   : > { %v1352_v15 = vpop.xlane.xlu0 %1351  ;;  %v900_v44 = vmul.f32 %v7732_v41, %v9151_v4 }
 0x49d   : > { %7733 = vrcp.f32 %v1352_v15  ;;  %v1350_v56 = vpop.xlane.xlu2 %1349  ;;  %2353 = vrot.lane.b32.xlu0 %v8644_v18, %s8271_s25 }
 0x49e   : > { %7735 = vrcp.f32 %v1350_v56  ;;  %v968_v9 = vpop.f32.mrf.mxu0  ;;  %v909_v17 = vpack.c.bf16 %v901_v11, %v900_v44 }
 0x49f   : > { %v994_v53 = vpack.c.bf16 %v968_v9, %v966_v39 }
 0x4a0   : > { %985 = vmatmul.bf16.gmra.mxu0 %v909_v17 }
 0x4a1   : > { %7168 = vmatmul.msk.bf16.gmra.mxu1 %vm12881_vm0, %v994_v53  ;;  %1872 = vrot.lane.b32.xlu1 %v8671_v35, %s8270_s20 }
 0x4a2   : > { %1876 = vrot.lane.b32.xlu2 %v8656_v6, %s8270_s20  ;;  %v1433_v43 = vpop.f32.mrf.mxu3 }
 0x4a3   : > { %v7734_v25 = vpop.eup %7733  ;;  %v1467_v59 = vpack.c.bf16 %v1433_v43, %v1431_v48 }
 0x4a4   : > { %v7736_v4 = vpop.eup %7735  ;;  %v1384_v12 = vmul.f32 %v7734_v25, %v9155_v40 }
 0x4a5   : > { %v1600_v47 = vpop.permute.xlu2 %1599  ;;  %2349 = vrot.lane.b32.xlu0 %v8661_v51, %s8271_s25  ;;  %v1383_v18 = vmul.f32 %v7736_v4, %v9157_v14  ;;  %v1466_v51 = vpack.c.bf16 %v1428_v46, %v1426_v3 }
 0x4a6   : > { %v1646_v60 = vsel %vm12881_vm0, %v1600_v47, 0 }
 0x4a7   : > { %v1392_v34 = vpack.c.bf16 %v1384_v12, %v1383_v18 }
 0x4a9   : > { %1460 = vmatmul.bf16.gmra.mxu3 %v1392_v34  ;;  %1870 = vrot.lane.b32.xlu1 %v8676_v29, %s8270_s20 }
 0x4aa   : > { %2355 = vrot.lane.b32.xlu2 %v8639_v42, %s8271_s25  ;;  %v1436_v54 = vpop.f32.mrf.mxu3 }
 0x4ab   : > { %v1602_v33 = vpop.permute.xlu1 %1601 }
 0x4ac   : > { %v1649_v20 = vsel %vm12881_vm0, %v1602_v33, 0 }
 0x4ad   : > { %v1596_v2 = vpop.permute.xlu2 %1595  ;;  %2345 = vrot.lane.b32.xlu0 %v8676_v29, %s8271_s25  ;;  %1651 = vmatpush.bf16.xpose.msrb.mxu1 %v1649_v20 }
 0x4ae   : > { %v971_v40 = vpop.f32.mrf.mxu0 }
 0x4af   : > { %v2077_v14 = vpop.permute.xlu0 %2076 }
 0x4b0   : > { %v2124_v8 = vsel %vm12882_vm1, %v2077_v14, 0  ;;  %7185 = vmatmul.msk.bf16.vlgmr.msra.gmra.mxu0 %vm12883_vm15, %v1466_v51  ;;  %vm12885_vm1 = vmmov %vm12881_vm0 }
 0x4b1   : > { %2126 = vmatpush.bf16.xpose.msrb.mxu0 %v2124_v8  ;;  %1868 = vrot.lane.b32.xlu1 %v8686_v38, %s8270_s20  ;;  %vm12886_vm15 = vmmov %vm12881_vm0 }
 0x4b2   : > { %2351 = vrot.lane.b32.xlu2 %v8656_v6, %s8271_s25  ;;  %v1438_v49 = vpop.f32.mrf.mxu3 }
 0x4b3   : > { %v1598_v42 = vpop.permute.xlu1 %1597  ;;  %v1468_v27 = vpack.c.bf16 %v1438_v49, %v1436_v54 }
 0x4b4   : > { %v1643_v26 = vsel %vm12886_vm15, %v1598_v42, 0  ;;  %vm12890_vm15 = vmmov %vm12881_vm0 }
 0x4b5   : > { %v2071_v29 = vpop.permute.xlu2 %2070  ;;  %1652 = vmatpush.bf16.xpose.msrb.mxu1 %v1646_v60 }
 0x4b6   : > { %v973_v23 = vpop.f32.mrf.mxu0  ;;  %v2115_v61 = vsel %vm12890_vm15, %v2071_v29, 0  ;;  %vm12896_vm15 = vmmov %vm12881_vm0 }
 0x4b7   : > { %v995_v36 = vpack.c.bf16 %v973_v23, %v971_v40  ;;  %v2075_v52 = vpop.permute.xlu0 %2074 }
 0x4b8   : > { %v2121_v28 = vsel %vm12884_vm14, %v2075_v52, 0  ;;  %vm12888_vm14 = vmmov %vm12881_vm0 }
 0x4b9   : > { %7169 = vmatmul.msk.bf16.gmra.mxu1 %vm12885_vm1, %v995_v36  ;;  %2127 = vmatpush.bf16.xpose.msrb.mxu0 %v2121_v28  ;;  %vm12889_vm1 = vmmov %vm12881_vm0 }
 0x4ba   : > { %2347 = vrot.lane.b32.xlu2 %v8671_v35, %s8271_s25  ;;  %v1640_v35 = vsel %vm12888_vm14, %v1596_v2, 0  ;;  %v1441_v63 = vpop.f32.mrf.mxu3  ;;  %vm12893_vm14 = vmmov %vm12881_vm0 }
 0x4bb   : > { %v2073_v6 = vpop.permute.xlu1 %2072 }
 0x4bc   : > { %v2118_v32 = vsel %vm12887_vm12, %v2073_v6, 0  ;;  %vm12892_vm12 = vmmov %vm12881_vm0 }
 0x4bd   : > { %v1590_v0 = vpop.permute.xlu2 %1589  ;;  %1653 = vmatpush.bf16.xpose.msrb.mxu1 %v1643_v26 }
 0x4be   : > { %v976_v58 = vpop.f32.mrf.mxu0 }
 0x4bf   : > { %v1594_v1 = vpop.permute.xlu0 %1593 }
 0x4c0   : > { %7186 = vmatmul.msk.bf16.gmra.mxu0 %vm12881_vm0, %v1467_v59  ;;  %v1637_v22 = vsel %vm12891_vm13, %v1594_v1, 0  ;;  %vm12894_vm13 = vmmov %vm12881_vm0 }
 0x4c1   : > { %2128 = vmatpush.bf16.xpose.msrb.mxu0 %v2118_v32 }
 0x4c2   : > { %v1443_v3 = vpop.f32.mrf.mxu3 }
 0x4c3   : > { %v1592_v55 = vpop.permute.xlu1 %1591  ;;  %v1469_v11 = vpack.c.bf16 %v1443_v3, %v1441_v63 }
 0x4c4   : > { %v1634_v30 = vsel %vm12893_vm14, %v1592_v55, 0  ;;  %vm12898_vm14 = vmmov %vm12881_vm0 }
 0x4c5   : > { %v2065_v19 = vpop.permute.xlu2 %2064  ;;  %1654 = vmatpush.bf16.xpose.msrb.mxu1 %v1640_v35 }
 0x4c6   : > { %v978_v37 = vpop.f32.mrf.mxu0 }
 0x4c7   : > { %v996_v50 = vpack.c.bf16 %v978_v37, %v976_v58  ;;  %v2069_v31 = vpop.permute.xlu0 %2068 }
 0x4c8   : > { %v2112_v62 = vsel %vm12881_vm0, %v2069_v31, 0 }
 0x4c9   : > { %7170 = vmatmul.msk.bf16.gmra.mxu1 %vm12889_vm1, %v996_v50  ;;  %2129 = vmatpush.bf16.xpose.msrb.mxu0 %v2115_v61  ;;  %vm12895_vm1 = vmmov %vm12881_vm0 }
 0x4ca   : > { %v1631_v46 = vsel %vm12895_vm1, %v1590_v0, 0  ;;  %v1446_v57 = vpop.f32.mrf.mxu3  ;;  %vm12900_vm1 = vmmov %vm12881_vm0 }
 0x4cb   : > { %v2067_v5 = vpop.permute.xlu1 %2066 }
 0x4cc   : > { %v2109_v10 = vsel %vm12894_vm13, %v2067_v5, 0  ;;  %vm12899_vm13 = vmmov %vm12881_vm0  ;;  %v8251_v5 = vld [vmem:[%s12687_s2] sm:$0xff] }
 0x4cd   : > { %v9300_v21 = vpop.permute.xlu2 %2046  ;;  %1655 = vmatpush.bf16.xpose.msrb.mxu1 %v1637_v22  ;;  %v9350_v22 = vperm.slane %v8251_v5, 4 }
 0x4cf   : > { %v1588_v24 = vpop.permute.xlu0 %1587 }
 0x4d0   : > { %7187 = vmatmul.msk.bf16.gmra.mxu0 %vm12892_vm12, %v1468_v27  ;;  %vm12897_vm12 = vmmov %vm12881_vm0  ;;  %v1628_v9 = vsel %vm12881_vm0, %v1588_v24, 0 }
 0x4d1   : > { %2130 = vmatpush.bf16.xpose.msrb.mxu0 %v2112_v62  ;;  %v2106_v44 = vsel %vm12897_vm12, %v2065_v19, 0  ;;  %vm12902_vm12 = vmmov %vm12881_vm0 }
 0x4d2   : > { %v1448_v53 = vpop.f32.mrf.mxu3 }
 0x4d3   : > { %v9304_v13 = vpop.permute.xlu1 %1571  ;;  %v1470_v47 = vpack.c.bf16 %v1448_v53, %v1446_v57 }
 0x4d5   : > { %v9307_v45 = vpop.permute.xlu2 %1575  ;;  %1656 = vmatpush.bf16.xpose.msrb.mxu1 %v1634_v30 }
 0x4d7   : > { %v2063_v7 = vpop.permute.xlu0 %2062 }
 0x4d8   : > { %v2103_v25 = vsel %vm12898_vm14, %v2063_v7, 0  ;;  %vm12903_vm14 = vmmov %vm12881_vm0 }
 0x4d9   : > { %2131 = vmatpush.bf16.xpose.msrb.mxu0 %v2109_v10 }
 0x4da   : > { %v1451_v34 = vpop.f32.mrf.mxu3 }
 0x4db   : > { %v9310_v39 = vpop.permute.xlu1 %1573 }
 0x4dd   : > { %v9313_v41 = vpop.permute.xlu2 %2052  ;;  %1657 = vmatpush.bf16.xpose.msrb.mxu1 %v1631_v46 }
 0x4df   : > { %v9315_v15 = vpop.permute.xlu0 %2048 }
 0x4e0   : > { %7188 = vmatmul.msk.bf16.gmra.mxu0 %vm12896_vm15, %v1469_v11  ;;  %vm12901_vm15 = vmmov %vm12881_vm0 }
 0x4e1   : > { %2132 = vmatpush.bf16.xpose.msrb.mxu0 %v2106_v44 }
 0x4e2   : > { %v1453_v2 = vpop.f32.mrf.mxu3 }
 0x4e3   : > { %v9319_v56 = vpop.permute.xlu1 %2050  ;;  %v1471_v8 = vpack.c.bf16 %v1453_v2, %v1451_v34 }
 0x4e5   : > { %v9322_v17 = vpop.permute.xlu2 %1581  ;;  %1658 = vmatpush.bf16.xpose.msrb.mxu1 %v1628_v9 }
 0x4e7   : > { %v9324_v48 = vpop.permute.xlu0 %1577 }
 0x4e9   : > { %2133 = vmatpush.bf16.xpose.msrb.mxu0 %v2103_v25 }
 0x4eb   : > { %v9327_v4 = vpop.permute.xlu1 %1579 }
 0x4ec   : > { %v1038_v58 = vpop.f32.mrf.mxu1 }
 0x4ed   : > { %v9329_v12 = vpop.permute.xlu2 %2058  ;;  %v1078_v24 = vadd.f32 %v1038_v58, %v9350_v22 }
 0x4ef   : > { %v9331_v18 = vpop.permute.xlu0 %2054 }
 0x4f0   : > { %7189 = vmatmul.msk.bf16.gmra.mxu0 %vm12899_vm13, %v1470_v47  ;;  %vm12904_vm13 = vmmov %vm12881_vm0 }
 0x4f3   : > { %v9334_v43 = vpop.permute.xlu1 %2056 }
 0x4f4   : > { %v9345_v50 = vpop.f32.mrf.mxu1 }
 0x4f5   : > { %v1879_v33 = vpop.permute.xlu2 %1878 }
 0x4f7   : > { %v9336_v20 = vpop.permute.xlu0 %1583 }
 0x4fb   : > { %v981_v51 = vpop.f32.mrf.mxu0  ;;  %v9338_v40 = vpop.permute.xlu1 %1585 }
 0x4fc   : > { %v1043_v27 = vpop.f32.mrf.mxu1 }
 0x4fd   : > { %v2358_v14 = vpop.permute.xlu2 %2357  ;;  %v1080_v11 = vadd.f32 %v1043_v27, %v9350_v22 }
 0x4fe   : > { %2367 = vmatpush.bf16.msra.mxu1 %v2358_v14 }
 0x4ff   : > { %v9340_v42 = vpop.permute.xlu0 %2060 }
 0x500   : > { %7190 = vmatmul.msk.bf16.gmra.mxu0 %vm12900_vm1, %v1471_v8  ;;  %vm12905_vm1 = vmmov %vm12881_vm0 }
 0x503   : > { %v983_v60 = vpop.f32.mrf.mxu0  ;;  %v1883_v54 = vpop.permute.xlu1 %1882 }
 0x504   : > { %v997_v29 = vpack.c.bf16 %v983_v60, %v981_v51  ;;  %1892 = vmatpush.bf16.msra.mxu2 %v1883_v54  ;;  %v9356_v10 = vpop.f32.mrf.mxu1 }
 0x505   : > { %v1877_v23 = vpop.permute.xlu2 %1876 }
 0x506   : > { %7171 = vmatmul.msk.bf16.gmra.mxu1 %vm12901_vm15, %v997_v29  ;;  %vm12906_vm15 = vmmov %vm12881_vm0 }
 0x507   : > { %v1881_v36 = vpop.permute.xlu0 %1880 }
 0x508   : > { %1893 = vmatpush.bf16.msra.mxu2 %v1881_v36 }
 0x50b   : > { %v1875_v52 = vpop.permute.xlu1 %1874 }
 0x50c   : > { %1894 = vmatpush.bf16.msra.mxu2 %v1879_v33 }
 0x50d   : > { %v2356_v28 = vpop.permute.xlu2 %2355 }
 0x50e   : > { %2368 = vmatpush.bf16.msra.mxu1 %v2356_v28  ;;  %v1048_v53 = vpop.f32.mrf.mxu1 }
 0x50f   : > { %v2354_v6 = vpop.permute.xlu0 %2353  ;;  %v1082_v34 = vadd.f32 %v1048_v53, %v9350_v22 }
 0x510   : > { %1895 = vmatpush.bf16.msra.mxu2 %v1877_v23 }
 0x512   : > { %2369 = vmatpush.bf16.msra.mxu1 %v2354_v6  ;;  %v1456_v26 = vpop.f32.mrf.mxu3 }
 0x513   : > { %v1873_v0 = vpop.permute.xlu1 %1872 }
 0x514   : > { %1896 = vmatpush.bf16.msra.mxu2 %v1875_v52 }
 0x515   : > { %v2352_v59 = vpop.permute.xlu2 %2351 }
 0x516   : > { %2370 = vmatpush.bf16.msra.mxu1 %v2352_v59  ;;  %v9372_v47 = vpop.f32.mrf.mxu1 }
 0x517   : > { %v2350_v49 = vpop.permute.xlu0 %2349 }
 0x518   : > { %1897 = vmatpush.bf16.msra.mxu2 %v1873_v0 }
 0x51a   : > { %2371 = vmatpush.bf16.msra.mxu1 %v2350_v49  ;;  %v1458_v1 = vpop.f32.mrf.mxu3 }
 0x51b   : > { %v1472_v32 = vpack.c.bf16 %v1458_v1, %v1456_v26  ;;  %v1871_v55 = vpop.permute.xlu1 %1870 }
 0x51c   : > { %1898 = vmatpush.bf16.msra.mxu2 %v1871_v55 }
 0x51d   : > { %v2348_v35 = vpop.permute.xlu2 %2347  ;;  %v986_v19 = vpop.f32.mrf.mxu0  ;;  %7191 = vmatmul.msk.bf16.gmra.mxu0 %vm12902_vm12, %v1472_v32  ;;  %vm12907_vm12 = vmmov %vm12881_vm0 }
 0x51e   : > { %2372 = vmatpush.bf16.msra.mxu1 %v2348_v35  ;;  %v1053_v2 = vpop.f32.mrf.mxu1 }
 0x51f   : > { %v2346_v37 = vpop.permute.xlu0 %2345 }
 0x522   : > { %2373 = vmatpush.bf16.msra.mxu1 %v2346_v37 }
 0x523   : > { %v1869_v31 = vpop.permute.xlu1 %1868 }
 0x524   : > { %1899 = vmatpush.bf16.msra.mxu2 %v1869_v31 }
 0x525   : > { %v988_v63 = vpop.f32.mrf.mxu0 }
 0x526   : > { %v998_v61 = vpack.c.bf16 %v988_v63, %v986_v19  ;;  %v9384_v14 = vpop.f32.mrf.mxu1 }
 0x528   : > { %7172 = vmatmul.msk.bf16.gmra.mxu1 %vm12881_vm0, %v998_v61 }
 0x52c   : > { %v1461_v62 = vpop.f32.mrf.mxu3 }
 0x52d   : > { %v1513_v3 = vpop.f32.mrf.mxu0 }
 0x52e   : > { %v9354_v30 = vadd.f32 %v1513_v3, %v1078_v24 }
 0x534   : > { %v1463_v7 = vpop.f32.mrf.mxu3 }
 0x535   : > { %v1473_v46 = vpack.c.bf16 %v1463_v7, %v1461_v62  ;;  %v9358_v57 = vpop.f32.mrf.mxu0 }
 0x536   : > { %v1058_v60 = vpop.f32.mrf.mxu1 }
 0x537   : > { %7192 = vmatmul.msk.bf16.gmra.mxu0 %vm12903_vm14, %v1473_v46  ;;  %vm12908_vm14 = vmmov %vm12881_vm0 }
 0x538   : > { %7193 = vmatmul.msk.bf16.vlgmr.msrb.gmra.mxu1 %vm12904_vm13, %v9304_v13  ;;  %vm12909_vm13 = vmmov %vm12881_vm0 }
 0x53d   : > { %v1518_v44 = vpop.f32.mrf.mxu0 }
 0x53e   : > { %v9364_v9 = vadd.f32 %v1518_v44, %v1080_v11  ;;  %v9397_v23 = vpop.f32.mrf.mxu1 }
 0x545   : > { %v9366_v25 = vpop.f32.mrf.mxu0 }
 0x546   : > { %v1063_v52 = vpop.f32.mrf.mxu1 }
 0x547   : > { %7213 = vmatmul.msk.bf16.vlgmr.msrb.gmra.mxu0 %vm12905_vm1, %v9300_v21  ;;  %v1084_v21 = vadd.f32 %v1053_v2, %v9350_v22  ;;  %vm12910_vm1 = vmmov %vm12881_vm0 }
 0x548   : > { %7194 = vmatmul.msk.bf16.gmra.mxu1 %vm12906_vm15, %v9310_v39  ;;  %vm12911_vm15 = vmmov %vm12881_vm0 }
 0x54d   : > { %v1523_v33 = vpop.f32.mrf.mxu0 }
 0x54e   : > { %v9375_v13 = vadd.f32 %v1523_v33, %v1082_v34  ;;  %v9412_v6 = vpop.f32.mrf.mxu1 }
 0x555   : > { %v9377_v51 = vpop.f32.mrf.mxu0 }
 0x557   : > { %7214 = vmatmul.msk.bf16.gmra.mxu0 %vm12907_vm12, %v9315_v15  ;;  %v1086_v15 = vadd.f32 %v1058_v60, %v9350_v22  ;;  %vm12912_vm12 = vmmov %vm12881_vm0 }
 0x558   : > { %7195 = vmatmul.msk.bf16.gmra.mxu1 %vm12881_vm0, %v9307_v45 }
 0x55d   : > { %v1528_v39 = vpop.f32.mrf.mxu0 }
 0x55e   : > { %v9386_v8 = vadd.f32 %v1528_v39, %v1084_v21 }
 0x565   : > { %v9388_v54 = vpop.f32.mrf.mxu0 }
 0x567   : > { %7215 = vmatmul.msk.bf16.gmra.mxu0 %vm12908_vm14, %v9319_v56  ;;  %v1088_v56 = vadd.f32 %v1063_v52, %v9350_v22  ;;  %vm12914_vm14 = vmmov %vm12881_vm0 }
 0x568   : > { %7196 = vmatmul.msk.bf16.gmra.mxu1 %vm12909_vm13, %v9324_v48  ;;  %vm12915_vm13 = vmmov %vm12881_vm0 }
 0x56d   : > { %v1533_v29 = vpop.f32.mrf.mxu0 }
 0x56e   : > { %v9395_v45 = vadd.f32 %v1533_v29, %v1086_v15 }
 0x575   : > { %v9399_v36 = vpop.f32.mrf.mxu0 }
 0x577   : > { %7216 = vmatmul.msk.bf16.gmra.mxu0 %vm12910_vm1, %v9313_v41  ;;  %vm12918_vm1 = vmmov %vm12881_vm0 }
 0x578   : > { %7197 = vmatmul.msk.bf16.gmra.mxu1 %vm12911_vm15, %v9327_v4  ;;  %vm12919_vm15 = vmmov %vm12881_vm0 }
 0x57d   : > { %v1538_v28 = vpop.f32.mrf.mxu0 }
 0x57e   : > { %v9406_v48 = vadd.f32 %v1538_v28, %v1088_v56 }
 0x583   : > { %v1068_v41 = vpop.f32.mrf.mxu1 }
 0x584   : > { %v1090_v4 = vadd.f32 %v1068_v41, %v9350_v22 }
 0x585   : > { %v9414_v26 = vpop.f32.mrf.mxu0 }
 0x586   : > { %12913 = vst [vmem:[#allocation34_spill] sm:$0xff] %v9414_v26 }
 0x587   : > { %7217 = vmatmul.msk.bf16.gmra.mxu0 %vm12912_vm12, %v9331_v18  ;;  %vm12923_vm12 = vmmov %vm12881_vm0 }
 0x588   : > { %7198 = vmatmul.msk.bf16.gmra.mxu1 %vm12881_vm0, %v9322_v17 }
 0x58b   : > { %v9423_v18 = vpop.f32.mrf.mxu1 }
 0x58c   : > { %12917 = vst [vmem:[#allocation36_spill] sm:$0xff] %v9423_v18 }
 0x597   : > { %7218 = vmatmul.msk.bf16.gmra.mxu0 %vm12914_vm14, %v9334_v43 }
 0x598   : > { %7199 = vmatmul.msk.bf16.gmra.mxu1 %vm12915_vm13, %v9336_v20 }
 0x59a   : > { %v1543_v0 = vpop.f32.mrf.mxu0 }
 0x59b   : > { %v9421_v59 = vadd.f32 %v1543_v0, %v1090_v4 }
 0x59d   : > { %12916 = vst [vmem:[#allocation35_spill] sm:$0xff] %v9421_v59 }
 0x5a2   : > { %v9429_v17 = vpop.f32.mrf.mxu0 }
 0x5a3   : > { %12920 = vst [vmem:[#allocation37_spill] sm:$0xff] %v9429_v17 }
 0x5a5   : > { %v1073_v58 = vpop.f32.mrf.mxu1 }
 0x5a6   : > { %v1092_v20 = vadd.f32 %v1073_v58, %v9350_v22 }
 0x5a7   : > { %7219 = vmatmul.msk.bf16.gmra.mxu0 %vm12918_vm1, %v9329_v12 }
 0x5a8   : > { %7200 = vmatmul.msk.bf16.gmra.mxu1 %vm12919_vm15, %v9338_v40 }
 0x5ad   : > { %v9431_v43 = vpop.f32.mrf.mxu1 }
 0x5ae   : > { %12921 = vst [vmem:[#allocation38_spill] sm:$0xff] %v9431_v43  ;;  %v12944_v43 = vld [vmem:[#allocation33_spill] sm:$0xff] }
 0x5b4   : > { %v1548_v49 = vpop.f32.mrf.mxu0 }
 0x5b5   : > { %v9434_v1 = vadd.f32 %v1548_v49, %v1092_v20  ;;  %v1660_v32 = vpop.f32.mrf.mxu1 }
 0x5b6   : > { %v9438_v55 = vsel %vm8763_vm2, %v1660_v32, -1e+30 }
 0x5b7   : > { %12922 = vst [vmem:[#allocation39_spill] sm:$0xff] %v9434_v1  ;;  %7220 = vmatmul.msk.bf16.gmra.mxu0 %vm12923_vm12, %v9340_v42  ;;  %1716 = vmax.xlane.f32.xlu2 %v9438_v55  ;;  %vm12945_vm12 = vnez %v12944_v43 }
 0x5bc   : > { %v9443_v12 = vpop.f32.mrf.mxu0 }
 0x5bd   : > { %12924 = vst [vmem:[#allocation40_spill] sm:$0xff] %v9443_v12  ;;  %v1662_v40 = vpop.f32.mrf.mxu1 }
 0x5be   : > { %v9447_v19 = vsel %vm8774_vm3, %v1662_v40, -1e+30 }
 0x5bf   : > { %1718 = vmax.xlane.f32.xlu1 %v9447_v19 }
 0x5c4   : > { %v2135_v37 = vpop.f32.mrf.mxu0 }
 0x5c5   : > { %v1665_v31 = vpop.f32.mrf.mxu1  ;;  %v9452_v63 = vsel %vm8763_vm2, %v2135_v37, -1e+30 }
 0x5c6   : > { %2191 = vmax.xlane.f32.xlu0 %v9452_v63  ;;  %v9457_v61 = vsel %vm8790_vm4, %v1665_v31, -1e+30 }
 0x5c7   : > { %1720 = vmax.xlane.f32.xlu1 %v9457_v61 }
 0x5cc   : > { %v2137_v5 = vpop.f32.mrf.mxu0 }
 0x5cd   : > { %v1667_v27 = vpop.f32.mrf.mxu1  ;;  %v9462_v24 = vsel %vm8774_vm3, %v2137_v5, -1e+30 }
 0x5ce   : > { %2193 = vmax.xlane.f32.xlu2 %v9462_v24  ;;  %v9467_v3 = vsel %vm8806_vm5, %v1667_v27, -1e+30 }
 0x5cf   : > { %1722 = vmax.xlane.f32.xlu0 %v9467_v3 }
 0x5d4   : > { %v2140_v7 = vpop.f32.mrf.mxu0 }
 0x5d5   : > { %v9472_v46 = vsel %vm8790_vm4, %v2140_v7, -1e+30  ;;  %v1670_v11 = vpop.f32.mrf.mxu1 }
 0x5d6   : > { %2195 = vmax.xlane.f32.xlu2 %v9472_v46  ;;  %v9477_v53 = vsel %vm8822_vm6, %v1670_v11, -1e+30 }
 0x5d7   : > { %1724 = vmax.xlane.f32.xlu0 %v9477_v53 }
 0x5dc   : > { %v2142_v34 = vpop.f32.mrf.mxu0 }
 0x5dd   : > { %v9482_v33 = vsel %vm8806_vm5, %v2142_v34, -1e+30  ;;  %v1672_v2 = vpop.f32.mrf.mxu1 }
 0x5de   : > { %2197 = vmax.xlane.f32.xlu1 %v9482_v33  ;;  %v9487_v39 = vsel %vm8838_vm7, %v1672_v2, -1e+30 }
 0x5df   : > { %1726 = vmax.xlane.f32.xlu2 %v9487_v39 }
 0x5e4   : > { %v2145_v60 = vpop.f32.mrf.mxu0 }
 0x5e5   : > { %v9492_v15 = vsel %vm8822_vm6, %v2145_v60, -1e+30  ;;  %v1675_v29 = vpop.f32.mrf.mxu1 }
 0x5e6   : > { %2199 = vmax.xlane.f32.xlu0 %v9492_v15  ;;  %v9497_v56 = vsel %vm8854_vm8, %v1675_v29, -1e+30 }
 0x5e7   : > { %1728 = vmax.xlane.f32.xlu2 %v9497_v56 }
 0x5ec   : > { %v2147_v28 = vpop.f32.mrf.mxu0 }
 0x5ed   : > { %v9502_v41 = vsel %vm8838_vm7, %v2147_v28, -1e+30  ;;  %v1677_v4 = vpop.f32.mrf.mxu1 }
 0x5ee   : > { %2201 = vmax.xlane.f32.xlu1 %v9502_v41  ;;  %v9507_v58 = vsel %vm8870_vm9, %v1677_v4, -1e+30 }
 0x5ef   : > { %1730 = vmax.xlane.f32.xlu0 %v9507_v58 }
 0x5f4   : > { %v2150_v20 = vpop.f32.mrf.mxu0 }
 0x5f5   : > { %v9512_v49 = vsel %vm8854_vm8, %v2150_v20, -1e+30  ;;  %v1680_v32 = vpop.f32.mrf.mxu1 }
 0x5f6   : > { %2203 = vmax.xlane.f32.xlu1 %v9512_v49  ;;  %v9517_v31 = vsel %vm8886_vm10, %v1680_v32, -1e+30 }
 0x5fc   : > { %v2152_v40 = vpop.f32.mrf.mxu0 }
 0x5fd   : > { %v9521_v5 = vsel %vm8870_vm9, %v2152_v40, -1e+30  ;;  %v1682_v27 = vpop.f32.mrf.mxu1 }
 0x5fe   : > { %1732 = vmax.xlane.f32.xlu1 %v9517_v31  ;;  %2205 = vmax.xlane.f32.xlu2 %v9521_v5  ;;  %v9531_v2 = vsel %vm8902_vm11, %v1682_v27, -1e+30 }
 0x604   : > { %v2155_v7 = vpop.f32.mrf.mxu0 }
 0x605   : > { %v9527_v11 = vsel %vm8886_vm10, %v2155_v7, -1e+30 }
 0x606   : > { %1734 = vmax.xlane.f32.xlu2 %v9531_v2  ;;  %2207 = vmax.xlane.f32.xlu1 %v9527_v11 }
 0x60c   : > { %v2157_v60 = vpop.f32.mrf.mxu0 }
 0x60d   : > { %v9537_v29 = vsel %vm8902_vm11, %v2157_v60, -1e+30 }
 0x60e   : > { %2209 = vmax.xlane.f32.xlu1 %v9537_v29 }
 0x62a   : > { %v1717_v28 = vpop.xlane.xlu2 %1716 }
 0x62b   : > { %v1748_v4 = vsub.f32 %v9438_v55, %v1717_v28 }
 0x62d   : > { %v1764_v20 = vmul.f32 1.442695, %v1748_v4 }
 0x62f   : > { %7737 = vpow2.f32 %v1764_v20 }
 0x632   : > { %v1719_v32 = vpop.xlane.xlu1 %1718 }
 0x633   : > { %v1749_v40 = vsub.f32 %v9447_v19, %v1719_v32 }
 0x635   : > { %v9542_v27 = vpop.eup %7737  ;;  %v1766_v7 = vmul.f32 1.442695, %v1749_v40 }
 0x636   : > { %1796 = vadd.xlane.f32.xlu2 %v9542_v27 }
 0x637   : > { %7739 = vpow2.f32 %v1766_v7 }
 0x639   : > { %v2192_v37 = vpop.xlane.xlu0 %2191 }
 0x63a   : > { %v2223_v60 = vsub.f32 %v9452_v63, %v2192_v37  ;;  %v1721_v28 = vpop.xlane.xlu1 %1720 }
 0x63b   : > { %v1750_v32 = vsub.f32 %v9457_v61, %v1721_v28  ;;  %v1685_v28 = vpop.f32.mrf.mxu1 }
 0x63c   : > { %v2239_v34 = vmul.f32 1.442695, %v2223_v60 }
 0x63d   : > { %v9546_v0 = vpop.eup %7739  ;;  %v1768_v40 = vmul.f32 1.442695, %v1750_v32  ;;  %v2160_v32 = vpop.f32.mrf.mxu0 }
 0x63e   : > { %7741 = vpow2.f32 %v2239_v34  ;;  %1798 = vadd.xlane.f32.xlu0 %v9546_v0 }
 0x641   : > { %v2194_v55 = vpop.xlane.xlu2 %2193 }
 0x642   : > { %v2224_v4 = vsub.f32 %v9462_v24, %v2194_v55  ;;  %v1723_v7 = vpop.xlane.xlu0 %1722 }
 0x643   : > { %v1751_v24 = vsub.f32 %v9467_v3, %v1723_v7  ;;  %v12936_v7 = vld [vmem:[#allocation28_spill] sm:$0xff] }
 0x644   : > { %v9550_v19 = vpop.eup %7741  ;;  %v2241_v20 = vmul.f32 1.442695, %v2224_v4  ;;  %vm12937_vm14 = vnez %v12936_v7 }
 0x645   : > { %2271 = vadd.xlane.f32.xlu1 %v9550_v19  ;;  %v1770_v61 = vmul.f32 1.442695, %v1751_v24  ;;  %v2162_v24 = vpop.f32.mrf.mxu0 }
 0x646   : > { %7743 = vpow2.f32 %v2241_v20  ;;  %v12934_v20 = vld [vmem:[#allocation29_spill] sm:$0xff]  ;;  %v9593_v35 = vsel %vm12937_vm14, %v2162_v24, -1e+30  ;;  %v12940_v24 = vld [vmem:[#allocation31_spill] sm:$0xff] }
 0x647   : > { %7745 = vpow2.f32 %v1768_v40  ;;  %vm12935_vm0 = vnez %v12934_v20  ;;  %v1687_v40 = vpop.f32.mrf.mxu1  ;;  %vm12941_vm1 = vnez %v12940_v24 }
 0x648   : > { %v9571_v3 = vsel %vm12935_vm0, %v1685_v28, -1e+30 }
 0x649   : > { %v2196_v63 = vpop.xlane.xlu2 %2195 }
 0x64a   : > { %v2225_v37 = vsub.f32 %v9472_v46, %v2196_v63  ;;  %v1725_v63 = vpop.xlane.xlu0 %1724 }
 0x64c   : > { %v9555_v34 = vpop.eup %7743  ;;  %v2243_v60 = vmul.f32 1.442695, %v2225_v37  ;;  %v9577_v37 = vsel %vm12935_vm0, %v2160_v32, -1e+30  ;;  %v12938_v32 = vld [vmem:[#allocation30_spill] sm:$0xff] }
 0x64d   : > { %2273 = vadd.xlane.f32.xlu0 %v9555_v34  ;;  %v9561_v55 = vpop.eup %7745  ;;  %vm12939_vm13 = vnez %v12938_v32 }
 0x64e   : > { %7747 = vpow2.f32 %v2243_v60  ;;  %2343 = vrot.lane.b32.xlu2 %v8686_v38, %s8271_s25  ;;  %v9581_v60 = vsel %vm12937_vm14, %v1687_v40, -1e+30 }
 0x64f   : > { %7749 = vpow2.f32 %v1770_v61  ;;  %v1752_v61 = vsub.f32 %v9477_v53, %v1725_v63  ;;  %v1690_v28 = vpop.f32.mrf.mxu1 }
 0x650   : > { %v9589_v42 = vsel %vm12939_vm13, %v1690_v28, -1e+30 }
 0x651   : > { %v2198_v38 = vpop.xlane.xlu1 %2197  ;;  %v1772_v62 = vmul.f32 1.442695, %v1752_v61 }
 0x652   : > { %v2226_v52 = vsub.f32 %v9482_v33, %v2198_v38  ;;  %v1727_v21 = vpop.xlane.xlu2 %1726  ;;  %v2165_v33 = vpop.f32.mrf.mxu0 }
 0x653   : > { %v1753_v16 = vsub.f32 %v9487_v39, %v1727_v21  ;;  %7751 = vpow2.f32 %v1772_v62 }
 0x654   : > { %v9563_v4 = vpop.eup %7747  ;;  %v2245_v40 = vmul.f32 1.442695, %v2226_v52 }
 0x655   : > { %1800 = vadd.xlane.f32.xlu0 %v9561_v55  ;;  %2275 = vadd.xlane.f32.xlu1 %v9563_v4  ;;  %v9567_v46 = vpop.eup %7749  ;;  %v1774_v63 = vmul.f32 1.442695, %v1753_v16 }
 0x656   : > { %7753 = vpow2.f32 %v2245_v40 }
 0x657   : > { %v1692_v38 = vpop.f32.mrf.mxu1  ;;  %7755 = vpow2.f32 %v1774_v63 }
 0x658   : > { %v9603_v7 = vsel %vm12941_vm1, %v1692_v38, -1e+30 }
 0x659   : > { %v2200_v20 = vpop.xlane.xlu0 %2199  ;;  %v9599_v12 = vpop.eup %7751 }
 0x65a   : > { %v2227_v53 = vsub.f32 %v9492_v15, %v2200_v20  ;;  %v1729_v28 = vpop.xlane.xlu2 %1728  ;;  %v2167_v20 = vpop.f32.mrf.mxu0 }
 0x65b   : > { %v1754_v39 = vsub.f32 %v9497_v56, %v1729_v28  ;;  %v9622_v56 = vsel %vm12941_vm1, %v2167_v20, -1e+30 }
 0x65c   : > { %v2247_v61 = vmul.f32 1.442695, %v2227_v53  ;;  %v9608_v62 = vpop.eup %7753 }
 0x65d   : > { %1736 = vmax.xlane.f32.xlu0 %v9571_v3  ;;  %1802 = vadd.xlane.f32.xlu1 %v9567_v46  ;;  %v9613_v53 = vpop.eup %7755  ;;  %v1776_v63 = vmul.f32 1.442695, %v1754_v39 }
 0x65e   : > { %7757 = vpow2.f32 %v2247_v61 }
 0x661   : > { %v2202_v44 = vpop.xlane.xlu1 %2201 }
 0x662   : > { %v2228_v21 = vsub.f32 %v9502_v41, %v2202_v44  ;;  %v1731_v38 = vpop.xlane.xlu0 %1730 }
 0x664   : > { %v2249_v15 = vmul.f32 1.442695, %v2228_v21  ;;  %v9615_v41 = vpop.eup %7757 }
 0x665   : > { %2211 = vmax.xlane.f32.xlu0 %v9577_v37  ;;  %1738 = vmax.xlane.f32.xlu1 %v9581_v60 }
 0x666   : > { %7759 = vpow2.f32 %v2249_v15  ;;  %v1695_v15 = vpop.f32.mrf.mxu1 }
 0x669   : > { %v2204_v52 = vpop.xlane.xlu1 %2203 }
 0x66a   : > { %v2229_v16 = vsub.f32 %v9512_v49, %v2204_v52  ;;  %v1755_v49 = vsub.f32 %v9507_v58, %v1731_v38 }
 0x66c   : > { %v2251_v40 = vmul.f32 1.442695, %v2229_v16  ;;  %v1778_v28 = vmul.f32 1.442695, %v1755_v49  ;;  %v9625_v52 = vpop.eup %7759  ;;  %v9640_v49 = vsel %vm12939_vm13, %v2165_v33, -1e+30 }
 0x66d   : > { %1740 = vmax.xlane.f32.xlu0 %v9589_v42  ;;  %2213 = vmax.xlane.f32.xlu1 %v9593_v35 }
 0x66e   : > { %7761 = vpow2.f32 %v2251_v40 }
 0x66f   : > { %7763 = vpow2.f32 %v1776_v63 }
 0x670   : > { %7765 = vpow2.f32 %v1778_v28  ;;  %v12942_v28 = vld [vmem:[#allocation32_spill] sm:$0xff] }
 0x671   : > { %v2206_v44 = vpop.xlane.xlu2 %2205  ;;  %v1733_v61 = vpop.xlane.xlu1 %1732  ;;  %vm12943_vm15 = vnez %v12942_v28 }
 0x672   : > { %v2230_v39 = vsub.f32 %v9521_v5, %v2206_v44  ;;  %v9646_v5 = vsel %vm12943_vm15, %v1695_v15, -1e+30  ;;  %v1756_v44 = vsub.f32 %v9517_v31, %v1733_v61 }
 0x674   : > { %v9627_v21 = vpop.eup %7761  ;;  %v2253_v38 = vmul.f32 1.442695, %v2230_v39  ;;  %v1780_v33 = vmul.f32 1.442695, %v1756_v44 }
 0x675   : > { %1804 = vadd.xlane.f32.xlu0 %v9599_v12  ;;  %1742 = vmax.xlane.f32.xlu1 %v9603_v7  ;;  %v9631_v58 = vpop.eup %7763 }
 0x676   : > { %v9636_v63 = vpop.eup %7765  ;;  %7767 = vpow2.f32 %v2253_v38 }
 0x677   : > { %2277 = vadd.xlane.f32.xlu2 %v9608_v62 }
 0x679   : > { %v1735_v16 = vpop.xlane.xlu2 %1734  ;;  %v2208_v40 = vpop.xlane.xlu1 %2207 }
 0x67a   : > { %v1757_v20 = vsub.f32 %v9531_v2, %v1735_v16  ;;  %v2231_v2 = vsub.f32 %v9527_v11, %v2208_v40  ;;  %v1697_v16 = vpop.f32.mrf.mxu1 }
 0x67b   : > { %v9655_v1 = vsel %vm12945_vm12, %v1697_v16, -1e+30 }
 0x67c   : > { %v1782_v24 = vmul.f32 1.442695, %v1757_v20  ;;  %v9651_v20 = vpop.eup %7767  ;;  %v2255_v32 = vmul.f32 1.442695, %v2231_v2 }
 0x67d   : > { %2279 = vadd.xlane.f32.xlu0 %v9615_v41  ;;  %1806 = vadd.xlane.f32.xlu1 %v9613_v53 }
 0x67e   : > { %7769 = vpow2.f32 %v1782_v24  ;;  %v2170_v24 = vpop.f32.mrf.mxu0 }
 0x67f   : > { %2217 = vmax.xlane.f32.xlu2 %v9622_v56  ;;  %7771 = vpow2.f32 %v1780_v33  ;;  %v9667_v40 = vsel %vm12943_vm15, %v2170_v24, -1e+30 }
 0x680   : > { %7773 = vpow2.f32 %v2255_v32 }
 0x681   : > { %v2210_v39 = vpop.xlane.xlu1 %2209 }
 0x682   : > { %v2232_v11 = vsub.f32 %v9537_v29, %v2210_v39 }
 0x684   : > { %v9659_v31 = vpop.eup %7769  ;;  %v2257_v61 = vmul.f32 1.442695, %v2232_v11 }
 0x685   : > { %2283 = vadd.xlane.f32.xlu0 %v9627_v21  ;;  %2281 = vadd.xlane.f32.xlu1 %v9625_v52  ;;  %v9663_v15 = vpop.eup %7771 }
 0x686   : > { %v9671_v38 = vpop.eup %7773  ;;  %7775 = vpow2.f32 %v2257_v61  ;;  %v2172_v29 = vpop.f32.mrf.mxu0 }
 0x687   : > { %1808 = vadd.xlane.f32.xlu2 %v9631_v58  ;;  %v9678_v32 = vsel %vm12945_vm12, %v2172_v29, -1e+30  ;;  %vm12946_vm12 = vcmask 130048  }
 0x688   : > { %vm12947_vm15 = vmmov %vm12946_vm12 }
 0x689   : > { %vm12948_vm1 = vmmov %vm12946_vm12 }
 0x68a   : > { %vm12950_vm13 = vmmov %vm12948_vm1 }
 0x68b   : > { %vm12951_vm14 = vmmov %vm12948_vm1 }
 0x68c   : > { %v9674_v44 = vpop.eup %7775 }
 0x68d   : > { %1810 = vadd.xlane.f32.xlu0 %v9636_v63  ;;  %2215 = vmax.xlane.f32.xlu1 %v9640_v49 }
 0x68f   : > { %1744 = vmax.xlane.f32.xlu2 %v9646_v5 }
 0x695   : > { %1746 = vmax.xlane.f32.xlu0 %v9655_v1  ;;  %2285 = vadd.xlane.f32.xlu1 %v9651_v20 }
 0x697   : > { %1814 = vadd.xlane.f32.xlu2 %v9659_v31 }
 0x69d   : > { %2219 = vmax.xlane.f32.xlu0 %v9667_v40  ;;  %1812 = vadd.xlane.f32.xlu1 %v9663_v15 }
 0x69f   : > { %2287 = vadd.xlane.f32.xlu2 %v9671_v38 }
 0x6a5   : > { %2289 = vadd.xlane.f32.xlu0 %v9674_v44  ;;  %2221 = vmax.xlane.f32.xlu1 %v9678_v32 }
 0x6a9   : > { %v1797_v2 = vpop.xlane.xlu2 %1796 }
 0x6aa   : > { %7777 = vrcp.f32 %v1797_v2 }
 0x6b0   : > { %v7778_v39 = vpop.eup %7777 }
 0x6b1   : > { %v1799_v16 = vpop.xlane.xlu0 %1798  ;;  %v2344_v33 = vpop.permute.xlu2 %2343  ;;  %v1844_v24 = vmul.f32 %v7778_v39, %v9542_v27 }
 0x6b2   : > { %7779 = vrcp.f32 %v1799_v16  ;;  %2374 = vmatpush.bf16.msra.mxu1 %v2344_v33 }
 0x6b8   : > { %v7780_v11 = vpop.eup %7779  ;;  %v2272_v43 = vpop.xlane.xlu1 %2271 }
 0x6b9   : > { %v1845_v61 = vmul.f32 %v7780_v11, %v9546_v0  ;;  %7781 = vrcp.f32 %v2272_v43 }
 0x6bb   : > { %v1860_v28 = vpack.c.bf16 %v1845_v61, %v1844_v24 }
 0x6bd   : > { %1900 = vmatmul.bf16.vlgmr.msra.gmra.mxu2 %v1860_v28 }
 0x6bf   : > { %v7782_v17 = vpop.eup %7781 }
 0x6c0   : > { %v2274_v29 = vpop.xlane.xlu0 %2273  ;;  %v2319_v2 = vmul.f32 %v7782_v17, %v9550_v19 }
 0x6c1   : > { %7783 = vrcp.f32 %v2274_v29 }
 0x6c7   : > { %v7784_v18 = vpop.eup %7783 }
 0x6c8   : > { %v2320_v59 = vmul.f32 %v7784_v18, %v9555_v34  ;;  %v1801_v16 = vpop.xlane.xlu0 %1800  ;;  %v2276_v33 = vpop.xlane.xlu1 %2275 }
 0x6c9   : > { %7785 = vrcp.f32 %v1801_v16 }
 0x6ca   : > { %v2335_v26 = vpack.c.bf16 %v2320_v59, %v2319_v2 }
 0x6cc   : > { %2375 = vmatmul.bf16.vlgmr.msra.gmra.mxu1 %v2335_v26 }
 0x6cf   : > { %v7786_v43 = vpop.eup %7785 }
 0x6d0   : > { %v1737_v27 = vpop.xlane.xlu0 %1736  ;;  %v1803_v39 = vpop.xlane.xlu1 %1802  ;;  %v1846_v17 = vmul.f32 %v7786_v43, %v9561_v55 }
 0x6d1   : > { %v1758_v0 = vsub.f32 %v9571_v3, %v1737_v27  ;;  %7787 = vrcp.f32 %v1803_v39 }
 0x6d3   : > { %v1784_v28 = vmul.f32 1.442695, %v1758_v0 }
 0x6d5   : > { %7789 = vpow2.f32 %v1784_v28 }
 0x6d7   : > { %v7788_v11 = vpop.eup %7787 }
 0x6d8   : > { %v2212_v24 = vpop.xlane.xlu0 %2211  ;;  %v1739_v61 = vpop.xlane.xlu1 %1738  ;;  %v1847_v18 = vmul.f32 %v7788_v11, %v9567_v46 }
 0x6d9   : > { %v2233_v19 = vsub.f32 %v9577_v37, %v2212_v24  ;;  %v1759_v26 = vsub.f32 %v9581_v60, %v1739_v61 }
 0x6da   : > { %v1861_v59 = vpack.c.bf16 %v1847_v18, %v1846_v17 }
 0x6db   : > { %v9691_v34 = vpop.eup %7789  ;;  %v2259_v29 = vmul.f32 1.442695, %v2233_v19  ;;  %v1786_v3 = vmul.f32 1.442695, %v1759_v26 }
 0x6dc   : > { %1816 = vadd.xlane.f32.xlu1 %v9691_v34  ;;  %1905 = vmatmul.bf16.gmra.mxu2 %v1861_v59 }
 0x6dd   : > { %7791 = vpow2.f32 %v2259_v29 }
 0x6de   : > { %7793 = vpow2.f32 %v1786_v3 }
 0x6e0   : > { %v1741_v2 = vpop.xlane.xlu0 %1740  ;;  %v2214_v16 = vpop.xlane.xlu1 %2213 }
 0x6e1   : > { %v1760_v55 = vsub.f32 %v9589_v42, %v1741_v2  ;;  %v2234_v46 = vsub.f32 %v9593_v35, %v2214_v16 }
 0x6e3   : > { %v9696_v27 = vpop.eup %7791  ;;  %v1788_v37 = vmul.f32 1.442695, %v1760_v55  ;;  %v2261_v60 = vmul.f32 1.442695, %v2234_v46 }
 0x6e4   : > { %v9698_v39 = vpop.eup %7793  ;;  %2291 = vadd.xlane.f32.xlu0 %v9696_v27 }
 0x6e5   : > { %7795 = vpow2.f32 %v1788_v37  ;;  %1818 = vadd.xlane.f32.xlu2 %v9698_v39 }
 0x6e6   : > { %7797 = vpow2.f32 %v2261_v60 }
 0x6e7   : > { %7799 = vrcp.f32 %v2276_v33 }
 0x6e8   : > { %v1805_v0 = vpop.xlane.xlu0 %1804  ;;  %v1743_v28 = vpop.xlane.xlu1 %1742 }
 0x6e9   : > { %v1761_v43 = vsub.f32 %v9603_v7, %v1743_v28 }
 0x6ea   : > { %v2278_v42 = vpop.xlane.xlu2 %2277 }
 0x6eb   : > { %v9703_v11 = vpop.eup %7795  ;;  %v1790_v35 = vmul.f32 1.442695, %v1761_v43  ;;  %7801 = vrcp.f32 %v2278_v42 }
 0x6ec   : > { %v9705_v24 = vpop.eup %7797 }
 0x6ed   : > { %7803 = vpow2.f32 %v1790_v35  ;;  %2293 = vadd.xlane.f32.xlu1 %v9705_v24  ;;  %1820 = vadd.xlane.f32.xlu2 %v9703_v11  ;;  %v7800_v61 = vpop.eup %7799 }
 0x6ee   : > { %7805 = vrcp.f32 %v1805_v0  ;;  %v2321_v7 = vmul.f32 %v7800_v61, %v9563_v4 }
 0x6f0   : > { %v2280_v17 = vpop.xlane.xlu0 %2279  ;;  %v1807_v18 = vpop.xlane.xlu1 %1806 }
 0x6f1   : > { %v7802_v19 = vpop.eup %7801  ;;  %7807 = vrcp.f32 %v1807_v18 }
 0x6f2   : > { %v2218_v33 = vpop.xlane.xlu2 %2217  ;;  %v2322_v26 = vmul.f32 %v7802_v19, %v9608_v62 }
 0x6f3   : > { %v9711_v59 = vpop.eup %7803  ;;  %v2236_v29 = vsub.f32 %v9622_v56, %v2218_v33 }
 0x6f4   : > { %1822 = vadd.xlane.f32.xlu0 %v9711_v59  ;;  %v2336_v3 = vpack.c.bf16 %v2322_v26, %v2321_v7  ;;  %v7806_v16 = vpop.eup %7805 }
 0x6f5   : > { %v2265_v2 = vmul.f32 1.442695, %v2236_v29  ;;  %v1848_v60 = vmul.f32 %v7806_v16, %v9599_v12 }
 0x6f6   : > { %2380 = vmatmul.bf16.gmra.mxu1 %v2336_v3 }
 0x6f7   : > { %7809 = vpow2.f32 %v2265_v2  ;;  %v7808_v55 = vpop.eup %7807 }
 0x6f8   : > { %v2284_v46 = vpop.xlane.xlu0 %2283  ;;  %v2282_v37 = vpop.xlane.xlu1 %2281  ;;  %7811 = vrcp.f32 %v2280_v17  ;;  %v1849_v4 = vmul.f32 %v7808_v55, %v9613_v53 }
 0x6f9   : > { %7813 = vrcp.f32 %v2282_v37 }
 0x6fa   : > { %v1809_v62 = vpop.xlane.xlu2 %1808  ;;  %v1862_v0 = vpack.c.bf16 %v1849_v4, %v1848_v60 }
 0x6fb   : > { %7815 = vrcp.f32 %v1809_v62 }
 0x6fc   : > { %1910 = vmatmul.bf16.gmra.mxu2 %v1862_v0 }
 0x6fd   : > { %v9717_v28 = vpop.eup %7809 }
 0x6fe   : > { %2297 = vadd.xlane.f32.xlu2 %v9717_v28  ;;  %v7812_v56 = vpop.eup %7811 }
 0x6ff   : > { %v7814_v43 = vpop.eup %7813  ;;  %v2323_v53 = vmul.f32 %v7812_v56, %v9615_v41 }
 0x700   : > { %v1811_v42 = vpop.xlane.xlu0 %1810  ;;  %v2216_v35 = vpop.xlane.xlu1 %2215  ;;  %v2324_v12 = vmul.f32 %v7814_v43, %v9625_v52 }
 0x701   : > { %7817 = vrcp.f32 %v1811_v42  ;;  %v2235_v61 = vsub.f32 %v9640_v49, %v2216_v35  ;;  %v7816_v7 = vpop.eup %7815 }
 0x702   : > { %v1745_v17 = vpop.xlane.xlu2 %1744  ;;  %v2337_v33 = vpack.c.bf16 %v2324_v12, %v2323_v53  ;;  %v1850_v49 = vmul.f32 %v7816_v7, %v9631_v58 }
 0x703   : > { %v2263_v18 = vmul.f32 1.442695, %v2235_v61  ;;  %v1762_v19 = vsub.f32 %v9646_v5, %v1745_v17 }
 0x705   : > { %7819 = vpow2.f32 %v2263_v18  ;;  %v1792_v26 = vmul.f32 1.442695, %v1762_v19 }
 0x706   : > { %2385 = vmatmul.bf16.gmra.mxu1 %v2337_v33 }
 0x707   : > { %v7818_v29 = vpop.eup %7817  ;;  %7821 = vpow2.f32 %v1792_v26 }
 0x708   : > { %7823 = vrcp.f32 %v2284_v46  ;;  %v1747_v3 = vpop.xlane.xlu0 %1746  ;;  %v2286_v2 = vpop.xlane.xlu1 %2285  ;;  %v1851_v52 = vmul.f32 %v7818_v29, %v9636_v63 }
 0x709   : > { %v1763_v16 = vsub.f32 %v9655_v1, %v1747_v3  ;;  %7825 = vrcp.f32 %v2286_v2  ;;  %v7534_v2 = vld [vmem:[%s12686_s1 + $0xf8] sm:$0xf0] }
 0x70a   : > { %v1863_v41 = vpack.c.bf16 %v1851_v52, %v1850_v49  ;;  %v1815_v37 = vpop.xlane.xlu2 %1814 }
 0x70b   : > { %v9727_v55 = vpop.eup %7819  ;;  %v1794_v5 = vmul.f32 1.442695, %v1763_v16 }
 0x70c   : > { %2295 = vadd.xlane.f32.xlu1 %v9727_v55  ;;  %1915 = vmatmul.bf16.gmra.mxu2 %v1863_v41 }
 0x70d   : > { %v9730_v60 = vpop.eup %7821  ;;  %7827 = vpow2.f32 %v1794_v5 }
 0x70e   : > { %v7824_v46 = vpop.eup %7823  ;;  %1824 = vadd.xlane.f32.xlu0 %v9730_v60  ;;  %7829 = vrcp.f32 %v1815_v37 }
 0x70f   : > { %v7826_v58 = vpop.eup %7825  ;;  %v2325_v0 = vmul.f32 %v7824_v46, %v9627_v21 }
 0x710   : > { %v2220_v63 = vpop.xlane.xlu0 %2219  ;;  %v1813_v4 = vpop.xlane.xlu1 %1812  ;;  %v2326_v1 = vmul.f32 %v7826_v58, %v9651_v20 }
 0x711   : > { %v2237_v62 = vsub.f32 %v9667_v40, %v2220_v63  ;;  %7831 = vrcp.f32 %v1813_v4 }
 0x712   : > { %v2338_v42 = vpack.c.bf16 %v2326_v1, %v2325_v0  ;;  %v2288_v61 = vpop.xlane.xlu2 %2287 }
 0x713   : > { %v9736_v56 = vpop.eup %7827  ;;  %v2267_v43 = vmul.f32 1.442695, %v2237_v62 }
 0x714   : > { %1826 = vadd.xlane.f32.xlu1 %v9736_v56  ;;  %v7830_v35 = vpop.eup %7829 }
 0x715   : > { %7833 = vpow2.f32 %v2267_v43  ;;  %v1853_v40 = vmul.f32 %v7830_v35, %v9659_v31 }
 0x716   : > { %2390 = vmatmul.bf16.gmra.mxu1 %v2338_v42  ;;  %7835 = vrcp.f32 %v2288_v61 }
 0x717   : > { %v7832_v12 = vpop.eup %7831 }
 0x718   : > { %v2290_v17 = vpop.xlane.xlu0 %2289  ;;  %v2222_v53 = vpop.xlane.xlu1 %2221  ;;  %v1852_v20 = vmul.f32 %v7832_v12, %v9663_v15 }
 0x719   : > { %7837 = vrcp.f32 %v2290_v17  ;;  %v2238_v21 = vsub.f32 %v9678_v32, %v2222_v53  ;;  %v7203_v32 = vld [vmem:[%s12686_s1 + $0xf4] sm:$0xf] }
 0x71a   : > { %v1864_v18 = vpack.c.bf16 %v1853_v40, %v1852_v20  ;;  %v7204_v49 = vor.u32 %v7534_v2, %v7203_v32 }
 0x71b   : > { %v9742_v19 = vpop.eup %7833  ;;  %v2269_v33 = vmul.f32 1.442695, %v2238_v21 }
 0x71c   : > { %2299 = vadd.xlane.f32.xlu2 %v9742_v19  ;;  %1920 = vmatmul.bf16.gmra.mxu2 %v1864_v18  ;;  %v7836_v7 = vpop.eup %7835 }
 0x71d   : > { %7839 = vpow2.f32 %v2269_v33  ;;  %v2327_v3 = vmul.f32 %v7836_v7, %v9671_v38  ;;  %1986 = vmatpush.bf16.msrb.mxu3 %v7204_v49  ;;  %v7223_v38 = vld [vmem:[%s12686_s1 + $0x104] sm:$0xf] }
 0x71f   : > { %v7838_v26 = vpop.eup %7837 }
 0x720   : > { %v2328_v29 = vmul.f32 %v7838_v26, %v9674_v44  ;;  %v7535_v44 = vld [vmem:[%s12686_s1 + $0x108] sm:$0xf0] }
 0x721   : > { %v7224_v16 = vor.u32 %v7535_v44, %v7223_v38 }
 0x722   : > { %v2339_v31 = vpack.c.bf16 %v2328_v29, %v2327_v3 }
 0x723   : > { %v9747_v15 = vpop.eup %7839  ;;  %2461 = vmatpush.bf16.msrb.mxu2 %v7224_v16 }
 0x724   : > { %2301 = vadd.xlane.f32.xlu0 %v9747_v15 }
 0x726   : > { %2395 = vmatmul.bf16.gmra.mxu1 %v2339_v31 }
 0x740   : > { %v1901_v52 = vpop.f32.mrf.mxu2 }
 0x748   : > { %v1903_v41 = vpop.f32.mrf.mxu2 }
 0x749   : > { %v1941_v5 = vpack.c.bf16 %v1903_v41, %v1901_v52  ;;  %v2376_v2 = vpop.f32.mrf.mxu1 }
 0x74b   : > { %7205 = vmatmul.msk.bf16.vlgmr.msrb.gmra.mxu3 %vm12946_vm12, %v1941_v5 }
 0x74f   : > { %v1817_v37 = vpop.xlane.xlu1 %1816 }
 0x750   : > { %7841 = vrcp.f32 %v1817_v37 }
 0x756   : > { %v7842_v63 = vpop.eup %7841 }
 0x757   : > { %v2292_v58 = vpop.xlane.xlu0 %2291  ;;  %v1854_v0 = vmul.f32 %v7842_v63, %v9691_v34 }
 0x758   : > { %v1819_v46 = vpop.xlane.xlu2 %1818 }
 0x759   : > { %7843 = vrcp.f32 %v1819_v46  ;;  %v2378_v46 = vpop.f32.mrf.mxu1 }
 0x75a   : > { %7845 = vrcp.f32 %v2292_v58 }
 0x75f   : > { %v7844_v4 = vpop.eup %7843  ;;  %v1906_v1 = vpop.f32.mrf.mxu2 }
 0x760   : > { %v2294_v62 = vpop.xlane.xlu1 %2293  ;;  %v1855_v43 = vmul.f32 %v7844_v4, %v9698_v39  ;;  %v1821_v35 = vpop.xlane.xlu2 %1820 }
 0x761   : > { %7847 = vrcp.f32 %v2294_v62  ;;  %v7846_v61 = vpop.eup %7845 }
 0x762   : > { %v1865_v42 = vpack.c.bf16 %v1855_v43, %v1854_v0  ;;  %7849 = vrcp.f32 %v1821_v35  ;;  %v2329_v40 = vmul.f32 %v7846_v61, %v9696_v27  ;;  %v2416_v35 = vpack.c.bf16 %v2378_v46, %v2376_v2 }
 0x764   : > { %1925 = vmatmul.bf16.gmra.mxu2 %v1865_v42 }
 0x767   : > { %v7848_v12 = vpop.eup %7847  ;;  %v1823_v17 = vpop.xlane.xlu0 %1822 }
 0x768   : > { %v1908_v53 = vpop.f32.mrf.mxu2  ;;  %7851 = vrcp.f32 %v1823_v17  ;;  %v2330_v21 = vmul.f32 %v7848_v12, %v9705_v24  ;;  %v7850_v18 = vpop.eup %7849 }
 0x769   : > { %v1942_v20 = vpack.c.bf16 %v1908_v53, %v1906_v1  ;;  %v1856_v33 = vmul.f32 %v7850_v18, %v9703_v11 }
 0x76a   : > { %v2340_v34 = vpack.c.bf16 %v2330_v21, %v2329_v40 }
 0x76b   : > { %7206 = vmatmul.msk.bf16.gmra.mxu3 %vm12946_vm12, %v1942_v20 }
 0x76c   : > { %2400 = vmatmul.bf16.gmra.mxu1 %v2340_v34 }
 0x76e   : > { %v7852_v39 = vpop.eup %7851 }
 0x76f   : > { %v1857_v7 = vmul.f32 %v7852_v39, %v9711_v59 }
 0x771   : > { %v1866_v26 = vpack.c.bf16 %v1857_v7, %v1856_v33  ;;  %v2298_v29 = vpop.xlane.xlu2 %2297 }
 0x772   : > { %7853 = vrcp.f32 %v2298_v29 }
 0x774   : > { %1930 = vmatmul.bf16.gmra.mxu2 %v1866_v26 }
 0x778   : > { %v7854_v32 = vpop.eup %7853 }
 0x779   : > { %v2332_v38 = vmul.f32 %v7854_v32, %v9717_v28 }
 0x77f   : > { %v2296_v3 = vpop.xlane.xlu1 %2295  ;;  %v1911_v31 = vpop.f32.mrf.mxu2 }
 0x780   : > { %7855 = vrcp.f32 %v2296_v3 }
 0x781   : > { %v1825_v27 = vpop.xlane.xlu0 %1824 }
 0x782   : > { %7857 = vrcp.f32 %v1825_v27 }
 0x786   : > { %v7856_v24 = vpop.eup %7855 }
 0x787   : > { %v1827_v49 = vpop.xlane.xlu1 %1826  ;;  %v2331_v52 = vmul.f32 %v7856_v24, %v9727_v55  ;;  %v1913_v11 = vpop.f32.mrf.mxu2 }
 0x788   : > { %7859 = vrcp.f32 %v1827_v49  ;;  %v1943_v59 = vpack.c.bf16 %v1913_v11, %v1911_v31  ;;  %v7858_v16 = vpop.eup %7857  ;;  %v2381_v55 = vpop.f32.mrf.mxu1 }
 0x789   : > { %v2341_v44 = vpack.c.bf16 %v2332_v38, %v2331_v52  ;;  %v1858_v5 = vmul.f32 %v7858_v16, %v9730_v60 }
 0x78a   : > { %7207 = vmatmul.msk.bf16.gmra.mxu3 %vm12946_vm12, %v1943_v59 }
 0x78b   : > { %2405 = vmatmul.bf16.gmra.mxu1 %v2341_v44 }
 0x78e   : > { %v7860_v41 = vpop.eup %7859 }
 0x78f   : > { %v1859_v37 = vmul.f32 %v7860_v41, %v9736_v56  ;;  %v1916_v58 = vpop.f32.mrf.mxu2  ;;  %v2300_v4 = vpop.xlane.xlu2 %2299 }
 0x790   : > { %7861 = vrcp.f32 %v2300_v4  ;;  %v2383_v12 = vpop.f32.mrf.mxu1 }
 0x791   : > { %v1867_v63 = vpack.c.bf16 %v1859_v37, %v1858_v5  ;;  %v2417_v40 = vpack.c.bf16 %v2383_v12, %v2381_v55  ;;  %v12957_v55 = vld [vmem:[#allocation2_spill] sm:$0xff] }
 0x793   : > { %1935 = vmatmul.bf16.gmra.mxu2 %v1867_v63 }
 0x796   : > { %v7862_v0 = vpop.eup %7861 }
 0x797   : > { %v2302_v28 = vpop.xlane.xlu0 %2301  ;;  %v1918_v1 = vpop.f32.mrf.mxu2  ;;  %v2333_v42 = vmul.f32 %v7862_v0, %v9742_v19 }
 0x798   : > { %7863 = vrcp.f32 %v2302_v28  ;;  %v1944_v62 = vpack.c.bf16 %v1918_v1, %v1916_v58  ;;  %v2386_v20 = vpop.f32.mrf.mxu1  ;;  %v1079_v28 = vadd.f32 %v9345_v50, %v9350_v22 }
 0x79a   : > { %7208 = vmatmul.msk.bf16.gmra.mxu3 %vm12947_vm15, %v1944_v62  ;;  %vm12949_vm15 = vmmov %vm12948_vm1  ;;  %v1554_v0 = vadd.f32 %v9358_v57, %v1079_v28 }
 0x79e   : > { %v7864_v43 = vpop.eup %7863 }
 0x79f   : > { %v2334_v60 = vmul.f32 %v7864_v43, %v9747_v15  ;;  %v1921_v56 = vpop.f32.mrf.mxu2 }
 0x7a0   : > { %v2388_v21 = vpop.f32.mrf.mxu1 }
 0x7a1   : > { %v2342_v61 = vpack.c.bf16 %v2334_v60, %v2333_v42  ;;  %v2418_v19 = vpack.c.bf16 %v2388_v21, %v2386_v20  ;;  %v1081_v20 = vadd.f32 %v9356_v10, %v9350_v22 }
 0x7a3   : > { %2410 = vmatmul.bf16.gmra.mxu1 %v2342_v61  ;;  %7225 = vmatmul.msk.bf16.vlgmr.msrb.gmra.mxu2 %vm12946_vm12, %v2416_v35  ;;  %vm12952_vm12 = vmmov %vm12948_vm1  ;;  %v12959_v35 = vld [vmem:[#allocation3_spill] sm:$0xff] }
 0x7a7   : > { %v1923_v17 = vpop.f32.mrf.mxu2 }
 0x7a8   : > { %v1945_v53 = vpack.c.bf16 %v1923_v17, %v1921_v56  ;;  %v2391_v34 = vpop.f32.mrf.mxu1 }
 0x7aa   : > { %7209 = vmatmul.msk.bf16.gmra.mxu3 %vm12948_vm1, %v1945_v53 }
 0x7b0   : > { %v2393_v15 = vpop.f32.mrf.mxu1 }
 0x7b1   : > { %v2419_v18 = vpack.c.bf16 %v2393_v15, %v2391_v34  ;;  %v1556_v34 = vadd.f32 %v9366_v25, %v1081_v20 }
 0x7b3   : > { %7226 = vmatmul.msk.bf16.gmra.mxu2 %vm12949_vm15, %v2417_v40  ;;  %vm12953_vm15 = vmmov %vm12948_vm1  ;;  %v12961_v40 = vld [vmem:[#allocation4_spill] sm:$0xff] }
 0x7b8   : > { %v2396_v39 = vpop.f32.mrf.mxu1 }
 0x7c0   : > { %v2398_v33 = vpop.f32.mrf.mxu1 }
 0x7c1   : > { %v2420_v7 = vpack.c.bf16 %v2398_v33, %v2396_v39 }
 0x7c3   : > { %7227 = vmatmul.msk.bf16.gmra.mxu2 %vm12950_vm13, %v2418_v19  ;;  %vm12954_vm13 = vmmov %vm12948_vm1 }
 0x7ce   : > { %v1988_v44 = vpop.f32.mrf.mxu3 }
 0x7cf   : > { %v2028_v46 = vadd.f32 %v1988_v44, %v9354_v30 }
 0x7d3   : > { %7228 = vmatmul.msk.bf16.gmra.mxu2 %vm12951_vm14, %v2419_v18  ;;  %vm12955_vm14 = vmmov %vm12948_vm1 }
 0x7d6   : > { %v1990_v37 = vpop.f32.mrf.mxu3 }
 0x7d7   : > { %v2029_v30 = vadd.f32 %v1990_v37, %v1554_v0 }
 0x7e3   : > { %7229 = vmatmul.msk.bf16.gmra.mxu2 %vm12952_vm12, %v2420_v7  ;;  %vm12956_vm12 = vmmov %vm12948_vm1 }
 0x7e7   : > { %v1926_v26 = vpop.f32.mrf.mxu2 }
 0x7e9   : > { %v2401_v29 = vpop.f32.mrf.mxu1 }
 0x7ee   : > { %v1993_v42 = vpop.f32.mrf.mxu3 }
 0x7ef   : > { %v1928_v3 = vpop.f32.mrf.mxu2  ;;  %v2030_v12 = vadd.f32 %v1993_v42, %v9364_v9  ;;  %v12963_v9 = vld [vmem:[#allocation5_spill] sm:$0xff]  ;;  %v1085_v42 = vadd.f32 %v9384_v14, %v9350_v22 }
 0x7f0   : > { %v1946_v31 = vpack.c.bf16 %v1928_v3, %v1926_v26 }
 0x7f1   : > { %v2403_v27 = vpop.f32.mrf.mxu1 }
 0x7f2   : > { %v2421_v32 = vpack.c.bf16 %v2403_v27, %v2401_v29  ;;  %7210 = vmatmul.msk.bf16.gmra.mxu3 %vm12948_vm1, %v1946_v31  ;;  %v1083_v31 = vadd.f32 %v9372_v47, %v9350_v22  ;;  %v12965_v27 = vld [vmem:[#allocation6_spill] sm:$0xff] }
 0x7f4   : > { %7230 = vmatmul.msk.bf16.gmra.mxu2 %vm12953_vm15, %v2421_v32  ;;  %vm12958_vm15 = vcmask 523264  }
 0x7f6   : > { %v1995_v57 = vpop.f32.mrf.mxu3 }
 0x7f7   : > { %v1931_v24 = vpop.f32.mrf.mxu2  ;;  %v2031_v15 = vadd.f32 %v1995_v57, %v1556_v34  ;;  %v12973_v34 = vld [vmem:[#allocation9_spill] sm:$0xff] }
 0x7ff   : > { %v1933_v2 = vpop.f32.mrf.mxu2 }
 0x800   : > { %v1947_v49 = vpack.c.bf16 %v1933_v2, %v1931_v24  ;;  %v1558_v24 = vadd.f32 %v9377_v51, %v1083_v31  ;;  %v12969_v51 = vld [vmem:[#allocation8_spill] sm:$0xff] }
 0x802   : > { %7211 = vmatmul.msk.bf16.gmra.mxu3 %vm12954_vm13, %v1947_v49  ;;  %vm12960_vm13 = vmmov %vm12958_vm15 }
 0x808   : > { %v2406_v52 = vpop.f32.mrf.mxu1 }
 0x80d   : > { %v1998_v18 = vpop.f32.mrf.mxu3 }
 0x80e   : > { %v2032_v10 = vadd.f32 %v1998_v18, %v9375_v13 }
 0x810   : > { %v2408_v38 = vpop.f32.mrf.mxu1 }
 0x811   : > { %v2422_v11 = vpack.c.bf16 %v2408_v38, %v2406_v52 }
 0x813   : > { %7231 = vmatmul.msk.bf16.gmra.mxu2 %vm12955_vm14, %v2422_v11  ;;  %vm12962_vm14 = vmmov %vm12960_vm13  ;;  %v12967_v11 = vld [vmem:[#allocation7_spill] sm:$0xff] }
 0x815   : > { %v2000_v25 = vpop.f32.mrf.mxu3 }
 0x816   : > { %v1936_v59 = vpop.f32.mrf.mxu2  ;;  %v2033_v49 = vadd.f32 %v2000_v25, %v1558_v24 }
 0x81e   : > { %v1938_v16 = vpop.f32.mrf.mxu2 }
 0x81f   : > { %v1948_v41 = vpack.c.bf16 %v1938_v16, %v1936_v59  ;;  %v2003_v59 = vpop.f32.mrf.mxu3 }
 0x820   : > { %v2411_v5 = vpop.f32.mrf.mxu1  ;;  %v2034_v47 = vadd.f32 %v2003_v59, %v9386_v8  ;;  %v12978_v59 = vld [vmem:[#allocation11_spill] sm:$0xff] }
 0x821   : > { %7212 = vmatmul.msk.bf16.gmra.mxu3 %vm12956_vm12, %v1948_v41  ;;  %vm12964_vm12 = vmmov %vm12960_vm13 }
 0x826   : > { %v2463_v58 = vpop.f32.mrf.mxu2 }
 0x827   : > { %v2503_v63 = vadd.f32 %v2463_v58, %v2028_v46  ;;  %v8272_v46 = vmov 64.0  }
 0x828   : > { %v2413_v4 = vpop.f32.mrf.mxu1  ;;  %7865 = vrcp.f32 %v8272_v46 }
 0x829   : > { %v9793_v1 = vadd.f32 %v2503_v63, %v12957_v55  ;;  %v2423_v62 = vpack.c.bf16 %v2413_v4, %v2411_v5  ;;  %v2005_v55 = vpop.f32.mrf.mxu3 }
 0x82b   : > { %7232 = vmatmul.msk.bf16.gmra.mxu2 %vm12948_vm1, %v2423_v62  ;;  %v2535_v43 = vsel %vm12958_vm15, %v9793_v1, 0.0  ;;  %vm12966_vm1 = vmmov %vm12964_vm12 }
 0x82c   : > { %2536 = vadd.xlane.f32.xlu1 %v2535_v43  ;;  %vm12968_vm15 = vmmov %vm12966_vm1 }
 0x82e   : > { %v2465_v60 = vpop.f32.mrf.mxu2  ;;  %v7866_v58 = vpop.eup %7865 }
 0x82f   : > { %v2504_v56 = vadd.f32 %v2465_v60, %v2029_v30  ;;  %v2584_v63 = vmul.f32 64.0, %v7866_v58 }
 0x831   : > { %v9800_v61 = vadd.f32 %v2504_v56, %v12959_v35  ;;  %v2585_v4 = vsub.f32 1.0, %v2584_v63  ;;  %v2008_v60 = vpop.f32.mrf.mxu3  ;;  %v1560_v56 = vadd.f32 %v9388_v54, %v1085_v42 }
 0x833   : > { %v2538_v50 = vsel %vm12960_vm13, %v9800_v61, 0.0  ;;  %vm12970_vm13 = vmmov %vm12966_vm1  ;;  %v2586_v28 = vmul.f32 %v7866_v58, %v2585_v4 }
 0x834   : > { %2539 = vadd.xlane.f32.xlu2 %v2538_v50 }
 0x835   : > { %v2587_v0 = vadd.f32 %v7866_v58, %v2586_v28  ;;  %v12981_v28 = vld [vmem:[#allocation12_spill] sm:$0xff] }
 0x836   : > { %v2468_v17 = vpop.f32.mrf.mxu2 }
 0x837   : > { %v2505_v53 = vadd.f32 %v2468_v17, %v2030_v12  ;;  %v2035_v12 = vadd.f32 %v2005_v55, %v1560_v56 }
 0x839   : > { %v9808_v21 = vadd.f32 %v2505_v53, %v12961_v40 }
 0x83b   : > { %v2541_v19 = vsel %vm12962_vm14, %v9808_v21, 0.0  ;;  %vm2588_vm14 = vweird.f32 %v7866_v58 }
 0x83c   : > { %2542 = vadd.xlane.f32.xlu0 %v2541_v19  ;;  %v9838_v8 = vsel %vm2588_vm14, %v7866_v58, %v2587_v0  ;;  %v2036_v19 = vadd.f32 %v2008_v60, %v9395_v45  ;;  %vm12977_vm14 = vmmov %vm12966_vm1 }
 0x83d   : > { %12971 = vst [vmem:[#allocation2_spill] sm:$0xff] %v9838_v8 }
 0x83e   : > { %v2470_v39 = vpop.f32.mrf.mxu2 }
 0x83f   : > { %v2506_v33 = vadd.f32 %v2470_v39, %v2031_v15 }
 0x841   : > { %v9814_v7 = vadd.f32 %v2506_v33, %v12963_v9 }
 0x843   : > { %v2544_v26 = vsel %vm12964_vm12, %v9814_v7, 0.0  ;;  %vm12972_vm12 = vmmov %vm12966_vm1 }
 0x844   : > { %2545 = vadd.xlane.f32.xlu1 %v2544_v26 }
 0x846   : > { %v2473_v29 = vpop.f32.mrf.mxu2 }
 0x847   : > { %v2507_v3 = vadd.f32 %v2473_v29, %v2032_v10  ;;  %v12975_v29 = vld [vmem:[#allocation10_spill] sm:$0xff] }
 0x849   : > { %v9822_v32 = vadd.f32 %v2507_v3, %v12965_v27 }
 0x84b   : > { %v2547_v2 = vsel %vm12966_vm1, %v9822_v32, 0.0 }
 0x84c   : > { %2548 = vadd.xlane.f32.xlu2 %v2547_v2 }
 0x84e   : > { %v2475_v52 = vpop.f32.mrf.mxu2 }
 0x84f   : > { %v2508_v38 = vadd.f32 %v2475_v52, %v2033_v49 }
 0x851   : > { %v9828_v13 = vadd.f32 %v2508_v38, %v12967_v11 }
 0x853   : > { %v2550_v44 = vsel %vm12968_vm15, %v9828_v13, 0.0  ;;  %vm12974_vm15 = vmmov %vm12966_vm1 }
 0x854   : > { %2551 = vadd.xlane.f32.xlu0 %v2550_v44 }
 0x856   : > { %v2478_v16 = vpop.f32.mrf.mxu2 }
 0x857   : > { %v2509_v41 = vadd.f32 %v2478_v16, %v2034_v47 }
 0x859   : > { %v9834_v5 = vadd.f32 %v2509_v41, %v12969_v51  ;;  %v1089_v41 = vadd.f32 %v9412_v6, %v9350_v22 }
 0x85b   : > { %v2553_v37 = vsel %vm12970_vm13, %v9834_v5, 0.0  ;;  %vm12976_vm13 = vmmov %vm12966_vm1 }
 0x85c   : > { %2554 = vadd.xlane.f32.xlu0 %v2553_v37 }
 0x85e   : > { %v2480_v62 = vpop.f32.mrf.mxu2 }
 0x85f   : > { %v2510_v17 = vadd.f32 %v2480_v62, %v2035_v12 }
 0x861   : > { %v9855_v54 = vadd.f32 %v2510_v17, %v12973_v34  ;;  %v12985_v34 = vld [vmem:[#allocation35_spill] sm:$0xff] }
 0x863   : > { %v2556_v33 = vsel %vm12966_vm1, %v9855_v54, 0.0 }
 0x866   : > { %v2483_v50 = vpop.f32.mrf.mxu2 }
 0x867   : > { %v2511_v39 = vadd.f32 %v2483_v50, %v2036_v19  ;;  %v7247_v50 = vld [vmem:[%s12686_s1 + $0x100] sm:$0xf] }
 0x869   : > { %v9868_v3 = vadd.f32 %v2511_v39, %v12975_v29  ;;  %v12990_v29 = vld [vmem:[#allocation14_spill] sm:$0xff] }
 0x86b   : > { %v2559_v49 = vsel %vm12976_vm13, %v9868_v3, 0.0  ;;  %vm12983_vm13 = vmmov %vm12966_vm1 }
 0x86e   : > { %v2485_v18 = vpop.f32.mrf.mxu2 }
 0x877   : > { %v2488_v52 = vpop.f32.mrf.mxu2 }
 0x87f   : > { %v2490_v4 = vpop.f32.mrf.mxu2 }
 0x896   : > { %v2493_v17 = vpop.f32.mrf.mxu2 }
 0x89f   : > { %v2537_v43 = vpop.xlane.xlu1 %2536 }
 0x8a0   : > { %v2590_v30 = vmul.f32 %v9838_v8, %v2537_v43 }
 0x8a2   : > { %v9845_v35 = vsub.f32 %v9793_v1, %v2590_v30  ;;  %v2010_v1 = vpop.f32.mrf.mxu3 }
 0x8a4   : > { %v2622_v57 = vmul.f32 %v9845_v35, %v9845_v35 }
 0x8a6   : > { %v2638_v53 = vsel %vm12972_vm12, %v2622_v57, 0.0  ;;  %vm12979_vm12 = vmmov %vm12966_vm1 }
 0x8a7   : > { %2639 = vadd.xlane.f32.xlu1 %v2638_v53  ;;  %v2540_v20 = vpop.xlane.xlu2 %2539 }
 0x8a8   : > { %v2591_v14 = vmul.f32 %v9838_v8, %v2540_v20  ;;  %v12984_v20 = vld [vmem:[#allocation13_spill] sm:$0xff] }
 0x8aa   : > { %v9852_v40 = vsub.f32 %v9800_v61, %v2591_v14  ;;  %v1087_v61 = vadd.f32 %v9397_v23, %v9350_v22  ;;  %v2013_v31 = vpop.f32.mrf.mxu3 }
 0x8ac   : > { %v2623_v15 = vmul.f32 %v9852_v40, %v9852_v40  ;;  %v1562_v45 = vadd.f32 %v9399_v36, %v1087_v61 }
 0x8ae   : > { %v2641_v9 = vsel %vm12974_vm15, %v2623_v15, 0.0  ;;  %v2037_v27 = vadd.f32 %v2010_v1, %v1562_v45  ;;  %vm12982_vm15 = vmmov %vm12966_vm1 }
 0x8af   : > { %v2543_v26 = vpop.xlane.xlu0 %2542  ;;  %2557 = vadd.xlane.f32.xlu1 %v2556_v33  ;;  %2642 = vadd.xlane.f32.xlu2 %v2641_v9 }
 0x8b0   : > { %v2592_v10 = vmul.f32 %v9838_v8, %v2543_v26  ;;  %v2512_v2 = vadd.f32 %v2485_v18, %v2037_v27 }
 0x8b2   : > { %v9871_v25 = vsub.f32 %v9808_v21, %v2592_v10  ;;  %v2038_v21 = vadd.f32 %v2013_v31, %v9406_v48  ;;  %v9884_v44 = vadd.f32 %v2512_v2, %v12978_v59  ;;  %v2015_v16 = vpop.f32.mrf.mxu3  ;;  %v12989_v10 = vld [vmem:[#allocation37_spill] sm:$0xff] }
 0x8b4   : > { %v2624_v24 = vmul.f32 %v9871_v25, %v9871_v25  ;;  %v2513_v51 = vadd.f32 %v2488_v52, %v2038_v21  ;;  %v2562_v46 = vsel %vm12966_vm1, %v9884_v44, 0.0  ;;  %v12992_v21 = vld [vmem:[#allocation15_spill] sm:$0xff] }
 0x8b6   : > { %v2644_v23 = vsel %vm12977_vm14, %v2624_v24, 0.0  ;;  %v9896_v55 = vadd.f32 %v2513_v51, %v12981_v28  ;;  %vm12986_vm14 = vmmov %vm12966_vm1  ;;  %v2495_v24 = vpop.f32.mrf.mxu2  ;;  %v7537_v28 = vld [vmem:[%s12686_s1 + $0xe4] sm:$0xf0] }
 0x8b7   : > { %v2546_v38 = vpop.xlane.xlu1 %2545  ;;  %2560 = vadd.xlane.f32.xlu1 %v2559_v49  ;;  %2645 = vadd.xlane.f32.xlu2 %v2644_v23 }
 0x8b8   : > { %v2593_v36 = vmul.f32 %v9838_v8, %v2546_v38  ;;  %v2565_v42 = vsel %vm12982_vm15, %v9896_v55, 0.0  ;;  %vm12991_vm15 = vmmov %vm12966_vm1 }
 0x8ba   : > { %v9881_v11 = vsub.f32 %v9814_v7, %v2593_v36  ;;  %v12980_v7 = vld [vmem:[#allocation34_spill] sm:$0xff]  ;;  %v2018_v60 = vpop.f32.mrf.mxu3 }
 0x8bb   : > { %v1564_v58 = vadd.f32 %v12980_v7, %v1089_v41  ;;  %v2040_v1 = vadd.f32 %v2018_v60, %v12985_v34  ;;  %v7243_v7 = vld [vmem:[%s12686_s1 + $0xf0] sm:$0xf]  ;;  %v7536_v60 = vld [vmem:[%s12686_s1 + $0xd4] sm:$0xf0] }
 0x8bc   : > { %v2625_v47 = vmul.f32 %v9881_v11, %v9881_v11 }
 0x8bd   : > { %v2039_v62 = vadd.f32 %v2015_v16, %v1564_v58  ;;  %v2515_v15 = vadd.f32 %v2493_v17, %v2040_v1  ;;  %v7538_v58 = vld [vmem:[%s12686_s1 + $0xf4] sm:$0xf0] }
 0x8be   : > { %v2647_v37 = vsel %vm12979_vm12, %v2625_v47, 0.0  ;;  %vm12987_vm12 = vmmov %vm12966_vm1  ;;  %v2498_v47 = vpop.f32.mrf.mxu2 }
 0x8bf   : > { %2648 = vadd.xlane.f32.xlu0 %v2647_v37  ;;  %2563 = vadd.xlane.f32.xlu2 %v2562_v46  ;;  %v2549_v48 = vpop.xlane.xlu2 %2548  ;;  %v2514_v43 = vadd.f32 %v2490_v4, %v2039_v62  ;;  %v9930_v31 = vadd.f32 %v2515_v15, %v12990_v29  ;;  %v12995_v37 = vld [vmem:[#allocation16_spill] sm:$0xff]  ;;  %v7239_v4 = vld [vmem:[%s12686_s1 + $0xe0] sm:$0xf] }
 0x8c0   : > { %v2594_v63 = vmul.f32 %v9838_v8, %v2549_v48 }
 0x8c1   : > { %v9917_v14 = vadd.f32 %v2514_v43, %v12984_v20  ;;  %v2571_v38 = vsel %vm12991_vm15, %v9930_v31, 0.0 }
 0x8c2   : > { %v9899_v6 = vsub.f32 %v9822_v32, %v2594_v63  ;;  %v7539_v32 = vld [vmem:[%s12686_s1 + $0x104] sm:$0xf0]  ;;  %v2020_v61 = vpop.f32.mrf.mxu3  ;;  %v7244_v63 = vor.u32 %v7538_v58, %v7243_v7 }
 0x8c3   : > { %v7248_v57 = vor.u32 %v7539_v32, %v7247_v50  ;;  %v2568_v39 = vsel %vm12987_vm12, %v9917_v14, 0.0  ;;  %vm12997_vm12 = vmmov %vm12966_vm1 }
 0x8c4   : > { %v2626_v0 = vmul.f32 %v9899_v6, %v9899_v6 }
 0x8c5   : > { %2997 = vmatpush.bf16.msra.mxu3 %v7248_v57 }
 0x8c6   : > { %v2650_v30 = vsel %vm12983_vm13, %v2626_v0, 0.0  ;;  %vm12994_vm13 = vmmov %vm12966_vm1  ;;  %v7240_v0 = vor.u32 %v7537_v28, %v7239_v4 }
 0x8c7   : > { %v2552_v56 = vpop.xlane.xlu0 %2551  ;;  %2566 = vadd.xlane.f32.xlu2 %v2565_v42  ;;  %2651 = vadd.xlane.f32.xlu0 %v2650_v30  ;;  %v7235_v30 = vld [vmem:[%s12686_s1 + $0xd0] sm:$0xf] }
 0x8c8   : > { %v2595_v12 = vmul.f32 %v9838_v8, %v2552_v56  ;;  %v7236_v56 = vor.u32 %v7536_v60, %v7235_v30  ;;  %v177_v60 = vld [vmem:[%s12687_s2 + $0x10] sm:$0xff] }
 0x8c9   : > { %2998 = vmatpush.bf16.msra.mxu3 %v7244_v63  ;;  %v13001_v63 = vld [vmem:[#allocation17_spill] sm:$0xff] }
 0x8ca   : > { %v9914_v53 = vsub.f32 %v9828_v13, %v2595_v12  ;;  %v12988_v13 = vld [vmem:[#allocation36_spill] sm:$0xff]  ;;  %v2023_v36 = vpop.f32.mrf.mxu3 }
 0x8cb   : > { %v1091_v9 = vadd.f32 %v12988_v13, %v9350_v22 }
 0x8cc   : > { %v2627_v19 = vmul.f32 %v9914_v53, %v9914_v53 }
 0x8cd   : > { %v1566_v45 = vadd.f32 %v12989_v10, %v1091_v9  ;;  %2999 = vmatpush.bf16.msra.mxu3 %v7240_v0 }
 0x8ce   : > { %v2653_v18 = vsel %vm12986_vm14, %v2627_v19, 0.0  ;;  %vm12996_vm14 = vmmov %vm12966_vm1 }
 0x8cf   : > { %v2555_v33 = vpop.xlane.xlu0 %2554  ;;  %2654 = vadd.xlane.f32.xlu1 %v2653_v18  ;;  %2569 = vadd.xlane.f32.xlu0 %v2568_v39  ;;  %v2041_v2 = vadd.f32 %v2020_v61, %v1566_v45  ;;  %v12998_v39 = vld [vmem:[#allocation38_spill] sm:$0xff]  ;;  %v12999_v45 = vld [vmem:[#allocation40_spill] sm:$0xff] }
 0x8d0   : > { %v2596_v26 = vmul.f32 %v9838_v8, %v2555_v33  ;;  %v1093_v33 = vadd.f32 %v12998_v39, %v9350_v22 }
 0x8d1   : > { %v2516_v23 = vadd.f32 %v2495_v24, %v2041_v2  ;;  %3000 = vmatpush.bf16.msra.mxu3 %v7236_v56 }
 0x8d2   : > { %v9933_v27 = vsub.f32 %v9834_v5, %v2596_v26  ;;  %v12993_v5 = vld [vmem:[#allocation39_spill] sm:$0xff]  ;;  %v2025_v61 = vpop.f32.mrf.mxu3  ;;  %v1568_v29 = vadd.f32 %v12999_v45, %v1093_v33 }
 0x8d3   : > { %v9941_v59 = vadd.f32 %v2516_v23, %v12992_v21  ;;  %v2042_v16 = vadd.f32 %v2023_v36, %v12993_v5 }
 0x8d4   : > { %v2628_v49 = vmul.f32 %v9933_v27, %v9933_v27  ;;  %v2043_v22 = vadd.f32 %v2025_v61, %v1568_v29 }
 0x8d5   : > { %v2517_v41 = vadd.f32 %v2498_v47, %v2042_v16  ;;  %v2574_v51 = vsel %vm12994_vm13, %v9941_v59, 0.0 }
 0x8d6   : > { %v2656_v52 = vsel %vm12966_vm1, %v2628_v49, 0.0  ;;  %v2500_v49 = vpop.f32.mrf.mxu2 }
 0x8d7   : > { %2657 = vadd.xlane.f32.xlu1 %v2656_v52  ;;  %2572 = vadd.xlane.f32.xlu0 %v2571_v38  ;;  %v9947_v46 = vadd.f32 %v2517_v41, %v12995_v37  ;;  %v2518_v47 = vadd.f32 %v2500_v49, %v2043_v22 }
 0x8d9   : > { %v2577_v48 = vsel %vm12996_vm14, %v9947_v46, 0.0  ;;  %vm13000_vm14 = vmmov %vm12997_vm12  ;;  %v9995_v4 = vadd.f32 %v2518_v47, %v13001_v63 }
 0x8df   : > { %2575 = vadd.xlane.f32.xlu1 %v2574_v51 }
 0x8e7   : > { %2578 = vadd.xlane.f32.xlu1 %v2577_v48 }
 0x91a   : > { %v2640_v62 = vpop.xlane.xlu1 %2639 }
 0x91b   : > { %v2686_v43 = vmul.f32 %v2640_v62, %v9838_v8  ;;  %v10000_v62 = vld [vmem:[%s12687_s2] sm:$0xff] }
 0x91c   : > { %v10003_v0 = vperm.slane %v10000_v62, 7 }
 0x91d   : > { %v2702_v42 = vadd.f32 1e-05, %v2686_v43 }
 0x91f   : > { %7867 = vrsqrt.f32 %v2702_v42  ;;  %vm2724_vm15 = vweird.f32 %v2702_v42 }
 0x922   : > { %v2558_v50 = vpop.xlane.xlu1 %2557  ;;  %v2643_v32 = vpop.xlane.xlu2 %2642 }
 0x923   : > { %v2597_v12 = vmul.f32 %v9838_v8, %v2558_v50  ;;  %v2687_v57 = vmul.f32 %v2643_v32, %v9838_v8 }
 0x925   : > { %v7868_v17 = vpop.eup %7867  ;;  %v9973_v20 = vsub.f32 %v9855_v54, %v2597_v12  ;;  %v2703_v34 = vadd.f32 1e-05, %v2687_v57 }
 0x926   : > { %v2719_v1 = vmul.f32 %v7868_v17, %v2702_v42  ;;  %vm2725_vm1 = vweird.f32 %v7868_v17 }
 0x927   : > { %7869 = vrsqrt.f32 %v2703_v34  ;;  %v2629_v19 = vmul.f32 %v9973_v20, %v9973_v20  ;;  %vm2726_vm13 = vmor %vm2724_vm15, %vm2725_vm1  ;;  %vm2734_vm1 = vweird.f32 %v2703_v34 }
 0x928   : > { %v2720_v15 = vmul.f32 %v7868_v17, %v2719_v1 }
 0x929   : > { %v2659_v18 = vsel %vm12997_vm12, %v2629_v19, 0.0 }
 0x92a   : > { %v2721_v13 = vmul.f32 0.5, %v2720_v15  ;;  %v2561_v9 = vpop.xlane.xlu1 %2560  ;;  %2660 = vadd.xlane.f32.xlu2 %v2659_v18  ;;  %v2646_v26 = vpop.xlane.xlu2 %2645 }
 0x92b   : > { %v2598_v54 = vmul.f32 %v9838_v8, %v2561_v9  ;;  %v2688_v10 = vmul.f32 %v2646_v26, %v9838_v8 }
 0x92c   : > { %v2722_v24 = vsub.f32 1.5, %v2721_v13 }
 0x92d   : > { %v7870_v2 = vpop.eup %7869  ;;  %v9984_v23 = vsub.f32 %v9868_v3, %v2598_v54  ;;  %v9986_v52 = vadd.f32 1e-05, %v2688_v10 }
 0x92e   : > { %v2723_v38 = vmul.f32 %v7868_v17, %v2722_v24  ;;  %v2729_v36 = vmul.f32 %v7870_v2, %v2703_v34  ;;  %vm2735_vm12 = vweird.f32 %v7870_v2 }
 0x92f   : > { %7871 = vrsqrt.f32 %v9986_v52  ;;  %v2630_v21 = vmul.f32 %v9984_v23, %v9984_v23  ;;  %vm2736_vm15 = vmor %vm2734_vm1, %vm2735_vm12  ;;  %vm2744_vm1 = vweird.f32 %v9986_v52 }
 0x930   : > { %v2730_v5 = vmul.f32 %v7870_v2, %v2729_v36  ;;  %v2727_v41 = vsel %vm2726_vm13, %v7868_v17, %v2723_v38  ;;  %vm13002_vm13 = vmmov %vm13000_vm14 }
 0x931   : > { %v2662_v16 = vsel %vm13000_vm14, %v2630_v21, 0.0  ;;  %v2878_v43 = vmul.f32 %v2727_v41, %v9845_v35  ;;  %v2580_v35 = vsel %vm13002_vm13, %v9995_v4, 0.0  ;;  %vm13003_vm14 = vmmov %vm13002_vm13 }
 0x932   : > { %v2731_v3 = vmul.f32 0.5, %v2730_v5  ;;  %v2649_v51 = vpop.xlane.xlu0 %2648  ;;  %2663 = vadd.xlane.f32.xlu2 %v2662_v16  ;;  %v2564_v37 = vpop.xlane.xlu2 %2563  ;;  %v7547_v5 = vld [vmem:[%s12686_s1 + $0x184] sm:$0xf0] }
 0x933   : > { %v2689_v48 = vmul.f32 %v2649_v51, %v9838_v8  ;;  %v2599_v7 = vmul.f32 %v9838_v8, %v2564_v37  ;;  %v2895_v17 = vmul.f32 %v10003_v0, %v2878_v43 }
 0x934   : > { %v2732_v58 = vsub.f32 1.5, %v2731_v3 }
 0x935   : > { %v7872_v28 = vpop.eup %7871  ;;  %v2705_v42 = vadd.f32 1e-05, %v2689_v48  ;;  %v10007_v30 = vsub.f32 %v9884_v44, %v2599_v7  ;;  %v10017_v44 = vperm.slane %v177_v60, 0 }
 0x936   : > { %v2733_v56 = vmul.f32 %v7870_v2, %v2732_v58  ;;  %v2739_v50 = vmul.f32 %v7872_v28, %v9986_v52  ;;  %vm2745_vm12 = vweird.f32 %v7872_v28  ;;  %v7287_v52 = vld [vmem:[%s12686_s1 + $0x180] sm:$0xf] }
 0x937   : > { %7873 = vrsqrt.f32 %v2705_v42  ;;  %v2631_v32 = vmul.f32 %v10007_v30, %v10007_v30  ;;  %v10026_v61 = vadd.f32 %v10017_v44, %v2895_v17  ;;  %v7288_v3 = vor.u32 %v7547_v5, %v7287_v52 }
 0x938   : > { %v2737_v12 = vsel %vm2736_vm15, %v7870_v2, %v2733_v56  ;;  %v2740_v57 = vmul.f32 %v7872_v28, %v2739_v50  ;;  %vm10039_vm15 = vmor %vm2744_vm1, %vm2745_vm12  ;;  %vm2754_vm1 = vweird.f32 %v2705_v42 }
 0x939   : > { %v2879_v1 = vmul.f32 %v2737_v12, %v9852_v40  ;;  %v2665_v34 = vsel %vm13003_vm14, %v2631_v32, 0.0  ;;  %vm13006_vm14 = vmmov %vm13002_vm13  ;;  %3131 = vmatpush.bf16.msra.mxu0 %v7288_v3 }
 0x93a   : > { %v2741_v19 = vmul.f32 0.5, %v2740_v57  ;;  %2581 = vadd.xlane.f32.xlu2 %v2580_v35  ;;  %v2652_v15 = vpop.xlane.xlu0 %2651  ;;  %2666 = vadd.xlane.f32.xlu0 %v2665_v34  ;;  %v2567_v18 = vpop.xlane.xlu2 %2566 }
 0x93b   : > { %v2896_v39 = vmul.f32 %v10003_v0, %v2879_v1  ;;  %v2690_v33 = vmul.f32 %v2652_v15, %v9838_v8  ;;  %v2600_v13 = vmul.f32 %v9838_v8, %v2567_v18 }
 0x93c   : > { %v2742_v9 = vsub.f32 1.5, %v2741_v19 }
 0x93d   : > { %v7874_v26 = vpop.eup %7873  ;;  %v10029_v40 = vadd.f32 %v10017_v44, %v2896_v39  ;;  %v2706_v54 = vadd.f32 1e-05, %v2690_v33  ;;  %v10032_v10 = vsub.f32 %v9896_v55, %v2600_v13 }
 0x93e   : > { %v2743_v45 = vmul.f32 %v7872_v28, %v2742_v9  ;;  %v2749_v29 = vmul.f32 %v7874_v26, %v2705_v42  ;;  %vm2755_vm12 = vweird.f32 %v7874_v26 }
 0x93f   : > { %v2928_v24 = vpack.c.bf16 %v10029_v40, %v10026_v61  ;;  %7875 = vrsqrt.f32 %v2706_v54  ;;  %v2632_v2 = vmul.f32 %v10032_v10, %v10032_v10 }
 0x940   : > { %v2750_v49 = vmul.f32 %v7874_v26, %v2749_v29  ;;  %v2747_v38 = vsel %vm10039_vm15, %v7872_v28, %v2743_v45  ;;  %vm2756_vm15 = vmor %vm2754_vm1, %vm2755_vm12  ;;  %vm2764_vm12 = vweird.f32 %v2706_v54 }
 0x941   : > { %7249 = vmatmul.msk.bf16.vlgmr.msra.gmra.mxu3 %vm13002_vm13, %v2928_v24  ;;  %v2668_v55 = vsel %vm13006_vm14, %v2632_v2, 0.0  ;;  %v2880_v48 = vmul.f32 %v2747_v38, %v9871_v25 }
 0x942   : > { %v2751_v36 = vmul.f32 0.5, %v2750_v49  ;;  %v2655_v21 = vpop.xlane.xlu1 %2654  ;;  %v2570_v47 = vpop.xlane.xlu0 %2569  ;;  %2669 = vadd.xlane.f32.xlu0 %v2668_v55 }
 0x943   : > { %v2691_v16 = vmul.f32 %v2655_v21, %v9838_v8  ;;  %v2601_v41 = vmul.f32 %v9838_v8, %v2570_v47  ;;  %v2897_v25 = vmul.f32 %v10003_v0, %v2880_v48  ;;  %v7546_v48 = vld [vmem:[%s12686_s1 + $0x174] sm:$0xf0] }
 0x944   : > { %v2752_v51 = vsub.f32 1.5, %v2751_v36 }
 0x945   : > { %v7876_v37 = vpop.eup %7875  ;;  %v2707_v7 = vadd.f32 1e-05, %v2691_v16  ;;  %v10057_v58 = vsub.f32 %v9917_v14, %v2601_v41  ;;  %v10070_v19 = vadd.f32 %v10017_v44, %v2897_v25 }
 0x946   : > { %v2753_v63 = vmul.f32 %v7874_v26, %v2752_v51  ;;  %v2759_v28 = vmul.f32 %v7876_v37, %v2706_v54  ;;  %vm2765_vm14 = vweird.f32 %v7876_v37 }
 0x947   : > { %7877 = vrsqrt.f32 %v2707_v7  ;;  %v2633_v43 = vmul.f32 %v10057_v58, %v10057_v58  ;;  %vm2766_vm1 = vmor %vm2764_vm12, %vm2765_vm14  ;;  %vm2774_vm11 = vweird.f32 %v2707_v7 }
 0x948   : > { %v2757_v60 = vsel %vm2756_vm15, %v7874_v26, %v2753_v63  ;;  %v2760_v56 = vmul.f32 %v7876_v37, %v2759_v28  ;;  %vm13007_vm15 = vmmov %vm13002_vm13 }
 0x949   : > { %v2881_v50 = vmul.f32 %v2757_v60, %v9881_v11  ;;  %v2671_v32 = vsel %vm13002_vm13, %v2633_v43, 0.0  ;;  %vm13008_vm12 = vmmov %vm13002_vm13  ;;  %v7279_v43 = vld [vmem:[%s12686_s1 + $0x160] sm:$0xf]  ;;  %v7545_v60 = vld [vmem:[%s12686_s1 + $0x164] sm:$0xf0] }
 0x94a   : > { %v2761_v12 = vmul.f32 0.5, %v2760_v56  ;;  %v2658_v14 = vpop.xlane.xlu1 %2657  ;;  %2672 = vadd.xlane.f32.xlu1 %v2671_v32  ;;  %v2573_v57 = vpop.xlane.xlu0 %2572  ;;  %v7280_v56 = vor.u32 %v7545_v60, %v7279_v43 }
 0x94b   : > { %v2602_v42 = vmul.f32 %v9838_v8, %v2573_v57  ;;  %v2898_v35 = vmul.f32 %v10003_v0, %v2881_v50 }
 0x94c   : > { %v2762_v17 = vsub.f32 1.5, %v2761_v12  ;;  %v7275_v12 = vld [vmem:[%s12686_s1 + $0x150] sm:$0xf] }
 0x94d   : > { %v7878_v1 = vpop.eup %7877  ;;  %v10067_v34 = vsub.f32 %v9930_v31, %v2602_v42  ;;  %v10073_v11 = vadd.f32 %v10017_v44, %v2898_v35 }
 0x94e   : > { %v2763_v15 = vmul.f32 %v7876_v37, %v2762_v17  ;;  %v2769_v18 = vmul.f32 %v7878_v1, %v2707_v7  ;;  %vm2775_vm0 = vweird.f32 %v7878_v1  ;;  %v7271_v17 = vld [vmem:[%s12686_s1 + $0x140] sm:$0xf] }
 0x94f   : > { %v2929_v39 = vpack.c.bf16 %v10073_v11, %v10070_v19  ;;  %v2634_v33 = vmul.f32 %v10067_v34, %v10067_v34  ;;  %vm2776_vm14 = vmor %vm2774_vm11, %vm2775_vm0 }
 0x950   : > { %v2770_v13 = vmul.f32 %v7878_v1, %v2769_v18  ;;  %v2767_v9 = vsel %vm2766_vm1, %v7876_v37, %v2763_v15  ;;  %vm13009_vm11 = vmmov %vm13008_vm12  ;;  %v7283_v37 = vld [vmem:[%s12686_s1 + $0x170] sm:$0xf] }
 0x951   : > { %7250 = vmatmul.msk.bf16.gmra.mxu3 %vm13007_vm15, %v2929_v39  ;;  %v2674_v31 = vsel %vm13002_vm13, %v2634_v33, 0.0  ;;  %v2882_v2 = vmul.f32 %v2767_v9, %v9899_v6  ;;  %vm13010_vm0 = vmmov %vm13009_vm11  ;;  %v7284_v7 = vor.u32 %v7546_v48, %v7283_v37 }
 0x952   : > { %v2771_v26 = vmul.f32 0.5, %v2770_v13  ;;  %v2576_v45 = vpop.xlane.xlu1 %2575  ;;  %2675 = vadd.xlane.f32.xlu2 %v2674_v31  ;;  %v7267_v13 = vld [vmem:[%s12686_s1 + $0x130] sm:$0xf]  ;;  %v7542_v31 = vld [vmem:[%s12686_s1 + $0x134] sm:$0xf0] }
 0x953   : > { %v2603_v29 = vmul.f32 %v9838_v8, %v2576_v45  ;;  %v2899_v21 = vmul.f32 %v10003_v0, %v2882_v2  ;;  %3132 = vmatpush.bf16.msra.mxu0 %v7284_v7  ;;  %v7268_v45 = vor.u32 %v7542_v31, %v7267_v13 }
 0x954   : > { %v2772_v24 = vsub.f32 1.5, %v2771_v26 }
 0x955   : > { %v10084_v49 = vsub.f32 %v9941_v59, %v2603_v29  ;;  %v10097_v5 = vadd.f32 %v10017_v44, %v2899_v21 }
 0x956   : > { %v2773_v54 = vmul.f32 %v7878_v1, %v2772_v24 }
 0x957   : > { %v2635_v22 = vmul.f32 %v10084_v49, %v10084_v49  ;;  %3133 = vmatpush.bf16.msra.mxu0 %v7280_v56 }
 0x958   : > { %v2777_v55 = vsel %vm2776_vm14, %v7878_v1, %v2773_v54  ;;  %v7543_v1 = vld [vmem:[%s12686_s1 + $0x144] sm:$0xf0]  ;;  %v7263_v54 = vld [vmem:[%s12686_s1 + $0x120] sm:$0xf] }
 0x959   : > { %v2883_v38 = vmul.f32 %v2777_v55, %v9914_v53  ;;  %v2677_v36 = vsel %vm13008_vm12, %v2635_v22, 0.0  ;;  %v7272_v15 = vor.u32 %v7543_v1, %v7271_v17  ;;  %v7541_v22 = vld [vmem:[%s12686_s1 + $0x124] sm:$0xf0] }
 0x95a   : > { %v2579_v47 = vpop.xlane.xlu1 %2578  ;;  %2678 = vadd.xlane.f32.xlu0 %v2677_v36  ;;  %v7264_v55 = vor.u32 %v7541_v22, %v7263_v54 }
 0x95b   : > { %v2604_v6 = vmul.f32 %v9838_v8, %v2579_v47  ;;  %v2900_v59 = vmul.f32 %v10003_v0, %v2883_v38 }
 0x95d   : > { %v10094_v52 = vsub.f32 %v9947_v46, %v2604_v6  ;;  %v10100_v16 = vadd.f32 %v10017_v44, %v2900_v59  ;;  %v2692_v46 = vmul.f32 %v2658_v14, %v9838_v8  ;;  %v7544_v14 = vld [vmem:[%s12686_s1 + $0x154] sm:$0xf0] }
 0x95e   : > { %v7276_v42 = vor.u32 %v7544_v14, %v7275_v12 }
 0x95f   : > { %v2930_v53 = vpack.c.bf16 %v10100_v16, %v10097_v5  ;;  %v2636_v41 = vmul.f32 %v10094_v52, %v10094_v52  ;;  %v2708_v51 = vadd.f32 1e-05, %v2692_v46 }
 0x960   : > { %3134 = vmatpush.bf16.msra.mxu0 %v7276_v42 }
 0x961   : > { %7251 = vmatmul.msk.bf16.gmra.mxu3 %vm13009_vm11, %v2930_v53  ;;  %v2680_v3 = vsel %vm13010_vm0, %v2636_v41, 0.0  ;;  %7879 = vrsqrt.f32 %v2708_v51  ;;  %vm2784_vm15 = vweird.f32 %v2708_v51  ;;  %v7259_v41 = vld [vmem:[%s12686_s1 + $0x110] sm:$0xf] }
 0x962   : > { %2681 = vadd.xlane.f32.xlu1 %v2680_v3  ;;  %v7540_v3 = vld [vmem:[%s12686_s1 + $0x114] sm:$0xf0] }
 0x963   : > { %v7260_v7 = vor.u32 %v7540_v3, %v7259_v41  ;;  %v10182_v41 = vperm.slane %v10000_v62, 5 }
 0x964   : > { %3135 = vmatpush.bf16.msra.mxu0 %v7272_v15 }
 0x967   : > { %v7880_v63 = vpop.eup %7879 }
 0x968   : > { %v2779_v28 = vmul.f32 %v7880_v63, %v2708_v51  ;;  %vm2785_vm1 = vweird.f32 %v7880_v63  ;;  %3136 = vmatpush.bf16.msra.mxu0 %v7268_v45 }
 0x969   : > { %vm2786_vm13 = vmor %vm2784_vm15, %vm2785_vm1 }
 0x96a   : > { %v2780_v50 = vmul.f32 %v7880_v63, %v2779_v28 }
 0x96c   : > { %v2781_v35 = vmul.f32 0.5, %v2780_v50  ;;  %3137 = vmatpush.bf16.msra.mxu0 %v7264_v55 }
 0x96e   : > { %v2782_v18 = vsub.f32 1.5, %v2781_v35 }
 0x970   : > { %v2783_v29 = vmul.f32 %v7880_v63, %v2782_v18  ;;  %3138 = vmatpush.bf16.msra.mxu0 %v7260_v7 }
 0x972   : > { %v2787_v38 = vsel %vm2786_vm13, %v7880_v63, %v2783_v29 }
 0x973   : > { %v2884_v51 = vmul.f32 %v2787_v38, %v9933_v27 }
 0x99d   : > { %v2661_v32 = vpop.xlane.xlu2 %2660 }
 0x99e   : > { %v2693_v25 = vmul.f32 %v2661_v32, %v9838_v8  ;;  %v2901_v32 = vmul.f32 %v10003_v0, %v2884_v51 }
 0x9a0   : > { %v2709_v57 = vadd.f32 1e-05, %v2693_v25  ;;  %v10167_v17 = vadd.f32 %v10017_v44, %v2901_v32 }
 0x9a2   : > { %7881 = vrsqrt.f32 %v2709_v57  ;;  %vm2794_vm12 = vweird.f32 %v2709_v57 }
 0x9a5   : > { %v2664_v39 = vpop.xlane.xlu2 %2663 }
 0x9a6   : > { %v2694_v33 = vmul.f32 %v2664_v39, %v9838_v8 }
 0x9a8   : > { %v7882_v9 = vpop.eup %7881  ;;  %v2710_v26 = vadd.f32 1e-05, %v2694_v33 }
 0x9a9   : > { %v2789_v24 = vmul.f32 %v7882_v9, %v2709_v57  ;;  %vm2795_vm14 = vweird.f32 %v7882_v9 }
 0x9aa   : > { %7883 = vrsqrt.f32 %v2710_v26  ;;  %vm2796_vm11 = vmor %vm2794_vm12, %vm2795_vm14  ;;  %vm2804_vm15 = vweird.f32 %v2710_v26 }
 0x9ab   : > { %v2790_v2 = vmul.f32 %v7882_v9, %v2789_v24  ;;  %vm13011_vm14 = vmmov %vm13010_vm0 }
 0x9ad   : > { %v2791_v36 = vmul.f32 0.5, %v2790_v2  ;;  %v2667_v21 = vpop.xlane.xlu0 %2666  ;;  %v2582_v47 = vpop.xlane.xlu2 %2581 }
 0x9ae   : > { %v2695_v6 = vmul.f32 %v2667_v21, %v9838_v8  ;;  %v2605_v59 = vmul.f32 %v9838_v8, %v2582_v47 }
 0x9af   : > { %v2792_v53 = vsub.f32 1.5, %v2791_v36 }
 0x9b0   : > { %v7884_v46 = vpop.eup %7883  ;;  %v2711_v37 = vadd.f32 1e-05, %v2695_v6  ;;  %v10157_v48 = vsub.f32 %v9995_v4, %v2605_v59 }
 0x9b1   : > { %v2793_v63 = vmul.f32 %v7882_v9, %v2792_v53  ;;  %v2799_v28 = vmul.f32 %v7884_v46, %v2710_v26  ;;  %vm2805_vm1 = vweird.f32 %v7884_v46 }
 0x9b2   : > { %7885 = vrsqrt.f32 %v2711_v37  ;;  %v2637_v43 = vmul.f32 %v10157_v48, %v10157_v48  ;;  %vm2806_vm13 = vmor %vm2804_vm15, %vm2805_vm1 }
 0x9b3   : > { %v2797_v60 = vsel %vm2796_vm11, %v7882_v9, %v2793_v63  ;;  %v2800_v56 = vmul.f32 %v7884_v46, %v2799_v28  ;;  %vm2814_vm11 = vweird.f32 %v2711_v37 }
 0x9b4   : > { %v2885_v50 = vmul.f32 %v2797_v60, %v9973_v20  ;;  %v2683_v27 = vsel %vm13010_vm0, %v2637_v43, 0.0 }
 0x9b5   : > { %v2801_v4 = vmul.f32 0.5, %v2800_v56  ;;  %v2670_v25 = vpop.xlane.xlu0 %2669  ;;  %2684 = vadd.xlane.f32.xlu2 %v2683_v27 }
 0x9b6   : > { %v2696_v12 = vmul.f32 %v2670_v25, %v9838_v8  ;;  %v2902_v14 = vmul.f32 %v10003_v0, %v2885_v50 }
 0x9b7   : > { %v2802_v57 = vsub.f32 1.5, %v2801_v4 }
 0x9b8   : > { %v7886_v42 = vpop.eup %7885  ;;  %v2712_v35 = vadd.f32 1e-05, %v2696_v12  ;;  %v10170_v1 = vadd.f32 %v10017_v44, %v2902_v14 }
 0x9b9   : > { %v2803_v20 = vmul.f32 %v7884_v46, %v2802_v57  ;;  %v2809_v15 = vmul.f32 %v7886_v42, %v2711_v37  ;;  %vm2815_vm12 = vweird.f32 %v7886_v42 }
 0x9ba   : > { %7887 = vrsqrt.f32 %v2712_v35  ;;  %v2931_v18 = vpack.c.bf16 %v10170_v1, %v10167_v17  ;;  %vm2816_vm0 = vmor %vm2814_vm11, %vm2815_vm12  ;;  %vm2824_vm15 = vweird.f32 %v2712_v35 }
 0x9bb   : > { %v2810_v39 = vmul.f32 %v7886_v42, %v2809_v15  ;;  %v2807_v33 = vsel %vm2806_vm13, %v7884_v46, %v2803_v20 }
 0x9bc   : > { %7252 = vmatmul.msk.bf16.gmra.mxu3 %vm13011_vm14, %v2931_v18  ;;  %v2886_v24 = vmul.f32 %v2807_v33, %v9984_v23 }
 0x9bd   : > { %v2811_v13 = vmul.f32 0.5, %v2810_v39  ;;  %v2673_v31 = vpop.xlane.xlu1 %2672 }
 0x9be   : > { %v2697_v9 = vmul.f32 %v2673_v31, %v9838_v8  ;;  %v2903_v21 = vmul.f32 %v10003_v0, %v2886_v24 }
 0x9bf   : > { %v2812_v45 = vsub.f32 1.5, %v2811_v13 }
 0x9c0   : > { %v7888_v29 = vpop.eup %7887  ;;  %v2713_v2 = vadd.f32 1e-05, %v2697_v9  ;;  %v10185_v51 = vadd.f32 %v10017_v44, %v2903_v21 }
 0x9c1   : > { %v2813_v54 = vmul.f32 %v7886_v42, %v2812_v45  ;;  %v2819_v22 = vmul.f32 %v7888_v29, %v2712_v35  ;;  %vm2825_vm1 = vweird.f32 %v7888_v29 }
 0x9c2   : > { %7889 = vrsqrt.f32 %v2713_v2  ;;  %vm2826_vm13 = vmor %vm2824_vm15, %vm2825_vm1  ;;  %vm2834_vm11 = vweird.f32 %v2713_v2 }
 0x9c3   : > { %v2817_v26 = vsel %vm2816_vm0, %v7886_v42, %v2813_v54  ;;  %v2820_v55 = vmul.f32 %v7888_v29, %v2819_v22 }
 0x9c4   : > { %v2887_v38 = vmul.f32 %v2817_v26, %v10007_v30  ;;  %v3002_v36 = vpop.f32.mrf.mxu3 }
 0x9c5   : > { %v2821_v47 = vmul.f32 0.5, %v2820_v55  ;;  %v2676_v6 = vpop.xlane.xlu2 %2675  ;;  %v3003_v43 = vadd.f32 %v3002_v36, %v10182_v41 }
 0x9c6   : > { %v2698_v59 = vmul.f32 %v2676_v6, %v9838_v8  ;;  %v2904_v53 = vmul.f32 %v10003_v0, %v2887_v38 }
 0x9c7   : > { %v2822_v23 = vsub.f32 1.5, %v2821_v47  ;;  %v3042_v12 = vmax.f32 %v3003_v43, 0.0 }
 0x9c8   : > { %v7890_v3 = vpop.eup %7889  ;;  %v2714_v46 = vadd.f32 1e-05, %v2698_v59  ;;  %v10188_v30 = vadd.f32 %v10017_v44, %v2904_v53 }
 0x9c9   : > { %v2823_v37 = vmul.f32 %v7888_v29, %v2822_v23  ;;  %v2829_v7 = vmul.f32 %v7890_v3, %v2713_v2  ;;  %vm2835_vm12 = vweird.f32 %v7890_v3 }
 0x9ca   : > { %7891 = vrsqrt.f32 %v2714_v46  ;;  %v2932_v63 = vpack.c.bf16 %v10188_v30, %v10185_v51  ;;  %vm2836_vm0 = vmor %vm2834_vm11, %vm2835_vm12  ;;  %vm2844_vm15 = vweird.f32 %v2714_v46 }
 0x9cb   : > { %v2830_v28 = vmul.f32 %v7890_v3, %v2829_v7  ;;  %v2827_v56 = vsel %vm2826_vm13, %v7888_v29, %v2823_v37 }
 0x9cc   : > { %v3004_v60 = vpop.f32.mrf.mxu3  ;;  %7253 = vmatmul.msk.bf16.gmra.mxu3 %vm13011_vm14, %v2932_v63  ;;  %v2888_v42 = vmul.f32 %v2827_v56, %v10032_v10 }
 0x9cd   : > { %v2831_v50 = vmul.f32 0.5, %v2830_v28  ;;  %v3005_v27 = vadd.f32 %v3004_v60, %v10182_v41  ;;  %v2679_v32 = vpop.xlane.xlu0 %2678 }
 0x9ce   : > { %v2699_v4 = vmul.f32 %v2679_v32, %v9838_v8  ;;  %v2905_v9 = vmul.f32 %v10003_v0, %v2888_v42 }
 0x9cf   : > { %v2832_v25 = vsub.f32 1.5, %v2831_v50  ;;  %v3043_v14 = vmax.f32 %v3005_v27, 0.0 }
 0x9d0   : > { %v7892_v57 = vpop.eup %7891  ;;  %v2715_v35 = vadd.f32 1e-05, %v2699_v4  ;;  %v10201_v54 = vadd.f32 %v10017_v44, %v2905_v9 }
 0x9d1   : > { %v2833_v20 = vmul.f32 %v7890_v3, %v2832_v25  ;;  %v2839_v15 = vmul.f32 %v7892_v57, %v2714_v46  ;;  %v3058_v18 = vpack.c.bf16 %v3043_v14, %v3042_v12  ;;  %vm2845_vm1 = vweird.f32 %v7892_v57 }
 0x9d2   : > { %7893 = vrsqrt.f32 %v2715_v35  ;;  %vm2846_vm13 = vmor %vm2844_vm15, %vm2845_vm1  ;;  %vm2854_vm11 = vweird.f32 %v2715_v35 }
 0x9d3   : > { %v2837_v39 = vsel %vm2836_vm0, %v7890_v3, %v2833_v20  ;;  %v2840_v33 = vmul.f32 %v7892_v57, %v2839_v15  ;;  %3139 = vmatmul.bf16.vlgmr.msra.gmra.mxu0 %v3058_v18  ;;  %vm13012_vm1 = vmmov %vm13011_vm14 }
 0x9d4   : > { %v2889_v13 = vmul.f32 %v2837_v39, %v10057_v58  ;;  %v3007_v31 = vpop.f32.mrf.mxu3 }
 0x9d5   : > { %v2841_v45 = vmul.f32 0.5, %v2840_v33  ;;  %v3008_v38 = vadd.f32 %v3007_v31, %v10182_v41  ;;  %v2682_v14 = vpop.xlane.xlu1 %2681 }
 0x9d6   : > { %v2906_v29 = vmul.f32 %v10003_v0, %v2889_v13 }
 0x9d7   : > { %v2842_v24 = vsub.f32 1.5, %v2841_v45  ;;  %v3044_v53 = vmax.f32 %v3008_v38, 0.0 }
 0x9d8   : > { %v7894_v10 = vpop.eup %7893  ;;  %v10204_v2 = vadd.f32 %v10017_v44, %v2906_v29 }
 0x9d9   : > { %v2843_v22 = vmul.f32 %v7892_v57, %v2842_v24  ;;  %v2849_v26 = vmul.f32 %v7894_v10, %v2715_v35  ;;  %vm2855_vm12 = vweird.f32 %v7894_v10 }
 0x9da   : > { %v2933_v58 = vpack.c.bf16 %v10204_v2, %v10201_v54  ;;  %vm2856_vm0 = vmor %vm2854_vm11, %vm2855_vm12 }
 0x9db   : > { %v2850_v55 = vmul.f32 %v7894_v10, %v2849_v26  ;;  %v2847_v21 = vsel %vm2846_vm13, %v7892_v57, %v2843_v22  ;;  %v2700_v57 = vmul.f32 %v2682_v14, %v9838_v8 }
 0x9dc   : > { %v3009_v36 = vpop.f32.mrf.mxu3  ;;  %7254 = vmatmul.msk.bf16.gmra.mxu3 %vm13011_vm14, %v2933_v58  ;;  %v2890_v3 = vmul.f32 %v2847_v21, %v10067_v34 }
 0x9dd   : > { %v2851_v47 = vmul.f32 0.5, %v2850_v55  ;;  %v3010_v6 = vadd.f32 %v3009_v36, %v10182_v41  ;;  %v2716_v42 = vadd.f32 1e-05, %v2700_v57 }
 0x9de   : > { %v2907_v43 = vmul.f32 %v10003_v0, %v2890_v3 }
 0x9df   : > { %v2852_v59 = vsub.f32 1.5, %v2851_v47  ;;  %v3045_v23 = vmax.f32 %v3010_v6, 0.0  ;;  %7895 = vrsqrt.f32 %v2716_v42  ;;  %vm2864_vm13 = vweird.f32 %v2716_v42 }
 0x9e0   : > { %v10216_v56 = vadd.f32 %v10017_v44, %v2907_v43 }
 0x9e1   : > { %v2853_v37 = vmul.f32 %v7894_v10, %v2852_v59  ;;  %v3059_v46 = vpack.c.bf16 %v3045_v23, %v3044_v53 }
 0x9e3   : > { %v2857_v7 = vsel %vm2856_vm0, %v7894_v10, %v2853_v37  ;;  %3144 = vmatmul.bf16.gmra.mxu0 %v3059_v46 }
 0x9e4   : > { %v2891_v63 = vmul.f32 %v2857_v7, %v10084_v49  ;;  %v3012_v28 = vpop.f32.mrf.mxu3 }
 0x9e5   : > { %v3013_v27 = vadd.f32 %v3012_v28, %v10182_v41  ;;  %v7896_v35 = vpop.eup %7895 }
 0x9e6   : > { %v2908_v60 = vmul.f32 %v10003_v0, %v2891_v63  ;;  %v2859_v20 = vmul.f32 %v7896_v35, %v2716_v42  ;;  %vm2865_vm15 = vweird.f32 %v7896_v35 }
 0x9e7   : > { %v3046_v4 = vmax.f32 %v3013_v27, 0.0  ;;  %vm2866_vm14 = vmor %vm2864_vm13, %vm2865_vm15 }
 0x9e8   : > { %v10219_v50 = vadd.f32 %v10017_v44, %v2908_v60  ;;  %v2860_v15 = vmul.f32 %v7896_v35, %v2859_v20  ;;  %vm13013_vm15 = vmmov %vm13012_vm1 }
 0x9e9   : > { %vm13014_vm13 = vmmov %vm13012_vm1 }
 0x9ea   : > { %v2934_v34 = vpack.c.bf16 %v10219_v50, %v10216_v56  ;;  %v2861_v13 = vmul.f32 0.5, %v2860_v15 }
 0x9ec   : > { %v3014_v32 = vpop.f32.mrf.mxu3  ;;  %7255 = vmatmul.msk.bf16.gmra.mxu3 %vm13012_vm1, %v2934_v34  ;;  %v2862_v31 = vsub.f32 1.5, %v2861_v13 }
 0x9ed   : > { %v3015_v49 = vadd.f32 %v3014_v32, %v10182_v41 }
 0x9ee   : > { %v2863_v45 = vmul.f32 %v7896_v35, %v2862_v31 }
 0x9ef   : > { %v3047_v25 = vmax.f32 %v3015_v49, 0.0 }
 0x9f0   : > { %v2867_v10 = vsel %vm2866_vm14, %v7896_v35, %v2863_v45  ;;  %vm13015_vm14 = vmmov %vm13012_vm1 }
 0x9f1   : > { %v3060_v12 = vpack.c.bf16 %v3047_v25, %v3046_v4  ;;  %v2892_v58 = vmul.f32 %v2867_v10, %v10094_v52 }
 0x9f3   : > { %3149 = vmatmul.bf16.gmra.mxu0 %v3060_v12  ;;  %v2909_v47 = vmul.f32 %v10003_v0, %v2892_v58 }
 0x9f5   : > { %v10233_v59 = vadd.f32 %v10017_v44, %v2909_v47 }
 0xa28   : > { %v2685_v18 = vpop.xlane.xlu2 %2684 }
 0xa29   : > { %v2701_v39 = vmul.f32 %v2685_v18, %v9838_v8 }
 0xa2b   : > { %v2717_v33 = vadd.f32 1e-05, %v2701_v39 }
 0xa2d   : > { %7897 = vrsqrt.f32 %v2717_v33  ;;  %vm2874_vm11 = vweird.f32 %v2717_v33 }
 0xa33   : > { %v7898_v9 = vpop.eup %7897 }
 0xa34   : > { %v2869_v29 = vmul.f32 %v7898_v9, %v2717_v33  ;;  %vm2875_vm12 = vweird.f32 %v7898_v9 }
 0xa35   : > { %vm2876_vm0 = vmor %vm2874_vm11, %vm2875_vm12 }
 0xa36   : > { %v2870_v24 = vmul.f32 %v7898_v9, %v2869_v29  ;;  %vm13016_vm12 = vmmov %vm13012_vm1 }
 0xa37   : > { %vm13017_vm11 = vmmov %vm13012_vm1 }
 0xa38   : > { %v2871_v22 = vmul.f32 0.5, %v2870_v24 }
 0xa3a   : > { %v2872_v26 = vsub.f32 1.5, %v2871_v22 }
 0xa3c   : > { %v2873_v55 = vmul.f32 %v7898_v9, %v2872_v26 }
 0xa3e   : > { %v2877_v38 = vsel %vm2876_vm0, %v7898_v9, %v2873_v55  ;;  %vm13018_vm0 = vmmov %vm13012_vm1 }
 0xa3f   : > { %v2893_v36 = vmul.f32 %v2877_v38, %v10157_v48  ;;  %v3017_v21 = vpop.f32.mrf.mxu3 }
 0xa40   : > { %v3018_v23 = vadd.f32 %v3017_v21, %v10182_v41 }
 0xa41   : > { %v2910_v6 = vmul.f32 %v10003_v0, %v2893_v36  ;;  %v10244_v0 = vperm.slane %v10000_v62, 6 }
 0xa42   : > { %v3048_v37 = vmax.f32 %v3018_v23, 0.0 }
 0xa43   : > { %v10236_v53 = vadd.f32 %v10017_v44, %v2910_v6 }
 0xa45   : > { %v2935_v52 = vpack.c.bf16 %v10236_v53, %v10233_v59 }
 0xa47   : > { %v3019_v3 = vpop.f32.mrf.mxu3  ;;  %7256 = vmatmul.msk.bf16.gmra.mxu3 %vm13012_vm1, %v2935_v52  ;;  %vm13019_vm1 = vmmov %vm13018_vm0 }
 0xa48   : > { %v3020_v48 = vadd.f32 %v3019_v3, %v10182_v41 }
 0xa4a   : > { %v3049_v46 = vmax.f32 %v3020_v48, 0.0 }
 0xa4c   : > { %v3061_v7 = vpack.c.bf16 %v3049_v46, %v3048_v37 }
 0xa4e   : > { %3154 = vmatmul.bf16.gmra.mxu0 %v3061_v7 }
 0xa4f   : > { %v3022_v63 = vpop.f32.mrf.mxu3 }
 0xa50   : > { %v3140_v44 = vpop.f32.mrf.mxu0  ;;  %v3023_v34 = vadd.f32 %v3022_v63, %v10182_v41 }
 0xa51   : > { %v3141_v28 = vadd.f32 %v3140_v44, %v10244_v0 }
 0xa52   : > { %v3050_v62 = vmax.f32 %v3023_v34, 0.0 }
 0xa53   : > { %v3180_v43 = vadd.f32 %v3141_v28, %v10026_v61 }
 0xa55   : > { %v3196_v60 = vsel %vm13013_vm15, %v3180_v43, 0.0  ;;  %vm13020_vm15 = vmmov %vm13018_vm0 }
 0xa56   : > { %3197 = vadd.xlane.f32.xlu0 %v3196_v60 }
 0xa57   : > { %v3024_v27 = vpop.f32.mrf.mxu3 }
 0xa58   : > { %v3025_v32 = vadd.f32 %v3024_v27, %v10182_v41  ;;  %v3142_v49 = vpop.f32.mrf.mxu0 }
 0xa59   : > { %v3143_v4 = vadd.f32 %v3142_v49, %v10244_v0 }
 0xa5a   : > { %v3051_v25 = vmax.f32 %v3025_v32, 0.0 }
 0xa5b   : > { %v3181_v12 = vadd.f32 %v3143_v4, %v10029_v40 }
 0xa5c   : > { %v3062_v14 = vpack.c.bf16 %v3051_v25, %v3050_v62 }
 0xa5d   : > { %v3199_v57 = vsel %vm13014_vm13, %v3181_v12, 0.0  ;;  %vm13021_vm13 = vmmov %vm13018_vm0 }
 0xa5e   : > { %3200 = vadd.xlane.f32.xlu1 %v3199_v57  ;;  %3159 = vmatmul.bf16.gmra.mxu0 %v3062_v14 }
 0xa5f   : > { %v3027_v61 = vpop.f32.mrf.mxu3 }
 0xa60   : > { %v3145_v42 = vpop.f32.mrf.mxu0  ;;  %v3028_v18 = vadd.f32 %v3027_v61, %v10182_v41 }
 0xa61   : > { %v3146_v35 = vadd.f32 %v3145_v42, %v10244_v0 }
 0xa62   : > { %v3052_v31 = vmax.f32 %v3028_v18, 0.0 }
 0xa63   : > { %v10256_v20 = vadd.f32 %v3146_v35, %v10070_v19 }
 0xa65   : > { %v3202_v15 = vsel %vm13015_vm14, %v10256_v20, 0.0  ;;  %vm13022_vm14 = vmmov %vm13018_vm0 }
 0xa66   : > { %3203 = vadd.xlane.f32.xlu2 %v3202_v15 }
 0xa67   : > { %v3029_v39 = vpop.f32.mrf.mxu3 }
 0xa68   : > { %v3030_v40 = vadd.f32 %v3029_v39, %v10182_v41  ;;  %v3147_v33 = vpop.f32.mrf.mxu0 }
 0xa69   : > { %v3148_v13 = vadd.f32 %v3147_v33, %v10244_v0 }
 0xa6a   : > { %v3053_v9 = vmax.f32 %v3030_v40, 0.0 }
 0xa6b   : > { %v10264_v45 = vadd.f32 %v3148_v13, %v10073_v11 }
 0xa6c   : > { %v3063_v29 = vpack.c.bf16 %v3053_v9, %v3052_v31 }
 0xa6d   : > { %v3205_v19 = vsel %vm13016_vm12, %v10264_v45, 0.0  ;;  %vm13023_vm12 = vmmov %vm13018_vm0 }
 0xa6e   : > { %3206 = vadd.xlane.f32.xlu0 %v3205_v19  ;;  %3164 = vmatmul.bf16.gmra.mxu0 %v3063_v29 }
 0xa6f   : > { %v3032_v24 = vpop.f32.mrf.mxu3 }
 0xa70   : > { %v3150_v10 = vpop.f32.mrf.mxu0  ;;  %v3033_v55 = vadd.f32 %v3032_v24, %v10182_v41 }
 0xa71   : > { %v3151_v22 = vadd.f32 %v3150_v10, %v10244_v0 }
 0xa72   : > { %v3054_v47 = vmax.f32 %v3033_v55, 0.0 }
 0xa73   : > { %v10270_v26 = vadd.f32 %v3151_v22, %v10097_v5 }
 0xa75   : > { %v3208_v58 = vsel %vm13017_vm11, %v10270_v26, 0.0  ;;  %vm13024_vm11 = vmmov %vm13018_vm0 }
 0xa76   : > { %3209 = vadd.xlane.f32.xlu1 %v3208_v58 }
 0xa77   : > { %v3034_v11 = vpop.f32.mrf.mxu3 }
 0xa78   : > { %v3035_v38 = vadd.f32 %v3034_v11, %v10182_v41  ;;  %v3152_v36 = vpop.f32.mrf.mxu0 }
 0xa79   : > { %v3153_v21 = vadd.f32 %v3152_v36, %v10244_v0 }
 0xa7a   : > { %v3055_v6 = vmax.f32 %v3035_v38, 0.0 }
 0xa7b   : > { %v10278_v52 = vadd.f32 %v3153_v21, %v10100_v16 }
 0xa7c   : > { %v3064_v23 = vpack.c.bf16 %v3055_v6, %v3054_v47 }
 0xa7d   : > { %v3211_v5 = vsel %vm13018_vm0, %v10278_v52, 0.0 }
 0xa7e   : > { %3212 = vadd.xlane.f32.xlu2 %v3211_v5  ;;  %3169 = vmatmul.bf16.gmra.mxu0 %v3064_v23 }
 0xac9   : > { %v3198_v3 = vpop.xlane.xlu0 %3197 }
 0xaca   : > { %v3244_v48 = vmul.f32 %v3198_v3, %v9838_v8  ;;  %v3037_v37 = vpop.f32.mrf.mxu3 }
 0xacb   : > { %v3155_v46 = vpop.f32.mrf.mxu0  ;;  %v3038_v34 = vadd.f32 %v3037_v37, %v10182_v41 }
 0xacc   : > { %v10283_v7 = vsub.f32 %v3180_v43, %v3244_v48  ;;  %v3156_v63 = vadd.f32 %v3155_v46, %v10244_v0 }
 0xacd   : > { %v3056_v25 = vmax.f32 %v3038_v34, 0.0  ;;  %v7555_v34 = vld [vmem:[%s12686_s1 + $0x1c4] sm:$0xf0] }
 0xace   : > { %v10287_v44 = vadd.f32 %v3156_v63, %v10167_v17  ;;  %v3276_v16 = vmul.f32 %v10283_v7, %v10283_v7 }
 0xad0   : > { %v3292_v28 = vsel %vm13019_vm1, %v3276_v16, 0.0  ;;  %v3214_v60 = vsel %vm13020_vm15, %v10287_v44, 0.0  ;;  %vm13025_vm1 = vmmov %vm13018_vm0 }
 0xad1   : > { %v3201_v27 = vpop.xlane.xlu1 %3200  ;;  %3293 = vadd.xlane.f32.xlu0 %v3292_v28  ;;  %3215 = vadd.xlane.f32.xlu2 %v3214_v60  ;;  %vm13026_vm15 = vmmov %vm13018_vm0  ;;  %v7315_v60 = vld [vmem:[%s12686_s1 + $0x1c0] sm:$0xf] }
 0xad2   : > { %v3245_v43 = vmul.f32 %v3201_v27, %v9838_v8  ;;  %v3039_v32 = vpop.f32.mrf.mxu3  ;;  %v7554_v27 = vld [vmem:[%s12686_s1 + $0x1c4] sm:$0xf] }
 0xad3   : > { %v3040_v49 = vadd.f32 %v3039_v32, %v10182_v41  ;;  %v3157_v17 = vpop.f32.mrf.mxu0 }
 0xad4   : > { %v10297_v4 = vsub.f32 %v3181_v12, %v3245_v43  ;;  %v3158_v62 = vadd.f32 %v3157_v17, %v10244_v0  ;;  %v7316_v43 = vor.u32 %v7555_v34, %v7315_v60  ;;  %v7553_v17 = vld [vmem:[%s12686_s1 + $0x1b4] sm:$0xf0] }
 0xad5   : > { %v3057_v14 = vmax.f32 %v3040_v49, 0.0  ;;  %v7307_v49 = vld [vmem:[%s12686_s1 + $0x1b0] sm:$0xf] }
 0xad6   : > { %v3277_v57 = vmul.f32 %v10297_v4, %v10297_v4  ;;  %v10303_v61 = vadd.f32 %v3158_v62, %v10170_v1  ;;  %3668 = vmatpush.bf16.msrb.mxu1 %v7316_v43  ;;  %v7552_v62 = vld [vmem:[%s12686_s1 + $0x1b4] sm:$0xf] }
 0xad7   : > { %v3065_v42 = vpack.c.bf16 %v3057_v14, %v3056_v25  ;;  %v7308_v25 = vor.u32 %v7553_v17, %v7307_v49  ;;  %v7309_v14 = vld [vmem:[%s12686_s1 + $0x1b8] sm:$0xf0] }
 0xad8   : > { %v3295_v35 = vsel %vm13021_vm13, %v3277_v57, 0.0  ;;  %v3217_v15 = vsel %vm13022_vm14, %v10303_v61, 0.0  ;;  %vm13027_vm13 = vmmov %vm13018_vm0  ;;  %v7312_v57 = vor.u32 %v7552_v62, %v7309_v14 }
 0xad9   : > { %3296 = vadd.xlane.f32.xlu1 %v3295_v35  ;;  %3218 = vadd.xlane.f32.xlu0 %v3217_v15  ;;  %v3204_v41 = vpop.xlane.xlu2 %3203  ;;  %vm13028_vm14 = vmmov %vm13018_vm0  ;;  %v7551_v35 = vld [vmem:[%s12686_s1 + $0x1a4] sm:$0xf0]  ;;  %v7550_v15 = vld [vmem:[%s12686_s1 + $0x1a4] sm:$0xf] }
 0xada   : > { %3174 = vmatmul.bf16.gmra.mxu0 %v3065_v42  ;;  %v3246_v12 = vmul.f32 %v3204_v41, %v9838_v8  ;;  %3669 = vmatpush.bf16.msrb.mxu1 %v7308_v25  ;;  %v7299_v42 = vld [vmem:[%s12686_s1 + $0x1a0] sm:$0xf] }
 0xadb   : > { %v3160_v18 = vpop.f32.mrf.mxu0 }
 0xadc   : > { %v10310_v39 = vsub.f32 %v10256_v20, %v3246_v12  ;;  %v3161_v40 = vadd.f32 %v3160_v18, %v10244_v0  ;;  %v7300_v18 = vor.u32 %v7551_v35, %v7299_v42 }
 0xade   : > { %v10314_v1 = vadd.f32 %v3161_v40, %v10185_v51  ;;  %v3278_v33 = vmul.f32 %v10310_v39, %v10310_v39  ;;  %v7301_v40 = vld [vmem:[%s12686_s1 + $0x1a8] sm:$0xf0]  ;;  %3670 = vmatpush.bf16.msrb.mxu1 %v7300_v18 }
 0xae0   : > { %v3220_v13 = vsel %vm13023_vm12, %v10314_v1, 0.0  ;;  %v3298_v31 = vsel %vm13024_vm11, %v3278_v33, 0.0  ;;  %vm13029_vm12 = vmmov %vm13018_vm0 }
 0xae1   : > { %v3207_v9 = vpop.xlane.xlu0 %3206  ;;  %3221 = vadd.xlane.f32.xlu0 %v3220_v13  ;;  %3299 = vadd.xlane.f32.xlu1 %v3298_v31  ;;  %vm13030_vm11 = vmmov %vm13018_vm0  ;;  %v7304_v31 = vor.u32 %v7550_v15, %v7301_v40 }
 0xae2   : > { %v3247_v29 = vmul.f32 %v3207_v9, %v9838_v8 }
 0xae3   : > { %v3162_v20 = vpop.f32.mrf.mxu0 }
 0xae4   : > { %v10323_v19 = vsub.f32 %v10264_v45, %v3247_v29  ;;  %v3163_v51 = vadd.f32 %v3162_v20, %v10244_v0  ;;  %v7291_v20 = vld [vmem:[%s12686_s1 + $0x190] sm:$0xf] }
 0xae6   : > { %v3279_v24 = vmul.f32 %v10323_v19, %v10323_v19  ;;  %v10329_v10 = vadd.f32 %v3163_v51, %v10188_v30  ;;  %v7549_v51 = vld [vmem:[%s12686_s1 + $0x194] sm:$0xf0] }
 0xae8   : > { %v3301_v22 = vsel %vm13018_vm0, %v3279_v24, 0.0  ;;  %v3223_v58 = vsel %vm13025_vm1, %v10329_v10, 0.0  ;;  %vm13031_vm1 = vmmov %vm13018_vm0 }
 0xae9   : > { %v3210_v55 = vpop.xlane.xlu1 %3209  ;;  %3302 = vadd.xlane.f32.xlu2 %v3301_v22  ;;  %3224 = vadd.xlane.f32.xlu1 %v3223_v58  ;;  %v7292_v22 = vor.u32 %v7549_v51, %v7291_v20  ;;  %v7548_v58 = vld [vmem:[%s12686_s1 + $0x194] sm:$0xf] }
 0xaea   : > { %v3248_v11 = vmul.f32 %v3210_v55, %v9838_v8  ;;  %v10464_v20 = vld [vmem:[%s12687_s2 + $0x10] sm:$0xff] }
 0xaeb   : > { %v3165_v45 = vpop.f32.mrf.mxu0  ;;  %3671 = vmatpush.bf16.msrb.mxu1 %v7292_v22  ;;  %v10467_v51 = vperm.slane %v10464_v20, 1 }
 0xaec   : > { %v10336_v38 = vsub.f32 %v10270_v26, %v3248_v11  ;;  %v3166_v36 = vadd.f32 %v3165_v45, %v10244_v0 }
 0xaee   : > { %v10340_v21 = vadd.f32 %v3166_v36, %v10201_v54  ;;  %v3280_v30 = vmul.f32 %v10336_v38, %v10336_v38 }
 0xaf0   : > { %v3304_v47 = vsel %vm13026_vm15, %v3280_v30, 0.0  ;;  %v3226_v6 = vsel %vm13027_vm13, %v10340_v21, 0.0  ;;  %vm13032_vm15 = vmmov %vm13018_vm0 }
 0xaf1   : > { %3305 = vadd.xlane.f32.xlu2 %v3304_v47  ;;  %3227 = vadd.xlane.f32.xlu1 %v3226_v6  ;;  %v3213_v23 = vpop.xlane.xlu2 %3212 }
 0xaf2   : > { %v3249_v5 = vmul.f32 %v3213_v23, %v9838_v8 }
 0xaf3   : > { %v3167_v26 = vpop.f32.mrf.mxu0 }
 0xaf4   : > { %v10349_v3 = vsub.f32 %v10278_v52, %v3249_v5  ;;  %v3168_v54 = vadd.f32 %v3167_v26, %v10244_v0 }
 0xaf6   : > { %v10353_v48 = vadd.f32 %v3168_v54, %v10204_v2  ;;  %v3281_v37 = vmul.f32 %v10349_v3, %v10349_v3 }
 0xaf8   : > { %v3229_v46 = vsel %vm13028_vm14, %v10353_v48, 0.0  ;;  %v3307_v63 = vsel %vm13029_vm12, %v3281_v37, 0.0 }
 0xaf9   : > { %3230 = vadd.xlane.f32.xlu2 %v3229_v46  ;;  %3308 = vadd.xlane.f32.xlu0 %v3307_v63 }
 0xafb   : > { %v3170_v16 = vpop.f32.mrf.mxu0 }
 0xafc   : > { %v3171_v28 = vadd.f32 %v3170_v16, %v10244_v0 }
 0xafe   : > { %v10362_v52 = vadd.f32 %v3171_v28, %v10216_v56  ;;  %v7317_v56 = vld [vmem:[%s12686_s1 + $0x1c8] sm:$0xf0] }
 0xaff   : > { %v7320_v32 = vor.u32 %v7554_v27, %v7317_v56 }
 0xb00   : > { %v3232_v2 = vsel %vm13030_vm11, %v10362_v52, 0.0  ;;  %vm13035_vm11 = vmmov %vm13018_vm0 }
 0xb01   : > { %3233 = vadd.xlane.f32.xlu2 %v3232_v2  ;;  %3717 = vmatpush.bf16.msra.mxu2 %v7320_v32 }
 0xb03   : > { %v3172_v24 = vpop.f32.mrf.mxu0 }
 0xb04   : > { %v3173_v45 = vadd.f32 %v3172_v24, %v10244_v0 }
 0xb05   : > { %3718 = vmatpush.bf16.msra.mxu2 %v7312_v57 }
 0xb06   : > { %v10429_v37 = vadd.f32 %v3173_v45, %v10219_v50 }
 0xb08   : > { %v3235_v2 = vsel %vm13032_vm15, %v10429_v37, 0.0 }
 0xb09   : > { %3719 = vmatpush.bf16.msra.mxu2 %v7304_v31 }
 0xb44   : > { %v3294_v41 = vpop.xlane.xlu0 %3293  ;;  %v3216_v12 = vpop.xlane.xlu2 %3215 }
 0xb45   : > { %v3340_v33 = vmul.f32 %v3294_v41, %v9838_v8  ;;  %v3250_v13 = vmul.f32 %v3216_v12, %v9838_v8 }
 0xb47   : > { %v3356_v9 = vadd.f32 1e-05, %v3340_v33  ;;  %v10405_v29 = vsub.f32 %v10287_v44, %v3250_v13  ;;  %v7293_v44 = vld [vmem:[%s12686_s1 + $0x198] sm:$0xf0] }
 0xb48   : > { %v7296_v11 = vor.u32 %v7548_v58, %v7293_v44 }
 0xb49   : > { %7899 = vrsqrt.f32 %v3356_v9  ;;  %v3282_v55 = vmul.f32 %v10405_v29, %v10405_v29  ;;  %vm3378_vm14 = vweird.f32 %v3356_v9 }
 0xb4a   : > { %3720 = vmatpush.bf16.msra.mxu2 %v7296_v11 }
 0xb4b   : > { %v3310_v36 = vsel %vm13018_vm0, %v3282_v55, 0.0 }
 0xb4c   : > { %v3297_v30 = vpop.xlane.xlu1 %3296  ;;  %v3219_v47 = vpop.xlane.xlu0 %3218  ;;  %3311 = vadd.xlane.f32.xlu0 %v3310_v36 }
 0xb4d   : > { %v3341_v6 = vmul.f32 %v3297_v30, %v9838_v8  ;;  %v3251_v23 = vmul.f32 %v3219_v47, %v9838_v8 }
 0xb4f   : > { %v7900_v5 = vpop.eup %7899  ;;  %v3357_v26 = vadd.f32 1e-05, %v3341_v6  ;;  %v10426_v54 = vsub.f32 %v10303_v61, %v3251_v23 }
 0xb50   : > { %v3373_v46 = vmul.f32 %v7900_v5, %v3356_v9  ;;  %vm3379_vm13 = vweird.f32 %v7900_v5 }
 0xb51   : > { %7901 = vrsqrt.f32 %v3357_v26  ;;  %v3283_v63 = vmul.f32 %v10426_v54, %v10426_v54  ;;  %vm10450_vm12 = vmor %vm3378_vm14, %vm3379_vm13  ;;  %vm3388_vm15 = vweird.f32 %v3357_v26 }
 0xb52   : > { %v3374_v16 = vmul.f32 %v7900_v5, %v3373_v46  ;;  %vm13036_vm14 = vmmov %vm13018_vm0 }
 0xb53   : > { %v3313_v28 = vsel %vm13031_vm1, %v3283_v63, 0.0 }
 0xb54   : > { %v3375_v60 = vmul.f32 0.5, %v3374_v16  ;;  %v3222_v34 = vpop.xlane.xlu0 %3221  ;;  %3314 = vadd.xlane.f32.xlu1 %v3313_v28  ;;  %v3300_v27 = vpop.xlane.xlu1 %3299  ;;  %3236 = vadd.xlane.f32.xlu0 %v3235_v2 }
 0xb55   : > { %v3252_v61 = vmul.f32 %v3222_v34, %v9838_v8  ;;  %v3342_v50 = vmul.f32 %v3300_v27, %v9838_v8 }
 0xb56   : > { %v3376_v43 = vsub.f32 1.5, %v3375_v60 }
 0xb57   : > { %v7902_v56 = vpop.eup %7901  ;;  %v10439_v32 = vsub.f32 %v10314_v1, %v3252_v61  ;;  %v10441_v49 = vadd.f32 1e-05, %v3342_v50  ;;  %v3175_v17 = vpop.f32.mrf.mxu0 }
 0xb58   : > { %v3377_v62 = vmul.f32 %v7900_v5, %v3376_v43  ;;  %v3383_v25 = vmul.f32 %v7902_v56, %v3357_v26  ;;  %v3176_v14 = vadd.f32 %v3175_v17, %v10244_v0  ;;  %vm3389_vm1 = vweird.f32 %v7902_v56 }
 0xb59   : > { %7903 = vrsqrt.f32 %v10441_v49  ;;  %v3284_v57 = vmul.f32 %v10439_v32, %v10439_v32  ;;  %vm3390_vm13 = vmor %vm3388_vm15, %vm3389_vm1 }
 0xb5a   : > { %v3384_v42 = vmul.f32 %v7902_v56, %v3383_v25  ;;  %v10448_v35 = vadd.f32 %v3176_v14, %v10233_v59  ;;  %v3381_v41 = vsel %vm10450_vm12, %v7900_v5, %v3377_v62  ;;  %vm13037_vm12 = vmmov %vm13018_vm0 }
 0xb5b   : > { %v3316_v15 = vsel %vm13035_vm11, %v3284_v57, 0.0  ;;  %v3532_v24 = vmul.f32 %v3381_v41, %v10283_v7  ;;  %vm13040_vm15 = vmmov %vm13037_vm12 }
 0xb5c   : > { %v3385_v12 = vmul.f32 0.5, %v3384_v42  ;;  %3317 = vadd.xlane.f32.xlu1 %v3316_v15  ;;  %v3225_v18 = vpop.xlane.xlu1 %3224  ;;  %v3238_v40 = vsel %vm13018_vm0, %v10448_v35, 0.0  ;;  %v3303_v33 = vpop.xlane.xlu2 %3302  ;;  %vm3398_vm0 = vweird.f32 %v10441_v49 }
 0xb5d   : > { %v3253_v13 = vmul.f32 %v3225_v18, %v9838_v8  ;;  %3239 = vadd.xlane.f32.xlu0 %v3238_v40  ;;  %v3343_v59 = vmul.f32 %v3303_v33, %v9838_v8  ;;  %v3549_v6 = vmul.f32 %v10467_v51, %v3532_v24 }
 0xb5e   : > { %v3386_v31 = vsub.f32 1.5, %v3385_v12 }
 0xb5f   : > { %v7904_v9 = vpop.eup %7903  ;;  %v10471_v22 = vsub.f32 %v10329_v10, %v3253_v13  ;;  %v3359_v58 = vadd.f32 1e-05, %v3343_v59  ;;  %v3177_v44 = vpop.f32.mrf.mxu0  ;;  %v10481_v10 = vperm.slane %v10464_v20, 2 }
 0xb60   : > { %v3387_v55 = vmul.f32 %v7902_v56, %v3386_v31  ;;  %v3393_v11 = vmul.f32 %v7904_v9, %v10441_v49  ;;  %v3178_v45 = vadd.f32 %v3177_v44, %v10244_v0  ;;  %vm3399_vm11 = vweird.f32 %v7904_v9 }
 0xb61   : > { %7905 = vrsqrt.f32 %v3359_v58  ;;  %v3285_v36 = vmul.f32 %v10471_v22, %v10471_v22  ;;  %vm3400_vm1 = vmor %vm3398_vm0, %vm3399_vm11  ;;  %vm3408_vm11 = vweird.f32 %v3359_v58 }
 0xb62   : > { %v3391_v30 = vsel %vm3390_vm13, %v7902_v56, %v3387_v55  ;;  %v3394_v47 = vmul.f32 %v7904_v9, %v3393_v11  ;;  %v10478_v7 = vadd.f32 %v3178_v45, %v10236_v53  ;;  %vm13041_vm13 = vmmov %vm13037_vm12 }
 0xb63   : > { %v3533_v23 = vmul.f32 %v3391_v30, %v10297_v4  ;;  %v3319_v5 = vsel %vm13036_vm14, %v3285_v36, 0.0  ;;  %v10492_v4 = vadd.f32 %v10481_v10, %v3549_v6  ;;  %vm13042_vm14 = vmmov %vm13037_vm12 }
 0xb64   : > { %v3395_v0 = vmul.f32 0.5, %v3394_v47  ;;  %v3241_v26 = vsel %vm13037_vm12, %v10478_v7, 0.0  ;;  %3320 = vadd.xlane.f32.xlu2 %v3319_v5  ;;  %v3228_v46 = vpop.xlane.xlu1 %3227  ;;  %v3306_v63 = vpop.xlane.xlu2 %3305 }
 0xb65   : > { %v3550_v16 = vmul.f32 %v10467_v51, %v3533_v23  ;;  %3242 = vadd.xlane.f32.xlu1 %v3241_v26  ;;  %v3254_v53 = vmul.f32 %v3228_v46, %v9838_v8  ;;  %v3344_v28 = vmul.f32 %v3306_v63, %v9838_v8  ;;  %13038 = vst [vmem:[#allocation3_spill] sm:$0xff] %v10492_v4 }
 0xb66   : > { %v3396_v2 = vsub.f32 1.5, %v3395_v0 }
 0xb67   : > { %v7906_v60 = vpop.eup %7905  ;;  %v10495_v34 = vadd.f32 %v10481_v10, %v3550_v16  ;;  %v10498_v27 = vsub.f32 %v10340_v21, %v3254_v53  ;;  %v3360_v61 = vadd.f32 1e-05, %v3344_v28 }
 0xb68   : > { %v3397_v50 = vmul.f32 %v7904_v9, %v3396_v2  ;;  %v3403_v43 = vmul.f32 %v7906_v60, %v3359_v58  ;;  %vm3409_vm12 = vweird.f32 %v7906_v60 }
 0xb69   : > { %13039 = vst [vmem:[#allocation4_spill] sm:$0xff] %v10495_v34  ;;  %v3582_v56 = vpack.c.bf16 %v10495_v34, %v10492_v4  ;;  %7907 = vrsqrt.f32 %v3360_v61  ;;  %v3286_v17 = vmul.f32 %v10498_v27, %v10498_v27  ;;  %vm3410_vm0 = vmor %vm3408_vm11, %vm3409_vm12 }
 0xb6a   : > { %v3404_v62 = vmul.f32 %v7906_v60, %v3403_v43  ;;  %v3401_v25 = vsel %vm3400_vm1, %v7904_v9, %v3397_v50  ;;  %vm13043_vm1 = vmmov %vm13041_vm13 }
 0xb6b   : > { %7321 = vmatmul.msk.bf16.vlgmr.msrb.gmra.mxu1 %vm13040_vm15, %v3582_v56  ;;  %7329 = vmatmul.msk.bf16.vlgmr.msra.gmra.mxu2 %vm13041_vm13, %v3582_v56  ;;  %v3322_v21 = vsel %vm13042_vm14, %v3286_v17, 0.0  ;;  %v3534_v12 = vmul.f32 %v3401_v25, %v10310_v39  ;;  %vm3418_vm13 = vweird.f32 %v3360_v61  ;;  %vm13046_vm12 = vmmov %vm13043_vm1 }
 0xb6c   : > { %v3405_v14 = vmul.f32 0.5, %v3404_v62  ;;  %3323 = vadd.xlane.f32.xlu2 %v3322_v21  ;;  %v3309_v57 = vpop.xlane.xlu0 %3308  ;;  %v3231_v42 = vpop.xlane.xlu2 %3230  ;;  %vm13047_vm11 = vmmov %vm13043_vm1 }
 0xb6d   : > { %v3345_v1 = vmul.f32 %v3309_v57, %v9838_v8  ;;  %v3255_v15 = vmul.f32 %v3231_v42, %v9838_v8  ;;  %v3551_v39 = vmul.f32 %v10467_v51, %v3534_v12 }
 0xb6e   : > { %v3406_v41 = vsub.f32 1.5, %v3405_v14 }
 0xb6f   : > { %v7908_v49 = vpop.eup %7907  ;;  %v3361_v18 = vadd.f32 1e-05, %v3345_v1  ;;  %v10512_v40 = vsub.f32 %v10353_v48, %v3255_v15  ;;  %v10525_v47 = vadd.f32 %v10481_v10, %v3551_v39 }
 0xb70   : > { %v3407_v33 = vmul.f32 %v7906_v60, %v3406_v41  ;;  %v3413_v13 = vmul.f32 %v7908_v49, %v3360_v61  ;;  %vm3419_vm15 = vweird.f32 %v7908_v49 }
 0xb71   : > { %7909 = vrsqrt.f32 %v3361_v18  ;;  %v3287_v59 = vmul.f32 %v10512_v40, %v10512_v40  ;;  %13044 = vst [vmem:[#allocation5_spill] sm:$0xff] %v10525_v47  ;;  %vm3420_vm14 = vmor %vm3418_vm13, %vm3419_vm15  ;;  %vm3428_vm10 = vweird.f32 %v3361_v18 }
 0xb72   : > { %v3411_v31 = vsel %vm3410_vm0, %v7906_v60, %v3407_v33  ;;  %v3414_v9 = vmul.f32 %v7908_v49, %v3413_v13  ;;  %vm13048_vm0 = vmmov %vm13043_vm1 }
 0xb73   : > { %v3535_v24 = vmul.f32 %v3411_v31, %v10323_v19  ;;  %v3325_v44 = vsel %vm13043_vm1, %v3287_v59, 0.0  ;;  %vm13051_vm15 = vmmov %vm13048_vm0 }
 0xb74   : > { %v3415_v55 = vmul.f32 0.5, %v3414_v9  ;;  %3326 = vadd.xlane.f32.xlu0 %v3325_v44  ;;  %v3234_v48 = vpop.xlane.xlu2 %3233  ;;  %vm13052_vm13 = vmmov %vm13048_vm0 }
 0xb75   : > { %v3256_v11 = vmul.f32 %v3234_v48, %v9838_v8  ;;  %v3552_v58 = vmul.f32 %v10467_v51, %v3535_v24 }
 0xb76   : > { %v3416_v45 = vsub.f32 1.5, %v3415_v55 }
 0xb77   : > { %v7910_v36 = vpop.eup %7909  ;;  %v10522_v30 = vsub.f32 %v10362_v52, %v3256_v11  ;;  %v10528_v19 = vadd.f32 %v10481_v10, %v3552_v58 }
 0xb78   : > { %v3417_v6 = vmul.f32 %v7908_v49, %v3416_v45  ;;  %v3423_v23 = vmul.f32 %v7910_v36, %v3361_v18  ;;  %vm3429_vm1 = vweird.f32 %v7910_v36 }
 0xb79   : > { %13045 = vst [vmem:[#allocation6_spill] sm:$0xff] %v10528_v19  ;;  %v3583_v5 = vpack.c.bf16 %v10528_v19, %v10525_v47  ;;  %v3288_v0 = vmul.f32 %v10522_v30, %v10522_v30  ;;  %vm3430_vm9 = vmor %vm3428_vm10, %vm3429_vm1 }
 0xb7a   : > { %v3424_v26 = vmul.f32 %v7910_v36, %v3423_v23  ;;  %v3421_v46 = vsel %vm3420_vm14, %v7908_v49, %v3417_v6 }
 0xb7b   : > { %7322 = vmatmul.msk.bf16.gmra.mxu1 %vm13046_vm12, %v3583_v5  ;;  %7330 = vmatmul.msk.bf16.gmra.mxu2 %vm13047_vm11, %v3583_v5  ;;  %v3328_v52 = vsel %vm13048_vm0, %v3288_v0, 0.0  ;;  %v3536_v53 = vmul.f32 %v3421_v46, %v10336_v38  ;;  %vm13054_vm11 = vmmov %vm13048_vm0 }
 0xb7c   : > { %v3425_v63 = vmul.f32 0.5, %v3424_v26  ;;  %3329 = vadd.xlane.f32.xlu1 %v3328_v52 }
 0xb7d   : > { %v3553_v61 = vmul.f32 %v10467_v51, %v3536_v53 }
 0xb7e   : > { %v3426_v16 = vsub.f32 1.5, %v3425_v63 }
 0xb7f   : > { %v10542_v43 = vadd.f32 %v10481_v10, %v3553_v61 }
 0xb80   : > { %v3427_v28 = vmul.f32 %v7910_v36, %v3426_v16 }
 0xb81   : > { %13049 = vst [vmem:[#allocation7_spill] sm:$0xff] %v10542_v43 }
 0xb82   : > { %v3431_v2 = vsel %vm3430_vm9, %v7910_v36, %v3427_v28  ;;  %vm13053_vm9 = vmmov %vm13048_vm0 }
 0xb83   : > { %v3537_v60 = vmul.f32 %v3431_v2, %v10349_v3 }
 0xb85   : > { %v3554_v50 = vmul.f32 %v10467_v51, %v3537_v60 }
 0xb87   : > { %v10545_v56 = vadd.f32 %v10481_v10, %v3554_v50 }
 0xb89   : > { %13050 = vst [vmem:[#allocation8_spill] sm:$0xff] %v10545_v56  ;;  %v3584_v17 = vpack.c.bf16 %v10545_v56, %v10542_v43 }
 0xb8b   : > { %7323 = vmatmul.msk.bf16.gmra.mxu1 %vm13051_vm15, %v3584_v17  ;;  %7331 = vmatmul.msk.bf16.gmra.mxu2 %vm13052_vm13, %v3584_v17  ;;  %vm13055_vm13 = vmmov %vm13053_vm9 }
 0xbbf   : > { %v3312_v38 = vpop.xlane.xlu0 %3311 }
 0xbc0   : > { %v3346_v3 = vmul.f32 %v3312_v38, %v9838_v8 }
 0xbc2   : > { %v3362_v62 = vadd.f32 1e-05, %v3346_v3 }
 0xbc4   : > { %7911 = vrsqrt.f32 %v3362_v62  ;;  %vm3438_vm14 = vweird.f32 %v3362_v62 }
 0xbc7   : > { %v3315_v21 = vpop.xlane.xlu1 %3314  ;;  %v3237_v25 = vpop.xlane.xlu0 %3236 }
 0xbc8   : > { %v3347_v14 = vmul.f32 %v3315_v21, %v9838_v8  ;;  %v3257_v57 = vmul.f32 %v3237_v25, %v9838_v8 }
 0xbca   : > { %v7912_v42 = vpop.eup %7911  ;;  %v3363_v1 = vadd.f32 1e-05, %v3347_v14  ;;  %v10555_v15 = vsub.f32 %v10429_v37, %v3257_v57 }
 0xbcb   : > { %v3433_v41 = vmul.f32 %v7912_v42, %v3362_v62  ;;  %vm3439_vm10 = vweird.f32 %v7912_v42 }
 0xbcc   : > { %7913 = vrsqrt.f32 %v3363_v1  ;;  %v3289_v49 = vmul.f32 %v10555_v15, %v10555_v15  ;;  %vm3440_vm12 = vmor %vm3438_vm14, %vm3439_vm10  ;;  %vm3448_vm1 = vweird.f32 %v3363_v1 }
 0xbcd   : > { %v3434_v12 = vmul.f32 %v7912_v42, %v3433_v41 }
 0xbce   : > { %v3331_v18 = vsel %vm13053_vm9, %v3289_v49, 0.0 }
 0xbcf   : > { %v3435_v33 = vmul.f32 0.5, %v3434_v12  ;;  %v3318_v13 = vpop.xlane.xlu1 %3317  ;;  %3332 = vadd.xlane.f32.xlu2 %v3331_v18 }
 0xbd0   : > { %v3348_v59 = vmul.f32 %v3318_v13, %v9838_v8  ;;  %v3240_v31 = vpop.xlane.xlu0 %3239 }
 0xbd1   : > { %v3436_v9 = vsub.f32 1.5, %v3435_v33  ;;  %v3258_v24 = vmul.f32 %v3240_v31, %v9838_v8  ;;  %v178_v31 = vld [vmem:[%s12687_s2 + $0x18] sm:$0xff] }
 0xbd2   : > { %v7914_v44 = vpop.eup %7913  ;;  %v3364_v37 = vadd.f32 1e-05, %v3348_v59 }
 0xbd3   : > { %v3437_v39 = vmul.f32 %v7912_v42, %v3436_v9  ;;  %v3443_v55 = vmul.f32 %v7914_v44, %v3363_v1  ;;  %v10563_v48 = vsub.f32 %v10448_v35, %v3258_v24  ;;  %vm3449_vm0 = vweird.f32 %v7914_v44 }
 0xbd4   : > { %7915 = vrsqrt.f32 %v3364_v37  ;;  %vm3450_vm15 = vmor %vm3448_vm1, %vm3449_vm0  ;;  %vm3458_vm10 = vweird.f32 %v3364_v37 }
 0xbd5   : > { %v3444_v11 = vmul.f32 %v7914_v44, %v3443_v55  ;;  %v3290_v58 = vmul.f32 %v10563_v48, %v10563_v48  ;;  %v3441_v45 = vsel %vm3440_vm12, %v7912_v42, %v3437_v39  ;;  %vm13058_vm12 = vmmov %vm13054_vm11  ;;  %v10597_v39 = vperm.slane %v10464_v20, 3 }
 0xbd6   : > { %v3538_v46 = vmul.f32 %v3441_v45, %v10405_v29 }
 0xbd7   : > { %v3445_v36 = vmul.f32 0.5, %v3444_v11  ;;  %v3334_v6 = vsel %vm13054_vm11, %v3290_v58, 0.0  ;;  %v3321_v23 = vpop.xlane.xlu2 %3320  ;;  %v10599_v58 = vperm.slane %v178_v31, 3 }
 0xbd8   : > { %v3243_v5 = vpop.xlane.xlu1 %3242  ;;  %3335 = vadd.xlane.f32.xlu0 %v3334_v6  ;;  %v3349_v0 = vmul.f32 %v3321_v23, %v9838_v8  ;;  %v3555_v17 = vmul.f32 %v10467_v51, %v3538_v46 }
 0xbd9   : > { %v3446_v26 = vsub.f32 1.5, %v3445_v36  ;;  %v3259_v35 = vmul.f32 %v3243_v5, %v9838_v8 }
 0xbda   : > { %v7916_v52 = vpop.eup %7915  ;;  %v3365_v63 = vadd.f32 1e-05, %v3349_v0  ;;  %v10582_v57 = vadd.f32 %v10481_v10, %v3555_v17 }
 0xbdb   : > { %v3447_v16 = vmul.f32 %v7914_v44, %v3446_v26  ;;  %v3453_v53 = vmul.f32 %v7916_v52, %v3364_v37  ;;  %v10572_v28 = vsub.f32 %v10478_v7, %v3259_v35  ;;  %vm3459_vm9 = vweird.f32 %v7916_v52 }
 0xbdc   : > { %7917 = vrsqrt.f32 %v3365_v63  ;;  %13056 = vst [vmem:[#allocation9_spill] sm:$0xff] %v10582_v57  ;;  %vm3460_vm14 = vmor %vm3458_vm10, %vm3459_vm9  ;;  %vm3468_vm1 = vweird.f32 %v3365_v63 }
 0xbdd   : > { %v3451_v2 = vsel %vm3450_vm15, %v7914_v44, %v3447_v16  ;;  %v3454_v60 = vmul.f32 %v7916_v52, %v3453_v53  ;;  %v3291_v61 = vmul.f32 %v10572_v28, %v10572_v28 }
 0xbde   : > { %v3539_v50 = vmul.f32 %v3451_v2, %v10426_v54 }
 0xbdf   : > { %v3455_v38 = vmul.f32 0.5, %v3454_v60  ;;  %v3337_v29 = vsel %vm13055_vm13, %v3291_v61, 0.0  ;;  %v3324_v3 = vpop.xlane.xlu2 %3323 }
 0xbe0   : > { %3338 = vadd.xlane.f32.xlu1 %v3337_v29  ;;  %v3350_v62 = vmul.f32 %v3324_v3, %v9838_v8  ;;  %v3556_v7 = vmul.f32 %v10467_v51, %v3539_v50 }
 0xbe1   : > { %v3456_v21 = vsub.f32 1.5, %v3455_v38 }
 0xbe2   : > { %v7918_v25 = vpop.eup %7917  ;;  %v3366_v14 = vadd.f32 1e-05, %v3350_v62  ;;  %v10585_v42 = vadd.f32 %v10481_v10, %v3556_v7 }
 0xbe3   : > { %v3457_v54 = vmul.f32 %v7916_v52, %v3456_v21  ;;  %v3463_v1 = vmul.f32 %v7918_v25, %v3365_v63  ;;  %vm3469_vm0 = vweird.f32 %v7918_v25 }
 0xbe4   : > { %13057 = vst [vmem:[#allocation10_spill] sm:$0xff] %v10585_v42  ;;  %7919 = vrsqrt.f32 %v3366_v14  ;;  %v3585_v41 = vpack.c.bf16 %v10585_v42, %v10582_v57  ;;  %vm3470_vm15 = vmor %vm3468_vm1, %vm3469_vm0  ;;  %vm3478_vm9 = vweird.f32 %v3366_v14 }
 0xbe5   : > { %v3464_v49 = vmul.f32 %v7918_v25, %v3463_v1  ;;  %v3461_v12 = vsel %vm3460_vm14, %v7916_v52, %v3457_v54  ;;  %vm13061_vm14 = vmmov %vm13054_vm11 }
 0xbe6   : > { %7324 = vmatmul.msk.bf16.gmra.mxu1 %vm13058_vm12, %v3585_v41  ;;  %7332 = vmatmul.msk.bf16.gmra.mxu2 %vm13054_vm11, %v3585_v41  ;;  %v3540_v44 = vmul.f32 %v3461_v12, %v10439_v32  ;;  %vm13062_vm12 = vmmov %vm13054_vm11 }
 0xbe7   : > { %v3465_v18 = vmul.f32 0.5, %v3464_v49  ;;  %v3327_v33 = vpop.xlane.xlu0 %3326 }
 0xbe8   : > { %v3351_v13 = vmul.f32 %v3327_v33, %v9838_v8  ;;  %v3673_v59 = vpop.f32.mrf.mxu1  ;;  %v3557_v5 = vmul.f32 %v10467_v51, %v3540_v44 }
 0xbe9   : > { %v3466_v9 = vsub.f32 1.5, %v3465_v18  ;;  %v3674_v32 = vadd.f32 %v3673_v59, %v10597_v39 }
 0xbea   : > { %v7920_v24 = vpop.eup %7919  ;;  %v3367_v37 = vadd.f32 1e-05, %v3351_v13  ;;  %v10611_v16 = vadd.f32 %v10481_v10, %v3557_v5 }
 0xbeb   : > { %v3467_v55 = vmul.f32 %v7918_v25, %v3466_v9  ;;  %v3473_v11 = vmul.f32 %v7920_v24, %v3366_v14  ;;  %vm3479_vm13 = vweird.f32 %v7920_v24 }
 0xbec   : > { %7921 = vrsqrt.f32 %v3367_v37  ;;  %13059 = vst [vmem:[#allocation11_spill] sm:$0xff] %v10611_v16  ;;  %vm3480_vm10 = vmor %vm3478_vm9, %vm3479_vm13  ;;  %vm3488_vm0 = vweird.f32 %v3367_v37 }
 0xbed   : > { %v3471_v45 = vsel %vm3470_vm15, %v7918_v25, %v3467_v55  ;;  %v3474_v36 = vmul.f32 %v7920_v24, %v3473_v11  ;;  %vm13065_vm15 = vmmov %vm13062_vm12 }
 0xbee   : > { %v3541_v6 = vmul.f32 %v3471_v45, %v10471_v22  ;;  %v3722_v23 = vpop.f32.mrf.mxu2  ;;  %vm13066_vm13 = vmmov %vm13062_vm12 }
 0xbef   : > { %v3475_v0 = vmul.f32 0.5, %v3474_v36  ;;  %v3723_v20 = vadd.f32 %v3722_v23, %v10599_v58 }
 0xbf0   : > { %v10605_v26 = vpop.f32.mrf.mxu1  ;;  %v3558_v35 = vmul.f32 %v10467_v51, %v3541_v6 }
 0xbf1   : > { %v3476_v52 = vsub.f32 1.5, %v3475_v0  ;;  %v10608_v46 = vpack.c.bf16 %v3723_v20, %v3674_v32 }
 0xbf2   : > { %v7922_v63 = vpop.eup %7921  ;;  %v10614_v22 = vadd.f32 %v10481_v10, %v3558_v35 }
 0xbf3   : > { %v3477_v53 = vmul.f32 %v7920_v24, %v3476_v52  ;;  %v3483_v2 = vmul.f32 %v7922_v63, %v3367_v37  ;;  %vm3489_vm11 = vweird.f32 %v7922_v63  ;;  %v3330_v37 = vpop.xlane.xlu1 %3329 }
 0xbf4   : > { %13060 = vst [vmem:[#allocation34_spill] sm:$0xff] %v10614_v22  ;;  %v3586_v60 = vpack.c.bf16 %v10614_v22, %v10611_v16  ;;  %vm3490_vm1 = vmor %vm3488_vm0, %vm3489_vm11  ;;  %v3352_v55 = vmul.f32 %v3330_v37, %v9838_v8  ;;  %v13119_v22 = vld [vmem:[#allocation28_spill] sm:$0xff] }
 0xbf5   : > { %v3484_v61 = vmul.f32 %v7922_v63, %v3483_v2  ;;  %v3481_v17 = vsel %vm3480_vm10, %v7920_v24, %v3477_v53 }
 0xbf6   : > { %7325 = vmatmul.msk.bf16.gmra.mxu1 %vm13061_vm14, %v3586_v60  ;;  %v10619_v50 = vpop.f32.mrf.mxu2  ;;  %7333 = vmatmul.msk.bf16.gmra.mxu2 %vm13062_vm12, %v3586_v60  ;;  %v3542_v62 = vmul.f32 %v3481_v17, %v10498_v27  ;;  %v3368_v11 = vadd.f32 1e-05, %v3352_v55 }
 0xbf7   : > { %v3485_v38 = vmul.f32 0.5, %v3484_v61 }
 0xbf8   : > { %v3678_v29 = vpop.f32.mrf.mxu1  ;;  %v3559_v54 = vmul.f32 %v10467_v51, %v3542_v62  ;;  %7923 = vrsqrt.f32 %v3368_v11  ;;  %vm3498_vm10 = vweird.f32 %v3368_v11 }
 0xbf9   : > { %v3486_v3 = vsub.f32 1.5, %v3485_v38  ;;  %v3679_v1 = vadd.f32 %v3678_v29, %v10597_v39 }
 0xbfa   : > { %v10633_v27 = vadd.f32 %v10481_v10, %v3559_v54 }
 0xbfb   : > { %v3487_v7 = vmul.f32 %v7922_v63, %v3486_v3 }
 0xbfc   : > { %13063 = vst [vmem:[#allocation12_spill] sm:$0xff] %v10633_v27 }
 0xbfd   : > { %v3491_v21 = vsel %vm3490_vm1, %v7922_v63, %v3487_v7 }
 0xbfe   : > { %v3543_v25 = vmul.f32 %v3491_v21, %v10512_v40  ;;  %v3727_v14 = vpop.f32.mrf.mxu2  ;;  %v7924_v45 = vpop.eup %7923 }
 0xbff   : > { %v3728_v41 = vadd.f32 %v3727_v14, %v10599_v58  ;;  %v3493_v36 = vmul.f32 %v7924_v45, %v3368_v11  ;;  %vm3499_vm9 = vweird.f32 %v7924_v45 }
 0xc00   : > { %v3560_v49 = vmul.f32 %v10467_v51, %v3543_v25  ;;  %v10630_v18 = vpop.f32.mrf.mxu1  ;;  %vm3500_vm14 = vmor %vm3498_vm10, %vm3499_vm9 }
 0xc01   : > { %v10628_v12 = vpack.c.bf16 %v3728_v41, %v3679_v1  ;;  %v3494_v6 = vmul.f32 %v7924_v45, %v3493_v36  ;;  %vm13069_vm9 = vmmov %vm13066_vm13 }
 0xc02   : > { %v10636_v33 = vadd.f32 %v10481_v10, %v3560_v49 }
 0xc03   : > { %v3495_v32 = vmul.f32 0.5, %v3494_v6 }
 0xc04   : > { %13064 = vst [vmem:[#allocation13_spill] sm:$0xff] %v10636_v33  ;;  %v3587_v40 = vpack.c.bf16 %v10636_v33, %v10633_v27 }
 0xc05   : > { %v3496_v20 = vsub.f32 1.5, %v3495_v32 }
 0xc06   : > { %7326 = vmatmul.msk.bf16.gmra.mxu1 %vm13065_vm15, %v3587_v40  ;;  %v10641_v13 = vpop.f32.mrf.mxu2  ;;  %7334 = vmatmul.msk.bf16.gmra.mxu2 %vm13066_vm13, %v3587_v40 }
 0xc07   : > { %v3497_v53 = vmul.f32 %v7924_v45, %v3496_v20 }
 0xc08   : > { %v3683_v59 = vpop.f32.mrf.mxu1 }
 0xc09   : > { %v3684_v9 = vadd.f32 %v3683_v59, %v10597_v39  ;;  %v3501_v17 = vsel %vm3500_vm14, %v7924_v45, %v3497_v53 }
 0xc0a   : > { %v3544_v7 = vmul.f32 %v3501_v17, %v10522_v30 }
 0xc0c   : > { %v3561_v40 = vmul.f32 %v10467_v51, %v3544_v7 }
 0xc0e   : > { %v3732_v31 = vpop.f32.mrf.mxu2  ;;  %v10659_v30 = vadd.f32 %v10481_v10, %v3561_v40 }
 0xc0f   : > { %v3733_v24 = vadd.f32 %v3732_v31, %v10599_v58 }
 0xc10   : > { %v10655_v59 = vpop.f32.mrf.mxu1  ;;  %13067 = vst [vmem:[#allocation35_spill] sm:$0xff] %v10659_v30 }
 0xc11   : > { %v10646_v44 = vpack.c.bf16 %v3733_v24, %v3684_v9 }
 0xc16   : > { %v10666_v36 = vpop.f32.mrf.mxu2 }
 0xc42   : > { %v3333_v23 = vpop.xlane.xlu2 %3332 }
 0xc43   : > { %v3353_v5 = vmul.f32 %v3333_v23, %v9838_v8 }
 0xc45   : > { %v3369_v0 = vadd.f32 1e-05, %v3353_v5 }
 0xc47   : > { %7925 = vrsqrt.f32 %v3369_v0  ;;  %vm3508_vm11 = vweird.f32 %v3369_v0 }
 0xc4b   : > { %v3336_v35 = vpop.xlane.xlu0 %3335 }
 0xc4c   : > { %v3354_v52 = vmul.f32 %v3336_v35, %v9838_v8 }
 0xc4d   : > { %v7926_v63 = vpop.eup %7925 }
 0xc4e   : > { %v3503_v2 = vmul.f32 %v7926_v63, %v3369_v0  ;;  %v3370_v60 = vadd.f32 1e-05, %v3354_v52  ;;  %vm3509_vm12 = vweird.f32 %v7926_v63 }
 0xc4f   : > { %vm3510_vm0 = vmor %vm3508_vm11, %vm3509_vm12 }
 0xc50   : > { %v3504_v61 = vmul.f32 %v7926_v63, %v3503_v2  ;;  %7927 = vrsqrt.f32 %v3370_v60  ;;  %vm3518_vm15 = vweird.f32 %v3370_v60 }
 0xc52   : > { %v3505_v38 = vmul.f32 0.5, %v3504_v61 }
 0xc53   : > { %v3339_v29 = vpop.xlane.xlu1 %3338 }
 0xc54   : > { %v3506_v3 = vsub.f32 1.5, %v3505_v38  ;;  %v3355_v62 = vmul.f32 %v3339_v29, %v9838_v8 }
 0xc56   : > { %v7928_v21 = vpop.eup %7927  ;;  %v3507_v25 = vmul.f32 %v7926_v63, %v3506_v3  ;;  %v3371_v14 = vadd.f32 1e-05, %v3355_v62 }
 0xc57   : > { %v3513_v54 = vmul.f32 %v7928_v21, %v3370_v60  ;;  %vm3519_vm1 = vweird.f32 %v7928_v21 }
 0xc58   : > { %v3511_v1 = vsel %vm3510_vm0, %v7926_v63, %v3507_v25  ;;  %7929 = vrsqrt.f32 %v3371_v14  ;;  %vm3520_vm10 = vmor %vm3518_vm15, %vm3519_vm1  ;;  %vm3528_vm12 = vweird.f32 %v3371_v14  ;;  %vm13074_vm15 = vcmask 130048  }
 0xc59   : > { %v3545_v41 = vmul.f32 %v3511_v1, %v10555_v15  ;;  %v3514_v49 = vmul.f32 %v7928_v21, %v3513_v54  ;;  %vm13072_vm0 = vmmov %vm13069_vm9 }
 0xc5a   : > { %vm13073_vm1 = vmmov %vm13072_vm0 }
 0xc5b   : > { %v3515_v31 = vmul.f32 0.5, %v3514_v49  ;;  %v3562_v9 = vmul.f32 %v10467_v51, %v3545_v41 }
 0xc5d   : > { %v3516_v24 = vsub.f32 1.5, %v3515_v31  ;;  %v10662_v37 = vadd.f32 %v10481_v10, %v3562_v9 }
 0xc5e   : > { %v7930_v55 = vpop.eup %7929 }
 0xc5f   : > { %13068 = vst [vmem:[#allocation36_spill] sm:$0xff] %v10662_v37  ;;  %v3517_v11 = vmul.f32 %v7928_v21, %v3516_v24  ;;  %v3523_v45 = vmul.f32 %v7930_v55, %v3371_v14  ;;  %v3588_v15 = vpack.c.bf16 %v10662_v37, %v10659_v30  ;;  %vm3529_vm14 = vweird.f32 %v7930_v55  ;;  %v13117_v37 = vld [vmem:[#allocation29_spill] sm:$0xff] }
 0xc60   : > { %vm3530_vm11 = vmor %vm3528_vm12, %vm3529_vm14 }
 0xc61   : > { %v3524_v6 = vmul.f32 %v7930_v55, %v3523_v45  ;;  %7327 = vmatmul.msk.bf16.gmra.mxu1 %vm13066_vm13, %v3588_v15  ;;  %7335 = vmatmul.msk.bf16.gmra.mxu2 %vm13069_vm9, %v3588_v15  ;;  %v3521_v23 = vsel %vm3520_vm10, %v7928_v21, %v3517_v11  ;;  %vm13075_vm13 = vmmov %vm13074_vm15 }
 0xc62   : > { %v3546_v20 = vmul.f32 %v3521_v23, %v10563_v48  ;;  %vm13076_vm9 = vmmov %vm13075_vm13 }
 0xc63   : > { %v3525_v5 = vmul.f32 0.5, %v3524_v6  ;;  %v3688_v0 = vpop.f32.mrf.mxu1  ;;  %vm13077_vm10 = vmmov %vm13076_vm9 }
 0xc64   : > { %v3689_v2 = vadd.f32 %v3688_v0, %v10597_v39  ;;  %v3563_v61 = vmul.f32 %v10467_v51, %v3546_v20  ;;  %vm13078_vm14 = vmmov %vm13076_vm9 }
 0xc65   : > { %v3526_v32 = vsub.f32 1.5, %v3525_v5  ;;  %vm13079_vm12 = vmmov %vm13076_vm9 }
 0xc66   : > { %v10679_v48 = vadd.f32 %v10481_v10, %v3563_v61 }
 0xc67   : > { %v3527_v35 = vmul.f32 %v7930_v55, %v3526_v32 }
 0xc68   : > { %13070 = vst [vmem:[#allocation37_spill] sm:$0xff] %v10679_v48 }
 0xc69   : > { %v3531_v52 = vsel %vm3530_vm11, %v7930_v55, %v3527_v35  ;;  %v3737_v63 = vpop.f32.mrf.mxu2  ;;  %vm13080_vm11 = vmmov %vm13076_vm9 }
 0xc6a   : > { %v3547_v53 = vmul.f32 %v3531_v52, %v10572_v28  ;;  %v3738_v60 = vadd.f32 %v3737_v63, %v10599_v58 }
 0xc6b   : > { %v3690_v29 = vpop.f32.mrf.mxu1 }
 0xc6c   : > { %v10675_v17 = vpack.c.bf16 %v3738_v60, %v3689_v2  ;;  %v3564_v38 = vmul.f32 %v10467_v51, %v3547_v53 }
 0xc6e   : > { %v10682_v3 = vadd.f32 %v10481_v10, %v3564_v38 }
 0xc70   : > { %13071 = vst [vmem:[#allocation14_spill] sm:$0xff] %v10682_v3  ;;  %v3589_v28 = vpack.c.bf16 %v10682_v3, %v10679_v48  ;;  %v13115_v3 = vld [vmem:[#allocation27_spill] sm:$0xff] }
 0xc71   : > { %v3739_v62 = vpop.f32.mrf.mxu2 }
 0xc72   : > { %7328 = vmatmul.msk.bf16.gmra.mxu1 %vm13072_vm0, %v3589_v28  ;;  %7336 = vmatmul.msk.bf16.gmra.mxu2 %vm13073_vm1, %v3589_v28  ;;  %v3740_v28 = vadd.f32 %v3739_v62, %v10599_v58  ;;  %vm13081_vm0 = vmmov %vm13076_vm9 }
 0xc73   : > { %v3693_v7 = vpop.f32.mrf.mxu1  ;;  %vm13082_vm1 = vmmov %vm13081_vm0 }
 0xc74   : > { %v3694_v25 = vadd.f32 %v3693_v7, %v10597_v39 }
 0xc79   : > { %v3742_v21 = vpop.f32.mrf.mxu2 }
 0xc7a   : > { %v3743_v51 = vadd.f32 %v3742_v21, %v10599_v58  ;;  %v3691_v21 = vadd.f32 %v3690_v29, %v10597_v39  ;;  %v3735_v29 = vadd.f32 %v10666_v36, %v10599_v58 }
 0xc7b   : > { %v3695_v54 = vpop.f32.mrf.mxu1 }
 0xc7c   : > { %v10690_v14 = vpack.c.bf16 %v3743_v51, %v3694_v25 }
 0xc81   : > { %v3744_v1 = vpop.f32.mrf.mxu2 }
 0xc83   : > { %v3698_v10 = vpop.f32.mrf.mxu1 }
 0xc84   : > { %v3699_v53 = vadd.f32 %v3698_v10, %v10597_v39 }
 0xc89   : > { %v3747_v41 = vpop.f32.mrf.mxu2 }
 0xc8a   : > { %v3748_v32 = vadd.f32 %v3747_v41, %v10599_v58  ;;  %v10707_v41 = vpack.c.bf16 %v3740_v28, %v3691_v21 }
 0xc8b   : > { %v3700_v49 = vpop.f32.mrf.mxu1 }
 0xc8c   : > { %v3701_v20 = vadd.f32 %v3700_v49, %v10597_v39  ;;  %v3772_v61 = vpack.c.bf16 %v3748_v32, %v3699_v53 }
 0xc8e   : > { %v3808_v25 = vunpack.c.l.b16 %v3772_v61 }
 0xc91   : > { %v3749_v40 = vpop.f32.mrf.mxu2 }
 0xc92   : > { %v3750_v5 = vadd.f32 %v3749_v40, %v10599_v58 }
 0xc94   : > { %v3773_v2 = vpack.c.bf16 %v3750_v5, %v3701_v20 }
 0xc96   : > { %v3809_v7 = vunpack.c.l.b16 %v3773_v2  ;;  %v4114_v21 = vunpack.c.h.b16 %v3773_v2  ;;  %v4111_v2 = vunpack.c.h.b16 %v10690_v14 }
 0xc98   : > { %v10709_v49 = vpack.c.b16 %v3809_v7, %v3808_v25  ;;  %v3725_v7 = vadd.f32 %v10619_v50, %v10599_v58 }
 0xcde   : > { %v3703_v31 = vpop.f32.mrf.mxu1 }
 0xcdf   : > { %v3704_v11 = vadd.f32 %v3703_v31, %v10597_v39 }
 0xce4   : > { %v3752_v9 = vpop.f32.mrf.mxu2 }
 0xce5   : > { %v3753_v55 = vadd.f32 %v3752_v9, %v10599_v58 }
 0xce6   : > { %v3705_v24 = vpop.f32.mrf.mxu1 }
 0xce7   : > { %v3774_v15 = vpack.c.bf16 %v3753_v55, %v3704_v11  ;;  %v3706_v6 = vadd.f32 %v3705_v24, %v10597_v39  ;;  %v3805_v55 = vunpack.c.l.b16 %v10707_v41 }
 0xce9   : > { %v3810_v35 = vunpack.c.l.b16 %v3774_v15  ;;  %v4115_v28 = vunpack.c.h.b16 %v3774_v15  ;;  %v3802_v15 = vunpack.c.l.b16 %v10646_v44 }
 0xcec   : > { %v3754_v45 = vpop.f32.mrf.mxu2 }
 0xced   : > { %v3755_v23 = vadd.f32 %v3754_v45, %v10599_v58  ;;  %v3686_v45 = vadd.f32 %v10655_v59, %v10597_v39  ;;  %v3696_v59 = vadd.f32 %v3695_v54, %v10597_v39  ;;  %v3676_v54 = vadd.f32 %v10605_v26, %v10597_v39 }
 0xcef   : > { %v3775_v0 = vpack.c.bf16 %v3755_v23, %v3706_v6  ;;  %v3708_v63 = vpop.f32.mrf.mxu1  ;;  %v3804_v6 = vunpack.c.l.b16 %v10675_v17 }
 0xcf0   : > { %v3709_v40 = vadd.f32 %v3708_v63, %v10597_v39  ;;  %v3745_v63 = vadd.f32 %v3744_v1, %v10599_v58 }
 0xcf1   : > { %v3811_v52 = vunpack.c.l.b16 %v3775_v0  ;;  %v4116_v53 = vunpack.c.h.b16 %v3775_v0 }
 0xcf2   : > { %v3771_v0 = vpack.c.bf16 %v3745_v63, %v3696_v59  ;;  %v4103_v63 = vunpack.c.h.b16 %v10608_v46 }
 0xcf3   : > { %v10700_v60 = vpack.c.b16 %v3811_v52, %v3810_v35  ;;  %v3767_v35 = vpack.c.bf16 %v3735_v29, %v3686_v45  ;;  %v10722_v52 = vpack.c.b16 %v3805_v55, %v3804_v6  ;;  %v10739_v25 = vpack.c.b16 %v4116_v53, %v4115_v28 }
 0xcf4   : > { %v4112_v50 = vunpack.c.h.b16 %v3771_v0  ;;  %v3798_v29 = vunpack.c.l.b16 %v10608_v46  ;;  %v3681_v55 = vadd.f32 %v10630_v18, %v10597_v39  ;;  %v3806_v45 = vunpack.c.l.b16 %v10690_v14 }
 0xcf5   : > { %v3757_v38 = vpop.f32.mrf.mxu2  ;;  %3834 = vrot.lane.b32.xlu1 %v10700_v60, %s8265_s8  ;;  %v3803_v1 = vunpack.c.l.b16 %v3767_v35  ;;  %v4108_v6 = vunpack.c.h.b16 %v3767_v35  ;;  %v3800_v14 = vunpack.c.l.b16 %v10628_v12 }
 0xcf6   : > { %v3758_v51 = vadd.f32 %v3757_v38, %v10599_v58 }
 0xcf7   : > { %v3710_v10 = vpop.f32.mrf.mxu1 }
 0xcf8   : > { %v3776_v9 = vpack.c.bf16 %v3758_v51, %v3709_v40  ;;  %v3711_v62 = vadd.f32 %v3710_v10, %v10597_v39  ;;  %v4113_v51 = vunpack.c.h.b16 %v3772_v61  ;;  %v3763_v10 = vpack.c.bf16 %v3725_v7, %v3676_v54 }
 0xcf9   : > { %v10745_v40 = vpack.c.b16 %v3803_v1, %v3802_v15  ;;  %v3730_v61 = vadd.f32 %v10641_v13, %v10599_v58 }
 0xcfa   : > { %v3812_v23 = vunpack.c.l.b16 %v3776_v9  ;;  %v4117_v5 = vunpack.c.h.b16 %v3776_v9  ;;  %v3799_v26 = vunpack.c.l.b16 %v3763_v10  ;;  %v4110_v9 = vunpack.c.h.b16 %v10707_v41 }
 0xcfb   : > { %v3765_v13 = vpack.c.bf16 %v3730_v61, %v3681_v55 }
 0xcfd   : > { %v3759_v31 = vpop.f32.mrf.mxu2  ;;  %4315 = vrot.lane.b32.xlu1 %v10709_v49, %s8266_s9  ;;  %v3801_v39 = vunpack.c.l.b16 %v3765_v13  ;;  %v4106_v18 = vunpack.c.h.b16 %v3765_v13 }
 0xcfe   : > { %v3760_v24 = vadd.f32 %v3759_v31, %v10599_v58  ;;  %v10747_v31 = vpack.c.b16 %v4114_v21, %v4113_v51  ;;  %v10768_v58 = vpack.c.b16 %v3799_v26, %v3798_v29 }
 0xd00   : > { %v3777_v11 = vpack.c.bf16 %v3760_v24, %v3711_v62  ;;  %v3807_v62 = vunpack.c.l.b16 %v3771_v0  ;;  %v10760_v24 = vpack.c.b16 %v4112_v50, %v4111_v2 }
 0xd02   : > { %v3813_v32 = vunpack.c.l.b16 %v3777_v11  ;;  %v4118_v20 = vunpack.c.h.b16 %v3777_v11  ;;  %v4109_v11 = vunpack.c.h.b16 %v10675_v17 }
 0xd04   : > { %v10725_v38 = vpack.c.b16 %v3813_v32, %v3812_v23  ;;  %v10727_v36 = vpack.c.b16 %v4118_v20, %v4117_v5  ;;  %v10770_v23 = vpack.c.b16 %v3807_v62, %v3806_v45  ;;  %v10772_v41 = vpack.c.b16 %v4110_v9, %v4109_v11 }
 0xd05   : > { %3828 = vrot.lane.b32.xlu1 %v10722_v52, %s8265_s8  ;;  %v4107_v5 = vunpack.c.h.b16 %v10646_v44  ;;  %v4105_v32 = vunpack.c.h.b16 %v10628_v12  ;;  %v10787_v20 = vpack.c.b16 %v3801_v39, %v3800_v14  ;;  %v4104_v44 = vunpack.c.h.b16 %v3763_v10 }
 0xd06   : > { %4135 = vmatpush.bf16.msrb.mxu0 %v10727_v36  ;;  %4319 = vrot.lane.b32.xlu0 %v10725_v38, %s8266_s9 }
 0xd07   : > { %3836 = vrot.lane.b32.xlu2 %v10725_v38, %s8265_s8  ;;  %v10782_v17 = vpack.c.b16 %v4108_v6, %v4107_v5  ;;  %v10789_v35 = vpack.c.b16 %v4106_v18, %v4105_v32  ;;  %v10799_v12 = vpack.c.b16 %v4104_v44, %v4103_v63 }
 0xd0a   : > { %4136 = vmatpush.bf16.msrb.mxu0 %v10739_v25 }
 0xd0d   : > { %4309 = vrot.lane.b32.xlu1 %v10745_v40, %s8266_s9 }
 0xd0e   : > { %4137 = vmatpush.bf16.msrb.mxu0 %v10747_v31  ;;  %4317 = vrot.lane.b32.xlu0 %v10700_v60, %s8266_s9 }
 0xd0f   : > { %3832 = vrot.lane.b32.xlu2 %v10709_v49, %s8265_s8 }
 0xd12   : > { %4138 = vmatpush.bf16.msrb.mxu0 %v10760_v24 }
 0xd15   : > { %3822 = vrot.lane.b32.xlu1 %v10768_v58, %s8265_s8 }
 0xd16   : > { %4139 = vmatpush.bf16.msrb.mxu0 %v10772_v41  ;;  %3830 = vrot.lane.b32.xlu0 %v10770_v23, %s8265_s8 }
 0xd17   : > { %4313 = vrot.lane.b32.xlu2 %v10770_v23, %s8266_s9 }
 0xd1a   : > { %4140 = vmatpush.bf16.msrb.mxu0 %v10782_v17 }
 0xd1d   : > { %4291 = vrot.lane.b32.xlu1 %v10787_v20, %s8267_s10 }
 0xd1e   : > { %4141 = vmatpush.bf16.msrb.mxu0 %v10789_v35  ;;  %4311 = vrot.lane.b32.xlu0 %v10722_v52, %s8266_s9 }
 0xd1f   : > { %3826 = vrot.lane.b32.xlu2 %v10745_v40, %s8265_s8 }
 0xd22   : > { %4142 = vmatpush.bf16.msrb.mxu0 %v10799_v12 }
 0xd25   : > { %4297 = vrot.lane.b32.xlu1 %v10770_v23, %s8267_s10 }
 0xd26   : > { %3824 = vrot.lane.b32.xlu0 %v10787_v20, %s8265_s8 }
 0xd27   : > { %4307 = vrot.lane.b32.xlu2 %v10787_v20, %s8266_s9 }
 0xd2d   : > { %4303 = vrot.lane.b32.xlu1 %v10725_v38, %s8267_s10 }
 0xd2e   : > { %4305 = vrot.lane.b32.xlu0 %v10768_v58, %s8266_s9 }
 0xd2f   : > { %4289 = vrot.lane.b32.xlu2 %v10768_v58, %s8267_s10 }
 0xd35   : > { %4596 = vrot.lane.b32.xlu1 %v10747_v31, %s8267_s10 }
 0xd36   : > { %4293 = vrot.lane.b32.xlu0 %v10745_v40, %s8267_s10 }
 0xd37   : > { %4295 = vrot.lane.b32.xlu2 %v10722_v52, %s8267_s10 }
 0xd3d   : > { %4590 = vrot.lane.b32.xlu1 %v10782_v17, %s8267_s10 }
 0xd3e   : > { %4299 = vrot.lane.b32.xlu0 %v10709_v49, %s8267_s10 }
 0xd3f   : > { %4301 = vrot.lane.b32.xlu2 %v10700_v60, %s8267_s10 }
 0xd46   : > { %4598 = vrot.lane.b32.xlu0 %v10739_v25, %s8267_s10 }
 0xd47   : > { %4588 = vrot.lane.b32.xlu2 %v10789_v35, %s8267_s10 }
 0xd4e   : > { %4594 = vrot.lane.b32.xlu0 %v10760_v24, %s8267_s10 }
 0xd4f   : > { %4600 = vrot.lane.b32.xlu2 %v10727_v36, %s8267_s10 }
 0xd56   : > { %4592 = vrot.lane.b32.xlu0 %v10772_v41, %s8267_s10 }
 0xd5e   : > { %4586 = vrot.lane.b32.xlu0 %v10799_v12, %s8267_s10 }
 0xd61   : > { %v3837_v46 = vpop.permute.xlu2 %3836 }
 0xd62   : > { %v3884_v53 = vsel %vm13074_vm15, %v3837_v46, 0  ;;  %vm13083_vm15 = vmmov %vm13081_vm0 }
 0xd63   : > { %3886 = vmatpush.bf16.xpose.msrb.mxu3 %v3884_v53 }
 0xd67   : > { %v3835_v59 = vpop.permute.xlu1 %3834 }
 0xd68   : > { %v3881_v28 = vsel %vm13075_vm13, %v3835_v59, 0  ;;  %vm13084_vm13 = vmmov %vm13081_vm0 }
 0xd69   : > { %v3833_v7 = vpop.permute.xlu2 %3832 }
 0xd6a   : > { %v3878_v0 = vsel %vm13076_vm9, %v3833_v7, 0  ;;  %vm13085_vm9 = vmmov %vm13081_vm0 }
 0xd6b   : > { %3887 = vmatpush.bf16.xpose.msrb.mxu3 %v3881_v28 }
 0xd6f   : > { %v4316_v21 = vpop.permute.xlu1 %4315 }
 0xd70   : > { %v4361_v29 = vsel %vm13080_vm11, %v4316_v21, 0  ;;  %vm13089_vm11 = vmmov %vm13081_vm0 }
 0xd71   : > { %v4314_v1 = vpop.permute.xlu2 %4313 }
 0xd72   : > { %v4358_v6 = vsel %vm13082_vm1, %v4314_v1, 0  ;;  %vm13090_vm1 = vmmov %vm13081_vm0 }
 0xd73   : > { %3888 = vmatpush.bf16.xpose.msrb.mxu3 %v3878_v0 }
 0xd77   : > { %v3829_v10 = vpop.permute.xlu1 %3828 }
 0xd78   : > { %v4320_v54 = vpop.permute.xlu0 %4319  ;;  %v3872_v13 = vsel %vm13081_vm0, %v3829_v10, 0 }
 0xd79   : > { %v4367_v15 = vsel %vm13077_vm10, %v4320_v54, 0  ;;  %v3827_v51 = vpop.permute.xlu2 %3826  ;;  %vm13086_vm10 = vmmov %vm13081_vm0 }
 0xd7a   : > { %4369 = vmatpush.bf16.xpose.msrb.mxu2 %v4367_v15  ;;  %v3869_v14 = vsel %vm13083_vm15, %v3827_v51, 0  ;;  %vm13091_vm15 = vmmov %vm13081_vm0 }
 0xd7f   : > { %v4310_v55 = vpop.permute.xlu1 %4309 }
 0xd80   : > { %v4318_v50 = vpop.permute.xlu0 %4317  ;;  %v4352_v59 = vsel %vm13086_vm10, %v4310_v55, 0  ;;  %vm13094_vm10 = vmmov %vm13081_vm0 }
 0xd81   : > { %v4308_v2 = vpop.permute.xlu2 %4307  ;;  %v4364_v26 = vsel %vm13078_vm14, %v4318_v50, 0  ;;  %vm13087_vm14 = vmmov %vm13081_vm0 }
 0xd82   : > { %4370 = vmatpush.bf16.xpose.msrb.mxu2 %v4364_v26 }
 0xd87   : > { %v3823_v5 = vpop.permute.xlu1 %3822 }
 0xd88   : > { %v3831_v61 = vpop.permute.xlu0 %3830  ;;  %v3863_v1 = vsel %vm13087_vm14, %v3823_v5, 0  ;;  %vm13095_vm14 = vmmov %vm13081_vm0 }
 0xd89   : > { %v4290_v9 = vpop.permute.xlu2 %4289  ;;  %v3875_v62 = vsel %vm13079_vm12, %v3831_v61, 0  ;;  %vm13088_vm12 = vmmov %vm13081_vm0 }
 0xd8a   : > { %3889 = vmatpush.bf16.xpose.msrb.mxu3 %v3875_v62  ;;  %4371 = vmatpush.bf16.xpose.msrb.mxu2 %v4361_v29  ;;  %v4349_v0 = vsel %vm13088_vm12, %v4308_v2, 0  ;;  %vm13096_vm12 = vmmov %vm13081_vm0 }
 0xd8f   : > { %v4292_v44 = vpop.permute.xlu1 %4291 }
 0xd90   : > { %v4312_v11 = vpop.permute.xlu0 %4311 }
 0xd91   : > { %v4296_v45 = vpop.permute.xlu2 %4295  ;;  %v4355_v32 = vsel %vm13084_vm13, %v4312_v11, 0  ;;  %vm13092_vm13 = vmmov %vm13081_vm0 }
 0xd92   : > { %3890 = vmatpush.bf16.xpose.msrb.mxu3 %v3872_v13  ;;  %4372 = vmatpush.bf16.xpose.msrb.mxu2 %v4358_v6 }
 0xd97   : > { %v4298_v28 = vpop.permute.xlu1 %4297 }
 0xd98   : > { %v3825_v39 = vpop.permute.xlu0 %3824 }
 0xd99   : > { %v4302_v18 = vpop.permute.xlu2 %4301  ;;  %v3866_v53 = vsel %vm13085_vm9, %v3825_v39, 0  ;;  %vm13093_vm9 = vmmov %vm13081_vm0 }
 0xd9a   : > { %3891 = vmatpush.bf16.xpose.msrb.mxu3 %v3869_v14  ;;  %4373 = vmatpush.bf16.xpose.msrb.mxu2 %v4355_v32 }
 0xd9f   : > { %v4304_v51 = vpop.permute.xlu1 %4303 }
 0xda0   : > { %v4306_v63 = vpop.permute.xlu0 %4305 }
 0xda1   : > { %v4589_v46 = vpop.permute.xlu2 %4588  ;;  %v4346_v15 = vsel %vm13081_vm0, %v4306_v63, 0 }
 0xda2   : > { %3892 = vmatpush.bf16.xpose.msrb.mxu3 %v3866_v53  ;;  %4374 = vmatpush.bf16.xpose.msrb.mxu2 %v4352_v59 }
 0xda7   : > { %v4597_v50 = vpop.permute.xlu1 %4596 }
 0xda8   : > { %v4294_v7 = vpop.permute.xlu0 %4293 }
 0xda9   : > { %v4601_v21 = vpop.permute.xlu2 %4600 }
 0xdaa   : > { %3893 = vmatpush.bf16.xpose.msrb.mxu3 %v3863_v1  ;;  %4375 = vmatpush.bf16.xpose.msrb.mxu2 %v4349_v0 }
 0xdaf   : > { %v4591_v61 = vpop.permute.xlu1 %4590 }
 0xdb0   : > { %v4300_v54 = vpop.permute.xlu0 %4299 }
 0xdb1   : > { %7337 = vmatmul.msk.bf16.vlgmr.msrb.gmra.mxu3 %vm13089_vm11, %v10768_v58  ;;  %vm13097_vm11 = vmmov %vm13081_vm0 }
 0xdb2   : > { %4610 = vmatpush.bf16.msra.mxu3 %v4601_v21  ;;  %4376 = vmatpush.bf16.xpose.msrb.mxu2 %v4346_v15 }
 0xdb8   : > { %v4599_v10 = vpop.permute.xlu0 %4598 }
 0xdb9   : > { %7357 = vmatmul.msk.bf16.vlgmr.msrb.gmra.mxu2 %vm13090_vm1, %v4290_v9  ;;  %4611 = vmatpush.bf16.msra.mxu3 %v4599_v10  ;;  %vm13098_vm1 = vmmov %vm13081_vm0 }
 0xdbd   : > { %4612 = vmatpush.bf16.msra.mxu3 %v4597_v50 }
 0xdc0   : > { %v4595_v26 = vpop.permute.xlu0 %4594 }
 0xdc1   : > { %7338 = vmatmul.msk.bf16.gmra.mxu3 %vm13091_vm15, %v10787_v20  ;;  %vm13099_vm15 = vmmov %vm13081_vm0 }
 0xdc2   : > { %4613 = vmatpush.bf16.msra.mxu3 %v4595_v26 }
 0xdc8   : > { %v4593_v2 = vpop.permute.xlu0 %4592 }
 0xdc9   : > { %7358 = vmatmul.msk.bf16.gmra.mxu2 %vm13092_vm13, %v4292_v44  ;;  %4614 = vmatpush.bf16.msra.mxu3 %v4593_v2  ;;  %vm13100_vm13 = vmmov %vm13081_vm0 }
 0xdcd   : > { %4615 = vmatpush.bf16.msra.mxu3 %v4591_v61 }
 0xdd0   : > { %v4587_v62 = vpop.permute.xlu0 %4586 }
 0xdd1   : > { %7339 = vmatmul.msk.bf16.gmra.mxu3 %vm13093_vm9, %v10745_v40  ;;  %vm13101_vm9 = vmmov %vm13081_vm0 }
 0xdd2   : > { %4616 = vmatpush.bf16.msra.mxu3 %v4589_v46 }
 0xdd6   : > { %4617 = vmatpush.bf16.msra.mxu3 %v4587_v62 }
 0xdd9   : > { %7359 = vmatmul.msk.bf16.gmra.mxu2 %vm13094_vm10, %v4294_v7  ;;  %vm13102_vm10 = vmmov %vm13081_vm0 }
 0xde1   : > { %7340 = vmatmul.msk.bf16.gmra.mxu3 %vm13095_vm14, %v10722_v52  ;;  %vm13103_vm14 = vmmov %vm13081_vm0 }
 0xde9   : > { %7360 = vmatmul.msk.bf16.gmra.mxu2 %vm13096_vm12, %v4296_v45 }
 0xdf1   : > { %7341 = vmatmul.msk.bf16.gmra.mxu3 %vm13097_vm11, %v10770_v23 }
 0xdf9   : > { %7361 = vmatmul.msk.bf16.gmra.mxu2 %vm13081_vm0, %v4298_v28  ;;  %vm13116_vm0 = vnez %v13115_v3 }
 0xe01   : > { %7342 = vmatmul.msk.bf16.gmra.mxu3 %vm13098_vm1, %v10709_v49  ;;  %vm13118_vm1 = vnez %v13117_v37 }
 0xe09   : > { %7362 = vmatmul.msk.bf16.gmra.mxu2 %vm13099_vm15, %v4300_v54  ;;  %vm13120_vm15 = vnez %v13119_v22 }
 0xe11   : > { %7343 = vmatmul.msk.bf16.gmra.mxu3 %vm13100_vm13, %v10700_v60 }
 0xe19   : > { %7363 = vmatmul.msk.bf16.gmra.mxu2 %vm13101_vm9, %v4302_v18 }
 0xe21   : > { %7344 = vmatmul.msk.bf16.gmra.mxu3 %vm13102_vm10, %v10725_v38 }
 0xe29   : > { %7364 = vmatmul.msk.bf16.gmra.mxu2 %vm13103_vm14, %v4304_v51 }
 0xe34   : > { %v3895_v9 = vpop.f32.mrf.mxu3 }
 0xe35   : > { %v10880_v55 = vsel %vm8763_vm2, %v3895_v9, -1e+30 }
 0xe36   : > { %3951 = vmax.xlane.f32.xlu0 %v10880_v55 }
 0xe3c   : > { %v3897_v11 = vpop.f32.mrf.mxu3  ;;  %v4378_v45 = vpop.f32.mrf.mxu2 }
 0xe3d   : > { %v10885_v13 = vsel %vm8763_vm2, %v4378_v45, -1e+30  ;;  %v10889_v5 = vsel %vm8774_vm3, %v3897_v11, -1e+30 }
 0xe3e   : > { %4434 = vmax.xlane.f32.xlu1 %v10885_v13  ;;  %3953 = vmax.xlane.f32.xlu2 %v10889_v5 }
 0xe44   : > { %v3900_v39 = vpop.f32.mrf.mxu3  ;;  %v4380_v18 = vpop.f32.mrf.mxu2 }
 0xe45   : > { %v10895_v32 = vsel %vm8790_vm4, %v3900_v39, -1e+30  ;;  %v10899_v44 = vsel %vm8774_vm3, %v4380_v18, -1e+30 }
 0xe46   : > { %4436 = vmax.xlane.f32.xlu2 %v10899_v44  ;;  %3955 = vmax.xlane.f32.xlu0 %v10895_v32 }
 0xe4c   : > { %v3902_v63 = vpop.f32.mrf.mxu3  ;;  %v4383_v46 = vpop.f32.mrf.mxu2 }
 0xe4d   : > { %v10905_v53 = vsel %vm8790_vm4, %v4383_v46, -1e+30  ;;  %v10909_v28 = vsel %vm8806_vm5, %v3902_v63, -1e+30  ;;  %v13111_v63 = vld [vmem:[#allocation25_spill] sm:$0xff] }
 0xe4e   : > { %3957 = vmax.xlane.f32.xlu1 %v10909_v28  ;;  %4438 = vmax.xlane.f32.xlu2 %v10905_v53  ;;  %vm13112_vm12 = vnez %v13111_v63 }
 0xe54   : > { %v3905_v7 = vpop.f32.mrf.mxu3  ;;  %v4385_v1 = vpop.f32.mrf.mxu2 }
 0xe55   : > { %v10915_v21 = vsel %vm8822_vm6, %v3905_v7, -1e+30  ;;  %v10919_v54 = vsel %vm8806_vm5, %v4385_v1, -1e+30 }
 0xe56   : > { %3959 = vmax.xlane.f32.xlu1 %v10915_v21  ;;  %4440 = vmax.xlane.f32.xlu0 %v10919_v54 }
 0xe5c   : > { %v3907_v15 = vpop.f32.mrf.mxu3  ;;  %v4388_v51 = vpop.f32.mrf.mxu2 }
 0xe5d   : > { %v10925_v10 = vsel %vm8822_vm6, %v4388_v51, -1e+30  ;;  %v10929_v26 = vsel %vm8838_vm7, %v3907_v15, -1e+30  ;;  %v13113_v15 = vld [vmem:[#allocation26_spill] sm:$0xff] }
 0xe5e   : > { %3961 = vmax.xlane.f32.xlu2 %v10929_v26  ;;  %4442 = vmax.xlane.f32.xlu0 %v10925_v10  ;;  %vm13114_vm11 = vnez %v13113_v15 }
 0xe64   : > { %v3910_v2 = vpop.f32.mrf.mxu3  ;;  %v4390_v61 = vpop.f32.mrf.mxu2 }
 0xe65   : > { %v10935_v9 = vsel %vm8854_vm8, %v3910_v2, -1e+30  ;;  %v10939_v11 = vsel %vm8838_vm7, %v4390_v61, -1e+30 }
 0xe66   : > { %3963 = vmax.xlane.f32.xlu2 %v10935_v9  ;;  %4444 = vmax.xlane.f32.xlu1 %v10939_v11 }
 0xe6c   : > { %v3912_v45 = vpop.f32.mrf.mxu3  ;;  %v4393_v39 = vpop.f32.mrf.mxu2 }
 0xe6d   : > { %v10945_v18 = vsel %vm8854_vm8, %v4393_v39, -1e+30  ;;  %v10949_v46 = vsel %vm13112_vm12, %v3912_v45, -1e+30 }
 0xe6e   : > { %3965 = vmax.xlane.f32.xlu0 %v10949_v46  ;;  %4446 = vmax.xlane.f32.xlu1 %v10945_v18 }
 0xe74   : > { %v3915_v7 = vpop.f32.mrf.mxu3  ;;  %v4395_v1 = vpop.f32.mrf.mxu2 }
 0xe75   : > { %v10955_v51 = vsel %vm13114_vm11, %v3915_v7, -1e+30  ;;  %v10959_v2 = vsel %vm13112_vm12, %v4395_v1, -1e+30 }
 0xe76   : > { %3967 = vmax.xlane.f32.xlu0 %v10955_v51  ;;  %4448 = vmax.xlane.f32.xlu2 %v10959_v2 }
 0xe7c   : > { %v3917_v61 = vpop.f32.mrf.mxu3  ;;  %v4398_v45 = vpop.f32.mrf.mxu2 }
 0xe7d   : > { %v10965_v39 = vsel %vm13114_vm11, %v4398_v45, -1e+30  ;;  %v10969_v48 = vsel %vm13116_vm0, %v3917_v61, -1e+30 }
 0xe7e   : > { %3969 = vmax.xlane.f32.xlu2 %v10969_v48  ;;  %4450 = vmax.xlane.f32.xlu1 %v10965_v39 }
 0xe84   : > { %v3920_v7 = vpop.f32.mrf.mxu3  ;;  %v4400_v1 = vpop.f32.mrf.mxu2 }
 0xe85   : > { %v10975_v30 = vsel %vm13118_vm1, %v3920_v7, -1e+30  ;;  %v10979_v33 = vsel %vm13116_vm0, %v4400_v1, -1e+30  ;;  %v13121_v1 = vld [vmem:[#allocation30_spill] sm:$0xff] }
 0xe86   : > { %3971 = vmax.xlane.f32.xlu2 %v10975_v30  ;;  %4452 = vmax.xlane.f32.xlu0 %v10979_v33  ;;  %vm13122_vm13 = vnez %v13121_v1 }
 0xe8c   : > { %v3922_v61 = vpop.f32.mrf.mxu3  ;;  %v4403_v45 = vpop.f32.mrf.mxu2 }
 0xe8d   : > { %v10985_v27 = vsel %vm13118_vm1, %v4403_v45, -1e+30  ;;  %v10989_v16 = vsel %vm13120_vm15, %v3922_v61, -1e+30 }
 0xe8e   : > { %3973 = vmax.xlane.f32.xlu1 %v10989_v16  ;;  %4454 = vmax.xlane.f32.xlu0 %v10985_v27 }
 0xe94   : > { %v3925_v7 = vpop.f32.mrf.mxu3 }
 0xe95   : > { %v10995_v42 = vsel %vm13122_vm13, %v3925_v7, -1e+30 }
 0xe96   : > { %3975 = vmax.xlane.f32.xlu0 %v10995_v42 }
 0xea9   : > { %v3952_v8 = vpop.xlane.xlu0 %3951 }
 0xeaa   : > { %v3983_v57 = vsub.f32 %v10880_v55, %v3952_v8 }
 0xeac   : > { %v3999_v45 = vmul.f32 1.442695, %v3983_v57 }
 0xeae   : > { %7931 = vpow2.f32 %v3999_v45 }
 0xeb1   : > { %v3954_v56 = vpop.xlane.xlu2 %3953  ;;  %v4435_v43 = vpop.xlane.xlu1 %4434 }
 0xeb2   : > { %v3984_v61 = vsub.f32 %v10889_v5, %v3954_v56  ;;  %v4466_v19 = vsub.f32 %v10885_v13, %v4435_v43 }
 0xeb4   : > { %v11001_v47 = vpop.eup %7931  ;;  %v4001_v34 = vmul.f32 1.442695, %v3984_v61  ;;  %v4482_v4 = vmul.f32 1.442695, %v4466_v19 }
 0xeb5   : > { %4031 = vadd.xlane.f32.xlu1 %v11001_v47 }
 0xeb6   : > { %7933 = vpow2.f32 %v4001_v34 }
 0xeb7   : > { %7935 = vpow2.f32 %v4482_v4 }
 0xeb9   : > { %v4437_v7 = vpop.xlane.xlu2 %4436  ;;  %v3956_v37 = vpop.xlane.xlu0 %3955 }
 0xeba   : > { %v4467_v8 = vsub.f32 %v10899_v44, %v4437_v7  ;;  %v3985_v57 = vsub.f32 %v10895_v32, %v3956_v37  ;;  %v4405_v32 = vpop.f32.mrf.mxu2 }
 0xebc   : > { %v11006_v55 = vpop.eup %7933  ;;  %v4484_v45 = vmul.f32 1.442695, %v4467_v8  ;;  %v4003_v56 = vmul.f32 1.442695, %v3985_v57 }
 0xebd   : > { %v11008_v5 = vpop.eup %7935  ;;  %4033 = vadd.xlane.f32.xlu2 %v11006_v55 }
 0xebe   : > { %7937 = vpow2.f32 %v4484_v45  ;;  %4514 = vadd.xlane.f32.xlu1 %v11008_v5 }
 0xebf   : > { %7939 = vpow2.f32 %v4003_v56  ;;  %v11025_v56 = vsel %vm13120_vm15, %v4405_v32, -1e+30 }
 0xec1   : > { %v4439_v34 = vpop.xlane.xlu2 %4438  ;;  %v3958_v4 = vpop.xlane.xlu1 %3957 }
 0xec2   : > { %v4468_v19 = vsub.f32 %v10905_v53, %v4439_v34  ;;  %v3986_v44 = vsub.f32 %v10909_v28, %v3958_v4  ;;  %v4408_v28 = vpop.f32.mrf.mxu2 }
 0xec3   : > { %v11035_v32 = vsel %vm13122_vm13, %v4408_v28, -1e+30 }
 0xec4   : > { %v11013_v43 = vpop.eup %7937  ;;  %v4486_v13 = vmul.f32 1.442695, %v4468_v19  ;;  %v4005_v57 = vmul.f32 1.442695, %v3986_v44 }
 0xec5   : > { %v11015_v37 = vpop.eup %7939  ;;  %4516 = vadd.xlane.f32.xlu2 %v11013_v43 }
 0xec6   : > { %7941 = vpow2.f32 %v4486_v13  ;;  %4035 = vadd.xlane.f32.xlu0 %v11015_v37 }
 0xec9   : > { %v4441_v61 = vpop.xlane.xlu0 %4440  ;;  %v3960_v8 = vpop.xlane.xlu1 %3959 }
 0xeca   : > { %v4469_v7 = vsub.f32 %v10919_v54, %v4441_v61  ;;  %v3987_v34 = vsub.f32 %v10915_v21, %v3960_v8  ;;  %v3927_v8 = vpop.f32.mrf.mxu3 }
 0xecc   : > { %v11021_v45 = vpop.eup %7941  ;;  %v4488_v53 = vmul.f32 1.442695, %v4469_v7  ;;  %v4007_v4 = vmul.f32 1.442695, %v3987_v34 }
 0xecd   : > { %4456 = vmax.xlane.f32.xlu2 %v11025_v56  ;;  %4518 = vadd.xlane.f32.xlu1 %v11021_v45 }
 0xece   : > { %7943 = vpow2.f32 %v4488_v53 }
 0xecf   : > { %7945 = vpow2.f32 %v4005_v57 }
 0xed0   : > { %7947 = vpow2.f32 %v4007_v4 }
 0xed1   : > { %v3962_v54 = vpop.xlane.xlu2 %3961  ;;  %v4443_v13 = vpop.xlane.xlu0 %4442 }
 0xed2   : > { %v3988_v19 = vsub.f32 %v10929_v26, %v3962_v54  ;;  %v4470_v7 = vsub.f32 %v10925_v10, %v4443_v13 }
 0xed4   : > { %v11031_v44 = vpop.eup %7943  ;;  %v4009_v61 = vmul.f32 1.442695, %v3988_v19  ;;  %v4490_v57 = vmul.f32 1.442695, %v4470_v7 }
 0xed5   : > { %v11037_v21 = vpop.eup %7945  ;;  %4520 = vadd.xlane.f32.xlu0 %v11031_v44  ;;  %4458 = vmax.xlane.f32.xlu1 %v11035_v32 }
 0xed6   : > { %7949 = vpow2.f32 %v4009_v61  ;;  %4037 = vadd.xlane.f32.xlu2 %v11037_v21  ;;  %v11044_v28 = vpop.eup %7947  ;;  %v13123_v61 = vld [vmem:[#allocation31_spill] sm:$0xff] }
 0xed7   : > { %vm13124_vm9 = vnez %v13123_v61  ;;  %7951 = vpow2.f32 %v4490_v57 }
 0xed8   : > { %v11052_v10 = vsel %vm13124_vm9, %v3927_v8, -1e+30 }
 0xed9   : > { %v4445_v26 = vpop.xlane.xlu1 %4444  ;;  %v3964_v53 = vpop.xlane.xlu2 %3963 }
 0xeda   : > { %v4471_v34 = vsub.f32 %v10939_v11, %v4445_v26  ;;  %v3989_v19 = vsub.f32 %v10935_v9, %v3964_v53  ;;  %v4410_v11 = vpop.f32.mrf.mxu2 }
 0xedb   : > { %v11062_v8 = vsel %vm13124_vm9, %v4410_v11, -1e+30 }
 0xedc   : > { %v11046_v54 = vpop.eup %7949  ;;  %v4492_v4 = vmul.f32 1.442695, %v4471_v34  ;;  %v4011_v13 = vmul.f32 1.442695, %v3989_v19 }
 0xedd   : > { %4041 = vadd.xlane.f32.xlu0 %v11046_v54  ;;  %4039 = vadd.xlane.f32.xlu1 %v11044_v28  ;;  %v11058_v53 = vpop.eup %7951 }
 0xede   : > { %3977 = vmax.xlane.f32.xlu2 %v11052_v10  ;;  %7953 = vpow2.f32 %v4492_v4 }
 0xedf   : > { %7955 = vpow2.f32 %v4011_v13 }
 0xee1   : > { %v3966_v7 = vpop.xlane.xlu0 %3965  ;;  %v4447_v26 = vpop.xlane.xlu1 %4446 }
 0xee2   : > { %v3990_v34 = vsub.f32 %v10949_v46, %v3966_v7  ;;  %v4472_v9 = vsub.f32 %v10945_v18, %v4447_v26  ;;  %v3930_v18 = vpop.f32.mrf.mxu3 }
 0xee4   : > { %v4013_v1 = vmul.f32 1.442695, %v3990_v34  ;;  %v4494_v22 = vmul.f32 1.442695, %v4472_v9  ;;  %v11064_v57 = vpop.eup %7953 }
 0xee5   : > { %4460 = vmax.xlane.f32.xlu0 %v11062_v8  ;;  %4524 = vadd.xlane.f32.xlu1 %v11064_v57  ;;  %v11070_v19 = vpop.eup %7955 }
 0xee6   : > { %7957 = vpow2.f32 %v4013_v1  ;;  %4522 = vadd.xlane.f32.xlu2 %v11058_v53 }
 0xee7   : > { %7959 = vpow2.f32 %v4494_v22  ;;  %v4413_v22 = vpop.f32.mrf.mxu2 }
 0xee9   : > { %v4449_v46 = vpop.xlane.xlu2 %4448  ;;  %v3968_v13 = vpop.xlane.xlu0 %3967 }
 0xeea   : > { %v4473_v4 = vsub.f32 %v10959_v2, %v4449_v46  ;;  %v3991_v1 = vsub.f32 %v10955_v51, %v3968_v13  ;;  %v3932_v2 = vpop.f32.mrf.mxu3 }
 0xeec   : > { %v11072_v7 = vpop.eup %7957  ;;  %v4496_v11 = vmul.f32 1.442695, %v4473_v4  ;;  %v4015_v46 = vmul.f32 1.442695, %v3991_v1  ;;  %v13125_v4 = vld [vmem:[#allocation32_spill] sm:$0xff] }
 0xeed   : > { %v11074_v26 = vpop.eup %7959  ;;  %4045 = vadd.xlane.f32.xlu1 %v11072_v7  ;;  %vm13126_vm10 = vnez %v13125_v4 }
 0xeee   : > { %4043 = vadd.xlane.f32.xlu2 %v11070_v19  ;;  %7961 = vpow2.f32 %v4496_v11  ;;  %4526 = vadd.xlane.f32.xlu0 %v11074_v26  ;;  %v11084_v15 = vsel %vm13126_vm10, %v3930_v18, -1e+30  ;;  %v13127_v11 = vld [vmem:[#allocation33_spill] sm:$0xff] }
 0xeef   : > { %vm13128_vm14 = vnez %v13127_v11  ;;  %7963 = vpow2.f32 %v4015_v46  ;;  %v4415_v62 = vpop.f32.mrf.mxu2 }
 0xef0   : > { %v11092_v51 = vsel %vm13128_vm14, %v3932_v2, -1e+30  ;;  %v11103_v2 = vsel %vm13128_vm14, %v4415_v62, -1e+30  ;;  %vm13129_vm14 = vcmask 130048  }
 0xef1   : > { %v3970_v34 = vpop.xlane.xlu2 %3969  ;;  %v4451_v9 = vpop.xlane.xlu1 %4450 }
 0xef2   : > { %v3992_v3 = vsub.f32 %v10969_v48, %v3970_v34  ;;  %v4474_v63 = vsub.f32 %v10965_v39, %v4451_v9  ;;  %v11098_v39 = vsel %vm13126_vm10, %v4413_v22, -1e+30  ;;  %vm13130_vm10 = vmmov %vm13129_vm14 }
 0xef3   : > { %vm13132_vm13 = vmmov %vm13130_vm10 }
 0xef4   : > { %v11080_v61 = vpop.eup %7961  ;;  %v4017_v13 = vmul.f32 1.442695, %v3992_v3  ;;  %v4498_v18 = vmul.f32 1.442695, %v4474_v63  ;;  %vm13133_vm9 = vmmov %vm13130_vm10 }
 0xef5   : > { %3979 = vmax.xlane.f32.xlu1 %v11084_v15  ;;  %v11105_v46 = vpop.eup %7963  ;;  %vm13135_vm15 = vmmov %vm13133_vm9 }
 0xef6   : > { %4528 = vadd.xlane.f32.xlu2 %v11080_v61  ;;  %3981 = vmax.xlane.f32.xlu0 %v11092_v51  ;;  %7965 = vpow2.f32 %v4017_v13 }
 0xef7   : > { %7967 = vpow2.f32 %v4498_v18 }
 0xef9   : > { %v4453_v1 = vpop.xlane.xlu0 %4452  ;;  %v3972_v50 = vpop.xlane.xlu2 %3971 }
 0xefa   : > { %v4475_v48 = vsub.f32 %v10979_v33, %v4453_v1  ;;  %v3993_v9 = vsub.f32 %v10975_v30, %v3972_v50 }
 0xefc   : > { %v4500_v34 = vmul.f32 1.442695, %v4475_v48  ;;  %v4019_v33 = vmul.f32 1.442695, %v3993_v9  ;;  %v11112_v50 = vpop.eup %7965 }
 0xefd   : > { %4464 = vmax.xlane.f32.xlu1 %v11103_v2  ;;  %v11114_v62 = vpop.eup %7967 }
 0xefe   : > { %4462 = vmax.xlane.f32.xlu2 %v11098_v39  ;;  %7969 = vpow2.f32 %v4500_v34  ;;  %4047 = vadd.xlane.f32.xlu0 %v11105_v46 }
 0xeff   : > { %7971 = vpow2.f32 %v4019_v33 }
 0xf01   : > { %v4455_v3 = vpop.xlane.xlu0 %4454  ;;  %v3974_v63 = vpop.xlane.xlu1 %3973 }
 0xf02   : > { %v4476_v22 = vsub.f32 %v10985_v27, %v4455_v3  ;;  %v3994_v30 = vsub.f32 %v10989_v16, %v3974_v63 }
 0xf04   : > { %v4502_v13 = vmul.f32 1.442695, %v4476_v22  ;;  %v4021_v1 = vmul.f32 1.442695, %v3994_v30  ;;  %v11116_v18 = vpop.eup %7969 }
 0xf05   : > { %4530 = vadd.xlane.f32.xlu1 %v11114_v62  ;;  %v11122_v48 = vpop.eup %7971 }
 0xf06   : > { %7973 = vpow2.f32 %v4502_v13  ;;  %4049 = vadd.xlane.f32.xlu2 %v11112_v50  ;;  %4532 = vadd.xlane.f32.xlu0 %v11116_v18 }
 0xf07   : > { %7975 = vpow2.f32 %v4021_v1 }
 0xf09   : > { %v3976_v27 = vpop.xlane.xlu0 %3975 }
 0xf0a   : > { %v3995_v16 = vsub.f32 %v10995_v42, %v3976_v27 }
 0xf0c   : > { %v11124_v34 = vpop.eup %7973  ;;  %v4023_v9 = vmul.f32 1.442695, %v3995_v16 }
 0xf0d   : > { %v11126_v3 = vpop.eup %7975 }
 0xf0e   : > { %7977 = vpow2.f32 %v4023_v9  ;;  %4051 = vadd.xlane.f32.xlu2 %v11122_v48  ;;  %4053 = vadd.xlane.f32.xlu1 %v11126_v3 }
 0xf0f   : > { %4534 = vadd.xlane.f32.xlu0 %v11124_v34 }
 0xf14   : > { %v11131_v33 = vpop.eup %7977 }
 0xf16   : > { %4055 = vadd.xlane.f32.xlu1 %v11131_v33 }
 0xf28   : > { %v4032_v63 = vpop.xlane.xlu1 %4031 }
 0xf29   : > { %7979 = vrcp.f32 %v4032_v63 }
 0xf2f   : > { %v7980_v30 = vpop.eup %7979 }
 0xf30   : > { %v4034_v42 = vpop.xlane.xlu2 %4033  ;;  %v4079_v1 = vmul.f32 %v7980_v30, %v11001_v47 }
 0xf31   : > { %7981 = vrcp.f32 %v4034_v42  ;;  %v4515_v22 = vpop.xlane.xlu1 %4514 }
 0xf32   : > { %7983 = vrcp.f32 %v4515_v22 }
 0xf37   : > { %v7982_v13 = vpop.eup %7981 }
 0xf38   : > { %v4080_v27 = vmul.f32 %v7982_v13, %v11006_v55  ;;  %v4517_v16 = vpop.xlane.xlu2 %4516  ;;  %v7984_v11 = vpop.eup %7983 }
 0xf39   : > { %7985 = vrcp.f32 %v4517_v16  ;;  %v4036_v0 = vpop.xlane.xlu0 %4035  ;;  %v4562_v59 = vmul.f32 %v7984_v11, %v11008_v5 }
 0xf3a   : > { %v4095_v9 = vpack.c.bf16 %v4080_v27, %v4079_v1 }
 0xf3c   : > { %4143 = vmatmul.bf16.vlgmr.msrb.gmra.mxu0 %v4095_v9 }
 0xf3f   : > { %v7986_v4 = vpop.eup %7985 }
 0xf40   : > { %v4563_v63 = vmul.f32 %v7986_v4, %v11013_v43  ;;  %v4457_v42 = vpop.xlane.xlu2 %4456  ;;  %v4519_v14 = vpop.xlane.xlu1 %4518 }
 0xf41   : > { %v4477_v6 = vsub.f32 %v11025_v56, %v4457_v42 }
 0xf42   : > { %v4578_v22 = vpack.c.bf16 %v4563_v63, %v4562_v59 }
 0xf43   : > { %v4504_v29 = vmul.f32 1.442695, %v4477_v6 }
 0xf44   : > { %4618 = vmatmul.bf16.vlgmr.msra.gmra.mxu3 %v4578_v22 }
 0xf45   : > { %7987 = vpow2.f32 %v4504_v29 }
 0xf46   : > { %7989 = vrcp.f32 %v4519_v14 }
 0xf47   : > { %7991 = vrcp.f32 %v4036_v0 }
 0xf48   : > { %v4521_v47 = vpop.xlane.xlu0 %4520  ;;  %v4459_v55 = vpop.xlane.xlu1 %4458 }
 0xf49   : > { %7993 = vrcp.f32 %v4521_v47  ;;  %v4038_v30 = vpop.xlane.xlu2 %4037  ;;  %v4478_v13 = vsub.f32 %v11035_v32, %v4459_v55 }
 0xf4a   : > { %7995 = vrcp.f32 %v4038_v30 }
 0xf4b   : > { %v11140_v5 = vpop.eup %7987  ;;  %v4506_v43 = vmul.f32 1.442695, %v4478_v13 }
 0xf4c   : > { %4536 = vadd.xlane.f32.xlu2 %v11140_v5  ;;  %v7990_v4 = vpop.eup %7989 }
 0xf4d   : > { %7997 = vpow2.f32 %v4506_v43  ;;  %v7992_v59 = vpop.eup %7991  ;;  %v4564_v0 = vmul.f32 %v7990_v4, %v11021_v45 }
 0xf4e   : > { %v4081_v32 = vmul.f32 %v7992_v59, %v11015_v37 }
 0xf4f   : > { %v7994_v6 = vpop.eup %7993 }
 0xf50   : > { %v7996_v56 = vpop.eup %7995  ;;  %v4042_v29 = vpop.xlane.xlu0 %4041  ;;  %v4565_v11 = vmul.f32 %v7994_v6, %v11031_v44 }
 0xf51   : > { %v4040_v14 = vpop.xlane.xlu1 %4039  ;;  %v3978_v1 = vpop.xlane.xlu2 %3977  ;;  %v4082_v27 = vmul.f32 %v7996_v56, %v11037_v21  ;;  %7999 = vrcp.f32 %v4042_v29 }
 0xf52   : > { %v3996_v16 = vsub.f32 %v11052_v10, %v3978_v1  ;;  %v4579_v9 = vpack.c.bf16 %v4565_v11, %v4564_v0  ;;  %8001 = vrcp.f32 %v4040_v14 }
 0xf53   : > { %v11148_v63 = vpop.eup %7997  ;;  %v4096_v42 = vpack.c.bf16 %v4082_v27, %v4081_v32 }
 0xf54   : > { %v4025_v22 = vmul.f32 1.442695, %v3996_v16  ;;  %4623 = vmatmul.bf16.gmra.mxu3 %v4579_v9  ;;  %4538 = vadd.xlane.f32.xlu2 %v11148_v63 }
 0xf55   : > { %4148 = vmatmul.bf16.gmra.mxu0 %v4096_v42 }
 0xf56   : > { %8003 = vpow2.f32 %v4025_v22 }
 0xf57   : > { %v8000_v21 = vpop.eup %7999 }
 0xf58   : > { %v4461_v45 = vpop.xlane.xlu0 %4460  ;;  %v8002_v10 = vpop.eup %8001  ;;  %v4084_v43 = vmul.f32 %v8000_v21, %v11046_v54 }
 0xf59   : > { %v4479_v44 = vsub.f32 %v11062_v8, %v4461_v45  ;;  %v4523_v37 = vpop.xlane.xlu2 %4522  ;;  %v4525_v47 = vpop.xlane.xlu1 %4524  ;;  %v4083_v13 = vmul.f32 %v8002_v10, %v11044_v28 }
 0xf5a   : > { %8005 = vrcp.f32 %v4523_v37 }
 0xf5b   : > { %v4508_v55 = vmul.f32 1.442695, %v4479_v44  ;;  %8007 = vrcp.f32 %v4525_v47  ;;  %v4097_v11 = vpack.c.bf16 %v4084_v43, %v4083_v13 }
 0xf5c   : > { %v11152_v30 = vpop.eup %8003 }
 0xf5d   : > { %8009 = vpow2.f32 %v4508_v55  ;;  %4057 = vadd.xlane.f32.xlu0 %v11152_v30 }
 0xf60   : > { %v8006_v4 = vpop.eup %8005 }
 0xf61   : > { %v8008_v59 = vpop.eup %8007  ;;  %v4044_v6 = vpop.xlane.xlu2 %4043  ;;  %v4566_v56 = vmul.f32 %v8006_v4, %v11058_v53 }
 0xf62   : > { %v4046_v8 = vpop.xlane.xlu1 %4045  ;;  %v4527_v29 = vpop.xlane.xlu0 %4526  ;;  %v4567_v14 = vmul.f32 %v8008_v59, %v11064_v57  ;;  %8011 = vrcp.f32 %v4044_v6 }
 0xf63   : > { %v11159_v0 = vpop.eup %8009  ;;  %8013 = vrcp.f32 %v4046_v8 }
 0xf64   : > { %4540 = vadd.xlane.f32.xlu1 %v11159_v0  ;;  %v4580_v1 = vpack.c.bf16 %v4567_v14, %v4566_v56  ;;  %8015 = vrcp.f32 %v4527_v29 }
 0xf65   : > { %4153 = vmatmul.bf16.gmra.mxu0 %v4097_v11 }
 0xf66   : > { %4628 = vmatmul.bf16.gmra.mxu3 %v4580_v1 }
 0xf68   : > { %v8012_v27 = vpop.eup %8011 }
 0xf69   : > { %v4529_v28 = vpop.xlane.xlu2 %4528  ;;  %v8014_v16 = vpop.eup %8013  ;;  %v4085_v45 = vmul.f32 %v8012_v27, %v11070_v19 }
 0xf6a   : > { %v3980_v54 = vpop.xlane.xlu1 %3979  ;;  %8017 = vrcp.f32 %v4529_v28  ;;  %v3982_v32 = vpop.xlane.xlu0 %3981  ;;  %v4086_v44 = vmul.f32 %v8014_v16, %v11072_v7 }
 0xf6b   : > { %v3997_v53 = vsub.f32 %v11084_v15, %v3980_v54  ;;  %v3998_v57 = vsub.f32 %v11092_v51, %v3982_v32  ;;  %v8016_v22 = vpop.eup %8015 }
 0xf6c   : > { %v4568_v10 = vmul.f32 %v8016_v22, %v11074_v26  ;;  %v4098_v43 = vpack.c.bf16 %v4086_v44, %v4085_v45  ;;  %v7367_v44 = vld [vmem:[%s12686_s1 + $0x1e4] sm:$0xf] }
 0xf6d   : > { %v4027_v9 = vmul.f32 1.442695, %v3997_v53  ;;  %v4029_v42 = vmul.f32 1.442695, %v3998_v57 }
 0xf6f   : > { %8019 = vpow2.f32 %v4027_v9 }
 0xf70   : > { %8021 = vpow2.f32 %v4029_v42  ;;  %v8018_v37 = vpop.eup %8017 }
 0xf71   : > { %v4463_v47 = vpop.xlane.xlu2 %4462  ;;  %v4569_v15 = vmul.f32 %v8018_v37, %v11080_v61  ;;  %v7557_v37 = vld [vmem:[%s12686_s1 + $0x1e8] sm:$0xf0] }
 0xf72   : > { %v4465_v21 = vpop.xlane.xlu1 %4464  ;;  %v4480_v55 = vsub.f32 %v11098_v39, %v4463_v47  ;;  %v4048_v51 = vpop.xlane.xlu0 %4047  ;;  %v7368_v47 = vor.u32 %v7557_v37, %v7367_v44 }
 0xf73   : > { %v4481_v13 = vsub.f32 %v11103_v2, %v4465_v21  ;;  %v4581_v4 = vpack.c.bf16 %v4569_v15, %v4568_v10 }
 0xf74   : > { %v4510_v6 = vmul.f32 1.442695, %v4480_v55  ;;  %4704 = vmatpush.bf16.msra.mxu0 %v7368_v47 }
 0xf75   : > { %v11170_v59 = vpop.eup %8019  ;;  %v4512_v19 = vmul.f32 1.442695, %v4481_v13  ;;  %4158 = vmatmul.bf16.gmra.mxu0 %v4098_v43 }
 0xf76   : > { %v11172_v8 = vpop.eup %8021  ;;  %4059 = vadd.xlane.f32.xlu0 %v11170_v59  ;;  %8023 = vpow2.f32 %v4510_v6  ;;  %4633 = vmatmul.bf16.gmra.mxu3 %v4581_v4 }
 0xf77   : > { %4061 = vadd.xlane.f32.xlu2 %v11172_v8  ;;  %8025 = vpow2.f32 %v4512_v19 }
 0xf78   : > { %8027 = vrcp.f32 %v4048_v51 }
 0xf79   : > { %v4050_v61 = vpop.xlane.xlu2 %4049 }
 0xf7a   : > { %v4531_v7 = vpop.xlane.xlu1 %4530  ;;  %8029 = vrcp.f32 %v4050_v61  ;;  %v4533_v26 = vpop.xlane.xlu0 %4532 }
 0xf7b   : > { %8031 = vrcp.f32 %v4533_v26 }
 0xf7c   : > { %v11176_v39 = vpop.eup %8023  ;;  %8033 = vrcp.f32 %v4531_v7 }
 0xf7d   : > { %v11178_v2 = vpop.eup %8025  ;;  %4542 = vadd.xlane.f32.xlu1 %v11176_v39 }
 0xf7e   : > { %v8028_v56 = vpop.eup %8027  ;;  %4544 = vadd.xlane.f32.xlu0 %v11178_v2 }
 0xf7f   : > { %v4087_v11 = vmul.f32 %v8028_v56, %v11105_v46 }
 0xf80   : > { %v8030_v29 = vpop.eup %8029 }
 0xf81   : > { %v8032_v14 = vpop.eup %8031  ;;  %v4088_v1 = vmul.f32 %v8030_v29, %v11112_v50  ;;  %v4052_v54 = vpop.xlane.xlu2 %4051 }
 0xf82   : > { %v8034_v28 = vpop.eup %8033  ;;  %v4571_v32 = vmul.f32 %v8032_v14, %v11116_v18  ;;  %v4054_v53 = vpop.xlane.xlu1 %4053  ;;  %8035 = vrcp.f32 %v4052_v54 }
 0xf83   : > { %v4099_v27 = vpack.c.bf16 %v4088_v1, %v4087_v11  ;;  %v4570_v57 = vmul.f32 %v8034_v28, %v11114_v62  ;;  %8037 = vrcp.f32 %v4054_v53  ;;  %v7347_v62 = vld [vmem:[%s12686_s1 + $0x1d4] sm:$0xf]  ;;  %v4535_v45 = vpop.xlane.xlu0 %4534 }
 0xf84   : > { %8039 = vrcp.f32 %v4535_v45 }
 0xf85   : > { %4163 = vmatmul.bf16.gmra.mxu0 %v4099_v27  ;;  %v4582_v16 = vpack.c.bf16 %v4571_v32, %v4570_v57 }
 0xf87   : > { %4638 = vmatmul.bf16.gmra.mxu3 %v4582_v16 }
 0xf88   : > { %v8036_v9 = vpop.eup %8035 }
 0xf89   : > { %v8038_v42 = vpop.eup %8037  ;;  %v4089_v46 = vmul.f32 %v8036_v9, %v11122_v48  ;;  %v7556_v48 = vld [vmem:[%s12686_s1 + $0x1d8] sm:$0xf0] }
 0xf8a   : > { %v4090_v50 = vmul.f32 %v8038_v42, %v11126_v3  ;;  %v7348_v3 = vor.u32 %v7556_v48, %v7347_v62  ;;  %v8040_v55 = vpop.eup %8039 }
 0xf8c   : > { %v4100_v18 = vpack.c.bf16 %v4090_v50, %v4089_v46  ;;  %4229 = vmatpush.bf16.msra.mxu1 %v7348_v3 }
 0xf8f   : > { %4794 = vrot.lane.b32.xlu2 %v10725_v38, %s8268_s11 }
 0xf92   : > { %5269 = vrot.lane.b32.xlu0 %v10725_v38, %s8269_s13 }
 0xf95   : > { %4168 = vmatmul.bf16.gmra.mxu0 %v4100_v18 }
 0xf96   : > { %4792 = vrot.lane.b32.xlu1 %v10700_v60, %s8268_s11 }
 0xf97   : > { %5267 = vrot.lane.b32.xlu2 %v10700_v60, %s8269_s13 }
 0xf9a   : > { %4790 = vrot.lane.b32.xlu0 %v10709_v49, %s8268_s11 }
 0xf9e   : > { %4788 = vrot.lane.b32.xlu1 %v10770_v23, %s8268_s11 }
 0xf9f   : > { %4786 = vrot.lane.b32.xlu2 %v10722_v52, %s8268_s11 }
 0xfa2   : > { %5265 = vrot.lane.b32.xlu0 %v10709_v49, %s8269_s13 }
 0xfa6   : > { %5263 = vrot.lane.b32.xlu1 %v10770_v23, %s8269_s13 }
 0xfa7   : > { %5261 = vrot.lane.b32.xlu2 %v10722_v52, %s8269_s13 }
 0xfaa   : > { %4784 = vrot.lane.b32.xlu0 %v10745_v40, %s8268_s11 }
 0xfae   : > { %4782 = vrot.lane.b32.xlu1 %v10787_v20, %s8268_s11 }
 0xfaf   : > { %4780 = vrot.lane.b32.xlu2 %v10768_v58, %s8268_s11 }
 0xfb2   : > { %5259 = vrot.lane.b32.xlu0 %v10745_v40, %s8269_s13 }
 0xfb6   : > { %5257 = vrot.lane.b32.xlu1 %v10787_v20, %s8269_s13 }
 0xfb7   : > { %5255 = vrot.lane.b32.xlu2 %v10768_v58, %s8269_s13 }
 0xfb9   : > { %v4144_v22 = vpop.f32.mrf.mxu0 }
 0xfba   : > { %4764 = vrot.lane.b32.xlu0 %v10768_v58, %s8270_s20 }
 0xfbe   : > { %5239 = vrot.lane.b32.xlu1 %v10768_v58, %s8271_s25  ;;  %v4572_v58 = vmul.f32 %v8040_v55, %v11124_v34 }
 0xfbf   : > { %5241 = vrot.lane.b32.xlu2 %v10787_v20, %s8271_s25  ;;  %v4537_v21 = vpop.xlane.xlu2 %4536 }
 0xfc0   : > { %8041 = vrcp.f32 %v4537_v21 }
 0xfc1   : > { %v4146_v10 = vpop.f32.mrf.mxu0 }
 0xfc2   : > { %4766 = vrot.lane.b32.xlu0 %v10787_v20, %s8270_s20  ;;  %v4184_v15 = vpack.c.bf16 %v4146_v10, %v4144_v22  ;;  %v4056_v20 = vpop.xlane.xlu1 %4055 }
 0xfc3   : > { %8043 = vrcp.f32 %v4056_v20 }
 0xfc4   : > { %7349 = vmatmul.msk.bf16.vlgmr.msra.gmra.mxu1 %vm13129_vm14, %v4184_v15 }
 0xfc6   : > { %v8042_v51 = vpop.eup %8041  ;;  %4768 = vrot.lane.b32.xlu1 %v10745_v40, %s8270_s20 }
 0xfc7   : > { %4770 = vrot.lane.b32.xlu2 %v10722_v52, %s8270_s20  ;;  %v4573_v13 = vmul.f32 %v8042_v51, %v11140_v5  ;;  %v4539_v5 = vpop.xlane.xlu2 %4538  ;;  %v4619_v11 = vpop.f32.mrf.mxu3 }
 0xfc9   : > { %v4583_v43 = vpack.c.bf16 %v4573_v13, %v4572_v58  ;;  %v8044_v6 = vpop.eup %8043 }
 0xfca   : > { %5243 = vrot.lane.b32.xlu0 %v10745_v40, %s8271_s25 }
 0xfcb   : > { %4643 = vmatmul.bf16.gmra.mxu3 %v4583_v43 }
 0xfce   : > { %5245 = vrot.lane.b32.xlu1 %v10722_v52, %s8271_s25  ;;  %v4091_v52 = vmul.f32 %v8044_v6, %v11131_v33 }
 0xfcf   : > { %5247 = vrot.lane.b32.xlu2 %v10770_v23, %s8271_s25  ;;  %v4621_v54 = vpop.f32.mrf.mxu3 }
 0xfd0   : > { %v4058_v4 = vpop.xlane.xlu0 %4057  ;;  %v4659_v45 = vpack.c.bf16 %v4621_v54, %v4619_v11 }
 0xfd1   : > { %8045 = vrcp.f32 %v4058_v4 }
 0xfd2   : > { %4772 = vrot.lane.b32.xlu0 %v10770_v23, %s8270_s20  ;;  %v4149_v34 = vpop.f32.mrf.mxu0  ;;  %8047 = vrcp.f32 %v4539_v5 }
 0xfd6   : > { %4774 = vrot.lane.b32.xlu1 %v10709_v49, %s8270_s20 }
 0xfd7   : > { %4776 = vrot.lane.b32.xlu2 %v10700_v60, %s8270_s20  ;;  %v8046_v40 = vpop.eup %8045  ;;  %v4541_v19 = vpop.xlane.xlu1 %4540 }
 0xfd8   : > { %8049 = vrcp.f32 %v4541_v19  ;;  %v4092_v61 = vmul.f32 %v8046_v40, %v11152_v30  ;;  %v8048_v56 = vpop.eup %8047  ;;  %v4624_v50 = vpop.f32.mrf.mxu3 }
 0xfd9   : > { %v4574_v33 = vmul.f32 %v8048_v56, %v11148_v63 }
 0xfda   : > { %5249 = vrot.lane.b32.xlu0 %v10709_v49, %s8271_s25  ;;  %v4151_v23 = vpop.f32.mrf.mxu0  ;;  %v4101_v7 = vpack.c.bf16 %v4092_v61, %v4091_v52 }
 0xfdb   : > { %v4185_v26 = vpack.c.bf16 %v4151_v23, %v4149_v34 }
 0xfdc   : > { %4173 = vmatmul.bf16.gmra.mxu0 %v4101_v7 }
 0xfdd   : > { %7350 = vmatmul.msk.bf16.gmra.mxu1 %vm13129_vm14, %v4185_v26 }
 0xfde   : > { %v8050_v29 = vpop.eup %8049  ;;  %5251 = vrot.lane.b32.xlu1 %v10700_v60, %s8271_s25 }
 0xfdf   : > { %5253 = vrot.lane.b32.xlu2 %v10725_v38, %s8271_s25  ;;  %v4575_v30 = vmul.f32 %v8050_v29, %v11159_v0 }
 0xfe1   : > { %v4584_v14 = vpack.c.bf16 %v4575_v30, %v4574_v33 }
 0xfe2   : > { %4778 = vrot.lane.b32.xlu0 %v10725_v38, %s8270_s20  ;;  %v4154_v49 = vpop.f32.mrf.mxu0 }
 0xfe3   : > { %4648 = vmatmul.bf16.gmra.mxu3 %v4584_v14 }
 0xfe6   : > { %5071 = vrot.lane.b32.xlu1 %v10747_v31, %s8270_s20 }
 0xfe7   : > { %5073 = vrot.lane.b32.xlu2 %v10739_v25, %s8270_s20 }
 0xfe9   : > { %v4060_v1 = vpop.xlane.xlu0 %4059 }
 0xfea   : > { %v4062_v28 = vpop.xlane.xlu2 %4061  ;;  %8051 = vrcp.f32 %v4060_v1  ;;  %5075 = vrot.lane.b32.xlu0 %v10727_v36, %s8270_s20  ;;  %v4156_v60 = vpop.f32.mrf.mxu0 }
 0xfeb   : > { %8053 = vrcp.f32 %v4062_v28  ;;  %v4186_v63 = vpack.c.bf16 %v4156_v60, %v4154_v49 }
 0xfed   : > { %7351 = vmatmul.msk.bf16.gmra.mxu1 %vm13129_vm14, %v4186_v63  ;;  %vm13131_vm14 = vmmov %vm13130_vm10 }
 0xfee   : > { %5550 = vrot.lane.b32.xlu1 %v10727_v36, %s8271_s25 }
 0xfef   : > { %5067 = vrot.lane.b32.xlu2 %v10772_v41, %s8270_s20 }
 0xff0   : > { %v8052_v38 = vpop.eup %8051  ;;  %v4543_v32 = vpop.xlane.xlu1 %4542 }
 0xff1   : > { %v8054_v0 = vpop.eup %8053  ;;  %v4093_v53 = vmul.f32 %v8052_v38, %v11170_v59  ;;  %8055 = vrcp.f32 %v4543_v32  ;;  %v4545_v9 = vpop.xlane.xlu0 %4544 }
 0xff2   : > { %v4795_v27 = vpop.permute.xlu2 %4794  ;;  %v4094_v57 = vmul.f32 %v8054_v0, %v11172_v8  ;;  %5546 = vrot.lane.b32.xlu0 %v10747_v31, %s8271_s25  ;;  %v4159_v42 = vpop.f32.mrf.mxu0  ;;  %8057 = vrcp.f32 %v4545_v9 }
 0xff3   : > { %v4842_v16 = vsel %vm13130_vm10, %v4795_v27, 0 }
 0xff4   : > { %4844 = vmatpush.bf16.xpose.msrb.mxu1 %v4842_v16  ;;  %v4102_v36 = vpack.c.bf16 %v4094_v57, %v4093_v53 }
 0xff6   : > { %4178 = vmatmul.bf16.gmra.mxu0 %v4102_v36  ;;  %5069 = vrot.lane.b32.xlu1 %v10760_v24, %s8270_s20 }
 0xff7   : > { %5540 = vrot.lane.b32.xlu2 %v10782_v17, %s8271_s25  ;;  %v8056_v59 = vpop.eup %8055 }
 0xff8   : > { %v4576_v8 = vmul.f32 %v8056_v59, %v11176_v39  ;;  %v8058_v46 = vpop.eup %8057  ;;  %v4626_v39 = vpop.f32.mrf.mxu3 }
 0xff9   : > { %v4577_v18 = vmul.f32 %v8058_v46, %v11178_v2  ;;  %v4660_v20 = vpack.c.bf16 %v4626_v39, %v4624_v50 }
 0xffa   : > { %5538 = vrot.lane.b32.xlu0 %v10789_v35, %s8271_s25  ;;  %v4161_v31 = vpop.f32.mrf.mxu0  ;;  %v5268_v48 = vpop.permute.xlu2 %5267 }
 0xffb   : > { %v4187_v62 = vpack.c.bf16 %v4161_v31, %v4159_v42  ;;  %v4585_v3 = vpack.c.bf16 %v4577_v18, %v4576_v8  ;;  %v5314_v55 = vsel %vm13135_vm15, %v5268_v48, 0  ;;  %vm13138_vm15 = vmmov %vm13133_vm9 }
 0xffd   : > { %7352 = vmatmul.msk.bf16.gmra.mxu1 %vm13130_vm10, %v4187_v62  ;;  %4653 = vmatmul.bf16.gmra.mxu3 %v4585_v3  ;;  %vm13134_vm10 = vmmov %vm13133_vm9 }
 0xffe   : > { %5548 = vrot.lane.b32.xlu1 %v10739_v25, %s8271_s25 }
0x1000   : > { %v4629_v51 = vpop.f32.mrf.mxu3 }
0x1002   : > { %v4164_v22 = vpop.f32.mrf.mxu0  ;;  %v4787_v47 = vpop.permute.xlu2 %4786 }
0x1004   : > { %v5270_v44 = vpop.permute.xlu0 %5269 }
0x1005   : > { %v5317_v37 = vsel %vm13131_vm14, %v5270_v44, 0  ;;  %vm13137_vm14 = vmmov %vm13133_vm9 }
0x1006   : > { %7369 = vmatmul.msk.bf16.vlgmr.msra.gmra.mxu0 %vm13132_vm13, %v4659_v45  ;;  %5065 = vrot.lane.b32.xlu1 %v10782_v17, %s8270_s20  ;;  %vm13136_vm13 = vmmov %vm13133_vm9 }
0x1007   : > { %5319 = vmatpush.bf16.xpose.msrb.mxu0 %v5317_v37 }
0x1008   : > { %v4793_v2 = vpop.permute.xlu1 %4792  ;;  %v4631_v5 = vpop.f32.mrf.mxu3 }
0x1009   : > { %v4839_v21 = vsel %vm13133_vm9, %v4793_v2, 0  ;;  %v4661_v56 = vpack.c.bf16 %v4631_v5, %v4629_v51 }
0x100a   : > { %v4166_v10 = vpop.f32.mrf.mxu0  ;;  %4845 = vmatpush.bf16.xpose.msrb.mxu1 %v4839_v21  ;;  %v5262_v58 = vpop.permute.xlu2 %5261 }
0x100b   : > { %v4188_v15 = vpack.c.bf16 %v4166_v10, %v4164_v22 }
0x100c   : > { %v4791_v25 = vpop.permute.xlu0 %4790 }
0x100d   : > { %7353 = vmatmul.msk.bf16.gmra.mxu1 %vm13134_vm10, %v4188_v15  ;;  %v4836_v17 = vsel %vm13136_vm13, %v4791_v25, 0  ;;  %vm13139_vm10 = vmmov %vm13133_vm9 }
0x100e   : > { %5544 = vrot.lane.b32.xlu1 %v10760_v24, %s8271_s25  ;;  %vm13140_vm13 = vmmov %vm13133_vm9 }
0x100f   : > { %5320 = vmatpush.bf16.xpose.msrb.mxu0 %v5314_v55 }
0x1010   : > { %v4789_v13 = vpop.permute.xlu1 %4788  ;;  %v4634_v26 = vpop.f32.mrf.mxu3 }
0x1011   : > { %v4833_v24 = vsel %vm13138_vm15, %v4789_v13, 0  ;;  %vm13142_vm15 = vmmov %vm13133_vm9 }
0x1012   : > { %v4169_v43 = vpop.f32.mrf.mxu0  ;;  %4846 = vmatpush.bf16.xpose.msrb.mxu1 %v4836_v17  ;;  %v4781_v40 = vpop.permute.xlu2 %4780  ;;  %v5305_v30 = vsel %vm13142_vm15, %v5262_v58, 0  ;;  %vm13146_vm15 = vmmov %vm13133_vm9 }
0x1014   : > { %v5266_v4 = vpop.permute.xlu0 %5265 }
0x1015   : > { %v5311_v34 = vsel %vm13137_vm14, %v5266_v4, 0  ;;  %vm13141_vm14 = vmmov %vm13133_vm9 }
0x1016   : > { %7370 = vmatmul.msk.bf16.gmra.mxu0 %vm13133_vm9, %v4660_v20  ;;  %5063 = vrot.lane.b32.xlu1 %v10789_v35, %s8270_s20  ;;  %v4830_v35 = vsel %vm13133_vm9, %v4787_v47, 0 }
0x1017   : > { %5321 = vmatpush.bf16.xpose.msrb.mxu0 %v5311_v34 }
0x1018   : > { %v5264_v6 = vpop.permute.xlu1 %5263 }
0x1019   : > { %v5308_v23 = vsel %vm13140_vm13, %v5264_v6, 0  ;;  %vm13144_vm13 = vmmov %vm13133_vm9 }
0x101a   : > { %v4171_v19 = vpop.f32.mrf.mxu0  ;;  %4847 = vmatpush.bf16.xpose.msrb.mxu1 %v4833_v24  ;;  %v5256_v29 = vpop.permute.xlu2 %5255 }
0x101b   : > { %v4189_v52 = vpack.c.bf16 %v4171_v19, %v4169_v43 }
0x101c   : > { %v4785_v61 = vpop.permute.xlu0 %4784 }
0x101d   : > { %7354 = vmatmul.msk.bf16.gmra.mxu1 %vm13139_vm10, %v4189_v52  ;;  %vm13143_vm10 = vmmov %vm13133_vm9 }
0x101e   : > { %5542 = vrot.lane.b32.xlu1 %v10772_v41, %s8271_s25  ;;  %v4827_v49 = vsel %vm13143_vm10, %v4785_v61, 0  ;;  %v4636_v41 = vpop.f32.mrf.mxu3  ;;  %vm13147_vm10 = vmmov %vm13133_vm9 }
0x101f   : > { %5322 = vmatpush.bf16.xpose.msrb.mxu0 %v5308_v23  ;;  %v4662_v38 = vpack.c.bf16 %v4636_v41, %v4634_v26  ;;  %v4821_v57 = vsel %vm13147_vm10, %v4781_v40, 0  ;;  %vm13151_vm10 = vmmov %vm13133_vm9  ;;  %v8254_v40 = vld [vmem:[%s12687_s2 + $0x10] sm:$0xff] }
0x1020   : > { %v4783_v7 = vpop.permute.xlu1 %4782  ;;  %v11371_v19 = vperm.slane %v8254_v40, 4 }
0x1021   : > { %v4824_v63 = vsel %vm13133_vm9, %v4783_v7, 0 }
0x1022   : > { %4848 = vmatpush.bf16.xpose.msrb.mxu1 %v4830_v35  ;;  %v11327_v28 = vpop.permute.xlu2 %5241 }
0x1024   : > { %v5260_v33 = vpop.permute.xlu0 %5259 }
0x1025   : > { %v5302_v1 = vsel %vm13144_vm13, %v5260_v33, 0  ;;  %vm13148_vm13 = vmmov %vm13133_vm9 }
0x1026   : > { %7371 = vmatmul.msk.bf16.gmra.mxu0 %vm13141_vm14, %v4661_v56  ;;  %5061 = vrot.lane.b32.xlu1 %v10799_v12, %s8270_s20  ;;  %vm13145_vm14 = vmmov %vm13133_vm9  ;;  %v4639_v32 = vpop.f32.mrf.mxu3  ;;  %v5296_v9 = vsel %vm13148_vm13, %v5256_v29, 0 }
0x1027   : > { %5323 = vmatpush.bf16.xpose.msrb.mxu0 %v5305_v30  ;;  %vm13152_vm13 = vmmov %vm13133_vm9 }
0x1028   : > { %v5258_v14 = vpop.permute.xlu1 %5257 }
0x1029   : > { %v5299_v54 = vsel %vm13146_vm15, %v5258_v14, 0  ;;  %vm13150_vm15 = vmmov %vm13133_vm9 }
0x102a   : > { %4849 = vmatpush.bf16.xpose.msrb.mxu1 %v4827_v49  ;;  %v11336_v53 = vpop.permute.xlu2 %4770 }
0x102c   : > { %v11324_v11 = vpop.permute.xlu0 %4764 }
0x102e   : > { %v4641_v42 = vpop.f32.mrf.mxu3 }
0x102f   : > { %5324 = vmatpush.bf16.xpose.msrb.mxu0 %v5302_v1  ;;  %v4663_v8 = vpack.c.bf16 %v4641_v42, %v4639_v32 }
0x1030   : > { %v11329_v60 = vpop.permute.xlu1 %5239 }
0x1032   : > { %4850 = vmatpush.bf16.xpose.msrb.mxu1 %v4824_v63  ;;  %v11346_v59 = vpop.permute.xlu2 %5247 }
0x1034   : > { %v11332_v0 = vpop.permute.xlu0 %4766 }
0x1036   : > { %7372 = vmatmul.msk.bf16.gmra.mxu0 %vm13145_vm14, %v4662_v38  ;;  %vm13149_vm14 = vmmov %vm13133_vm9 }
0x1037   : > { %5325 = vmatpush.bf16.xpose.msrb.mxu0 %v5299_v54 }
0x1038   : > { %v11338_v27 = vpop.permute.xlu1 %4768 }
0x103a   : > { %4851 = vmatpush.bf16.xpose.msrb.mxu1 %v4821_v57  ;;  %v11353_v31 = vpop.permute.xlu2 %4776 }
0x103c   : > { %v11341_v16 = vpop.permute.xlu0 %5243 }
0x103f   : > { %5326 = vmatpush.bf16.xpose.msrb.mxu0 %v5296_v9 }
0x1040   : > { %v11344_v36 = vpop.permute.xlu1 %5245 }
0x1041   : > { %v4231_v17 = vpop.f32.mrf.mxu1 }
0x1042   : > { %v11361_v22 = vpop.permute.xlu2 %5253  ;;  %v4271_v61 = vadd.f32 %v4231_v17, %v11371_v19 }
0x1044   : > { %v11348_v46 = vpop.permute.xlu0 %4772 }
0x1046   : > { %7373 = vmatmul.msk.bf16.gmra.mxu0 %vm13133_vm9, %v4663_v8 }
0x1048   : > { %v11351_v50 = vpop.permute.xlu1 %4774 }
0x1049   : > { %v11366_v5 = vpop.f32.mrf.mxu1 }
0x104a   : > { %v5074_v2 = vpop.permute.xlu2 %5073 }
0x104c   : > { %v11355_v18 = vpop.permute.xlu0 %5249 }
0x104e   : > { %v4644_v62 = vpop.f32.mrf.mxu3 }
0x1050   : > { %v11357_v48 = vpop.permute.xlu1 %5251 }
0x1052   : > { %v5068_v51 = vpop.permute.xlu2 %5067 }
0x1054   : > { %v11359_v3 = vpop.permute.xlu0 %4778 }
0x1056   : > { %v4646_v45 = vpop.f32.mrf.mxu3 }
0x1057   : > { %v4664_v39 = vpack.c.bf16 %v4646_v45, %v4644_v62 }
0x1058   : > { %v5072_v44 = vpop.permute.xlu1 %5071 }
0x1059   : > { %v4174_v37 = vpop.f32.mrf.mxu0  ;;  %7374 = vmatmul.msk.bf16.gmra.mxu0 %vm13149_vm14, %v4664_v39  ;;  %vm13153_vm14 = vmmov %vm13133_vm9 }
0x105a   : > { %v4236_v7 = vpop.f32.mrf.mxu1  ;;  %v5541_v38 = vpop.permute.xlu2 %5540 }
0x105b   : > { %v4273_v41 = vadd.f32 %v4236_v7, %v11371_v19 }
0x105c   : > { %v5076_v47 = vpop.permute.xlu0 %5075 }
0x105d   : > { %5085 = vmatpush.bf16.msra.mxu2 %v5076_v47 }
0x1060   : > { %v5551_v21 = vpop.permute.xlu1 %5550 }
0x1061   : > { %5086 = vmatpush.bf16.msra.mxu2 %v5074_v2  ;;  %v4176_v10 = vpop.f32.mrf.mxu0  ;;  %5560 = vmatpush.bf16.msra.mxu1 %v5551_v21 }
0x1062   : > { %v4190_v15 = vpack.c.bf16 %v4176_v10, %v4174_v37  ;;  %v11379_v14 = vpop.f32.mrf.mxu1 }
0x1064   : > { %7355 = vmatmul.msk.bf16.gmra.mxu1 %vm13150_vm15, %v4190_v15  ;;  %v5547_v4 = vpop.permute.xlu0 %5546  ;;  %vm13154_vm15 = vmmov %vm13133_vm9 }
0x1065   : > { %5087 = vmatpush.bf16.msra.mxu2 %v5072_v44 }
0x1066   : > { %v4649_v25 = vpop.f32.mrf.mxu3 }
0x1068   : > { %v5070_v55 = vpop.permute.xlu1 %5069 }
0x1069   : > { %5088 = vmatpush.bf16.msra.mxu2 %v5070_v55 }
0x106a   : > { %v4241_v54 = vpop.f32.mrf.mxu1 }
0x106b   : > { %v4275_v42 = vadd.f32 %v4241_v54, %v11371_v19 }
0x106c   : > { %v5539_v32 = vpop.permute.xlu0 %5538 }
0x106d   : > { %5089 = vmatpush.bf16.msra.mxu2 %v5068_v51 }
0x106e   : > { %v4651_v58 = vpop.f32.mrf.mxu3 }
0x106f   : > { %v4665_v13 = vpack.c.bf16 %v4651_v58, %v4649_v25 }
0x1070   : > { %v5549_v43 = vpop.permute.xlu1 %5548 }
0x1071   : > { %5561 = vmatpush.bf16.msra.mxu1 %v5549_v43  ;;  %7375 = vmatmul.msk.bf16.gmra.mxu0 %vm13151_vm10, %v4665_v13  ;;  %vm13155_vm10 = vmmov %vm13133_vm9 }
0x1073   : > { %v4179_v20 = vpop.f32.mrf.mxu0 }
0x1075   : > { %5562 = vmatpush.bf16.msra.mxu1 %v5547_v4 }
0x1078   : > { %v5066_v34 = vpop.permute.xlu1 %5065 }
0x1079   : > { %5090 = vmatpush.bf16.msra.mxu2 %v5066_v34 }
0x107b   : > { %v4181_v6 = vpop.f32.mrf.mxu0 }
0x107c   : > { %v4191_v24 = vpack.c.bf16 %v4181_v6, %v4179_v20 }
0x107e   : > { %7356 = vmatmul.msk.bf16.gmra.mxu1 %vm13152_vm13, %v4191_v24  ;;  %vm13156_vm13 = vmmov %vm13133_vm9 }
0x1080   : > { %v5545_v52 = vpop.permute.xlu1 %5544  ;;  %v4654_v23 = vpop.f32.mrf.mxu3 }
0x1081   : > { %5563 = vmatpush.bf16.msra.mxu1 %v5545_v52 }
0x1083   : > { %v4706_v35 = vpop.f32.mrf.mxu0 }
0x1084   : > { %v11375_v26 = vadd.f32 %v4706_v35, %v4271_v61 }
0x1088   : > { %v5064_v56 = vpop.permute.xlu1 %5063  ;;  %v4656_v29 = vpop.f32.mrf.mxu3 }
0x1089   : > { %5091 = vmatpush.bf16.msra.mxu2 %v5064_v56  ;;  %v4666_v33 = vpack.c.bf16 %v4656_v29, %v4654_v23 }
0x108b   : > { %v11377_v30 = vpop.f32.mrf.mxu0  ;;  %7376 = vmatmul.msk.bf16.gmra.mxu0 %vm13133_vm9, %v4666_v33 }
0x108e   : > { %7377 = vmatmul.msk.bf16.vlgmr.msrb.gmra.mxu1 %vm13153_vm14, %v11324_v11  ;;  %v11393_v11 = vpop.f32.mrf.mxu1  ;;  %vm13157_vm14 = vmmov %vm13133_vm9 }
0x1090   : > { %v5543_v49 = vpop.permute.xlu1 %5542 }
0x1091   : > { %5564 = vmatpush.bf16.msra.mxu1 %v5543_v49 }
0x1093   : > { %v4711_v1 = vpop.f32.mrf.mxu0 }
0x1094   : > { %v11385_v63 = vadd.f32 %v4711_v1, %v4273_v41 }
0x1095   : > { %5565 = vmatpush.bf16.msra.mxu1 %v5541_v38 }
0x1096   : > { %v4246_v45 = vpop.f32.mrf.mxu1 }
0x1098   : > { %v5062_v57 = vpop.permute.xlu1 %5061 }
0x1099   : > { %5092 = vmatpush.bf16.msra.mxu2 %v5062_v57  ;;  %5566 = vmatpush.bf16.msra.mxu1 %v5539_v32 }
0x109b   : > { %v11387_v9 = vpop.f32.mrf.mxu0  ;;  %7397 = vmatmul.msk.bf16.vlgmr.msrb.gmra.mxu0 %vm13154_vm15, %v11329_v60  ;;  %v4277_v60 = vadd.f32 %v4246_v45, %v11371_v19  ;;  %vm13158_vm15 = vmmov %vm13133_vm9 }
0x109e   : > { %7378 = vmatmul.msk.bf16.gmra.mxu1 %vm13155_vm10, %v11332_v0  ;;  %v11407_v37 = vpop.f32.mrf.mxu1  ;;  %vm13159_vm10 = vmmov %vm13133_vm9 }
0x10a3   : > { %v4716_v8 = vpop.f32.mrf.mxu0 }
0x10a4   : > { %v11396_v62 = vadd.f32 %v4716_v8, %v4275_v42 }
0x10a6   : > { %v4251_v2 = vpop.f32.mrf.mxu1 }
0x10ab   : > { %v11398_v39 = vpop.f32.mrf.mxu0  ;;  %7398 = vmatmul.msk.bf16.gmra.mxu0 %vm13156_vm13, %v11327_v28  ;;  %v4279_v28 = vadd.f32 %v4251_v2, %v11371_v19  ;;  %vm13160_vm13 = vmmov %vm13133_vm9 }
0x10ae   : > { %7379 = vmatmul.msk.bf16.gmra.mxu1 %vm13133_vm9, %v11338_v27  ;;  %v11418_v10 = vpop.f32.mrf.mxu1 }
0x10b3   : > { %v4721_v44 = vpop.f32.mrf.mxu0 }
0x10b4   : > { %v11405_v0 = vadd.f32 %v4721_v44, %v4277_v60 }
0x10bb   : > { %v11409_v47 = vpop.f32.mrf.mxu0  ;;  %7399 = vmatmul.msk.bf16.gmra.mxu0 %vm13157_vm14, %v11341_v16  ;;  %v4256_v16 = vpop.f32.mrf.mxu1  ;;  %vm13161_vm14 = vmmov %vm13133_vm9 }
0x10bc   : > { %v4281_v25 = vadd.f32 %v4256_v16, %v11371_v19 }
0x10be   : > { %7380 = vmatmul.msk.bf16.gmra.mxu1 %vm13158_vm15, %v11336_v53  ;;  %vm13164_vm15 = vmmov %vm13133_vm9 }
0x10c3   : > { %v4726_v21 = vpop.f32.mrf.mxu0  ;;  %v11433_v51 = vpop.f32.mrf.mxu1 }
0x10c4   : > { %v11416_v27 = vadd.f32 %v4726_v21, %v4279_v28  ;;  %13162 = vst [vmem:[#allocation15_spill] sm:$0xff] %v11433_v51 }
0x10cb   : > { %7400 = vmatmul.msk.bf16.gmra.mxu0 %vm13159_vm10, %v11344_v36  ;;  %v11424_v15 = vpop.f32.mrf.mxu0  ;;  %vm13165_vm10 = vmmov %vm13133_vm9 }
0x10ce   : > { %7381 = vmatmul.msk.bf16.gmra.mxu1 %vm13160_vm13, %v11348_v46  ;;  %vm13168_vm13 = vmmov %vm13133_vm9 }
0x10d6   : > { %v4731_v53 = vpop.f32.mrf.mxu0 }
0x10d7   : > { %v11427_v55 = vadd.f32 %v4731_v53, %v4281_v25 }
0x10db   : > { %7401 = vmatmul.msk.bf16.gmra.mxu0 %vm13133_vm9, %v11346_v59 }
0x10de   : > { %7382 = vmatmul.msk.bf16.gmra.mxu1 %vm13161_vm14, %v11351_v50  ;;  %v11435_v36 = vpop.f32.mrf.mxu0  ;;  %vm13173_vm14 = vmmov %vm13133_vm9 }
0x10df   : > { %13163 = vst [vmem:[#allocation39_spill] sm:$0xff] %v11435_v36 }
0x10e1   : > { %v4261_v58 = vpop.f32.mrf.mxu1 }
0x10e2   : > { %v4283_v46 = vadd.f32 %v4261_v58, %v11371_v19 }
0x10e9   : > { %v11444_v59 = vpop.f32.mrf.mxu1 }
0x10ea   : > { %13167 = vst [vmem:[#allocation38_spill] sm:$0xff] %v11444_v59 }
0x10eb   : > { %7402 = vmatmul.msk.bf16.gmra.mxu0 %vm13164_vm15, %v11355_v18 }
0x10ee   : > { %7383 = vmatmul.msk.bf16.gmra.mxu1 %vm13165_vm10, %v11353_v31  ;;  %v4736_v13 = vpop.f32.mrf.mxu0 }
0x10ef   : > { %v11442_v17 = vadd.f32 %v4736_v13, %v4283_v46 }
0x10f1   : > { %13166 = vst [vmem:[#allocation16_spill] sm:$0xff] %v11442_v17 }
0x10f6   : > { %v11450_v50 = vpop.f32.mrf.mxu0 }
0x10f7   : > { %13169 = vst [vmem:[#allocation40_spill] sm:$0xff] %v11450_v50 }
0x10fb   : > { %v4266_v43 = vpop.f32.mrf.mxu1  ;;  %7403 = vmatmul.msk.bf16.gmra.mxu0 %vm13168_vm13, %v11357_v48 }
0x10fc   : > { %v4285_v20 = vadd.f32 %v4266_v43, %v11371_v19 }
0x10fe   : > { %7384 = vmatmul.msk.bf16.gmra.mxu1 %vm13133_vm9, %v11359_v3 }
0x1103   : > { %v11452_v18 = vpop.f32.mrf.mxu1 }
0x1104   : > { %13170 = vst [vmem:[#allocation17_spill] sm:$0xff] %v11452_v18 }
0x1108   : > { %v4741_v4 = vpop.f32.mrf.mxu0 }
0x1109   : > { %v11455_v31 = vadd.f32 %v4741_v4, %v4285_v20 }
0x110b   : > { %13171 = vst [vmem:[#allocation41_spill] sm:$0xff] %v11455_v31  ;;  %v4853_v34 = vpop.f32.mrf.mxu1  ;;  %7404 = vmatmul.msk.bf16.gmra.mxu0 %vm13173_vm14, %v11361_v22 }
0x110c   : > { %v11459_v24 = vsel %vm8763_vm2, %v4853_v34, -1e+30 }
0x110d   : > { %4909 = vmax.xlane.f32.xlu1 %v11459_v24 }
0x1110   : > { %v11464_v48 = vpop.f32.mrf.mxu0 }
0x1111   : > { %13174 = vst [vmem:[#allocation18_spill] sm:$0xff] %v11464_v48 }
0x1113   : > { %v4855_v3 = vpop.f32.mrf.mxu1 }
0x1114   : > { %v11468_v52 = vsel %vm8774_vm3, %v4855_v3, -1e+30 }
0x1115   : > { %4911 = vmax.xlane.f32.xlu0 %v11468_v52 }
0x1118   : > { %v5328_v61 = vpop.f32.mrf.mxu0 }
0x1119   : > { %v11473_v23 = vsel %vm8763_vm2, %v5328_v61, -1e+30 }
0x111a   : > { %5384 = vmax.xlane.f32.xlu2 %v11473_v23 }
0x111b   : > { %v4858_v7 = vpop.f32.mrf.mxu1 }
0x111c   : > { %v11477_v22 = vsel %vm8790_vm4, %v4858_v7, -1e+30 }
0x111d   : > { %4913 = vmax.xlane.f32.xlu0 %v11477_v22 }
0x1120   : > { %v5330_v56 = vpop.f32.mrf.mxu0 }
0x1121   : > { %v11483_v33 = vsel %vm8774_vm3, %v5330_v56, -1e+30 }
0x1122   : > { %5386 = vmax.xlane.f32.xlu1 %v11483_v33 }
0x1123   : > { %v4860_v29 = vpop.f32.mrf.mxu1 }
0x1124   : > { %v11488_v41 = vsel %vm8806_vm5, %v4860_v29, -1e+30 }
0x1125   : > { %4915 = vmax.xlane.f32.xlu2 %v11488_v41 }
0x1128   : > { %v5333_v1 = vpop.f32.mrf.mxu0 }
0x1129   : > { %v11493_v38 = vsel %vm8790_vm4, %v5333_v1, -1e+30 }
0x112a   : > { %5388 = vmax.xlane.f32.xlu1 %v11493_v38 }
0x112b   : > { %v4863_v54 = vpop.f32.mrf.mxu1 }
0x112c   : > { %v11498_v57 = vsel %vm8822_vm6, %v4863_v54, -1e+30 }
0x112d   : > { %4917 = vmax.xlane.f32.xlu2 %v11498_v57 }
0x1130   : > { %v5335_v42 = vpop.f32.mrf.mxu0 }
0x1131   : > { %v11503_v8 = vsel %vm8806_vm5, %v5335_v42, -1e+30 }
0x1132   : > { %5390 = vmax.xlane.f32.xlu0 %v11503_v8 }
0x1133   : > { %v4865_v45 = vpop.f32.mrf.mxu1 }
0x1134   : > { %v11508_v44 = vsel %vm8838_vm7, %v4865_v45, -1e+30 }
0x1135   : > { %4919 = vmax.xlane.f32.xlu1 %v11508_v44 }
0x1138   : > { %v5338_v2 = vpop.f32.mrf.mxu0 }
0x1139   : > { %v11513_v28 = vsel %vm8822_vm6, %v5338_v2, -1e+30 }
0x113a   : > { %5392 = vmax.xlane.f32.xlu0 %v11513_v28 }
0x113b   : > { %v4868_v21 = vpop.f32.mrf.mxu1 }
0x113c   : > { %v11518_v25 = vsel %vm8854_vm8, %v4868_v21, -1e+30 }
0x113d   : > { %4921 = vmax.xlane.f32.xlu1 %v11518_v25 }
0x1140   : > { %v5340_v53 = vpop.f32.mrf.mxu0 }
0x1141   : > { %v11523_v58 = vsel %vm8838_vm7, %v5340_v53, -1e+30  ;;  %vm13195_vm7 = vmmov %vm13133_vm9 }
0x1142   : > { %5394 = vmax.xlane.f32.xlu2 %v11523_v58 }
0x1143   : > { %v4870_v46 = vpop.f32.mrf.mxu1 }
0x1144   : > { %v11528_v43 = vsel %vm13112_vm12, %v4870_v46, -1e+30 }
0x1145   : > { %4923 = vmax.xlane.f32.xlu0 %v11528_v43 }
0x1148   : > { %v5343_v20 = vpop.f32.mrf.mxu0 }
0x1149   : > { %v11533_v4 = vsel %vm8854_vm8, %v5343_v20, -1e+30  ;;  %vm13196_vm8 = vmmov %vm13195_vm7 }
0x114a   : > { %5396 = vmax.xlane.f32.xlu2 %v11533_v4 }
0x114b   : > { %v4873_v34 = vpop.f32.mrf.mxu1 }
0x114c   : > { %v11548_v29 = vsel %vm13114_vm11, %v4873_v34, -1e+30 }
0x1150   : > { %v5345_v6 = vpop.f32.mrf.mxu0 }
0x1151   : > { %v11538_v40 = vsel %vm13112_vm12, %v5345_v6, -1e+30  ;;  %vm13197_vm12 = vmmov %vm13195_vm7 }
0x1152   : > { %5398 = vmax.xlane.f32.xlu0 %v11538_v40 }
0x1153   : > { %v4875_v3 = vpop.f32.mrf.mxu1 }
0x1154   : > { %v11543_v7 = vsel %vm13116_vm0, %v4875_v3, -1e+30 }
0x1155   : > { %4927 = vmax.xlane.f32.xlu1 %v11543_v7 }
0x1158   : > { %v5348_v35 = vpop.f32.mrf.mxu0 }
0x1159   : > { %v11552_v49 = vsel %vm13114_vm11, %v5348_v35, -1e+30  ;;  %vm13198_vm11 = vmmov %vm13195_vm7 }
0x115a   : > { %4925 = vmax.xlane.f32.xlu0 %v11548_v29  ;;  %5400 = vmax.xlane.f32.xlu2 %v11552_v49 }
0x115b   : > { %v4878_v3 = vpop.f32.mrf.mxu1 }
0x1160   : > { %v5350_v1 = vpop.f32.mrf.mxu0 }
0x1161   : > { %v11558_v54 = vsel %vm13116_vm0, %v5350_v1, -1e+30  ;;  %vm13199_vm0 = vmmov %vm13195_vm7 }
0x1162   : > { %5402 = vmax.xlane.f32.xlu0 %v11558_v54  ;;  %vm13201_vm15 = vmmov %vm13199_vm0 }
0x1163   : > { %vm13202_vm10 = vmmov %vm13199_vm0 }
0x1164   : > { %vm13203_vm13 = vmmov %vm13199_vm0 }
0x1165   : > { %vm13204_vm9 = vmmov %vm13199_vm0 }
0x1166   : > { %vm13205_vm14 = vmmov %vm13199_vm0 }
0x1168   : > { %v5353_v20 = vpop.f32.mrf.mxu0 }
0x116e   : > { %5536 = vrot.lane.b32.xlu1 %v10799_v12, %s8271_s25  ;;  %s12637_s25 = scalar_lea.vmem %s12688_s3, %s7090_s19 }
0x1180   : > { %v4910_v32 = vpop.xlane.xlu1 %4909 }
0x1181   : > { %v4941_v42 = vsub.f32 %v11459_v24, %v4910_v32 }
0x1183   : > { %v4957_v45 = vmul.f32 1.442695, %v4941_v42 }
0x1185   : > { %8059 = vpow2.f32 %v4957_v45  ;;  %v4880_v45 = vpop.f32.mrf.mxu1 }
0x1188   : > { %v4912_v60 = vpop.xlane.xlu0 %4911 }
0x1189   : > { %v4942_v2 = vsub.f32 %v11468_v52, %v4912_v60 }
0x118b   : > { %v11565_v21 = vpop.eup %8059  ;;  %v4959_v16 = vmul.f32 1.442695, %v4942_v2 }
0x118c   : > { %4989 = vadd.xlane.f32.xlu2 %v11565_v21 }
0x118d   : > { %8061 = vpow2.f32 %v4959_v16  ;;  %v5385_v53 = vpop.xlane.xlu2 %5384 }
0x118e   : > { %v5416_v46 = vsub.f32 %v11473_v23, %v5385_v53  ;;  %v5355_v23 = vpop.f32.mrf.mxu0 }
0x1190   : > { %v4914_v13 = vpop.xlane.xlu0 %4913  ;;  %v5432_v12 = vmul.f32 1.442695, %v5416_v46  ;;  %v11590_v46 = vsel %vm13118_vm1, %v4878_v3, -1e+30  ;;  %v11602_v3 = vsel %vm13118_vm1, %v5353_v20, -1e+30  ;;  %vm13200_vm1 = vmmov %vm13199_vm0 }
0x1191   : > { %v4943_v24 = vsub.f32 %v11477_v22, %v4914_v13 }
0x1192   : > { %8063 = vpow2.f32 %v5432_v12 }
0x1193   : > { %v11569_v34 = vpop.eup %8061  ;;  %v4961_v52 = vmul.f32 1.442695, %v4943_v24  ;;  %v4883_v24 = vpop.f32.mrf.mxu1 }
0x1194   : > { %4991 = vadd.xlane.f32.xlu0 %v11569_v34 }
0x1195   : > { %v5387_v6 = vpop.xlane.xlu1 %5386  ;;  %8065 = vpow2.f32 %v4961_v52 }
0x1196   : > { %v5417_v61 = vsub.f32 %v11483_v33, %v5387_v6  ;;  %v11584_v33 = vpop.f32.mrf.mxu0 }
0x1198   : > { %v11574_v35 = vpop.eup %8063  ;;  %v5434_v56 = vmul.f32 1.442695, %v5417_v61  ;;  %v4916_v12 = vpop.xlane.xlu2 %4915 }
0x1199   : > { %5464 = vadd.xlane.f32.xlu2 %v11574_v35 }
0x119a   : > { %8067 = vpow2.f32 %v5434_v56 }
0x119b   : > { %v11578_v22 = vpop.eup %8065  ;;  %v4885_v53 = vpop.f32.mrf.mxu1 }
0x119d   : > { %v5389_v1 = vpop.xlane.xlu1 %5388 }
0x119e   : > { %v5418_v32 = vsub.f32 %v11493_v38, %v5389_v1  ;;  %v13185_v38 = vld [vmem:[#allocation28_spill] sm:$0xff]  ;;  %v5360_v52 = vpop.f32.mrf.mxu0 }
0x119f   : > { %vm13186_vm2 = vnez %v13185_v38 }
0x11a0   : > { %v11580_v42 = vpop.eup %8067  ;;  %v5436_v60 = vmul.f32 1.442695, %v5418_v32  ;;  %v11594_v13 = vsel %vm13186_vm2, %v4880_v45, -1e+30  ;;  %v11606_v1 = vsel %vm13186_vm2, %v5355_v23, -1e+30  ;;  %v4918_v20 = vpop.xlane.xlu2 %4917  ;;  %vm13206_vm2 = vmmov %vm13199_vm0 }
0x11a1   : > { %4993 = vadd.xlane.f32.xlu2 %v11578_v22  ;;  %5466 = vadd.xlane.f32.xlu0 %v11580_v42  ;;  %v13187_v32 = vld [vmem:[#allocation31_spill] sm:$0xff] }
0x11a2   : > { %8069 = vpow2.f32 %v5436_v60  ;;  %vm13188_vm3 = vnez %v13187_v32  ;;  %v4944_v60 = vsub.f32 %v11488_v41, %v4916_v12 }
0x11a3   : > { %v11610_v45 = vsel %vm13188_vm3, %v5360_v52, -1e+30  ;;  %v11623_v41 = vsel %vm13188_vm3, %v4885_v53, -1e+30  ;;  %v4888_v32 = vpop.f32.mrf.mxu1  ;;  %vm13207_vm3 = vmmov %vm13199_vm0 }
0x11a4   : > { %v4963_v23 = vmul.f32 1.442695, %v4944_v60 }
0x11a5   : > { %v5391_v61 = vpop.xlane.xlu0 %5390 }
0x11a8   : > { %v4920_v2 = vpop.xlane.xlu1 %4919  ;;  %v11586_v16 = vpop.eup %8069 }
0x11a9   : > { %4931 = vmax.xlane.f32.xlu2 %v11594_v13  ;;  %4929 = vmax.xlane.f32.xlu0 %v11590_v46 }
0x11aa   : > { %5468 = vadd.xlane.f32.xlu1 %v11586_v16 }
0x11b0   : > { %v4922_v6 = vpop.xlane.xlu1 %4921 }
0x11b1   : > { %v4947_v56 = vsub.f32 %v11518_v25, %v4922_v6  ;;  %5406 = vmax.xlane.f32.xlu2 %v11606_v1  ;;  %5404 = vmax.xlane.f32.xlu0 %v11602_v3  ;;  %v5419_v25 = vsub.f32 %v11503_v8, %v5391_v61  ;;  %v13189_v6 = vld [vmem:[#allocation30_spill] sm:$0xff]  ;;  %v4945_v8 = vsub.f32 %v11498_v57, %v4918_v20 }
0x11b2   : > { %5410 = vmax.xlane.f32.xlu1 %v11610_v45  ;;  %vm13190_vm4 = vnez %v13189_v6 }
0x11b3   : > { %v4969_v48 = vmul.f32 1.442695, %v4947_v56  ;;  %v5438_v38 = vmul.f32 1.442695, %v5419_v25  ;;  %v11619_v52 = vsel %vm13190_vm4, %v4883_v24, -1e+30  ;;  %v5393_v56 = vpop.xlane.xlu0 %5392 }
0x11b4   : > { %v4965_v61 = vmul.f32 1.442695, %v4945_v8  ;;  %v5420_v20 = vsub.f32 %v11513_v28, %v5393_v56 }
0x11b5   : > { %8071 = vpow2.f32 %v4969_v48  ;;  %v4946_v48 = vsub.f32 %v11508_v44, %v4920_v2  ;;  %v5395_v24 = vpop.xlane.xlu2 %5394 }
0x11b6   : > { %8073 = vpow2.f32 %v4963_v23  ;;  %v13191_v23 = vld [vmem:[#allocation32_spill] sm:$0xff]  ;;  %v5421_v44 = vsub.f32 %v11523_v58, %v5395_v24  ;;  %v5440_v2 = vmul.f32 1.442695, %v5420_v20 }
0x11b7   : > { %8075 = vpow2.f32 %v5438_v38  ;;  %v4967_v60 = vmul.f32 1.442695, %v4946_v48  ;;  %vm13192_vm5 = vnez %v13191_v23 }
0x11b8   : > { %v11638_v57 = vsel %vm13192_vm5, %v4888_v32, -1e+30  ;;  %8077 = vpow2.f32 %v4965_v61  ;;  %v5442_v48 = vmul.f32 1.442695, %v5421_v44 }
0x11b9   : > { %4935 = vmax.xlane.f32.xlu2 %v11623_v41  ;;  %4933 = vmax.xlane.f32.xlu0 %v11619_v52  ;;  %8079 = vpow2.f32 %v4967_v60 }
0x11ba   : > { %8081 = vpow2.f32 %v5440_v2 }
0x11bb   : > { %v11625_v12 = vpop.eup %8071  ;;  %v4924_v38 = vpop.xlane.xlu0 %4923  ;;  %8083 = vpow2.f32 %v5442_v48 }
0x11bc   : > { %5001 = vadd.xlane.f32.xlu1 %v11625_v12  ;;  %v11632_v25 = vpop.eup %8073 }
0x11bd   : > { %v11634_v53 = vpop.eup %8075  ;;  %v5397_v8 = vpop.xlane.xlu2 %5396 }
0x11be   : > { %v11645_v31 = vpop.eup %8077  ;;  %v5422_v58 = vsub.f32 %v11533_v4, %v5397_v8 }
0x11bf   : > { %v11648_v32 = vpop.eup %8079 }
0x11c0   : > { %v5444_v60 = vmul.f32 1.442695, %v5422_v58  ;;  %v11654_v44 = vpop.eup %8081  ;;  %v11670_v58 = vsel %vm13190_vm4, %v11584_v33, -1e+30  ;;  %v5363_v33 = vpop.f32.mrf.mxu0  ;;  %vm13208_vm4 = vmmov %vm13199_vm0 }
0x11c1   : > { %5470 = vadd.xlane.f32.xlu2 %v11634_v53  ;;  %4995 = vadd.xlane.f32.xlu0 %v11632_v25 }
0x11c4   : > { %4937 = vmax.xlane.f32.xlu1 %v11638_v57 }
0x11c5   : > { %v5399_v24 = vpop.xlane.xlu0 %5398 }
0x11c6   : > { %v5423_v4 = vsub.f32 %v11538_v40, %v5399_v24 }
0x11c8   : > { %v4928_v18 = vpop.xlane.xlu1 %4927  ;;  %v5446_v8 = vmul.f32 1.442695, %v5423_v4 }
0x11c9   : > { %v4950_v61 = vsub.f32 %v11543_v7, %v4928_v18  ;;  %4997 = vadd.xlane.f32.xlu0 %v11645_v31  ;;  %4999 = vadd.xlane.f32.xlu2 %v11648_v32  ;;  %v11656_v18 = vpop.eup %8083 }
0x11cb   : > { %v4975_v28 = vmul.f32 1.442695, %v4950_v61  ;;  %v4948_v61 = vsub.f32 %v11528_v43, %v4924_v38 }
0x11cd   : > { %8085 = vpow2.f32 %v4975_v28  ;;  %v5401_v56 = vpop.xlane.xlu2 %5400  ;;  %v4926_v48 = vpop.xlane.xlu0 %4925 }
0x11ce   : > { %v5424_v20 = vsub.f32 %v11552_v49, %v5401_v56  ;;  %8087 = vpow2.f32 %v5444_v60  ;;  %v4971_v49 = vmul.f32 1.442695, %v4948_v61  ;;  %v4949_v40 = vsub.f32 %v11548_v29, %v4926_v48  ;;  %v4890_v60 = vpop.f32.mrf.mxu1  ;;  %v13193_v29 = vld [vmem:[#allocation33_spill] sm:$0xff] }
0x11cf   : > { %vm13194_vm6 = vnez %v13193_v29  ;;  %v11695_v48 = vsel %vm13192_vm5, %v5363_v33, -1e+30  ;;  %vm13209_vm5 = vmmov %vm13199_vm0 }
0x11d0   : > { %v5448_v7 = vmul.f32 1.442695, %v5424_v20  ;;  %v4973_v38 = vmul.f32 1.442695, %v4949_v40  ;;  %v11688_v61 = vsel %vm13194_vm6, %v4890_v60, -1e+30 }
0x11d1   : > { %5472 = vadd.xlane.f32.xlu0 %v11654_v44  ;;  %5474 = vadd.xlane.f32.xlu2 %v11656_v18 }
0x11d2   : > { %8089 = vpow2.f32 %v5448_v7 }
0x11d3   : > { %v11658_v2 = vpop.eup %8085  ;;  %8091 = vpow2.f32 %v4971_v49  ;;  %v5365_v49 = vpop.f32.mrf.mxu0 }
0x11d4   : > { %5007 = vadd.xlane.f32.xlu1 %v11658_v2  ;;  %v11665_v28 = vpop.eup %8087  ;;  %8093 = vpow2.f32 %v5446_v8  ;;  %v11699_v40 = vsel %vm13194_vm6, %v5365_v49, -1e+30  ;;  %vm13210_vm6 = vmmov %vm13199_vm0 }
0x11d5   : > { %8095 = vpow2.f32 %v4973_v38  ;;  %v5403_v20 = vpop.xlane.xlu0 %5402 }
0x11d6   : > { %v5425_v4 = vsub.f32 %v11558_v54, %v5403_v20 }
0x11d8   : > { %v11672_v43 = vpop.eup %8089  ;;  %v5450_v8 = vmul.f32 1.442695, %v5425_v4 }
0x11d9   : > { %5476 = vadd.xlane.f32.xlu0 %v11665_v28  ;;  %5408 = vmax.xlane.f32.xlu2 %v11670_v58  ;;  %v11678_v56 = vpop.eup %8091 }
0x11da   : > { %v11680_v6 = vpop.eup %8093  ;;  %8097 = vpow2.f32 %v5450_v8 }
0x11db   : > { %v11684_v7 = vpop.eup %8095 }
0x11dc   : > { %5480 = vadd.xlane.f32.xlu1 %v11672_v43 }
0x11e0   : > { %v5537_v24 = vpop.permute.xlu1 %5536  ;;  %v11703_v38 = vpop.eup %8097 }
0x11e1   : > { %5567 = vmatpush.bf16.msra.mxu1 %v5537_v24  ;;  %5003 = vadd.xlane.f32.xlu0 %v11678_v56 }
0x11e2   : > { %5478 = vadd.xlane.f32.xlu2 %v11680_v6 }
0x11e9   : > { %4939 = vmax.xlane.f32.xlu0 %v11688_v61 }
0x11ea   : > { %5005 = vadd.xlane.f32.xlu2 %v11684_v7 }
0x11f1   : > { %5412 = vmax.xlane.f32.xlu0 %v11695_v48 }
0x11f2   : > { %5414 = vmax.xlane.f32.xlu2 %v11699_v40 }
0x11f9   : > { %5482 = vadd.xlane.f32.xlu0 %v11703_v38 }
0x11ff   : > { %v4990_v54 = vpop.xlane.xlu2 %4989 }
0x1200   : > { %8099 = vrcp.f32 %v4990_v54 }
0x1206   : > { %v8100_v23 = vpop.eup %8099 }
0x1207   : > { %v4992_v24 = vpop.xlane.xlu0 %4991  ;;  %v5037_v20 = vmul.f32 %v8100_v23, %v11565_v21 }
0x1208   : > { %8101 = vrcp.f32 %v4992_v24 }
0x120c   : > { %v5465_v60 = vpop.xlane.xlu2 %5464 }
0x120d   : > { %8103 = vrcp.f32 %v5465_v60 }
0x120e   : > { %v8102_v33 = vpop.eup %8101 }
0x120f   : > { %v5038_v29 = vmul.f32 %v8102_v33, %v11569_v34 }
0x1211   : > { %v5053_v4 = vpack.c.bf16 %v5038_v29, %v5037_v20 }
0x1213   : > { %5093 = vmatmul.bf16.vlgmr.msra.gmra.mxu2 %v5053_v4  ;;  %v8104_v50 = vpop.eup %8103 }
0x1214   : > { %v4994_v49 = vpop.xlane.xlu2 %4993  ;;  %v5467_v8 = vpop.xlane.xlu0 %5466  ;;  %v5512_v54 = vmul.f32 %v8104_v50, %v11574_v35 }
0x1215   : > { %8105 = vrcp.f32 %v5467_v8 }
0x121b   : > { %v8106_v59 = vpop.eup %8105 }
0x121c   : > { %v4932_v17 = vpop.xlane.xlu2 %4931  ;;  %v4930_v36 = vpop.xlane.xlu0 %4929  ;;  %v5513_v24 = vmul.f32 %v8106_v59, %v11580_v42 }
0x121d   : > { %v4952_v51 = vsub.f32 %v11594_v13, %v4932_v17  ;;  %v4951_v21 = vsub.f32 %v11590_v46, %v4930_v36  ;;  %v5469_v23 = vpop.xlane.xlu1 %5468 }
0x121e   : > { %v5528_v34 = vpack.c.bf16 %v5513_v24, %v5512_v54 }
0x121f   : > { %v4979_v33 = vmul.f32 1.442695, %v4952_v51  ;;  %v4977_v20 = vmul.f32 1.442695, %v4951_v21 }
0x1220   : > { %5568 = vmatmul.bf16.vlgmr.msra.gmra.mxu1 %v5528_v34 }
0x1221   : > { %8107 = vpow2.f32 %v4979_v33 }
0x1222   : > { %8109 = vpow2.f32 %v4977_v20 }
0x1224   : > { %v5407_v60 = vpop.xlane.xlu2 %5406  ;;  %v5405_v29 = vpop.xlane.xlu0 %5404 }
0x1225   : > { %v5427_v4 = vsub.f32 %v11606_v1, %v5407_v60  ;;  %v5426_v8 = vsub.f32 %v11602_v3, %v5405_v29  ;;  %v5411_v50 = vpop.xlane.xlu1 %5410 }
0x1226   : > { %v5429_v34 = vsub.f32 %v11610_v45, %v5411_v50 }
0x1227   : > { %v11714_v35 = vpop.eup %8107  ;;  %v5454_v59 = vmul.f32 1.442695, %v5427_v4  ;;  %v5452_v17 = vmul.f32 1.442695, %v5426_v8 }
0x1228   : > { %v11716_v42 = vpop.eup %8109  ;;  %5011 = vadd.xlane.f32.xlu1 %v11714_v35  ;;  %v5458_v33 = vmul.f32 1.442695, %v5429_v34 }
0x1229   : > { %8111 = vpow2.f32 %v5454_v59  ;;  %5009 = vadd.xlane.f32.xlu2 %v11716_v42 }
0x122a   : > { %8113 = vpow2.f32 %v5452_v17 }
0x122c   : > { %v4936_v51 = vpop.xlane.xlu2 %4935  ;;  %v4934_v36 = vpop.xlane.xlu0 %4933 }
0x122d   : > { %v4954_v46 = vsub.f32 %v11623_v41, %v4936_v51  ;;  %v4953_v13 = vsub.f32 %v11619_v52, %v4934_v36 }
0x122f   : > { %v11722_v3 = vpop.xlane.xlu1 %5001  ;;  %v11724_v1 = vpop.eup %8111  ;;  %v4983_v54 = vmul.f32 1.442695, %v4954_v46  ;;  %v4981_v24 = vmul.f32 1.442695, %v4953_v13 }
0x1230   : > { %v11726_v21 = vpop.eup %8113 }
0x1231   : > { %8115 = vpow2.f32 %v4983_v54  ;;  %5484 = vadd.xlane.f32.xlu0 %v11726_v21  ;;  %5486 = vadd.xlane.f32.xlu2 %v11724_v1 }
0x1232   : > { %8117 = vpow2.f32 %v4981_v24 }
0x1233   : > { %8119 = vrcp.f32 %v5469_v23 }
0x1234   : > { %8121 = vrcp.f32 %v4994_v49  ;;  %v5471_v41 = vpop.xlane.xlu2 %5470  ;;  %v4996_v52 = vpop.xlane.xlu0 %4995 }
0x1235   : > { %8123 = vrcp.f32 %v5471_v41 }
0x1236   : > { %8125 = vrcp.f32 %v4996_v52 }
0x1237   : > { %v4938_v20 = vpop.xlane.xlu1 %4937  ;;  %v11732_v29 = vpop.eup %8115  ;;  %8127 = vpow2.f32 %v5458_v33 }
0x1238   : > { %v4955_v60 = vsub.f32 %v11638_v57, %v4938_v20  ;;  %v11734_v4 = vpop.eup %8117 }
0x1239   : > { %v8120_v8 = vpop.eup %8119  ;;  %5015 = vadd.xlane.f32.xlu0 %v11732_v29  ;;  %5013 = vadd.xlane.f32.xlu1 %v11734_v4 }
0x123a   : > { %v4985_v45 = vmul.f32 1.442695, %v4955_v60  ;;  %v8122_v49 = vpop.eup %8121  ;;  %v5514_v51 = vmul.f32 %v8120_v8, %v11586_v16 }
0x123b   : > { %v8124_v23 = vpop.eup %8123  ;;  %v5039_v36 = vmul.f32 %v8122_v49, %v11578_v22 }
0x123c   : > { %8129 = vpow2.f32 %v4985_v45  ;;  %v8126_v50 = vpop.eup %8125  ;;  %v4998_v59 = vpop.xlane.xlu0 %4997  ;;  %v5515_v57 = vmul.f32 %v8124_v23, %v11634_v53 }
0x123d   : > { %v5000_v17 = vpop.xlane.xlu2 %4999  ;;  %v5040_v46 = vmul.f32 %v8126_v50, %v11632_v25  ;;  %v11742_v54 = vpop.eup %8127  ;;  %8131 = vrcp.f32 %v4998_v59 }
0x123e   : > { %v5529_v13 = vpack.c.bf16 %v5515_v57, %v5514_v51  ;;  %8133 = vrcp.f32 %v5000_v17 }
0x123f   : > { %v5054_v24 = vpack.c.bf16 %v5040_v46, %v5039_v36 }
0x1240   : > { %5573 = vmatmul.bf16.gmra.mxu1 %v5529_v13 }
0x1241   : > { %5098 = vmatmul.bf16.gmra.mxu2 %v5054_v24  ;;  %5490 = vadd.xlane.f32.xlu1 %v11742_v54 }
0x1242   : > { %v11744_v34 = vpop.eup %8129 }
0x1243   : > { %5017 = vadd.xlane.f32.xlu0 %v11744_v34  ;;  %v8132_v22 = vpop.eup %8131 }
0x1244   : > { %v5473_v16 = vpop.xlane.xlu0 %5472  ;;  %v8134_v25 = vpop.eup %8133  ;;  %v5041_v52 = vmul.f32 %v8132_v22, %v11645_v31 }
0x1245   : > { %v5475_v53 = vpop.xlane.xlu2 %5474  ;;  %8135 = vrcp.f32 %v5473_v16  ;;  %v5042_v33 = vmul.f32 %v8134_v25, %v11648_v32 }
0x1246   : > { %8137 = vrcp.f32 %v5475_v53 }
0x1247   : > { %v5055_v59 = vpack.c.bf16 %v5042_v33, %v5041_v52  ;;  %v5008_v22 = vpop.xlane.xlu1 %5007 }
0x124b   : > { %v8136_v41 = vpop.eup %8135 }
0x124c   : > { %v8138_v20 = vpop.eup %8137  ;;  %v5477_v60 = vpop.xlane.xlu0 %5476  ;;  %v5516_v8 = vmul.f32 %v8136_v41, %v11654_v44 }
0x124d   : > { %v5409_v45 = vpop.xlane.xlu2 %5408  ;;  %v5517_v23 = vmul.f32 %v8138_v20, %v11656_v18 }
0x124e   : > { %v5428_v49 = vsub.f32 %v11670_v58, %v5409_v45 }
0x124f   : > { %v5530_v17 = vpack.c.bf16 %v5517_v23, %v5516_v8  ;;  %v5481_v45 = vpop.xlane.xlu1 %5480 }
0x1250   : > { %v5456_v50 = vmul.f32 1.442695, %v5428_v49 }
0x1251   : > { %5103 = vmatmul.bf16.gmra.mxu2 %v5055_v59  ;;  %5578 = vmatmul.bf16.gmra.mxu1 %v5530_v17 }
0x1252   : > { %8139 = vpow2.f32 %v5456_v50 }
0x1253   : > { %8141 = vrcp.f32 %v11722_v3 }
0x1254   : > { %8143 = vrcp.f32 %v5477_v60  ;;  %v5004_v31 = vpop.xlane.xlu0 %5003 }
0x1255   : > { %v5479_v32 = vpop.xlane.xlu2 %5478  ;;  %8145 = vrcp.f32 %v5004_v31 }
0x1256   : > { %8147 = vrcp.f32 %v5479_v32 }
0x1258   : > { %v11754_v51 = vpop.eup %8139 }
0x1259   : > { %5488 = vadd.xlane.f32.xlu2 %v11754_v51  ;;  %v8142_v44 = vpop.eup %8141 }
0x125a   : > { %v8144_v58 = vpop.eup %8143  ;;  %v5043_v13 = vmul.f32 %v8142_v44, %v11625_v12 }
0x125b   : > { %v8146_v18 = vpop.eup %8145  ;;  %v5518_v16 = vmul.f32 %v8144_v58, %v11665_v28  ;;  %v7558_v58 = vld [vmem:[%s12686_s1 + $0x1f8] sm:$0xf0] }
0x125c   : > { %v8148_v57 = vpop.eup %8147  ;;  %v4940_v36 = vpop.xlane.xlu0 %4939  ;;  %v5044_v24 = vmul.f32 %v8146_v18, %v11678_v56 }
0x125d   : > { %v5006_v46 = vpop.xlane.xlu2 %5005  ;;  %v4956_v3 = vsub.f32 %v11688_v61, %v4940_v36  ;;  %v5519_v53 = vmul.f32 %v8148_v57, %v11680_v6  ;;  %v7407_v36 = vld [vmem:[%s12686_s1 + $0x204] sm:$0xf] }
0x125e   : > { %v5056_v25 = vpack.c.bf16 %v5044_v24, %v5043_v13 }
0x125f   : > { %v4987_v41 = vmul.f32 1.442695, %v4956_v3  ;;  %v5531_v52 = vpack.c.bf16 %v5519_v53, %v5518_v16 }
0x1261   : > { %8149 = vpow2.f32 %v4987_v41  ;;  %5108 = vmatmul.bf16.gmra.mxu2 %v5056_v25  ;;  %5583 = vmatmul.bf16.gmra.mxu1 %v5531_v52 }
0x1262   : > { %8151 = vrcp.f32 %v5006_v46 }
0x1263   : > { %8153 = vrcp.f32 %v5008_v22 }
0x1264   : > { %v5413_v33 = vpop.xlane.xlu0 %5412 }
0x1265   : > { %v5415_v20 = vpop.xlane.xlu2 %5414  ;;  %v5430_v12 = vsub.f32 %v11695_v48, %v5413_v33 }
0x1266   : > { %v5431_v56 = vsub.f32 %v11699_v40, %v5415_v20 }
0x1267   : > { %v11764_v61 = vpop.eup %8149  ;;  %v5460_v28 = vmul.f32 1.442695, %v5430_v12 }
0x1268   : > { %v5462_v60 = vmul.f32 1.442695, %v5431_v56  ;;  %v8152_v6 = vpop.eup %8151  ;;  %5019 = vadd.xlane.f32.xlu2 %v11764_v61 }
0x1269   : > { %8155 = vpow2.f32 %v5460_v28  ;;  %v8154_v8 = vpop.eup %8153  ;;  %v5045_v49 = vmul.f32 %v8152_v6, %v11684_v7 }
0x126a   : > { %8157 = vpow2.f32 %v5462_v60  ;;  %v5046_v48 = vmul.f32 %v8154_v8, %v11658_v2  ;;  %v7387_v2 = vld [vmem:[%s12686_s1 + $0x1f4] sm:$0xf] }
0x126b   : > { %8159 = vrcp.f32 %v5481_v45  ;;  %v7388_v18 = vor.u32 %v7558_v58, %v7387_v2 }
0x126c   : > { %v5483_v23 = vpop.xlane.xlu0 %5482  ;;  %v5057_v40 = vpack.c.bf16 %v5046_v48, %v5045_v49 }
0x126d   : > { %8161 = vrcp.f32 %v5483_v23  ;;  %5179 = vmatpush.bf16.msrb.mxu3 %v7388_v18 }
0x126f   : > { %v11769_v50 = vpop.eup %8155 }
0x1270   : > { %v11771_v59 = vpop.eup %8157  ;;  %5492 = vadd.xlane.f32.xlu1 %v11769_v50 }
0x1271   : > { %v8160_v17 = vpop.eup %8159  ;;  %5494 = vadd.xlane.f32.xlu0 %v11771_v59  ;;  %5113 = vmatmul.bf16.gmra.mxu2 %v5057_v40 }
0x1272   : > { %v5520_v32 = vmul.f32 %v8160_v17, %v11672_v43  ;;  %v7559_v43 = vld [vmem:[%s12686_s1 + $0x208] sm:$0xf0] }
0x1273   : > { %v8162_v31 = vpop.eup %8161 }
0x1274   : > { %v5521_v7 = vmul.f32 %v8162_v31, %v11703_v38  ;;  %v7408_v38 = vor.u32 %v7559_v43, %v7407_v36 }
0x1276   : > { %v5532_v44 = vpack.c.bf16 %v5521_v7, %v5520_v32  ;;  %5654 = vmatpush.bf16.msrb.mxu2 %v7408_v38 }
0x1278   : > { %5588 = vmatmul.bf16.gmra.mxu1 %v5532_v44 }
0x1296   : > { %v5094_v57 = vpop.f32.mrf.mxu2 }
0x129b   : > { %v5012_v46 = vpop.xlane.xlu1 %5011 }
0x129c   : > { %v5010_v13 = vpop.xlane.xlu2 %5009  ;;  %8163 = vrcp.f32 %v5012_v46 }
0x129d   : > { %8165 = vrcp.f32 %v5010_v13  ;;  %v5569_v58 = vpop.f32.mrf.mxu1 }
0x129e   : > { %v5096_v24 = vpop.f32.mrf.mxu2 }
0x129f   : > { %v5134_v3 = vpack.c.bf16 %v5096_v24, %v5094_v57 }
0x12a1   : > { %7389 = vmatmul.msk.bf16.vlgmr.msrb.gmra.mxu3 %vm13195_vm7, %v5134_v3  ;;  %vm13212_vm7 = vcmask 523264  }
0x12a2   : > { %v8164_v16 = vpop.eup %8163 }
0x12a3   : > { %v8166_v53 = vpop.eup %8165  ;;  %v5048_v22 = vmul.f32 %v8164_v16, %v11714_v35 }
0x12a4   : > { %v5485_v25 = vpop.xlane.xlu0 %5484  ;;  %v5487_v41 = vpop.xlane.xlu2 %5486  ;;  %v5047_v52 = vmul.f32 %v8166_v53, %v11716_v42 }
0x12a5   : > { %8167 = vrcp.f32 %v5485_v25  ;;  %v5571_v46 = vpop.f32.mrf.mxu1 }
0x12a6   : > { %8169 = vrcp.f32 %v5487_v41  ;;  %v5058_v33 = vpack.c.bf16 %v5048_v22, %v5047_v52 }
0x12a8   : > { %5118 = vmatmul.bf16.gmra.mxu2 %v5058_v33 }
0x12ab   : > { %v8168_v20 = vpop.eup %8167 }
0x12ac   : > { %v8170_v12 = vpop.eup %8169  ;;  %v5016_v56 = vpop.xlane.xlu0 %5015  ;;  %v5522_v60 = vmul.f32 %v8168_v20, %v11726_v21 }
0x12ad   : > { %v5014_v28 = vpop.xlane.xlu1 %5013  ;;  %8171 = vrcp.f32 %v5016_v56  ;;  %v5523_v6 = vmul.f32 %v8170_v12, %v11724_v1 }
0x12ae   : > { %8173 = vrcp.f32 %v5014_v28 }
0x12af   : > { %v5533_v45 = vpack.c.bf16 %v5523_v6, %v5522_v60 }
0x12b1   : > { %5593 = vmatmul.bf16.gmra.mxu1 %v5533_v45 }
0x12b3   : > { %v8172_v35 = vpop.eup %8171 }
0x12b4   : > { %v8174_v8 = vpop.eup %8173  ;;  %v5050_v42 = vmul.f32 %v8172_v35, %v11732_v29 }
0x12b5   : > { %v5049_v49 = vmul.f32 %v8174_v8, %v11734_v4  ;;  %v5491_v40 = vpop.xlane.xlu1 %5490 }
0x12b6   : > { %8175 = vrcp.f32 %v5491_v40  ;;  %v5018_v4 = vpop.xlane.xlu0 %5017 }
0x12b7   : > { %v5059_v23 = vpack.c.bf16 %v5050_v42, %v5049_v49 }
0x12b9   : > { %5123 = vmatmul.bf16.gmra.mxu2 %v5059_v23 }
0x12bc   : > { %v8176_v1 = vpop.eup %8175 }
0x12bd   : > { %v5525_v44 = vmul.f32 %v8176_v1, %v11742_v54  ;;  %v5574_v41 = vpop.f32.mrf.mxu1 }
0x12c4   : > { %v5099_v48 = vpop.f32.mrf.mxu2 }
0x12c5   : > { %v5576_v56 = vpop.f32.mrf.mxu1 }
0x12cc   : > { %v5489_v17 = vpop.xlane.xlu2 %5488  ;;  %v5101_v31 = vpop.f32.mrf.mxu2 }
0x12cd   : > { %8177 = vrcp.f32 %v5489_v17  ;;  %v5135_v21 = vpack.c.bf16 %v5101_v31, %v5099_v48 }
0x12ce   : > { %8179 = vrcp.f32 %v5018_v4  ;;  %v5579_v6 = vpop.f32.mrf.mxu1 }
0x12cf   : > { %7390 = vmatmul.msk.bf16.gmra.mxu3 %vm13196_vm8, %v5135_v21  ;;  %vm13214_vm8 = vmmov %vm13212_vm7 }
0x12d3   : > { %v8178_v32 = vpop.eup %8177 }
0x12d4   : > { %v5524_v7 = vmul.f32 %v8178_v32, %v11754_v51  ;;  %v5104_v29 = vpop.f32.mrf.mxu2  ;;  %v8180_v43 = vpop.eup %8179 }
0x12d5   : > { %v5051_v51 = vmul.f32 %v8180_v43, %v11744_v34 }
0x12d6   : > { %v5534_v2 = vpack.c.bf16 %v5525_v44, %v5524_v7  ;;  %v5581_v45 = vpop.f32.mrf.mxu1 }
0x12d7   : > { %v5611_v35 = vpack.c.bf16 %v5581_v45, %v5579_v6  ;;  %v4274_v6 = vadd.f32 %v11379_v14, %v11371_v19 }
0x12d8   : > { %5598 = vmatmul.bf16.gmra.mxu1 %v5534_v2 }
0x12d9   : > { %v4749_v45 = vadd.f32 %v11387_v9, %v4274_v6 }
0x12db   : > { %v5020_v18 = vpop.xlane.xlu2 %5019 }
0x12dc   : > { %v5106_v57 = vpop.f32.mrf.mxu2  ;;  %8181 = vrcp.f32 %v5020_v18 }
0x12dd   : > { %v5136_v36 = vpack.c.bf16 %v5106_v57, %v5104_v29 }
0x12df   : > { %7391 = vmatmul.msk.bf16.gmra.mxu3 %vm13197_vm12, %v5136_v36  ;;  %vm13216_vm12 = vmmov %vm13212_vm7 }
0x12e2   : > { %v8182_v38 = vpop.eup %8181 }
0x12e3   : > { %v5493_v13 = vpop.xlane.xlu1 %5492  ;;  %v5052_v54 = vmul.f32 %v8182_v38, %v11764_v61  ;;  %v5609_v61 = vpack.c.bf16 %v5571_v46, %v5569_v58 }
0x12e4   : > { %v5109_v24 = vpop.f32.mrf.mxu2  ;;  %v5495_v3 = vpop.xlane.xlu0 %5494  ;;  %8183 = vrcp.f32 %v5493_v13 }
0x12e5   : > { %8185 = vrcp.f32 %v5495_v3  ;;  %v5060_v16 = vpack.c.bf16 %v5052_v54, %v5051_v51 }
0x12e7   : > { %5128 = vmatmul.bf16.gmra.mxu2 %v5060_v16  ;;  %v4272_v16 = vadd.f32 %v11366_v5, %v11371_v19 }
0x12ea   : > { %v8184_v53 = vpop.eup %8183 }
0x12eb   : > { %v8186_v22 = vpop.eup %8185  ;;  %v5526_v25 = vmul.f32 %v8184_v53, %v11769_v50  ;;  %v5610_v50 = vpack.c.bf16 %v5576_v56, %v5574_v41  ;;  %v13211_v53 = vld [vmem:[#allocation3_spill] sm:$0xff]  ;;  %v4747_v41 = vadd.f32 %v11377_v30, %v4272_v16  ;;  %v13215_v30 = vld [vmem:[#allocation5_spill] sm:$0xff] }
0x12ec   : > { %v5111_v52 = vpop.f32.mrf.mxu2  ;;  %v5527_v33 = vmul.f32 %v8186_v22, %v11771_v59  ;;  %v5584_v59 = vpop.f32.mrf.mxu1 }
0x12ed   : > { %v5137_v20 = vpack.c.bf16 %v5111_v52, %v5109_v24 }
0x12ee   : > { %v5535_v12 = vpack.c.bf16 %v5527_v33, %v5526_v25 }
0x12ef   : > { %7392 = vmatmul.msk.bf16.gmra.mxu3 %vm13198_vm11, %v5137_v20  ;;  %vm13218_vm11 = vmmov %vm13212_vm7 }
0x12f0   : > { %5603 = vmatmul.bf16.gmra.mxu1 %v5535_v12 }
0x12f4   : > { %v5114_v34 = vpop.f32.mrf.mxu2  ;;  %v5586_v8 = vpop.f32.mrf.mxu1 }
0x12f5   : > { %v5612_v42 = vpack.c.bf16 %v5586_v8, %v5584_v59 }
0x12f7   : > { %7409 = vmatmul.msk.bf16.vlgmr.msrb.gmra.mxu2 %vm13199_vm0, %v5609_v61  ;;  %vm13220_vm0 = vmmov %vm13212_vm7 }
0x12fc   : > { %v5116_v28 = vpop.f32.mrf.mxu2  ;;  %v5589_v49 = vpop.f32.mrf.mxu1 }
0x12fd   : > { %v5138_v60 = vpack.c.bf16 %v5116_v28, %v5114_v34  ;;  %v13213_v34 = vld [vmem:[#allocation4_spill] sm:$0xff] }
0x12ff   : > { %7393 = vmatmul.msk.bf16.gmra.mxu3 %vm13200_vm1, %v5138_v60  ;;  %vm13222_vm1 = vmmov %vm13220_vm0 }
0x1304   : > { %v5591_v48 = vpop.f32.mrf.mxu1 }
0x1305   : > { %v5613_v31 = vpack.c.bf16 %v5591_v48, %v5589_v49 }
0x1307   : > { %7410 = vmatmul.msk.bf16.gmra.mxu2 %vm13201_vm15, %v5610_v50  ;;  %vm13224_vm15 = vmmov %vm13220_vm0 }
0x1317   : > { %7411 = vmatmul.msk.bf16.gmra.mxu2 %vm13202_vm10, %v5611_v35  ;;  %vm13226_vm10 = vmmov %vm13220_vm0 }
0x1324   : > { %v5181_v57 = vpop.f32.mrf.mxu3 }
0x1325   : > { %v5221_v54 = vadd.f32 %v5181_v57, %v11375_v26 }
0x1327   : > { %7412 = vmatmul.msk.bf16.gmra.mxu2 %vm13203_vm13, %v5612_v42  ;;  %vm13228_vm13 = vmmov %vm13220_vm0 }
0x132b   : > { %v5119_v23 = vpop.f32.mrf.mxu2 }
0x132c   : > { %v5183_v13 = vpop.f32.mrf.mxu3 }
0x132d   : > { %v5222_v33 = vadd.f32 %v5183_v13, %v4747_v41 }
0x132e   : > { %v5594_v21 = vpop.f32.mrf.mxu1 }
0x1333   : > { %v5121_v40 = vpop.f32.mrf.mxu2 }
0x1334   : > { %v5139_v17 = vpack.c.bf16 %v5121_v40, %v5119_v23  ;;  %v13217_v23 = vld [vmem:[#allocation6_spill] sm:$0xff] }
0x1336   : > { %7394 = vmatmul.msk.bf16.gmra.mxu3 %vm13204_vm9, %v5139_v17  ;;  %v5596_v32 = vpop.f32.mrf.mxu1  ;;  %vm13229_vm9 = vmmov %vm13220_vm0 }
0x1337   : > { %7413 = vmatmul.msk.bf16.gmra.mxu2 %vm13205_vm14, %v5613_v31  ;;  %v5614_v44 = vpack.c.bf16 %v5596_v32, %v5594_v21  ;;  %v4276_v31 = vadd.f32 %v11393_v11, %v11371_v19  ;;  %v13219_v21 = vld [vmem:[#allocation7_spill] sm:$0xff]  ;;  %vm13231_vm14 = vmmov %vm13220_vm0 }
0x1339   : > { %v4751_v32 = vadd.f32 %v11398_v39, %v4276_v31  ;;  %v13223_v39 = vld [vmem:[#allocation9_spill] sm:$0xff]  ;;  %v13233_v31 = vld [vmem:[#allocation34_spill] sm:$0xff] }
0x133c   : > { %v5124_v1 = vpop.f32.mrf.mxu2 }
0x1344   : > { %v5126_v7 = vpop.f32.mrf.mxu2 }
0x1345   : > { %v5140_v29 = vpack.c.bf16 %v5126_v7, %v5124_v1 }
0x1347   : > { %7395 = vmatmul.msk.bf16.gmra.mxu3 %vm13206_vm2, %v5140_v29  ;;  %7414 = vmatmul.msk.bf16.gmra.mxu2 %vm13207_vm3, %v5614_v44  ;;  %vm13232_vm2 = vmmov %vm13220_vm0 }
0x1348   : > { %vm13234_vm3 = vmmov %vm13220_vm0 }
0x1352   : > { %v5186_v25 = vpop.f32.mrf.mxu3 }
0x1353   : > { %v5223_v28 = vadd.f32 %v5186_v25, %v11385_v63 }
0x1355   : > { %v5599_v2 = vpop.f32.mrf.mxu1 }
0x135a   : > { %v5188_v56 = vpop.f32.mrf.mxu3 }
0x135b   : > { %v5224_v35 = vadd.f32 %v5188_v56, %v4749_v45  ;;  %v13227_v56 = vld [vmem:[#allocation10_spill] sm:$0xff] }
0x135d   : > { %v5601_v4 = vpop.f32.mrf.mxu1 }
0x135e   : > { %v5615_v58 = vpack.c.bf16 %v5601_v4, %v5599_v2  ;;  %v13221_v4 = vld [vmem:[#allocation8_spill] sm:$0xff] }
0x1360   : > { %7415 = vmatmul.msk.bf16.gmra.mxu2 %vm13208_vm4, %v5615_v58  ;;  %vm13235_vm4 = vmmov %vm13220_vm0 }
0x1362   : > { %v5191_v8 = vpop.f32.mrf.mxu3 }
0x1363   : > { %v5225_v14 = vadd.f32 %v5191_v8, %v11396_v62  ;;  %v13230_v8 = vld [vmem:[#allocation11_spill] sm:$0xff] }
0x136a   : > { %v5129_v18 = vpop.f32.mrf.mxu2  ;;  %v5193_v9 = vpop.f32.mrf.mxu3 }
0x136b   : > { %v5226_v44 = vadd.f32 %v5193_v9, %v4751_v32 }
0x136d   : > { %v5604_v36 = vpop.f32.mrf.mxu1 }
0x1372   : > { %v5131_v43 = vpop.f32.mrf.mxu2  ;;  %v5196_v58 = vpop.f32.mrf.mxu3 }
0x1373   : > { %v5141_v38 = vpack.c.bf16 %v5131_v43, %v5129_v18  ;;  %v5227_v11 = vadd.f32 %v5196_v58, %v11405_v0 }
0x1375   : > { %v5606_v46 = vpop.f32.mrf.mxu1  ;;  %7396 = vmatmul.msk.bf16.gmra.mxu3 %vm13209_vm5, %v5141_v38  ;;  %vm13239_vm5 = vmmov %vm13220_vm0 }
0x1376   : > { %v5616_v51 = vpack.c.bf16 %v5606_v46, %v5604_v36 }
0x1378   : > { %7416 = vmatmul.msk.bf16.gmra.mxu2 %vm13210_vm6, %v5616_v51  ;;  %vm13240_vm6 = vmmov %vm13220_vm0 }
0x137a   : > { %v5656_v24 = vpop.f32.mrf.mxu2  ;;  %v5198_v46 = vpop.f32.mrf.mxu3 }
0x137b   : > { %v5696_v3 = vadd.f32 %v5656_v24, %v5221_v54  ;;  %v4278_v24 = vadd.f32 %v11407_v37, %v11371_v19 }
0x137d   : > { %v5712_v22 = vadd.f32 %v5696_v3, %v13211_v53  ;;  %v13225_v3 = vld [vmem:[#allocation2_spill] sm:$0xff]  ;;  %v4753_v0 = vadd.f32 %v11409_v47, %v4278_v24 }
0x137f   : > { %v5728_v52 = vsel %vm13212_vm7, %v5712_v22, 0.0  ;;  %v5228_v41 = vadd.f32 %v5198_v46, %v4753_v0  ;;  %vm13243_vm7 = vmmov %vm13220_vm0 }
0x1380   : > { %5729 = vadd.xlane.f32.xlu2 %v5728_v52 }
0x1382   : > { %v5658_v20 = vpop.f32.mrf.mxu2  ;;  %v5201_v51 = vpop.f32.mrf.mxu3 }
0x1383   : > { %v5697_v12 = vadd.f32 %v5658_v20, %v5222_v33  ;;  %v5229_v47 = vadd.f32 %v5201_v51, %v11416_v27 }
0x1385   : > { %v5713_v61 = vadd.f32 %v5697_v12, %v13213_v34 }
0x1387   : > { %v5731_v26 = vsel %vm13214_vm8, %v5713_v61, 0.0  ;;  %vm13244_vm8 = vmmov %vm13220_vm0 }
0x1388   : > { %5732 = vadd.xlane.f32.xlu1 %v5731_v26 }
0x138a   : > { %v5661_v5 = vpop.f32.mrf.mxu2  ;;  %v5203_v26 = vpop.f32.mrf.mxu3 }
0x138b   : > { %v5698_v60 = vadd.f32 %v5661_v5, %v5223_v28 }
0x138d   : > { %v11829_v50 = vadd.f32 %v5698_v60, %v13215_v30 }
0x138f   : > { %v5734_v59 = vsel %vm13216_vm12, %v11829_v50, 0.0  ;;  %vm13248_vm12 = vmmov %vm13220_vm0 }
0x1390   : > { %5735 = vadd.xlane.f32.xlu0 %v5734_v59 }
0x1392   : > { %v5663_v42 = vpop.f32.mrf.mxu2 }
0x1393   : > { %v5699_v49 = vadd.f32 %v5663_v42, %v5224_v35 }
0x1395   : > { %v11835_v63 = vadd.f32 %v5699_v49, %v13217_v23 }
0x1397   : > { %v5737_v48 = vsel %vm13218_vm11, %v11835_v63, 0.0  ;;  %vm13249_vm11 = vmmov %vm13220_vm0 }
0x1398   : > { %5738 = vadd.xlane.f32.xlu2 %v5737_v48 }
0x139a   : > { %v5666_v40 = vpop.f32.mrf.mxu2 }
0x139b   : > { %v5700_v17 = vadd.f32 %v5666_v40, %v5225_v14 }
0x139d   : > { %v11843_v1 = vadd.f32 %v5700_v17, %v13219_v21 }
0x139f   : > { %v5740_v7 = vsel %vm13220_vm0, %v11843_v1, 0.0 }
0x13a0   : > { %5741 = vadd.xlane.f32.xlu1 %v5740_v7 }
0x13a2   : > { %v5668_v29 = vpop.f32.mrf.mxu2 }
0x13a3   : > { %v5701_v2 = vadd.f32 %v5668_v29, %v5226_v44 }
0x13a5   : > { %v11849_v62 = vadd.f32 %v5701_v2, %v13221_v4 }
0x13a7   : > { %v5743_v18 = vsel %vm13222_vm1, %v11849_v62, 0.0  ;;  %vm13253_vm1 = vmmov %vm13220_vm0 }
0x13a8   : > { %5744 = vadd.xlane.f32.xlu0 %v5743_v18  ;;  %v13236_v18 = vld [vmem:[#allocation15_spill] sm:$0xff] }
0x13aa   : > { %v5671_v57 = vpop.f32.mrf.mxu2 }
0x13ab   : > { %v5702_v36 = vadd.f32 %v5671_v57, %v5227_v11  ;;  %v4282_v11 = vadd.f32 %v13236_v18, %v11371_v19 }
0x13ad   : > { %v11855_v43 = vadd.f32 %v5702_v36, %v13223_v39  ;;  %v13237_v36 = vld [vmem:[#allocation39_spill] sm:$0xff]  ;;  %v13238_v39 = vld [vmem:[#allocation12_spill] sm:$0xff] }
0x13af   : > { %v5746_v38 = vsel %vm13224_vm15, %v11855_v43, 0.0  ;;  %vm13255_vm15 = vmmov %vm13220_vm0 }
0x13b0   : > { %5747 = vadd.xlane.f32.xlu0 %v5746_v38 }
0x13b2   : > { %v5673_v13 = vpop.f32.mrf.mxu2 }
0x13b3   : > { %v5703_v33 = vadd.f32 %v5673_v13, %v5228_v41  ;;  %v7431_v41 = vld [vmem:[%s12686_s1 + $0x200] sm:$0xf] }
0x13b5   : > { %v11872_v28 = vadd.f32 %v5703_v33, %v13227_v56  ;;  %v13242_v56 = vld [vmem:[#allocation16_spill] sm:$0xff] }
0x13b7   : > { %v5749_v6 = vsel %vm13228_vm13, %v11872_v28, 0.0 }
0x13b9   : > { %v5206_v35 = vpop.f32.mrf.mxu3 }
0x13ba   : > { %v5676_v25 = vpop.f32.mrf.mxu2  ;;  %v5231_v7 = vadd.f32 %v5206_v35, %v11427_v55  ;;  %v4757_v55 = vadd.f32 %v13237_v36, %v4282_v11  ;;  %v13246_v35 = vld [vmem:[#allocation40_spill] sm:$0xff] }
0x13bb   : > { %v5704_v60 = vadd.f32 %v5676_v25, %v5229_v47 }
0x13bd   : > { %v11885_v42 = vadd.f32 %v5704_v60, %v13230_v8  ;;  %v13247_v8 = vld [vmem:[#allocation35_spill] sm:$0xff] }
0x13bf   : > { %v5752_v40 = vsel %vm13231_vm14, %v11885_v42, 0.0  ;;  %vm13257_vm14 = vmmov %vm13220_vm0 }
0x13c1   : > { %v5208_v32 = vpop.f32.mrf.mxu3 }
0x13c2   : > { %v5678_v5 = vpop.f32.mrf.mxu2  ;;  %v5232_v13 = vadd.f32 %v5208_v32, %v4757_v55  ;;  %v13250_v32 = vld [vmem:[#allocation36_spill] sm:$0xff]  ;;  %v7423_v55 = vld [vmem:[%s12686_s1 + $0x1e0] sm:$0xf] }
0x13ca   : > { %v5681_v17 = vpop.f32.mrf.mxu2 }
0x13cb   : > { %v5706_v29 = vadd.f32 %v5681_v17, %v5231_v7 }
0x13cd   : > { %v11913_v38 = vadd.f32 %v5706_v29, %v13238_v39  ;;  %v7561_v39 = vld [vmem:[%s12686_s1 + $0x1e4] sm:$0xf0] }
0x13d2   : > { %v5683_v57 = vpop.f32.mrf.mxu2 }
0x13d3   : > { %v5707_v24 = vadd.f32 %v5683_v57, %v5232_v13  ;;  %v7562_v57 = vld [vmem:[%s12686_s1 + $0x1f4] sm:$0xf0] }
0x13f3   : > { %v5730_v54 = vpop.xlane.xlu2 %5729 }
0x13f4   : > { %v5776_v16 = vmul.f32 %v5730_v54, %v13225_v3  ;;  %v5211_v54 = vpop.f32.mrf.mxu3 }
0x13f5   : > { %v5233_v47 = vadd.f32 %v5211_v54, %v13242_v56 }
0x13f6   : > { %v11863_v53 = vsub.f32 %v5712_v22, %v5776_v16  ;;  %v5758_v16 = vsel %vm13239_vm5, %v11913_v38, 0.0  ;;  %vm13259_vm5 = vmmov %vm13220_vm0 }
0x13f8   : > { %v5808_v52 = vmul.f32 %v11863_v53, %v11863_v53 }
0x13fa   : > { %v5824_v20 = vsel %vm13226_vm10, %v5808_v52, 0.0 }
0x13fb   : > { %5825 = vadd.xlane.f32.xlu2 %v5824_v20  ;;  %v5733_v12 = vpop.xlane.xlu1 %5732  ;;  %v5686_v20 = vpop.f32.mrf.mxu2 }
0x13fc   : > { %v5777_v34 = vmul.f32 %v5733_v12, %v13225_v3  ;;  %v13241_v12 = vld [vmem:[#allocation13_spill] sm:$0xff] }
0x13fe   : > { %v11869_v37 = vsub.f32 %v5713_v61, %v5777_v34  ;;  %v4280_v61 = vadd.f32 %v11418_v10, %v11371_v19  ;;  %v11931_v34 = vadd.f32 %v5707_v24, %v13241_v12 }
0x1400   : > { %v5809_v22 = vmul.f32 %v11869_v37, %v11869_v37  ;;  %v4755_v27 = vadd.f32 %v11424_v15, %v4280_v61  ;;  %v13245_v61 = vld [vmem:[#allocation38_spill] sm:$0xff] }
0x1402   : > { %v5827_v30 = vsel %vm13229_vm9, %v5809_v22, 0.0  ;;  %v5230_v23 = vadd.f32 %v5203_v26, %v4755_v27 }
0x1403   : > { %v5736_v45 = vpop.xlane.xlu0 %5735  ;;  %5750 = vadd.xlane.f32.xlu2 %v5749_v6  ;;  %5828 = vadd.xlane.f32.xlu1 %v5827_v30  ;;  %v5761_v6 = vsel %vm13244_vm8, %v11931_v34, 0.0  ;;  %v5213_v30 = vpop.f32.mrf.mxu3 }
0x1404   : > { %v5778_v59 = vmul.f32 %v5736_v45, %v13225_v3  ;;  %v5705_v14 = vadd.f32 %v5678_v5, %v5230_v23  ;;  %v5708_v5 = vadd.f32 %v5686_v20, %v5233_v47 }
0x1406   : > { %v11888_v49 = vsub.f32 %v11829_v50, %v5778_v59  ;;  %v11897_v21 = vadd.f32 %v5705_v14, %v13233_v31  ;;  %v11947_v23 = vadd.f32 %v5708_v5, %v13247_v8  ;;  %v5688_v14 = vpop.f32.mrf.mxu2  ;;  %v13254_v5 = vld [vmem:[#allocation17_spill] sm:$0xff] }
0x1408   : > { %v5810_v48 = vmul.f32 %v11888_v49, %v11888_v49  ;;  %v5755_v4 = vsel %vm13235_vm4, %v11897_v21, 0.0 }
0x140a   : > { %v5830_v10 = vsel %vm13232_vm2, %v5810_v48, 0.0 }
0x140b   : > { %v5739_v9 = vpop.xlane.xlu2 %5738  ;;  %5753 = vadd.xlane.f32.xlu2 %v5752_v40  ;;  %5831 = vadd.xlane.f32.xlu1 %v5830_v10  ;;  %v5216_v31 = vpop.f32.mrf.mxu3 }
0x140c   : > { %v5779_v15 = vmul.f32 %v5739_v9, %v13225_v3 }
0x140e   : > { %v11900_v50 = vsub.f32 %v11835_v63, %v5779_v15  ;;  %v5764_v15 = vsel %vm13249_vm11, %v11947_v23, 0.0  ;;  %v5691_v29 = vpop.f32.mrf.mxu2  ;;  %vm13263_vm11 = vmmov %vm13220_vm0 }
0x1410   : > { %v5811_v44 = vmul.f32 %v11900_v50, %v11900_v50 }
0x1412   : > { %v5833_v2 = vsel %vm13234_vm3, %v5811_v44, 0.0  ;;  %v13251_v44 = vld [vmem:[#allocation41_spill] sm:$0xff] }
0x1413   : > { %5834 = vadd.xlane.f32.xlu0 %v5833_v2  ;;  %5756 = vadd.xlane.f32.xlu1 %v5755_v4  ;;  %v5742_v58 = vpop.xlane.xlu1 %5741 }
0x1414   : > { %v5780_v63 = vmul.f32 %v5742_v58, %v13225_v3  ;;  %v13252_v58 = vld [vmem:[#allocation37_spill] sm:$0xff] }
0x1416   : > { %v11916_v46 = vsub.f32 %v11843_v1, %v5780_v63  ;;  %v7563_v1 = vld [vmem:[%s12686_s1 + $0x204] sm:$0xf0]  ;;  %v7427_v63 = vld [vmem:[%s12686_s1 + $0x1f0] sm:$0xf] }
0x1417   : > { %v7432_v33 = vor.u32 %v7563_v1, %v7431_v41  ;;  %v7428_v36 = vor.u32 %v7562_v57, %v7427_v63  ;;  %v13258_v57 = vld [vmem:[#allocation14_spill] sm:$0xff] }
0x1418   : > { %v5812_v51 = vmul.f32 %v11916_v46, %v11916_v46 }
0x1419   : > { %6183 = vmatpush.bf16.msra.mxu3 %v7432_v33 }
0x141a   : > { %v5836_v0 = vsel %vm13240_vm6, %v5812_v51, 0.0  ;;  %v7424_v51 = vor.u32 %v7561_v39, %v7423_v55  ;;  %vm13260_vm6 = vmmov %vm13220_vm0 }
0x141b   : > { %v5745_v25 = vpop.xlane.xlu0 %5744  ;;  %5759 = vadd.xlane.f32.xlu1 %v5758_v16  ;;  %5837 = vadd.xlane.f32.xlu0 %v5836_v0  ;;  %v7419_v16 = vld [vmem:[%s12686_s1 + $0x1d0] sm:$0xf]  ;;  %v7560_v0 = vld [vmem:[%s12686_s1 + $0x1d4] sm:$0xf0] }
0x141c   : > { %v5781_v52 = vmul.f32 %v5745_v25, %v13225_v3  ;;  %v7420_v25 = vor.u32 %v7560_v0, %v7419_v16  ;;  %v179_v0 = vld [vmem:[%s12687_s2 + $0x20] sm:$0xff] }
0x141d   : > { %6184 = vmatpush.bf16.msra.mxu3 %v7428_v36 }
0x141e   : > { %v11934_v26 = vsub.f32 %v11849_v62, %v5781_v52  ;;  %v4284_v62 = vadd.f32 %v13245_v61, %v11371_v19  ;;  %v13256_v61 = vld [vmem:[#allocation18_spill] sm:$0xff] }
0x1420   : > { %v5813_v22 = vmul.f32 %v11934_v26, %v11934_v26  ;;  %v4759_v27 = vadd.f32 %v13246_v35, %v4284_v62 }
0x1421   : > { %6185 = vmatpush.bf16.msra.mxu3 %v7424_v51 }
0x1422   : > { %v5839_v60 = vsel %vm13243_vm7, %v5813_v22, 0.0  ;;  %v5234_v40 = vadd.f32 %v5213_v30, %v4759_v27  ;;  %v5218_v30 = vpop.f32.mrf.mxu3 }
0x1423   : > { %v5748_v45 = vpop.xlane.xlu0 %5747  ;;  %5840 = vadd.xlane.f32.xlu2 %v5839_v60  ;;  %5762 = vadd.xlane.f32.xlu0 %v5761_v6  ;;  %v4286_v60 = vadd.f32 %v13254_v5, %v11371_v19 }
0x1424   : > { %v5782_v59 = vmul.f32 %v5748_v45, %v13225_v3  ;;  %v5709_v17 = vadd.f32 %v5688_v14, %v5234_v40 }
0x1425   : > { %6186 = vmatpush.bf16.msra.mxu3 %v7420_v25  ;;  %v4761_v62 = vadd.f32 %v13256_v61, %v4286_v60 }
0x1426   : > { %v11950_v48 = vsub.f32 %v11855_v43, %v5782_v59  ;;  %v11958_v7 = vadd.f32 %v5709_v17, %v13250_v32  ;;  %v5235_v43 = vadd.f32 %v5216_v31, %v13251_v44  ;;  %v5693_v17 = vpop.f32.mrf.mxu2 }
0x1427   : > { %v5236_v14 = vadd.f32 %v5218_v30, %v4761_v62 }
0x1428   : > { %v5814_v10 = vmul.f32 %v11950_v48, %v11950_v48  ;;  %v5710_v2 = vadd.f32 %v5691_v29, %v5235_v43  ;;  %v5767_v4 = vsel %vm13220_vm0, %v11958_v7, 0.0 }
0x1429   : > { %v5711_v44 = vadd.f32 %v5693_v17, %v5236_v14 }
0x142a   : > { %v5842_v9 = vsel %vm13248_vm12, %v5814_v10, 0.0  ;;  %v11964_v18 = vadd.f32 %v5710_v2, %v13252_v58 }
0x142b   : > { %5843 = vadd.xlane.f32.xlu2 %v5842_v9  ;;  %5765 = vadd.xlane.f32.xlu0 %v5764_v15  ;;  %v12012_v36 = vadd.f32 %v5711_v44, %v13258_v57 }
0x142c   : > { %v5770_v11 = vsel %vm13253_vm1, %v11964_v18, 0.0 }
0x1433   : > { %5768 = vadd.xlane.f32.xlu2 %v5767_v4 }
0x143b   : > { %5771 = vadd.xlane.f32.xlu2 %v5770_v11 }
0x146e   : > { %v5826_v13 = vpop.xlane.xlu2 %5825 }
0x146f   : > { %v5872_v54 = vmul.f32 %v5826_v13, %v13225_v3  ;;  %v12017_v13 = vld [vmem:[%s12687_s2 + $0x10] sm:$0xff] }
0x1470   : > { %v12020_v51 = vperm.slane %v12017_v13, 7 }
0x1471   : > { %v5888_v24 = vadd.f32 1e-05, %v5872_v54 }
0x1473   : > { %8187 = vrsqrt.f32 %v5888_v24  ;;  %vm5910_vm13 = vweird.f32 %v5888_v24 }
0x1476   : > { %v5751_v41 = vpop.xlane.xlu2 %5750  ;;  %v5829_v1 = vpop.xlane.xlu1 %5828 }
0x1477   : > { %v5783_v52 = vmul.f32 %v5751_v41, %v13225_v3  ;;  %v5873_v33 = vmul.f32 %v5829_v1, %v13225_v3 }
0x1479   : > { %v8188_v20 = vpop.eup %8187  ;;  %v11990_v12 = vsub.f32 %v11872_v28, %v5783_v52  ;;  %v5889_v56 = vadd.f32 1e-05, %v5873_v33 }
0x147a   : > { %v5905_v47 = vmul.f32 %v8188_v20, %v5888_v24  ;;  %vm5911_vm10 = vweird.f32 %v8188_v20 }
0x147b   : > { %8189 = vrsqrt.f32 %v5889_v56  ;;  %v5815_v22 = vmul.f32 %v11990_v12, %v11990_v12  ;;  %vm5912_vm9 = vmor %vm5910_vm13, %vm5911_vm10  ;;  %vm5920_vm3 = vweird.f32 %v5889_v56 }
0x147c   : > { %v5906_v6 = vmul.f32 %v8188_v20, %v5905_v47  ;;  %vm13264_vm13 = vmmov %vm13220_vm0 }
0x147d   : > { %v5845_v45 = vsel %vm13255_vm15, %v5815_v22, 0.0 }
0x147e   : > { %v5907_v59 = vmul.f32 0.5, %v5906_v6  ;;  %v5754_v35 = vpop.xlane.xlu2 %5753  ;;  %5846 = vadd.xlane.f32.xlu1 %v5845_v45  ;;  %v5832_v28 = vpop.xlane.xlu1 %5831 }
0x147f   : > { %v5784_v27 = vmul.f32 %v5754_v35, %v13225_v3  ;;  %v5874_v8 = vmul.f32 %v5832_v28, %v13225_v3 }
0x1480   : > { %v5908_v40 = vsub.f32 1.5, %v5907_v59 }
0x1481   : > { %v8190_v10 = vpop.eup %8189  ;;  %v12001_v19 = vsub.f32 %v11885_v42, %v5784_v27  ;;  %v12003_v9 = vadd.f32 1e-05, %v5874_v8 }
0x1482   : > { %v5909_v15 = vmul.f32 %v8188_v20, %v5908_v40  ;;  %v5915_v31 = vmul.f32 %v8190_v10, %v5889_v56  ;;  %vm5921_vm2 = vweird.f32 %v8190_v10 }
0x1483   : > { %8191 = vrsqrt.f32 %v12003_v9  ;;  %v5816_v32 = vmul.f32 %v12001_v19, %v12001_v19  ;;  %vm5922_vm4 = vmor %vm5920_vm3, %vm5921_vm2  ;;  %vm5930_vm8 = vweird.f32 %v12003_v9 }
0x1484   : > { %v5916_v43 = vmul.f32 %v8190_v10, %v5915_v31  ;;  %v5913_v2 = vsel %vm5912_vm9, %v8188_v20, %v5909_v15  ;;  %vm13265_vm3 = vmmov %vm13220_vm0 }
0x1485   : > { %v5848_v29 = vsel %vm13257_vm14, %v5816_v32, 0.0  ;;  %v6064_v54 = vmul.f32 %v5913_v2, %v11863_v53  ;;  %v5773_v53 = vsel %vm13259_vm5, %v12012_v36, 0.0 }
0x1486   : > { %v5917_v4 = vmul.f32 0.5, %v5916_v43  ;;  %v5835_v42 = vpop.xlane.xlu0 %5834  ;;  %5849 = vadd.xlane.f32.xlu1 %v5848_v29  ;;  %v5757_v58 = vpop.xlane.xlu1 %5756  ;;  %v7571_v43 = vld [vmem:[%s12686_s1 + $0x284] sm:$0xf0] }
0x1487   : > { %v5875_v11 = vmul.f32 %v5835_v42, %v13225_v3  ;;  %v5785_v63 = vmul.f32 %v5757_v58, %v13225_v3  ;;  %v6081_v20 = vmul.f32 %v12020_v51, %v6064_v54 }
0x1488   : > { %v5918_v55 = vsub.f32 1.5, %v5917_v4 }
0x1489   : > { %v8192_v39 = vpop.eup %8191  ;;  %v5891_v24 = vadd.f32 1e-05, %v5875_v11  ;;  %v12024_v16 = vsub.f32 %v11897_v21, %v5785_v63  ;;  %v12034_v21 = vperm.slane %v179_v0, 0 }
0x148a   : > { %v5919_v25 = vmul.f32 %v8190_v10, %v5918_v55  ;;  %v5925_v41 = vmul.f32 %v8192_v39, %v12003_v9  ;;  %vm5931_vm7 = vweird.f32 %v8192_v39  ;;  %v7471_v9 = vld [vmem:[%s12686_s1 + $0x280] sm:$0xf] }
0x148b   : > { %8193 = vrsqrt.f32 %v5891_v24  ;;  %v5817_v1 = vmul.f32 %v12024_v16, %v12024_v16  ;;  %v12043_v59 = vadd.f32 %v12034_v21, %v6081_v20  ;;  %vm12056_vm12 = vmor %vm5930_vm8, %vm5931_vm7  ;;  %v7472_v4 = vor.u32 %v7571_v43, %v7471_v9 }
0x148c   : > { %v5923_v52 = vsel %vm5922_vm4, %v8190_v10, %v5919_v25  ;;  %v5926_v33 = vmul.f32 %v8192_v39, %v5925_v41  ;;  %vm5940_vm15 = vweird.f32 %v5891_v24  ;;  %vm13266_vm4 = vmmov %vm13220_vm0 }
0x148d   : > { %v6065_v47 = vmul.f32 %v5923_v52, %v11869_v37  ;;  %v5851_v56 = vsel %vm13260_vm6, %v5817_v1, 0.0  ;;  %6317 = vmatpush.bf16.msra.mxu0 %v7472_v4  ;;  %vm13267_vm8 = vmmov %vm13220_vm0 }
0x148e   : > { %v5927_v22 = vmul.f32 0.5, %v5926_v33  ;;  %5774 = vadd.xlane.f32.xlu1 %v5773_v53  ;;  %v5838_v5 = vpop.xlane.xlu0 %5837  ;;  %5852 = vadd.xlane.f32.xlu0 %v5851_v56  ;;  %v5760_v60 = vpop.xlane.xlu1 %5759 }
0x148f   : > { %v6082_v6 = vmul.f32 %v12020_v51, %v6065_v47  ;;  %v5876_v30 = vmul.f32 %v5838_v5, %v13225_v3  ;;  %v5786_v45 = vmul.f32 %v5760_v60, %v13225_v3 }
0x1490   : > { %v5928_v61 = vsub.f32 1.5, %v5927_v22 }
0x1491   : > { %v8194_v62 = vpop.eup %8193  ;;  %v12046_v37 = vadd.f32 %v12034_v21, %v6082_v6  ;;  %v5892_v35 = vadd.f32 1e-05, %v5876_v30  ;;  %v12049_v28 = vsub.f32 %v11913_v38, %v5786_v45 }
0x1492   : > { %v5929_v27 = vmul.f32 %v8192_v39, %v5928_v61  ;;  %v5935_v8 = vmul.f32 %v8194_v62, %v5891_v24  ;;  %vm5941_vm1 = vweird.f32 %v8194_v62 }
0x1493   : > { %v6114_v14 = vpack.c.bf16 %v12046_v37, %v12043_v59  ;;  %8195 = vrsqrt.f32 %v5892_v35  ;;  %v5818_v40 = vmul.f32 %v12049_v28, %v12049_v28  ;;  %vm5942_vm10 = vmor %vm5940_vm15, %vm5941_vm1  ;;  %vm5950_vm14 = vweird.f32 %v5892_v35 }
0x1494   : > { %v5936_v10 = vmul.f32 %v8194_v62, %v5935_v8  ;;  %v5933_v15 = vsel %vm12056_vm12, %v8192_v39, %v5929_v27  ;;  %vm13268_vm12 = vmmov %vm13220_vm0 }
0x1495   : > { %7433 = vmatmul.msk.bf16.vlgmr.msra.gmra.mxu3 %vm13263_vm11, %v6114_v14  ;;  %v5854_v38 = vsel %vm13220_vm0, %v5818_v40, 0.0  ;;  %v6066_v11 = vmul.f32 %v5933_v15, %v11888_v49  ;;  %vm13269_vm11 = vmmov %vm13220_vm0 }
0x1496   : > { %v5937_v31 = vmul.f32 0.5, %v5936_v10  ;;  %v5841_v32 = vpop.xlane.xlu2 %5840  ;;  %v5763_v44 = vpop.xlane.xlu0 %5762  ;;  %5855 = vadd.xlane.f32.xlu0 %v5854_v38 }
0x1497   : > { %v5877_v29 = vmul.f32 %v5841_v32, %v13225_v3  ;;  %v5787_v2 = vmul.f32 %v5763_v44, %v13225_v3  ;;  %v6083_v49 = vmul.f32 %v12020_v51, %v6066_v11  ;;  %v7570_v11 = vld [vmem:[%s12686_s1 + $0x274] sm:$0xf0] }
0x1498   : > { %v5938_v42 = vsub.f32 1.5, %v5937_v31 }
0x1499   : > { %v8196_v58 = vpop.eup %8195  ;;  %v5893_v63 = vadd.f32 1e-05, %v5877_v29  ;;  %v12074_v57 = vsub.f32 %v11931_v34, %v5787_v2  ;;  %v12087_v22 = vadd.f32 %v12034_v21, %v6083_v49 }
0x149a   : > { %v5939_v55 = vmul.f32 %v8194_v62, %v5938_v42  ;;  %v5945_v39 = vmul.f32 %v8196_v58, %v5892_v35  ;;  %vm5951_vm9 = vweird.f32 %v8196_v58 }
0x149b   : > { %8197 = vrsqrt.f32 %v5893_v63  ;;  %v5819_v54 = vmul.f32 %v12074_v57, %v12074_v57  ;;  %vm5952_vm2 = vmor %vm5950_vm14, %vm5951_vm9  ;;  %vm5960_vm6 = vweird.f32 %v5893_v63 }
0x149c   : > { %v5943_v0 = vsel %vm5942_vm10, %v8194_v62, %v5939_v55  ;;  %v5946_v25 = vmul.f32 %v8196_v58, %v5945_v39  ;;  %vm13270_vm14 = vmmov %vm13265_vm3 }
0x149d   : > { %v6067_v41 = vmul.f32 %v5943_v0, %v11900_v50  ;;  %v5857_v1 = vsel %vm13264_vm13, %v5819_v54, 0.0  ;;  %v7463_v54 = vld [vmem:[%s12686_s1 + $0x260] sm:$0xf]  ;;  %v7569_v0 = vld [vmem:[%s12686_s1 + $0x264] sm:$0xf0] }
0x149e   : > { %v5947_v52 = vmul.f32 0.5, %v5946_v25  ;;  %v5844_v34 = vpop.xlane.xlu2 %5843  ;;  %5858 = vadd.xlane.f32.xlu2 %v5857_v1  ;;  %v5766_v33 = vpop.xlane.xlu0 %5765  ;;  %v7464_v25 = vor.u32 %v7569_v0, %v7463_v54 }
0x149f   : > { %v5788_v24 = vmul.f32 %v5766_v33, %v13225_v3  ;;  %v6084_v53 = vmul.f32 %v12020_v51, %v6067_v41 }
0x14a0   : > { %v5948_v20 = vsub.f32 1.5, %v5947_v52  ;;  %v7459_v52 = vld [vmem:[%s12686_s1 + $0x250] sm:$0xf] }
0x14a1   : > { %v8198_v47 = vpop.eup %8197  ;;  %v12084_v56 = vsub.f32 %v11947_v23, %v5788_v24  ;;  %v12090_v50 = vadd.f32 %v12034_v21, %v6084_v53 }
0x14a2   : > { %v5949_v5 = vmul.f32 %v8196_v58, %v5948_v20  ;;  %v5955_v60 = vmul.f32 %v8198_v47, %v5893_v63  ;;  %vm5961_vm5 = vweird.f32 %v8198_v47  ;;  %v7455_v20 = vld [vmem:[%s12686_s1 + $0x240] sm:$0xf] }
0x14a3   : > { %v6115_v6 = vpack.c.bf16 %v12090_v50, %v12087_v22  ;;  %v5820_v30 = vmul.f32 %v12084_v56, %v12084_v56  ;;  %vm5962_vm7 = vmor %vm5960_vm6, %vm5961_vm5 }
0x14a4   : > { %v5956_v45 = vmul.f32 %v8198_v47, %v5955_v60  ;;  %v5953_v61 = vsel %vm5952_vm2, %v8196_v58, %v5949_v5  ;;  %v7467_v58 = vld [vmem:[%s12686_s1 + $0x270] sm:$0xf]  ;;  %vm13271_vm5 = vmmov %vm13267_vm8 }
0x14a5   : > { %7434 = vmatmul.msk.bf16.gmra.mxu3 %vm13265_vm3, %v6115_v6  ;;  %v5860_v23 = vsel %vm13266_vm4, %v5820_v30, 0.0  ;;  %v6068_v40 = vmul.f32 %v5953_v61, %v11916_v46  ;;  %v7468_v63 = vor.u32 %v7570_v11, %v7467_v58 }
0x14a6   : > { %v5957_v62 = vmul.f32 0.5, %v5956_v45  ;;  %v5769_v27 = vpop.xlane.xlu2 %5768  ;;  %5861 = vadd.xlane.f32.xlu1 %v5860_v23  ;;  %v7451_v45 = vld [vmem:[%s12686_s1 + $0x230] sm:$0xf]  ;;  %v7566_v23 = vld [vmem:[%s12686_s1 + $0x234] sm:$0xf0] }
0x14a7   : > { %v5789_v8 = vmul.f32 %v5769_v27, %v13225_v3  ;;  %v6085_v32 = vmul.f32 %v12020_v51, %v6068_v40  ;;  %6318 = vmatpush.bf16.msra.mxu0 %v7468_v63  ;;  %v7452_v27 = vor.u32 %v7566_v23, %v7451_v45 }
0x14a8   : > { %v5958_v14 = vsub.f32 1.5, %v5957_v62 }
0x14a9   : > { %v12101_v10 = vsub.f32 %v11958_v7, %v5789_v8  ;;  %v12114_v43 = vadd.f32 %v12034_v21, %v6085_v32 }
0x14aa   : > { %v5959_v35 = vmul.f32 %v8198_v47, %v5958_v14 }
0x14ab   : > { %v5821_v17 = vmul.f32 %v12101_v10, %v12101_v10  ;;  %6319 = vmatpush.bf16.msra.mxu0 %v7464_v25 }
0x14ac   : > { %v5963_v38 = vsel %vm5962_vm7, %v8198_v47, %v5959_v35  ;;  %v7567_v47 = vld [vmem:[%s12686_s1 + $0x244] sm:$0xf0]  ;;  %v7447_v35 = vld [vmem:[%s12686_s1 + $0x220] sm:$0xf] }
0x14ad   : > { %v6069_v15 = vmul.f32 %v5963_v38, %v11934_v26  ;;  %v5863_v31 = vsel %vm13267_vm8, %v5821_v17, 0.0  ;;  %v7456_v5 = vor.u32 %v7567_v47, %v7455_v20  ;;  %v7565_v17 = vld [vmem:[%s12686_s1 + $0x224] sm:$0xf0] }
0x14ae   : > { %v5772_v44 = vpop.xlane.xlu2 %5771  ;;  %5864 = vadd.xlane.f32.xlu0 %v5863_v31  ;;  %v7448_v38 = vor.u32 %v7565_v17, %v7447_v35 }
0x14af   : > { %v5790_v46 = vmul.f32 %v5772_v44, %v13225_v3  ;;  %v6086_v7 = vmul.f32 %v12020_v51, %v6069_v15 }
0x14b1   : > { %v12111_v9 = vsub.f32 %v11964_v18, %v5790_v46  ;;  %v12117_v29 = vadd.f32 %v12034_v21, %v6086_v7  ;;  %v5878_v18 = vmul.f32 %v5844_v34, %v13225_v3  ;;  %v7568_v34 = vld [vmem:[%s12686_s1 + $0x254] sm:$0xf0] }
0x14b2   : > { %v7460_v24 = vor.u32 %v7568_v34, %v7459_v52 }
0x14b3   : > { %v6116_v26 = vpack.c.bf16 %v12117_v29, %v12114_v43  ;;  %v5822_v2 = vmul.f32 %v12111_v9, %v12111_v9  ;;  %v5894_v42 = vadd.f32 1e-05, %v5878_v18 }
0x14b4   : > { %6320 = vmatpush.bf16.msra.mxu0 %v7460_v24 }
0x14b5   : > { %7435 = vmatmul.msk.bf16.gmra.mxu3 %vm13268_vm12, %v6116_v26  ;;  %v5866_v4 = vsel %vm13269_vm11, %v5822_v2, 0.0  ;;  %8199 = vrsqrt.f32 %v5894_v42  ;;  %vm5970_vm1 = vweird.f32 %v5894_v42  ;;  %v7443_v2 = vld [vmem:[%s12686_s1 + $0x210] sm:$0xf] }
0x14b6   : > { %5867 = vadd.xlane.f32.xlu2 %v5866_v4  ;;  %v7564_v4 = vld [vmem:[%s12686_s1 + $0x214] sm:$0xf0] }
0x14b7   : > { %v7444_v63 = vor.u32 %v7564_v4, %v7443_v2  ;;  %v12199_v2 = vperm.slane %v12017_v13, 5 }
0x14b8   : > { %6321 = vmatpush.bf16.msra.mxu0 %v7456_v5 }
0x14bb   : > { %v8200_v55 = vpop.eup %8199 }
0x14bc   : > { %v5965_v39 = vmul.f32 %v8200_v55, %v5894_v42  ;;  %vm5971_vm0 = vweird.f32 %v8200_v55  ;;  %6322 = vmatpush.bf16.msra.mxu0 %v7452_v27 }
0x14bd   : > { %vm5972_vm15 = vmor %vm5970_vm1, %vm5971_vm0 }
0x14be   : > { %v5966_v41 = vmul.f32 %v8200_v55, %v5965_v39  ;;  %vm13272_vm1 = vmmov %vm13271_vm5 }
0x14c0   : > { %v5967_v53 = vmul.f32 0.5, %v5966_v41  ;;  %6323 = vmatpush.bf16.msra.mxu0 %v7448_v38 }
0x14c2   : > { %v5968_v60 = vsub.f32 1.5, %v5967_v53 }
0x14c4   : > { %v5969_v8 = vmul.f32 %v8200_v55, %v5968_v60  ;;  %6324 = vmatpush.bf16.msra.mxu0 %v7444_v63 }
0x14c6   : > { %v5973_v15 = vsel %vm5972_vm15, %v8200_v55, %v5969_v8 }
0x14c7   : > { %v6070_v42 = vmul.f32 %v5973_v15, %v11950_v48 }
0x14f1   : > { %v5847_v1 = vpop.xlane.xlu1 %5846 }
0x14f2   : > { %v5879_v49 = vmul.f32 %v5847_v1, %v13225_v3  ;;  %v6087_v1 = vmul.f32 %v12020_v51, %v6070_v42 }
0x14f4   : > { %v5895_v33 = vadd.f32 1e-05, %v5879_v49  ;;  %v12184_v20 = vadd.f32 %v12034_v21, %v6087_v1 }
0x14f6   : > { %8201 = vrsqrt.f32 %v5895_v33  ;;  %vm5980_vm13 = vweird.f32 %v5895_v33 }
0x14f9   : > { %v5850_v6 = vpop.xlane.xlu1 %5849 }
0x14fa   : > { %v5880_v30 = vmul.f32 %v5850_v6, %v13225_v3 }
0x14fc   : > { %v8202_v61 = vpop.eup %8201  ;;  %v5896_v62 = vadd.f32 1e-05, %v5880_v30 }
0x14fd   : > { %v5975_v14 = vmul.f32 %v8202_v61, %v5895_v33  ;;  %vm5981_vm10 = vweird.f32 %v8202_v61 }
0x14fe   : > { %8203 = vrsqrt.f32 %v5896_v62  ;;  %vm5982_vm9 = vmor %vm5980_vm13, %vm5981_vm10  ;;  %vm5990_vm3 = vweird.f32 %v5896_v62 }
0x14ff   : > { %v5976_v40 = vmul.f32 %v8202_v61, %v5975_v14 }
0x1501   : > { %v5977_v31 = vmul.f32 0.5, %v5976_v40  ;;  %v5853_v32 = vpop.xlane.xlu0 %5852  ;;  %v5775_v44 = vpop.xlane.xlu1 %5774 }
0x1502   : > { %v5881_v46 = vmul.f32 %v5853_v32, %v13225_v3  ;;  %v5791_v7 = vmul.f32 %v5775_v44, %v13225_v3 }
0x1503   : > { %v5978_v26 = vsub.f32 1.5, %v5977_v31 }
0x1504   : > { %v8204_v18 = vpop.eup %8203  ;;  %v5897_v58 = vadd.f32 1e-05, %v5881_v46  ;;  %v12174_v11 = vsub.f32 %v12012_v36, %v5791_v7 }
0x1505   : > { %v5979_v55 = vmul.f32 %v8202_v61, %v5978_v26  ;;  %v5985_v39 = vmul.f32 %v8204_v18, %v5896_v62  ;;  %vm5991_vm2 = vweird.f32 %v8204_v18 }
0x1506   : > { %8205 = vrsqrt.f32 %v5897_v58  ;;  %v5823_v54 = vmul.f32 %v12174_v11, %v12174_v11  ;;  %vm5992_vm4 = vmor %vm5990_vm3, %vm5991_vm2  ;;  %vm6000_vm7 = vweird.f32 %v5897_v58 }
0x1507   : > { %v5983_v0 = vsel %vm5982_vm9, %v8202_v61, %v5979_v55  ;;  %v5986_v25 = vmul.f32 %v8204_v18, %v5985_v39  ;;  %vm13273_vm3 = vmmov %vm13272_vm1 }
0x1508   : > { %v6071_v41 = vmul.f32 %v5983_v0, %v11990_v12  ;;  %v5869_v48 = vsel %vm13270_vm14, %v5823_v54, 0.0 }
0x1509   : > { %v5987_v36 = vmul.f32 0.5, %v5986_v25  ;;  %v5856_v49 = vpop.xlane.xlu0 %5855  ;;  %5870 = vadd.xlane.f32.xlu1 %v5869_v48 }
0x150a   : > { %v5882_v52 = vmul.f32 %v5856_v49, %v13225_v3  ;;  %v6088_v34 = vmul.f32 %v12020_v51, %v6071_v41 }
0x150b   : > { %v5988_v33 = vsub.f32 1.5, %v5987_v36 }
0x150c   : > { %v8206_v24 = vpop.eup %8205  ;;  %v5898_v53 = vadd.f32 1e-05, %v5882_v52  ;;  %v12187_v47 = vadd.f32 %v12034_v21, %v6088_v34 }
0x150d   : > { %v5989_v12 = vmul.f32 %v8204_v18, %v5988_v33  ;;  %v5995_v5 = vmul.f32 %v8206_v24, %v5897_v58  ;;  %vm6001_vm6 = vweird.f32 %v8206_v24 }
0x150e   : > { %8207 = vrsqrt.f32 %v5898_v53  ;;  %v6117_v60 = vpack.c.bf16 %v12187_v47, %v12184_v20  ;;  %vm6002_vm8 = vmor %vm6000_vm7, %vm6001_vm6  ;;  %vm6010_vm11 = vweird.f32 %v5898_v53 }
0x150f   : > { %v5996_v6 = vmul.f32 %v8206_v24, %v5995_v5  ;;  %v5993_v30 = vsel %vm5992_vm4, %v8204_v18, %v5989_v12  ;;  %vm13274_vm7 = vmmov %vm13272_vm1 }
0x1510   : > { %7436 = vmatmul.msk.bf16.gmra.mxu3 %vm13271_vm5, %v6117_v60  ;;  %v6072_v14 = vmul.f32 %v5993_v30, %v12001_v19 }
0x1511   : > { %v5997_v45 = vmul.f32 0.5, %v5996_v6  ;;  %v5859_v23 = vpop.xlane.xlu2 %5858 }
0x1512   : > { %v5883_v61 = vmul.f32 %v5859_v23, %v13225_v3  ;;  %v6089_v32 = vmul.f32 %v12020_v51, %v6072_v14 }
0x1513   : > { %v5998_v27 = vsub.f32 1.5, %v5997_v45 }
0x1514   : > { %v8208_v8 = vpop.eup %8207  ;;  %v5899_v40 = vadd.f32 1e-05, %v5883_v61  ;;  %v12202_v42 = vadd.f32 %v12034_v21, %v6089_v32 }
0x1515   : > { %v5999_v35 = vmul.f32 %v8206_v24, %v5998_v27  ;;  %v6005_v17 = vmul.f32 %v8208_v8, %v5898_v53  ;;  %vm6011_vm12 = vweird.f32 %v8208_v8 }
0x1516   : > { %8209 = vrsqrt.f32 %v5899_v40  ;;  %vm6012_vm0 = vmor %vm6010_vm11, %vm6011_vm12  ;;  %vm6020_vm10 = vweird.f32 %v5899_v40 }
0x1517   : > { %v6003_v62 = vsel %vm6002_vm8, %v8206_v24, %v5999_v35  ;;  %v6006_v38 = vmul.f32 %v8208_v8, %v6005_v17 }
0x1518   : > { %v6073_v15 = vmul.f32 %v6003_v62, %v12024_v16  ;;  %v6188_v31 = vpop.f32.mrf.mxu3 }
0x1519   : > { %v6007_v44 = vmul.f32 0.5, %v6006_v38  ;;  %v5862_v46 = vpop.xlane.xlu1 %5861  ;;  %v6189_v54 = vadd.f32 %v6188_v31, %v12199_v2 }
0x151a   : > { %v5884_v7 = vmul.f32 %v5862_v46, %v13225_v3  ;;  %v6090_v26 = vmul.f32 %v12020_v51, %v6073_v15 }
0x151b   : > { %v6008_v19 = vsub.f32 1.5, %v6007_v44  ;;  %v6228_v52 = vmax.f32 %v6189_v54, 0.0 }
0x151c   : > { %v8210_v4 = vpop.eup %8209  ;;  %v5900_v18 = vadd.f32 1e-05, %v5884_v7  ;;  %v12205_v16 = vadd.f32 %v12034_v21, %v6090_v26 }
0x151d   : > { %v6009_v58 = vmul.f32 %v8208_v8, %v6008_v19  ;;  %v6015_v63 = vmul.f32 %v8210_v4, %v5899_v40  ;;  %vm6021_vm15 = vweird.f32 %v8210_v4 }
0x151e   : > { %8211 = vrsqrt.f32 %v5900_v18  ;;  %v6118_v55 = vpack.c.bf16 %v12205_v16, %v12202_v42  ;;  %vm6022_vm13 = vmor %vm6020_vm10, %vm6021_vm15  ;;  %vm6030_vm14 = vweird.f32 %v5900_v18 }
0x151f   : > { %v6016_v39 = vmul.f32 %v8210_v4, %v6015_v63  ;;  %v6013_v25 = vsel %vm6012_vm0, %v8208_v8, %v6009_v58  ;;  %vm13275_vm10 = vmmov %vm13273_vm3 }
0x1520   : > { %v6190_v0 = vpop.f32.mrf.mxu3  ;;  %7437 = vmatmul.msk.bf16.gmra.mxu3 %vm13272_vm1, %v6118_v55  ;;  %v6074_v24 = vmul.f32 %v6013_v25, %v12049_v28 }
0x1521   : > { %v6017_v41 = vmul.f32 0.5, %v6016_v39  ;;  %v6191_v48 = vadd.f32 %v6190_v0, %v12199_v2  ;;  %v5865_v1 = vpop.xlane.xlu0 %5864 }
0x1522   : > { %v5885_v36 = vmul.f32 %v5865_v1, %v13225_v3  ;;  %v6091_v61 = vmul.f32 %v12020_v51, %v6074_v24 }
0x1523   : > { %v6018_v49 = vsub.f32 1.5, %v6017_v41  ;;  %v6229_v34 = vmax.f32 %v6191_v48, 0.0 }
0x1524   : > { %v8212_v33 = vpop.eup %8211  ;;  %v5901_v53 = vadd.f32 1e-05, %v5885_v36  ;;  %v12218_v35 = vadd.f32 %v12034_v21, %v6091_v61 }
0x1525   : > { %v6019_v12 = vmul.f32 %v8210_v4, %v6018_v49  ;;  %v6025_v5 = vmul.f32 %v8212_v33, %v5900_v18  ;;  %v6244_v60 = vpack.c.bf16 %v6229_v34, %v6228_v52  ;;  %vm6031_vm9 = vweird.f32 %v8212_v33 }
0x1526   : > { %8213 = vrsqrt.f32 %v5901_v53  ;;  %vm6032_vm2 = vmor %vm6030_vm14, %vm6031_vm9  ;;  %vm6040_vm5 = vweird.f32 %v5901_v53 }
0x1527   : > { %v6023_v6 = vsel %vm6022_vm13, %v8210_v4, %v6019_v12  ;;  %v6026_v30 = vmul.f32 %v8212_v33, %v6025_v5  ;;  %6325 = vmatmul.bf16.vlgmr.msra.gmra.mxu0 %v6244_v60  ;;  %vm13276_vm13 = vmmov %vm13273_vm3 }
0x1528   : > { %v6075_v45 = vmul.f32 %v6023_v6, %v12074_v57  ;;  %v6193_v23 = vpop.f32.mrf.mxu3  ;;  %vm13277_vm9 = vmmov %vm13273_vm3 }
0x1529   : > { %v6027_v27 = vmul.f32 0.5, %v6026_v30  ;;  %v6194_v15 = vadd.f32 %v6193_v23, %v12199_v2  ;;  %v5868_v34 = vpop.xlane.xlu2 %5867  ;;  %vm13278_vm14 = vmmov %vm13273_vm3 }
0x152a   : > { %v6092_v8 = vmul.f32 %v12020_v51, %v6075_v45 }
0x152b   : > { %v6028_v14 = vsub.f32 1.5, %v6027_v27  ;;  %v6230_v26 = vmax.f32 %v6194_v15, 0.0 }
0x152c   : > { %v8214_v28 = vpop.eup %8213  ;;  %v12221_v40 = vadd.f32 %v12034_v21, %v6092_v8 }
0x152d   : > { %v6029_v17 = vmul.f32 %v8212_v33, %v6028_v14  ;;  %v6035_v62 = vmul.f32 %v8214_v28, %v5901_v53  ;;  %vm6041_vm4 = vweird.f32 %v8214_v28 }
0x152e   : > { %v6119_v57 = vpack.c.bf16 %v12221_v40, %v12218_v35  ;;  %vm6042_vm6 = vmor %vm6040_vm5, %vm6041_vm4 }
0x152f   : > { %v6036_v38 = vmul.f32 %v8214_v28, %v6035_v62  ;;  %v6033_v32 = vsel %vm6032_vm2, %v8212_v33, %v6029_v17  ;;  %v5886_v33 = vmul.f32 %v5868_v34, %v13225_v3  ;;  %vm13279_vm2 = vmmov %vm13273_vm3 }
0x1530   : > { %v6195_v31 = vpop.f32.mrf.mxu3  ;;  %7438 = vmatmul.msk.bf16.gmra.mxu3 %vm13273_vm3, %v6119_v57  ;;  %v6076_v4 = vmul.f32 %v6033_v32, %v12084_v56  ;;  %vm13280_vm3 = vmmov %vm13279_vm2 }
0x1531   : > { %v6037_v44 = vmul.f32 0.5, %v6036_v38  ;;  %v6196_v46 = vadd.f32 %v6195_v31, %v12199_v2  ;;  %v5902_v24 = vadd.f32 1e-05, %v5886_v33  ;;  %vm13281_vm4 = vmmov %vm13279_vm2 }
0x1532   : > { %v6093_v54 = vmul.f32 %v12020_v51, %v6076_v4  ;;  %vm13282_vm5 = vmmov %vm13279_vm2 }
0x1533   : > { %v6038_v7 = vsub.f32 1.5, %v6037_v44  ;;  %v6231_v19 = vmax.f32 %v6196_v46, 0.0  ;;  %8215 = vrsqrt.f32 %v5902_v24  ;;  %vm6050_vm12 = vweird.f32 %v5902_v24 }
0x1534   : > { %v12233_v25 = vadd.f32 %v12034_v21, %v6093_v54 }
0x1535   : > { %v6039_v58 = vmul.f32 %v8214_v28, %v6038_v7  ;;  %v6245_v18 = vpack.c.bf16 %v6231_v19, %v6230_v26 }
0x1537   : > { %v6043_v63 = vsel %vm6042_vm6, %v8214_v28, %v6039_v58  ;;  %6330 = vmatmul.bf16.gmra.mxu0 %v6245_v18  ;;  %vm13283_vm6 = vmmov %vm13279_vm2 }
0x1538   : > { %v6077_v55 = vmul.f32 %v6043_v63, %v12101_v10  ;;  %v6198_v39 = vpop.f32.mrf.mxu3 }
0x1539   : > { %v6199_v48 = vadd.f32 %v6198_v39, %v12199_v2  ;;  %v8216_v53 = vpop.eup %8215 }
0x153a   : > { %v6094_v0 = vmul.f32 %v12020_v51, %v6077_v55  ;;  %v6045_v12 = vmul.f32 %v8216_v53, %v5902_v24  ;;  %vm6051_vm8 = vweird.f32 %v8216_v53 }
0x153b   : > { %v6232_v36 = vmax.f32 %v6199_v48, 0.0  ;;  %vm6052_vm11 = vmor %vm6050_vm12, %vm6051_vm8 }
0x153c   : > { %v12236_v41 = vadd.f32 %v12034_v21, %v6094_v0  ;;  %v6046_v5 = vmul.f32 %v8216_v53, %v6045_v12  ;;  %vm13285_vm8 = vmmov %vm13279_vm2 }
0x153d   : > { %vm13286_vm12 = vmmov %vm13279_vm2 }
0x153e   : > { %v6120_v56 = vpack.c.bf16 %v12236_v41, %v12233_v25  ;;  %v6047_v45 = vmul.f32 0.5, %v6046_v5 }
0x1540   : > { %v6200_v1 = vpop.f32.mrf.mxu3  ;;  %7439 = vmatmul.msk.bf16.gmra.mxu3 %vm13274_vm7, %v6120_v56  ;;  %v6048_v23 = vsub.f32 1.5, %v6047_v45  ;;  %vm13284_vm7 = vmmov %vm13279_vm2 }
0x1541   : > { %v6201_v10 = vadd.f32 %v6200_v1, %v12199_v2 }
0x1542   : > { %v6049_v27 = vmul.f32 %v8216_v53, %v6048_v23 }
0x1543   : > { %v6233_v49 = vmax.f32 %v6201_v10, 0.0 }
0x1544   : > { %v6053_v28 = vsel %vm6052_vm11, %v8216_v53, %v6049_v27  ;;  %vm13287_vm11 = vmmov %vm13279_vm2 }
0x1545   : > { %v6246_v52 = vpack.c.bf16 %v6233_v49, %v6232_v36  ;;  %v6078_v57 = vmul.f32 %v6053_v28, %v12111_v9 }
0x1547   : > { %6335 = vmatmul.bf16.gmra.mxu0 %v6246_v52  ;;  %v6095_v44 = vmul.f32 %v12020_v51, %v6078_v57 }
0x1549   : > { %v12250_v7 = vadd.f32 %v12034_v21, %v6095_v44 }
0x157c   : > { %v5871_v60 = vpop.xlane.xlu1 %5870 }
0x157d   : > { %v5887_v6 = vmul.f32 %v5871_v60, %v13225_v3 }
0x157f   : > { %v5903_v30 = vadd.f32 1e-05, %v5887_v6 }
0x1581   : > { %8217 = vrsqrt.f32 %v5903_v30  ;;  %vm6060_vm1 = vweird.f32 %v5903_v30 }
0x1587   : > { %v8218_v61 = vpop.eup %8217 }
0x1588   : > { %v6055_v8 = vmul.f32 %v8218_v61, %v5903_v30  ;;  %vm6061_vm0 = vweird.f32 %v8218_v61 }
0x1589   : > { %vm6062_vm15 = vmor %vm6060_vm1, %vm6061_vm0 }
0x158a   : > { %v6056_v14 = vmul.f32 %v8218_v61, %v6055_v8  ;;  %vm13288_vm0 = vmmov %vm13279_vm2 }
0x158b   : > { %vm13289_vm1 = vmmov %vm13288_vm0 }
0x158c   : > { %v6057_v17 = vmul.f32 0.5, %v6056_v14 }
0x158e   : > { %v6058_v62 = vsub.f32 1.5, %v6057_v17 }
0x1590   : > { %v6059_v38 = vmul.f32 %v8218_v61, %v6058_v62 }
0x1592   : > { %v6063_v15 = vsel %vm6062_vm15, %v8218_v61, %v6059_v38  ;;  %vm13290_vm15 = vmmov %vm13288_vm0 }
0x1593   : > { %v6079_v31 = vmul.f32 %v6063_v15, %v12174_v11  ;;  %v6203_v32 = vpop.f32.mrf.mxu3 }
0x1594   : > { %v6204_v19 = vadd.f32 %v6203_v32, %v12199_v2 }
0x1595   : > { %v6096_v46 = vmul.f32 %v12020_v51, %v6079_v31  ;;  %v12261_v51 = vperm.slane %v12017_v13, 6 }
0x1596   : > { %v6234_v58 = vmax.f32 %v6204_v19, 0.0 }
0x1597   : > { %v12253_v26 = vadd.f32 %v12034_v21, %v6096_v46 }
0x1599   : > { %v6121_v9 = vpack.c.bf16 %v12253_v26, %v12250_v7 }
0x159b   : > { %v6205_v4 = vpop.f32.mrf.mxu3  ;;  %7440 = vmatmul.msk.bf16.gmra.mxu3 %vm13275_vm10, %v6121_v9  ;;  %vm13291_vm10 = vmmov %vm13288_vm0 }
0x159c   : > { %v6206_v11 = vadd.f32 %v6205_v4, %v12199_v2 }
0x159e   : > { %v6235_v18 = vmax.f32 %v6206_v11, 0.0 }
0x15a0   : > { %v6247_v63 = vpack.c.bf16 %v6235_v18, %v6234_v58 }
0x15a2   : > { %6340 = vmatmul.bf16.gmra.mxu0 %v6247_v63 }
0x15a3   : > { %v6208_v55 = vpop.f32.mrf.mxu3 }
0x15a4   : > { %v6326_v21 = vpop.f32.mrf.mxu0  ;;  %v6209_v56 = vadd.f32 %v6208_v55, %v12199_v2 }
0x15a5   : > { %v6327_v39 = vadd.f32 %v6326_v21, %v12261_v51 }
0x15a6   : > { %v6236_v13 = vmax.f32 %v6209_v56, 0.0 }
0x15a7   : > { %v6366_v54 = vadd.f32 %v6327_v39, %v12043_v59 }
0x15a9   : > { %v6382_v0 = vsel %vm13276_vm13, %v6366_v54, 0.0  ;;  %vm13292_vm13 = vmmov %vm13288_vm0 }
0x15aa   : > { %6383 = vadd.xlane.f32.xlu0 %v6382_v0 }
0x15ab   : > { %v6210_v48 = vpop.f32.mrf.mxu3 }
0x15ac   : > { %v6211_v1 = vadd.f32 %v6210_v48, %v12199_v2  ;;  %v6328_v10 = vpop.f32.mrf.mxu0 }
0x15ad   : > { %v6329_v36 = vadd.f32 %v6328_v10, %v12261_v51 }
0x15ae   : > { %v6237_v49 = vmax.f32 %v6211_v1, 0.0 }
0x15af   : > { %v6367_v52 = vadd.f32 %v6329_v36, %v12046_v37 }
0x15b0   : > { %v6248_v34 = vpack.c.bf16 %v6237_v49, %v6236_v13 }
0x15b1   : > { %v6385_v33 = vsel %vm13277_vm9, %v6367_v52, 0.0  ;;  %vm13293_vm9 = vmmov %vm13288_vm0 }
0x15b2   : > { %6386 = vadd.xlane.f32.xlu2 %v6385_v33  ;;  %6345 = vmatmul.bf16.gmra.mxu0 %v6248_v34 }
0x15b3   : > { %v6213_v59 = vpop.f32.mrf.mxu3 }
0x15b4   : > { %v6331_v24 = vpop.f32.mrf.mxu0  ;;  %v6214_v60 = vadd.f32 %v6213_v59, %v12199_v2 }
0x15b5   : > { %v6332_v53 = vadd.f32 %v6331_v24, %v12261_v51 }
0x15b6   : > { %v6238_v23 = vmax.f32 %v6214_v60, 0.0 }
0x15b7   : > { %v12273_v12 = vadd.f32 %v6332_v53, %v12087_v22 }
0x15b9   : > { %v6388_v5 = vsel %vm13278_vm14, %v12273_v12, 0.0  ;;  %vm13294_vm14 = vmmov %vm13288_vm0 }
0x15ba   : > { %6389 = vadd.xlane.f32.xlu1 %v6388_v5 }
0x15bb   : > { %v6215_v6 = vpop.f32.mrf.mxu3 }
0x15bc   : > { %v6216_v37 = vadd.f32 %v6215_v6, %v12199_v2  ;;  %v6333_v30 = vpop.f32.mrf.mxu0 }
0x15bd   : > { %v6334_v45 = vadd.f32 %v6333_v30, %v12261_v51 }
0x15be   : > { %v6239_v61 = vmax.f32 %v6216_v37, 0.0 }
0x15bf   : > { %v12281_v27 = vadd.f32 %v6334_v45, %v12090_v50 }
0x15c0   : > { %v6249_v8 = vpack.c.bf16 %v6239_v61, %v6238_v23 }
0x15c1   : > { %v6391_v22 = vsel %vm13279_vm2, %v12281_v27, 0.0  ;;  %vm13295_vm2 = vmmov %vm13288_vm0 }
0x15c2   : > { %6392 = vadd.xlane.f32.xlu0 %v6391_v22  ;;  %6350 = vmatmul.bf16.gmra.mxu0 %v6249_v8 }
0x15c3   : > { %v6218_v14 = vpop.f32.mrf.mxu3 }
0x15c4   : > { %v6336_v28 = vpop.f32.mrf.mxu0  ;;  %v6219_v38 = vadd.f32 %v6218_v14, %v12199_v2 }
0x15c5   : > { %v6337_v17 = vadd.f32 %v6336_v28, %v12261_v51 }
0x15c6   : > { %v6240_v44 = vmax.f32 %v6219_v38, 0.0 }
0x15c7   : > { %v12287_v62 = vadd.f32 %v6337_v17, %v12114_v43 }
0x15c9   : > { %v6394_v57 = vsel %vm13280_vm3, %v12287_v62, 0.0  ;;  %vm13296_vm3 = vmmov %vm13288_vm0 }
0x15ca   : > { %6395 = vadd.xlane.f32.xlu2 %v6394_v57 }
0x15cb   : > { %v6220_v50 = vpop.f32.mrf.mxu3 }
0x15cc   : > { %v6221_v15 = vadd.f32 %v6220_v50, %v12199_v2  ;;  %v6338_v31 = vpop.f32.mrf.mxu0 }
0x15cd   : > { %v6339_v32 = vadd.f32 %v6338_v31, %v12261_v51 }
0x15ce   : > { %v6241_v46 = vmax.f32 %v6221_v15, 0.0 }
0x15cf   : > { %v12295_v9 = vadd.f32 %v6339_v32, %v12117_v29 }
0x15d0   : > { %v6250_v19 = vpack.c.bf16 %v6241_v46, %v6240_v44 }
0x15d1   : > { %v6397_v43 = vsel %vm13281_vm4, %v12295_v9, 0.0  ;;  %vm13297_vm4 = vmmov %vm13288_vm0 }
0x15d2   : > { %6398 = vadd.xlane.f32.xlu1 %v6397_v43  ;;  %6355 = vmatmul.bf16.gmra.mxu0 %v6250_v19 }
0x161d   : > { %v6384_v4 = vpop.xlane.xlu0 %6383 }
0x161e   : > { %v6430_v11 = vmul.f32 %v6384_v4, %v13225_v3  ;;  %v6223_v58 = vpop.f32.mrf.mxu3 }
0x161f   : > { %v6341_v18 = vpop.f32.mrf.mxu0  ;;  %v6224_v56 = vadd.f32 %v6223_v58, %v12199_v2 }
0x1620   : > { %v12300_v63 = vsub.f32 %v6366_v54, %v6430_v11  ;;  %v6342_v55 = vadd.f32 %v6341_v18, %v12261_v51 }
0x1621   : > { %v6242_v49 = vmax.f32 %v6224_v56, 0.0  ;;  %v7575_v56 = vld [vmem:[%s12686_s1 + $0x44] sm:$0xf0] }
0x1622   : > { %v12304_v21 = vadd.f32 %v6342_v55, %v12184_v20  ;;  %v6462_v29 = vmul.f32 %v12300_v63, %v12300_v63 }
0x1624   : > { %v6478_v39 = vsel %vm13282_vm5, %v6462_v29, 0.0  ;;  %v6400_v0 = vsel %vm13283_vm6, %v12304_v21, 0.0 }
0x1625   : > { %v6387_v48 = vpop.xlane.xlu2 %6386  ;;  %6479 = vadd.xlane.f32.xlu0 %v6478_v39  ;;  %6401 = vadd.xlane.f32.xlu1 %v6400_v0  ;;  %v7487_v0 = vld [vmem:[%s12686_s1 + $0x40] sm:$0xf] }
0x1626   : > { %v6431_v54 = vmul.f32 %v6387_v48, %v13225_v3  ;;  %v6225_v1 = vpop.f32.mrf.mxu3  ;;  %v7488_v48 = vor.u32 %v7575_v56, %v7487_v0 }
0x1627   : > { %v6226_v10 = vadd.f32 %v6225_v1, %v12199_v2  ;;  %v6343_v20 = vpop.f32.mrf.mxu0 }
0x1628   : > { %v12314_v36 = vsub.f32 %v6367_v52, %v6431_v54  ;;  %v6344_v13 = vadd.f32 %v6343_v20, %v12261_v51  ;;  %6837 = vmatpush.bf16.msrb.mxu1 %v7488_v48  ;;  %v7483_v54 = vld [vmem:[%s12686_s1 + $0x30] sm:$0xf]  ;;  %v7573_v20 = vld [vmem:[%s12686_s1 + $0x24] sm:$0xf0] }
0x1629   : > { %v6243_v34 = vmax.f32 %v6226_v10, 0.0  ;;  %v7479_v10 = vld [vmem:[%s12686_s1 + $0x20] sm:$0xf] }
0x162a   : > { %v12318_v33 = vadd.f32 %v6344_v13, %v12187_v47  ;;  %v6463_v59 = vmul.f32 %v12314_v36, %v12314_v36 }
0x162b   : > { %v6251_v24 = vpack.c.bf16 %v6243_v34, %v6242_v49  ;;  %v7480_v34 = vor.u32 %v7573_v20, %v7479_v10 }
0x162c   : > { %v6481_v53 = vsel %vm13284_vm7, %v6463_v59, 0.0  ;;  %v6403_v5 = vsel %vm13285_vm8, %v12318_v33, 0.0  ;;  %vm13300_vm8 = vmmov %vm13288_vm0 }
0x162d   : > { %6482 = vadd.xlane.f32.xlu2 %v6481_v53  ;;  %6404 = vadd.xlane.f32.xlu0 %v6403_v5  ;;  %v6390_v2 = vpop.xlane.xlu1 %6389 }
0x162e   : > { %6360 = vmatmul.bf16.gmra.mxu0 %v6251_v24  ;;  %v6432_v52 = vmul.f32 %v6390_v2, %v13225_v3  ;;  %v7475_v2 = vld [vmem:[%s12686_s1 + $0x10] sm:$0xf] }
0x162f   : > { %v6346_v60 = vpop.f32.mrf.mxu0 }
0x1630   : > { %v12327_v6 = vsub.f32 %v12273_v12, %v6432_v52  ;;  %v6347_v47 = vadd.f32 %v6346_v60, %v12261_v51  ;;  %v7572_v52 = vld [vmem:[%s12686_s1 + $0x14] sm:$0xf0] }
0x1632   : > { %v12331_v37 = vadd.f32 %v6347_v47, %v12202_v42  ;;  %v6464_v30 = vmul.f32 %v12327_v6, %v12327_v6  ;;  %v7476_v47 = vor.u32 %v7572_v52, %v7475_v2 }
0x1634   : > { %v6406_v45 = vsel %vm13286_vm12, %v12331_v37, 0.0  ;;  %v6484_v23 = vsel %vm13287_vm11, %v6464_v30, 0.0  ;;  %vm13301_vm12 = vmmov %vm13288_vm0 }
0x1635   : > { %v6393_v61 = vpop.xlane.xlu0 %6392  ;;  %6407 = vadd.xlane.f32.xlu0 %v6406_v45  ;;  %6485 = vadd.xlane.f32.xlu2 %v6484_v23 }
0x1636   : > { %v6433_v8 = vmul.f32 %v6393_v61, %v13225_v3 }
0x1637   : > { %v6348_v12 = vpop.f32.mrf.mxu0 }
0x1638   : > { %v12340_v22 = vsub.f32 %v12281_v27, %v6433_v8  ;;  %v6349_v42 = vadd.f32 %v6348_v12, %v12261_v51 }
0x163a   : > { %v12344_v14 = vadd.f32 %v6349_v42, %v12205_v16  ;;  %v6465_v28 = vmul.f32 %v12340_v22, %v12340_v22 }
0x163c   : > { %v6487_v17 = vsel %vm13288_vm0, %v6465_v28, 0.0  ;;  %v6409_v57 = vsel %vm13289_vm1, %v12344_v14, 0.0 }
0x163d   : > { %v6396_v38 = vpop.xlane.xlu2 %6395  ;;  %6488 = vadd.xlane.f32.xlu1 %v6487_v17  ;;  %6410 = vadd.xlane.f32.xlu2 %v6409_v57 }
0x163e   : > { %v6434_v50 = vmul.f32 %v6396_v38, %v13225_v3 }
0x163f   : > { %v6351_v27 = vpop.f32.mrf.mxu0 }
0x1640   : > { %v12353_v15 = vsub.f32 %v12287_v62, %v6434_v50  ;;  %v6352_v16 = vadd.f32 %v6351_v27, %v12261_v51 }
0x1642   : > { %v12357_v31 = vadd.f32 %v6352_v16, %v12218_v35  ;;  %v6466_v32 = vmul.f32 %v12353_v15, %v12353_v15 }
0x1644   : > { %v6490_v44 = vsel %vm13290_vm15, %v6466_v32, 0.0  ;;  %v6412_v46 = vsel %vm13291_vm10, %v12357_v31, 0.0  ;;  %vm13302_vm15 = vmmov %vm13295_vm2 }
0x1645   : > { %6491 = vadd.xlane.f32.xlu1 %v6490_v44  ;;  %6413 = vadd.xlane.f32.xlu2 %v6412_v46  ;;  %v6399_v19 = vpop.xlane.xlu1 %6398  ;;  %vm13303_vm10 = vmmov %vm13295_vm2 }
0x1646   : > { %v6435_v43 = vmul.f32 %v6399_v19, %v13225_v3 }
0x1647   : > { %v6353_v62 = vpop.f32.mrf.mxu0 }
0x1648   : > { %v12366_v4 = vsub.f32 %v12295_v9, %v6435_v43  ;;  %v6354_v35 = vadd.f32 %v6353_v62, %v12261_v51 }
0x164a   : > { %v12370_v11 = vadd.f32 %v6354_v35, %v12221_v40  ;;  %v6467_v58 = vmul.f32 %v12366_v4, %v12366_v4 }
0x164c   : > { %v6415_v18 = vsel %vm13292_vm13, %v12370_v11, 0.0  ;;  %v6493_v55 = vsel %vm13293_vm9, %v6467_v58, 0.0 }
0x164d   : > { %6416 = vadd.xlane.f32.xlu1 %v6415_v18  ;;  %6494 = vadd.xlane.f32.xlu0 %v6493_v55 }
0x164f   : > { %v6356_v29 = vpop.f32.mrf.mxu0 }
0x1650   : > { %v6357_v39 = vadd.f32 %v6356_v29, %v12261_v51 }
0x1652   : > { %v12379_v9 = vadd.f32 %v6357_v39, %v12233_v25  ;;  %v7574_v25 = vld [vmem:[%s12686_s1 + $0x34] sm:$0xf0] }
0x1653   : > { %v7484_v1 = vor.u32 %v7574_v25, %v7483_v54 }
0x1654   : > { %v6418_v40 = vsel %vm13294_vm14, %v12379_v9, 0.0 }
0x1655   : > { %6419 = vadd.xlane.f32.xlu1 %v6418_v40  ;;  %6838 = vmatpush.bf16.msrb.mxu1 %v7484_v1 }
0x1657   : > { %v6358_v60 = vpop.f32.mrf.mxu0 }
0x1658   : > { %v6359_v45 = vadd.f32 %v6358_v60, %v12261_v51 }
0x1659   : > { %6839 = vmatpush.bf16.msrb.mxu1 %v7480_v34 }
0x165a   : > { %v12419_v28 = vadd.f32 %v6359_v45, %v12236_v41 }
0x165c   : > { %v6421_v32 = vsel %vm13297_vm4, %v12419_v28, 0.0 }
0x165d   : > { %6840 = vmatpush.bf16.msrb.mxu1 %v7476_v47 }
0x1698   : > { %v6480_v13 = vpop.xlane.xlu0 %6479  ;;  %v6402_v49 = vpop.xlane.xlu1 %6401 }
0x1699   : > { %v6526_v59 = vmul.f32 %v6480_v13, %v13225_v3  ;;  %v6436_v24 = vmul.f32 %v6402_v49, %v13225_v3 }
0x169b   : > { %v6542_v53 = vadd.f32 1e-05, %v6526_v59  ;;  %v12404_v5 = vsub.f32 %v12304_v21, %v6436_v24  ;;  %v12457_v59 = vld [vmem:[%s12687_s2 + $0x20] sm:$0xff] }
0x169c   : > { %v12460_v24 = vperm.slane %v12457_v59, 1 }
0x169d   : > { %8219 = vrsqrt.f32 %v6542_v53  ;;  %v6468_v30 = vmul.f32 %v12404_v5, %v12404_v5  ;;  %vm6564_vm6 = vweird.f32 %v6542_v53 }
0x169f   : > { %v6496_v21 = vsel %vm13295_vm2, %v6468_v30, 0.0 }
0x16a0   : > { %v6483_v23 = vpop.xlane.xlu2 %6482  ;;  %v6405_v61 = vpop.xlane.xlu0 %6404  ;;  %6497 = vadd.xlane.f32.xlu0 %v6496_v21 }
0x16a1   : > { %v6527_v8 = vmul.f32 %v6483_v23, %v13225_v3  ;;  %v6437_v12 = vmul.f32 %v6405_v61, %v13225_v3 }
0x16a3   : > { %v8220_v42 = vpop.eup %8219  ;;  %v6543_v17 = vadd.f32 1e-05, %v6527_v8  ;;  %v12422_v57 = vsub.f32 %v12318_v33, %v6437_v12 }
0x16a4   : > { %v6559_v38 = vmul.f32 %v8220_v42, %v6542_v53  ;;  %vm6565_vm5 = vweird.f32 %v8220_v42 }
0x16a5   : > { %8221 = vrsqrt.f32 %v6543_v17  ;;  %v6469_v50 = vmul.f32 %v12422_v57, %v12422_v57  ;;  %vm12443_vm7 = vmor %vm6564_vm6, %vm6565_vm5  ;;  %vm6574_vm0 = vweird.f32 %v6543_v17 }
0x16a6   : > { %v6560_v27 = vmul.f32 %v8220_v42, %v6559_v38 }
0x16a7   : > { %v6499_v16 = vsel %vm13296_vm3, %v6469_v50, 0.0  ;;  %vm13304_vm3 = vmmov %vm13295_vm2 }
0x16a8   : > { %v6561_v44 = vmul.f32 0.5, %v6560_v27  ;;  %v6408_v46 = vpop.xlane.xlu0 %6407  ;;  %6500 = vadd.xlane.f32.xlu2 %v6499_v16  ;;  %v6486_v41 = vpop.xlane.xlu2 %6485  ;;  %6422 = vadd.xlane.f32.xlu0 %v6421_v32 }
0x16a9   : > { %v6438_v19 = vmul.f32 %v6408_v46, %v13225_v3  ;;  %v6528_v33 = vmul.f32 %v6486_v41, %v13225_v3 }
0x16aa   : > { %v6562_v43 = vsub.f32 1.5, %v6561_v44 }
0x16ab   : > { %v8222_v62 = vpop.eup %8221  ;;  %v12432_v35 = vsub.f32 %v12331_v37, %v6438_v19  ;;  %v12434_v58 = vadd.f32 1e-05, %v6528_v33  ;;  %v6361_v18 = vpop.f32.mrf.mxu0 }
0x16ac   : > { %v6563_v55 = vmul.f32 %v8220_v42, %v6562_v43  ;;  %v6569_v29 = vmul.f32 %v8222_v62, %v6543_v17  ;;  %v6362_v39 = vadd.f32 %v6361_v18, %v12261_v51  ;;  %vm6575_vm11 = vweird.f32 %v8222_v62 }
0x16ad   : > { %8223 = vrsqrt.f32 %v12434_v58  ;;  %v6470_v40 = vmul.f32 %v12432_v35, %v12432_v35  ;;  %vm6576_vm1 = vmor %vm6574_vm0, %vm6575_vm11  ;;  %vm6584_vm9 = vweird.f32 %v12434_v58 }
0x16ae   : > { %v6570_v0 = vmul.f32 %v8222_v62, %v6569_v29  ;;  %v12441_v56 = vadd.f32 %v6362_v39, %v12250_v7  ;;  %v6567_v54 = vsel %vm12443_vm7, %v8220_v42, %v6563_v55  ;;  %vm13305_vm7 = vmmov %vm13295_vm2 }
0x16af   : > { %v6502_v48 = vsel %vm13300_vm8, %v6470_v40, 0.0  ;;  %v6718_v53 = vmul.f32 %v6567_v54, %v12300_v63  ;;  %vm13306_vm0 = vmmov %vm13295_vm2 }
0x16b0   : > { %v6571_v25 = vmul.f32 0.5, %v6570_v0  ;;  %6503 = vadd.xlane.f32.xlu2 %v6502_v48  ;;  %v6411_v1 = vpop.xlane.xlu2 %6410  ;;  %v6424_v10 = vsel %vm13301_vm12, %v12441_v56, 0.0  ;;  %v6489_v20 = vpop.xlane.xlu1 %6488 }
0x16b1   : > { %v6439_v13 = vmul.f32 %v6411_v1, %v13225_v3  ;;  %6425 = vadd.xlane.f32.xlu0 %v6424_v10  ;;  %v6529_v7 = vmul.f32 %v6489_v20, %v13225_v3  ;;  %v6735_v8 = vmul.f32 %v12460_v24, %v6718_v53 }
0x16b2   : > { %v6572_v49 = vsub.f32 1.5, %v6571_v25 }
0x16b3   : > { %v8224_v34 = vpop.eup %8223  ;;  %v12464_v2 = vsub.f32 %v12344_v14, %v6439_v13  ;;  %v6545_v52 = vadd.f32 1e-05, %v6529_v7  ;;  %v6363_v60 = vpop.f32.mrf.mxu0  ;;  %v12474_v14 = vperm.slane %v12457_v59, 2 }
0x16b4   : > { %v6573_v47 = vmul.f32 %v8222_v62, %v6572_v49  ;;  %v6579_v30 = vmul.f32 %v8224_v34, %v12434_v58  ;;  %v6364_v45 = vadd.f32 %v6363_v60, %v12261_v51  ;;  %vm6585_vm13 = vweird.f32 %v8224_v34 }
0x16b5   : > { %8225 = vrsqrt.f32 %v6545_v52  ;;  %v6471_v21 = vmul.f32 %v12464_v2, %v12464_v2  ;;  %vm6586_vm14 = vmor %vm6584_vm9, %vm6585_vm13  ;;  %vm6594_vm5 = vweird.f32 %v6545_v52 }
0x16b6   : > { %v6577_v23 = vsel %vm6576_vm1, %v8222_v62, %v6573_v47  ;;  %v6580_v61 = vmul.f32 %v8224_v34, %v6579_v30  ;;  %v12471_v63 = vadd.f32 %v6364_v45, %v12253_v26  ;;  %vm13307_vm1 = vmmov %vm13306_vm0 }
0x16b7   : > { %v6719_v12 = vmul.f32 %v6577_v23, %v12314_v36  ;;  %v6505_v42 = vsel %vm13302_vm15, %v6471_v21, 0.0  ;;  %v6752_v36 = vadd.f32 %v12474_v14, %v6735_v8  ;;  %vm13308_vm9 = vmmov %vm13306_vm0 }
0x16b8   : > { %v6581_v51 = vmul.f32 0.5, %v6580_v61  ;;  %v6427_v17 = vsel %vm13303_vm10, %v12471_v63, 0.0  ;;  %6506 = vadd.xlane.f32.xlu1 %v6505_v42  ;;  %v6414_v38 = vpop.xlane.xlu2 %6413  ;;  %v6492_v50 = vpop.xlane.xlu1 %6491 }
0x16b9   : > { %v6736_v27 = vmul.f32 %v12460_v24, %v6719_v12  ;;  %6428 = vadd.xlane.f32.xlu2 %v6427_v17  ;;  %v6440_v26 = vmul.f32 %v6414_v38, %v13225_v3  ;;  %v6530_v16 = vmul.f32 %v6492_v50, %v13225_v3 }
0x16ba   : > { %v6582_v32 = vsub.f32 1.5, %v6581_v51 }
0x16bb   : > { %v8226_v44 = vpop.eup %8225  ;;  %v6753_v46 = vadd.f32 %v12474_v14, %v6736_v27  ;;  %v12487_v41 = vsub.f32 %v12357_v31, %v6440_v26  ;;  %v6546_v19 = vadd.f32 1e-05, %v6530_v16 }
0x16bc   : > { %v6583_v33 = vmul.f32 %v8224_v34, %v6582_v32  ;;  %v6589_v43 = vmul.f32 %v8226_v44, %v6545_v52  ;;  %vm6595_vm4 = vweird.f32 %v8226_v44 }
0x16bd   : > { %v6768_v62 = vpack.c.bf16 %v6753_v46, %v6752_v36  ;;  %8227 = vrsqrt.f32 %v6546_v19  ;;  %v6472_v18 = vmul.f32 %v12487_v41, %v12487_v41  ;;  %vm6596_vm6 = vmor %vm6594_vm5, %vm6595_vm4  ;;  %vm6604_vm12 = vweird.f32 %v6546_v19 }
0x16be   : > { %v6590_v55 = vmul.f32 %v8226_v44, %v6589_v43  ;;  %v6587_v39 = vsel %vm6586_vm14, %v8224_v34, %v6583_v33  ;;  %vm13309_vm14 = vmmov %vm13306_vm0 }
0x16bf   : > { %7489 = vmatmul.msk.bf16.vlgmr.msrb.gmra.mxu1 %vm13295_vm2, %v6768_v62  ;;  %v6508_v29 = vsel %vm13304_vm3, %v6472_v18, 0.0  ;;  %v6720_v58 = vmul.f32 %v6587_v39, %v12327_v6  ;;  %v7579_v39 = vld [vmem:[%s12686_s1 + $0x84] sm:$0xf0]  ;;  %vm13310_vm5 = vmmov %vm13306_vm0 }
0x16c0   : > { %v6591_v31 = vmul.f32 0.5, %v6590_v55  ;;  %6509 = vadd.xlane.f32.xlu1 %v6508_v29  ;;  %v6495_v40 = vpop.xlane.xlu0 %6494  ;;  %v6417_v0 = vpop.xlane.xlu1 %6416 }
0x16c1   : > { %v6531_v37 = vmul.f32 %v6495_v40, %v13225_v3  ;;  %v6441_v48 = vmul.f32 %v6417_v0, %v13225_v3  ;;  %v6737_v6 = vmul.f32 %v12460_v24, %v6720_v58  ;;  %v7507_v58 = vld [vmem:[%s12686_s1 + $0x70] sm:$0xf] }
0x16c2   : > { %v6592_v54 = vsub.f32 1.5, %v6591_v31 }
0x16c3   : > { %v8228_v25 = vpop.eup %8227  ;;  %v6547_v1 = vadd.f32 1e-05, %v6531_v37  ;;  %v12498_v10 = vsub.f32 %v12370_v11, %v6441_v48  ;;  %v6754_v61 = vadd.f32 %v12474_v14, %v6737_v6 }
0x16c4   : > { %v6593_v20 = vmul.f32 %v8226_v44, %v6592_v54  ;;  %v6599_v13 = vmul.f32 %v8228_v25, %v6546_v19  ;;  %vm6605_vm8 = vweird.f32 %v8228_v25 }
0x16c5   : > { %8229 = vrsqrt.f32 %v6547_v1  ;;  %v6473_v7 = vmul.f32 %v12498_v10, %v12498_v10  ;;  %vm6606_vm11 = vmor %vm6604_vm12, %vm6605_vm8  ;;  %vm6614_vm10 = vweird.f32 %v6547_v1 }
0x16c6   : > { %v6597_v49 = vsel %vm6596_vm6, %v8226_v44, %v6593_v20  ;;  %v6600_v34 = vmul.f32 %v8228_v25, %v6599_v13  ;;  %vm13311_vm12 = vmmov %vm13306_vm0 }
0x16c7   : > { %v6721_v53 = vmul.f32 %v6597_v49, %v12340_v22  ;;  %v6511_v60 = vsel %vm13305_vm7, %v6473_v7, 0.0 }
0x16c8   : > { %v6601_v47 = vmul.f32 0.5, %v6600_v34  ;;  %6512 = vadd.xlane.f32.xlu0 %v6511_v60  ;;  %v6420_v11 = vpop.xlane.xlu1 %6419  ;;  %v7577_v60 = vld [vmem:[%s12686_s1 + $0x64] sm:$0xf0] }
0x16c9   : > { %v6442_v30 = vmul.f32 %v6420_v11, %v13225_v3  ;;  %v6738_v52 = vmul.f32 %v12460_v24, %v6721_v53  ;;  %v7503_v53 = vld [vmem:[%s12686_s1 + $0x60] sm:$0xf] }
0x16ca   : > { %v6602_v45 = vsub.f32 1.5, %v6601_v47  ;;  %v7504_v11 = vor.u32 %v7577_v60, %v7503_v53 }
0x16cb   : > { %v8230_v21 = vpop.eup %8229  ;;  %v12508_v23 = vsub.f32 %v12379_v9, %v6442_v30  ;;  %v6755_v22 = vadd.f32 %v12474_v14, %v6738_v52 }
0x16cc   : > { %v6603_v8 = vmul.f32 %v8228_v25, %v6602_v45  ;;  %v6609_v12 = vmul.f32 %v8230_v21, %v6547_v1  ;;  %vm6615_vm15 = vweird.f32 %v8230_v21  ;;  %v7578_v1 = vld [vmem:[%s12686_s1 + $0x74] sm:$0xf0] }
0x16cd   : > { %v6769_v42 = vpack.c.bf16 %v6755_v22, %v6754_v61  ;;  %v6474_v51 = vmul.f32 %v12508_v23, %v12508_v23  ;;  %vm6616_vm13 = vmor %vm6614_vm10, %vm6615_vm15  ;;  %v7508_v13 = vor.u32 %v7578_v1, %v7507_v58 }
0x16ce   : > { %v6610_v17 = vmul.f32 %v8230_v21, %v6609_v12  ;;  %v6607_v9 = vsel %vm6606_vm11, %v8228_v25, %v6603_v8  ;;  %v7499_v12 = vld [vmem:[%s12686_s1 + $0x50] sm:$0xf]  ;;  %vm13312_vm15 = vmmov %vm13310_vm5 }
0x16cf   : > { %7490 = vmatmul.msk.bf16.gmra.mxu1 %vm13306_vm0, %v6769_v42  ;;  %v6514_v38 = vsel %vm13307_vm1, %v6474_v51, 0.0  ;;  %v6722_v26 = vmul.f32 %v6607_v9, %v12353_v15  ;;  %v7576_v42 = vld [vmem:[%s12686_s1 + $0x54] sm:$0xf0] }
0x16d0   : > { %v6611_v50 = vmul.f32 0.5, %v6610_v17  ;;  %6515 = vadd.xlane.f32.xlu2 %v6514_v38  ;;  %v7500_v51 = vor.u32 %v7576_v42, %v7499_v12 }
0x16d1   : > { %v6739_v36 = vmul.f32 %v12460_v24, %v6722_v26 }
0x16d2   : > { %v6612_v27 = vsub.f32 1.5, %v6611_v50 }
0x16d3   : > { %v6756_v19 = vadd.f32 %v12474_v14, %v6739_v36 }
0x16d4   : > { %v6613_v16 = vmul.f32 %v8230_v21, %v6612_v27 }
0x16d6   : > { %v6617_v32 = vsel %vm6616_vm13, %v8230_v21, %v6613_v16 }
0x16d7   : > { %v6723_v44 = vmul.f32 %v6617_v32, %v12366_v4  ;;  %v7511_v4 = vld [vmem:[%s12686_s1 + $0x80] sm:$0xf] }
0x16d8   : > { %v7512_v0 = vor.u32 %v7579_v39, %v7511_v4 }
0x16d9   : > { %v6740_v46 = vmul.f32 %v12460_v24, %v6723_v44 }
0x16da   : > { %6967 = vmatpush.bf16.msra.mxu2 %v7512_v0 }
0x16db   : > { %v6757_v33 = vadd.f32 %v12474_v14, %v6740_v46 }
0x16dd   : > { %v6770_v43 = vpack.c.bf16 %v6757_v33, %v6756_v19 }
0x16de   : > { %6968 = vmatpush.bf16.msra.mxu2 %v7508_v13 }
0x16df   : > { %7491 = vmatmul.msk.bf16.gmra.mxu1 %vm13308_vm9, %v6770_v43 }
0x16e2   : > { %6969 = vmatpush.bf16.msra.mxu2 %v7504_v11 }
0x16e6   : > { %6970 = vmatpush.bf16.msra.mxu2 %v7500_v51 }
0x1713   : > { %v6498_v62 = vpop.xlane.xlu0 %6497 }
0x1714   : > { %v6532_v15 = vmul.f32 %v6498_v62, %v13225_v3 }
0x1716   : > { %v6548_v18 = vadd.f32 1e-05, %v6532_v15 }
0x1718   : > { %8231 = vrsqrt.f32 %v6548_v18  ;;  %vm6624_vm3 = vweird.f32 %v6548_v18 }
0x171b   : > { %v6501_v55 = vpop.xlane.xlu2 %6500  ;;  %v6423_v29 = vpop.xlane.xlu0 %6422 }
0x171c   : > { %v6533_v31 = vmul.f32 %v6501_v55, %v13225_v3  ;;  %v6443_v40 = vmul.f32 %v6423_v29, %v13225_v3 }
0x171e   : > { %v8232_v37 = vpop.eup %8231  ;;  %v6549_v48 = vadd.f32 1e-05, %v6533_v31  ;;  %v12533_v54 = vsub.f32 %v12419_v28, %v6443_v40 }
0x171f   : > { %v6619_v25 = vmul.f32 %v8232_v37, %v6548_v18  ;;  %vm6625_vm2 = vweird.f32 %v8232_v37 }
0x1720   : > { %8233 = vrsqrt.f32 %v6549_v48  ;;  %v6475_v20 = vmul.f32 %v12533_v54, %v12533_v54  ;;  %vm6626_vm4 = vmor %vm6624_vm3, %vm6625_vm2  ;;  %vm6634_vm7 = vweird.f32 %v6549_v48 }
0x1721   : > { %v6620_v7 = vmul.f32 %v8232_v37, %v6619_v25 }
0x1722   : > { %v6517_v49 = vsel %vm13309_vm14, %v6475_v20, 0.0 }
0x1723   : > { %v6621_v28 = vmul.f32 0.5, %v6620_v7  ;;  %v6504_v34 = vpop.xlane.xlu2 %6503  ;;  %6518 = vadd.xlane.f32.xlu1 %v6517_v49 }
0x1724   : > { %v6534_v6 = vmul.f32 %v6504_v34, %v13225_v3  ;;  %v6426_v47 = vpop.xlane.xlu0 %6425 }
0x1725   : > { %v6622_v30 = vsub.f32 1.5, %v6621_v28  ;;  %v6444_v52 = vmul.f32 %v6426_v47, %v13225_v3 }
0x1726   : > { %v8234_v45 = vpop.eup %8233  ;;  %v6550_v21 = vadd.f32 1e-05, %v6534_v6 }
0x1727   : > { %v6623_v61 = vmul.f32 %v8232_v37, %v6622_v30  ;;  %v6629_v22 = vmul.f32 %v8234_v45, %v6549_v48  ;;  %v12553_v8 = vsub.f32 %v12441_v56, %v6444_v52  ;;  %vm6635_vm6 = vweird.f32 %v8234_v45 }
0x1728   : > { %8235 = vrsqrt.f32 %v6550_v21  ;;  %vm6636_vm8 = vmor %vm6634_vm7, %vm6635_vm6  ;;  %vm6644_vm0 = vweird.f32 %v6550_v21 }
0x1729   : > { %v6630_v17 = vmul.f32 %v8234_v45, %v6629_v22  ;;  %v6476_v38 = vmul.f32 %v12553_v8, %v12553_v8  ;;  %v6627_v9 = vsel %vm6626_vm4, %v8232_v37, %v6623_v61  ;;  %vm13313_vm4 = vmmov %vm13310_vm5 }
0x172a   : > { %v6724_v46 = vmul.f32 %v6627_v9, %v12404_v5 }
0x172b   : > { %v6631_v56 = vmul.f32 0.5, %v6630_v17  ;;  %v6520_v50 = vsel %vm13310_vm5, %v6476_v38, 0.0  ;;  %v6507_v27 = vpop.xlane.xlu1 %6506  ;;  %vm13314_vm5 = vmmov %vm13313_vm4 }
0x172c   : > { %v6429_v26 = vpop.xlane.xlu2 %6428  ;;  %6521 = vadd.xlane.f32.xlu0 %v6520_v50  ;;  %v6535_v16 = vmul.f32 %v6507_v27, %v13225_v3  ;;  %v6741_v4 = vmul.f32 %v12460_v24, %v6724_v46 }
0x172d   : > { %v6632_v32 = vsub.f32 1.5, %v6631_v56  ;;  %v6445_v44 = vmul.f32 %v6429_v26, %v13225_v3 }
0x172e   : > { %v8236_v36 = vpop.eup %8235  ;;  %v6551_v19 = vadd.f32 1e-05, %v6535_v16  ;;  %v6758_v25 = vadd.f32 %v12474_v14, %v6741_v4 }
0x172f   : > { %v6633_v33 = vmul.f32 %v8234_v45, %v6632_v32  ;;  %v6639_v43 = vmul.f32 %v8236_v36, %v6550_v21  ;;  %v12568_v62 = vsub.f32 %v12471_v63, %v6445_v44  ;;  %vm6645_vm11 = vweird.f32 %v8236_v36 }
0x1730   : > { %8237 = vrsqrt.f32 %v6551_v19  ;;  %vm6646_vm1 = vmor %vm6644_vm0, %vm6645_vm11  ;;  %vm6654_vm13 = vweird.f32 %v6551_v19 }
0x1731   : > { %v6637_v15 = vsel %vm6636_vm8, %v8234_v45, %v6633_v33  ;;  %v6640_v18 = vmul.f32 %v8236_v36, %v6639_v43  ;;  %v6477_v55 = vmul.f32 %v12568_v62, %v12568_v62  ;;  %v12583_v45 = vperm.slane %v12457_v59, 3  ;;  %vm13316_vm11 = vmmov %vm13313_vm4 }
0x1732   : > { %v6725_v29 = vmul.f32 %v6637_v15, %v12422_v57  ;;  %vm13317_vm0 = vmmov %vm13313_vm4 }
0x1733   : > { %v6641_v39 = vmul.f32 0.5, %v6640_v18  ;;  %v6523_v5 = vsel %vm13311_vm12, %v6477_v55, 0.0  ;;  %v6510_v31 = vpop.xlane.xlu1 %6509  ;;  %vm13315_vm12 = vmmov %vm13313_vm4 }
0x1734   : > { %6524 = vadd.xlane.f32.xlu2 %v6523_v5  ;;  %v6536_v40 = vmul.f32 %v6510_v31, %v13225_v3  ;;  %v6742_v63 = vmul.f32 %v12460_v24, %v6725_v29 }
0x1735   : > { %v6642_v0 = vsub.f32 1.5, %v6641_v39 }
0x1736   : > { %v8238_v37 = vpop.eup %8237  ;;  %v6552_v48 = vadd.f32 1e-05, %v6536_v40  ;;  %v6759_v58 = vadd.f32 %v12474_v14, %v6742_v63 }
0x1737   : > { %v6643_v1 = vmul.f32 %v8236_v36, %v6642_v0  ;;  %v6649_v57 = vmul.f32 %v8238_v37, %v6551_v19  ;;  %vm6655_vm10 = vweird.f32 %v8238_v37 }
0x1738   : > { %8239 = vrsqrt.f32 %v6552_v48  ;;  %v6771_v20 = vpack.c.bf16 %v6759_v58, %v6758_v25  ;;  %vm6656_vm9 = vmor %vm6654_vm13, %vm6655_vm10  ;;  %vm6664_vm2 = vweird.f32 %v6552_v48 }
0x1739   : > { %v6650_v13 = vmul.f32 %v8238_v37, %v6649_v57  ;;  %v6647_v7 = vsel %vm6646_vm1, %v8236_v36, %v6643_v1 }
0x173a   : > { %7492 = vmatmul.msk.bf16.gmra.mxu1 %vm13312_vm15, %v6771_v20  ;;  %v6726_v47 = vmul.f32 %v6647_v7, %v12432_v35 }
0x173b   : > { %v6651_v49 = vmul.f32 0.5, %v6650_v13  ;;  %v6513_v28 = vpop.xlane.xlu0 %6512 }
0x173c   : > { %v6537_v34 = vmul.f32 %v6513_v28, %v13225_v3  ;;  %v6842_v53 = vpop.f32.mrf.mxu1  ;;  %v6743_v12 = vmul.f32 %v12460_v24, %v6726_v47 }
0x173d   : > { %v6652_v60 = vsub.f32 1.5, %v6651_v49  ;;  %v6843_v51 = vadd.f32 %v6842_v53, %v12583_v45 }
0x173e   : > { %v8240_v6 = vpop.eup %8239  ;;  %v6553_v11 = vadd.f32 1e-05, %v6537_v34  ;;  %v6760_v50 = vadd.f32 %v12474_v14, %v6743_v12 }
0x173f   : > { %v6653_v30 = vmul.f32 %v8238_v37, %v6652_v60  ;;  %v6659_v52 = vmul.f32 %v8240_v6, %v6552_v48  ;;  %vm6665_vm14 = vweird.f32 %v8240_v6 }
0x1740   : > { %8241 = vrsqrt.f32 %v6553_v11  ;;  %vm6666_vm3 = vmor %vm6664_vm2, %vm6665_vm14  ;;  %vm6674_vm7 = vweird.f32 %v6553_v11 }
0x1741   : > { %v6657_v21 = vsel %vm6656_vm9, %v8238_v37, %v6653_v30  ;;  %v6660_v61 = vmul.f32 %v8240_v6, %v6659_v52 }
0x1742   : > { %v6727_v22 = vmul.f32 %v6657_v21, %v12464_v2  ;;  %v6882_v2 = vmax.f32 %v6843_v51, 0.0 }
0x1743   : > { %v6661_v42 = vmul.f32 0.5, %v6660_v61  ;;  %v6516_v28 = vpop.xlane.xlu2 %6515 }
0x1744   : > { %v6844_v17 = vpop.f32.mrf.mxu1  ;;  %v6744_v35 = vmul.f32 %v12460_v24, %v6727_v22  ;;  %v6538_v34 = vmul.f32 %v6516_v28, %v13225_v3 }
0x1745   : > { %v6662_v38 = vsub.f32 1.5, %v6661_v42  ;;  %v6845_v9 = vadd.f32 %v6844_v17, %v12583_v45 }
0x1746   : > { %v8242_v56 = vpop.eup %8241  ;;  %v6761_v27 = vadd.f32 %v12474_v14, %v6744_v35  ;;  %v6554_v53 = vadd.f32 1e-05, %v6538_v34 }
0x1747   : > { %v6663_v26 = vmul.f32 %v8240_v6, %v6662_v38  ;;  %v6669_v16 = vmul.f32 %v8242_v56, %v6553_v11  ;;  %v6883_v32 = vmax.f32 %v6845_v9, 0.0  ;;  %vm6675_vm6 = vweird.f32 %v8242_v56 }
0x1748   : > { %v6772_v44 = vpack.c.bf16 %v6761_v27, %v6760_v50  ;;  %vm6676_vm8 = vmor %vm6674_vm7, %vm6675_vm6  ;;  %8243 = vrsqrt.f32 %v6554_v53  ;;  %vm6684_vm15 = vweird.f32 %v6554_v53 }
0x1749   : > { %v6670_v36 = vmul.f32 %v8242_v56, %v6669_v16  ;;  %v6898_v46 = vpack.c.bf16 %v6883_v32, %v6882_v2  ;;  %v6667_v19 = vsel %vm6666_vm3, %v8240_v6, %v6663_v26 }
0x174a   : > { %7493 = vmatmul.msk.bf16.gmra.mxu1 %vm13313_vm4, %v6772_v44  ;;  %v6728_v18 = vmul.f32 %v6667_v19, %v12487_v41  ;;  %vm13318_vm4 = vmmov %vm13317_vm0 }
0x174b   : > { %v6671_v33 = vmul.f32 0.5, %v6670_v36  ;;  %7513 = vmatmul.msk.bf16.vlgmr.msra.gmra.mxu2 %vm13314_vm5, %v6898_v46 }
0x174c   : > { %v6847_v43 = vpop.f32.mrf.mxu1  ;;  %v6745_v39 = vmul.f32 %v12460_v24, %v6728_v18 }
0x174d   : > { %v6672_v15 = vsub.f32 1.5, %v6671_v33  ;;  %v6848_v5 = vadd.f32 %v6847_v43, %v12583_v45 }
0x174e   : > { %v6762_v0 = vadd.f32 %v12474_v14, %v6745_v39  ;;  %v8244_v60 = vpop.eup %8243 }
0x174f   : > { %v6673_v55 = vmul.f32 %v8242_v56, %v6672_v15  ;;  %v6884_v41 = vmax.f32 %v6848_v5, 0.0  ;;  %v6679_v6 = vmul.f32 %v8244_v60, %v6554_v53  ;;  %vm6685_vm1 = vweird.f32 %v8244_v60 }
0x1750   : > { %vm6686_vm10 = vmor %vm6684_vm15, %vm6685_vm1  ;;  %v12629_v53 = vperm.slane %v12457_v59, 4 }
0x1751   : > { %v6677_v29 = vsel %vm6676_vm8, %v8242_v56, %v6673_v55  ;;  %v6680_v47 = vmul.f32 %v8244_v60, %v6679_v6  ;;  %vm13321_vm1 = vmmov %vm13317_vm0 }
0x1752   : > { %v6729_v4 = vmul.f32 %v6677_v29, %v12498_v10  ;;  %vm13322_vm15 = vmmov %vm13317_vm0 }
0x1753   : > { %v6681_v21 = vmul.f32 0.5, %v6680_v47 }
0x1754   : > { %v6849_v31 = vpop.f32.mrf.mxu1  ;;  %v6746_v40 = vmul.f32 %v12460_v24, %v6729_v4 }
0x1755   : > { %v6850_v63 = vadd.f32 %v6849_v31, %v12583_v45  ;;  %v6682_v61 = vsub.f32 1.5, %v6681_v21 }
0x1756   : > { %v6763_v37 = vadd.f32 %v12474_v14, %v6746_v40 }
0x1757   : > { %v6885_v48 = vmax.f32 %v6850_v63, 0.0  ;;  %v6683_v51 = vmul.f32 %v8244_v60, %v6682_v61 }
0x1758   : > { %v6773_v25 = vpack.c.bf16 %v6763_v37, %v6762_v0 }
0x1759   : > { %v6899_v58 = vpack.c.bf16 %v6885_v48, %v6884_v41  ;;  %v6687_v9 = vsel %vm6686_vm10, %v8244_v60, %v6683_v51  ;;  %vm13323_vm10 = vmmov %vm13317_vm0 }
0x175a   : > { %7494 = vmatmul.msk.bf16.gmra.mxu1 %vm13315_vm12, %v6773_v25  ;;  %v6730_v16 = vmul.f32 %v6687_v9, %v12508_v23  ;;  %vm13319_vm12 = vmmov %vm13317_vm0 }
0x175b   : > { %7514 = vmatmul.msk.bf16.gmra.mxu2 %vm13316_vm11, %v6899_v58  ;;  %vm13320_vm11 = vmmov %vm13317_vm0 }
0x175c   : > { %v6852_v10 = vpop.f32.mrf.mxu1  ;;  %v6747_v43 = vmul.f32 %v12460_v24, %v6730_v16 }
0x175d   : > { %v6853_v1 = vadd.f32 %v6852_v10, %v12583_v45 }
0x175f   : > { %v6886_v13 = vmax.f32 %v6853_v1, 0.0 }
0x1764   : > { %v6854_v57 = vpop.f32.mrf.mxu1 }
0x1765   : > { %v6855_v20 = vadd.f32 %v6854_v57, %v12583_v45 }
0x1767   : > { %v6887_v7 = vmax.f32 %v6855_v20, 0.0 }
0x1769   : > { %v6900_v49 = vpack.c.bf16 %v6887_v7, %v6886_v13 }
0x176b   : > { %7515 = vmatmul.msk.bf16.gmra.mxu2 %vm13317_vm0, %v6900_v49 }
0x1796   : > { %v6519_v11 = vpop.xlane.xlu1 %6518 }
0x1797   : > { %v6539_v30 = vmul.f32 %v6519_v11, %v13225_v3 }
0x1799   : > { %v6555_v52 = vadd.f32 1e-05, %v6539_v30 }
0x179b   : > { %8245 = vrsqrt.f32 %v6555_v52  ;;  %vm6694_vm9 = vweird.f32 %v6555_v52 }
0x179f   : > { %v6522_v22 = vpop.xlane.xlu0 %6521 }
0x17a0   : > { %v6540_v12 = vmul.f32 %v6522_v22, %v13225_v3 }
0x17a1   : > { %v8246_v42 = vpop.eup %8245 }
0x17a2   : > { %v6689_v17 = vmul.f32 %v8246_v42, %v6555_v52  ;;  %v6556_v35 = vadd.f32 1e-05, %v6540_v12  ;;  %vm6695_vm13 = vweird.f32 %v8246_v42 }
0x17a3   : > { %vm6696_vm14 = vmor %vm6694_vm9, %vm6695_vm13 }
0x17a4   : > { %v6690_v38 = vmul.f32 %v8246_v42, %v6689_v17  ;;  %8247 = vrsqrt.f32 %v6556_v35  ;;  %vm6704_vm3 = vweird.f32 %v6556_v35 }
0x17a6   : > { %v6691_v56 = vmul.f32 0.5, %v6690_v38 }
0x17a7   : > { %v6525_v50 = vpop.xlane.xlu2 %6524 }
0x17a8   : > { %v6692_v27 = vsub.f32 1.5, %v6691_v56  ;;  %v6541_v26 = vmul.f32 %v6525_v50, %v13225_v3  ;;  %v6764_v3 = vadd.f32 %v12474_v14, %v6747_v43 }
0x17aa   : > { %v8248_v2 = vpop.eup %8247  ;;  %v6693_v32 = vmul.f32 %v8246_v42, %v6692_v27  ;;  %v6557_v44 = vadd.f32 1e-05, %v6541_v26 }
0x17ab   : > { %v6699_v36 = vmul.f32 %v8248_v2, %v6556_v35  ;;  %vm6705_vm2 = vweird.f32 %v8248_v2 }
0x17ac   : > { %v6697_v46 = vsel %vm6696_vm14, %v8246_v42, %v6693_v32  ;;  %8249 = vrsqrt.f32 %v6557_v44  ;;  %vm6706_vm5 = vmor %vm6704_vm3, %vm6705_vm2  ;;  %vm6714_vm7 = vweird.f32 %v6557_v44 }
0x17ad   : > { %v6731_v19 = vmul.f32 %v6697_v46, %v12533_v54  ;;  %v6700_v33 = vmul.f32 %v8248_v2, %v6699_v36 }
0x17af   : > { %v6701_v15 = vmul.f32 0.5, %v6700_v33  ;;  %v6748_v18 = vmul.f32 %v12460_v24, %v6731_v19 }
0x17b1   : > { %v6702_v55 = vsub.f32 1.5, %v6701_v15  ;;  %v6765_v23 = vadd.f32 %v12474_v14, %v6748_v18 }
0x17b2   : > { %v8250_v29 = vpop.eup %8249 }
0x17b3   : > { %v6703_v4 = vmul.f32 %v8248_v2, %v6702_v55  ;;  %v6709_v39 = vmul.f32 %v8250_v29, %v6557_v44  ;;  %v6774_v5 = vpack.c.bf16 %v6765_v23, %v6764_v3  ;;  %vm6715_vm6 = vweird.f32 %v8250_v29 }
0x17b4   : > { %vm6716_vm8 = vmor %vm6714_vm7, %vm6715_vm6 }
0x17b5   : > { %v6710_v31 = vmul.f32 %v8250_v29, %v6709_v39  ;;  %7495 = vmatmul.msk.bf16.gmra.mxu1 %vm13318_vm4, %v6774_v5  ;;  %v6707_v54 = vsel %vm6706_vm5, %v8248_v2, %v6703_v4 }
0x17b6   : > { %v6732_v37 = vmul.f32 %v6707_v54, %v12553_v8 }
0x17b7   : > { %v6711_v40 = vmul.f32 0.5, %v6710_v31  ;;  %v6857_v63 = vpop.f32.mrf.mxu1 }
0x17b8   : > { %v6858_v58 = vadd.f32 %v6857_v63, %v12583_v45  ;;  %v6749_v10 = vmul.f32 %v12460_v24, %v6732_v37 }
0x17b9   : > { %v6712_v0 = vsub.f32 1.5, %v6711_v40 }
0x17ba   : > { %v6888_v13 = vmax.f32 %v6858_v58, 0.0  ;;  %v6766_v8 = vadd.f32 %v12474_v14, %v6749_v10 }
0x17bb   : > { %v6713_v41 = vmul.f32 %v8250_v29, %v6712_v0 }
0x17bd   : > { %v6717_v48 = vsel %vm6716_vm8, %v8250_v29, %v6713_v41 }
0x17be   : > { %v6733_v25 = vmul.f32 %v6717_v48, %v12568_v62 }
0x17bf   : > { %v6859_v1 = vpop.f32.mrf.mxu1 }
0x17c0   : > { %v6860_v57 = vadd.f32 %v6859_v1, %v12583_v45  ;;  %v6750_v20 = vmul.f32 %v12460_v24, %v6733_v25 }
0x17c2   : > { %v6889_v7 = vmax.f32 %v6860_v57, 0.0  ;;  %v6767_v49 = vadd.f32 %v12474_v14, %v6750_v20 }
0x17c4   : > { %v6901_v28 = vpack.c.bf16 %v6889_v7, %v6888_v13  ;;  %v6775_v34 = vpack.c.bf16 %v6767_v49, %v6766_v8 }
0x17c6   : > { %7496 = vmatmul.msk.bf16.gmra.mxu1 %vm13319_vm12, %v6775_v34  ;;  %7516 = vmatmul.msk.bf16.gmra.mxu2 %vm13320_vm11, %v6901_v28 }
0x17c7   : > { %v6862_v62 = vpop.f32.mrf.mxu1 }
0x17c8   : > { %v6863_v60 = vadd.f32 %v6862_v62, %v12583_v45 }
0x17ca   : > { %v6890_v59 = vmax.f32 %v6863_v60, 0.0 }
0x17ce   : > { %v6972_v24 = vpop.f32.mrf.mxu2 }
0x17cf   : > { %v6973_v14 = vadd.f32 %v6972_v24, %v12629_v53  ;;  %v6864_v6 = vpop.f32.mrf.mxu1 }
0x17d0   : > { %v6865_v47 = vadd.f32 %v6864_v6, %v12583_v45 }
0x17d1   : > { %7012 = vst [vmem:[%s12637_s25] sm:$0xff] %v6973_v14 }
0x17d2   : > { %v6891_v11 = vmax.f32 %v6865_v47, 0.0 }
0x17d4   : > { %v6902_v30 = vpack.c.bf16 %v6891_v11, %v6890_v59 }
0x17d6   : > { %v6974_v52 = vpop.f32.mrf.mxu2  ;;  %7517 = vmatmul.msk.bf16.gmra.mxu2 %vm13317_vm0, %v6902_v30 }
0x17d7   : > { %v6975_v21 = vadd.f32 %v6974_v52, %v12629_v53  ;;  %v6867_v61 = vpop.f32.mrf.mxu1 }
0x17d8   : > { %v6868_v22 = vadd.f32 %v6867_v61, %v12583_v45 }
0x17d9   : > { %7013 = vst [vmem:[%s12637_s25 + $0x8] sm:$0xff] %v6975_v21 }
0x17da   : > { %v6892_v35 = vmax.f32 %v6868_v22, 0.0 }
0x17de   : > { %v6977_v12 = vpop.f32.mrf.mxu2 }
0x17df   : > { %v6978_v42 = vadd.f32 %v6977_v12, %v12629_v53  ;;  %v6869_v51 = vpop.f32.mrf.mxu1 }
0x17e0   : > { %v6870_v17 = vadd.f32 %v6869_v51, %v12583_v45 }
0x17e1   : > { %7014 = vst [vmem:[%s12637_s25 + $0x10] sm:$0xff] %v6978_v42 }
0x17e2   : > { %v6893_v38 = vmax.f32 %v6870_v17, 0.0 }
0x17e4   : > { %v6903_v9 = vpack.c.bf16 %v6893_v38, %v6892_v35 }
0x17e6   : > { %v6979_v56 = vpop.f32.mrf.mxu2  ;;  %7518 = vmatmul.msk.bf16.gmra.mxu2 %vm13321_vm1, %v6903_v9 }
0x17e7   : > { %v6980_v50 = vadd.f32 %v6979_v56, %v12629_v53 }
0x17e9   : > { %7015 = vst [vmem:[%s12637_s25 + $0x18] sm:$0xff] %v6980_v50 }
0x17ee   : > { %v6982_v27 = vpop.f32.mrf.mxu2 }
0x17ef   : > { %v6983_v26 = vadd.f32 %v6982_v27, %v12629_v53 }
0x17f1   : > { %7016 = vst [vmem:[%s12637_s25 + $0x20] sm:$0xff] %v6983_v26 }
0x17f6   : > { %v6984_v16 = vpop.f32.mrf.mxu2 }
0x17f7   : > { %v6985_v2 = vadd.f32 %v6984_v16, %v12629_v53 }
0x17f9   : > { %7017 = vst [vmem:[%s12637_s25 + $0x28] sm:$0xff] %v6985_v2 }
0x1832   : > { %v6872_v32 = vpop.f32.mrf.mxu1 }
0x1833   : > { %v6873_v44 = vadd.f32 %v6872_v32, %v12583_v45 }
0x1835   : > { %v6894_v19 = vmax.f32 %v6873_v44, 0.0 }
0x183a   : > { %v6874_v36 = vpop.f32.mrf.mxu1 }
0x183b   : > { %v6875_v46 = vadd.f32 %v6874_v36, %v12583_v45 }
0x183d   : > { %v6895_v33 = vmax.f32 %v6875_v46, 0.0 }
0x183f   : > { %v6904_v43 = vpack.c.bf16 %v6895_v33, %v6894_v19 }
0x1841   : > { %7519 = vmatmul.msk.bf16.gmra.mxu2 %vm13322_vm15, %v6904_v43 }
0x1843   : > { %v6877_v15 = vpop.f32.mrf.mxu1 }
0x1844   : > { %v6878_v55 = vadd.f32 %v6877_v15, %v12583_v45 }
0x1846   : > { %v6896_v4 = vmax.f32 %v6878_v55, 0.0 }
0x1849   : > { %v6987_v18 = vpop.f32.mrf.mxu2 }
0x184a   : > { %v6988_v3 = vadd.f32 %v6987_v18, %v12629_v53 }
0x184b   : > { %v6879_v23 = vpop.f32.mrf.mxu1 }
0x184c   : > { %7018 = vst [vmem:[%s12637_s25 + $0x30] sm:$0xff] %v6988_v3  ;;  %v6880_v29 = vadd.f32 %v6879_v23, %v12583_v45 }
0x184e   : > { %v6897_v39 = vmax.f32 %v6880_v29, 0.0 }
0x1850   : > { %v6905_v5 = vpack.c.bf16 %v6897_v39, %v6896_v4 }
0x1851   : > { %v6989_v31 = vpop.f32.mrf.mxu2 }
0x1852   : > { %v6990_v54 = vadd.f32 %v6989_v31, %v12629_v53  ;;  %7520 = vmatmul.msk.bf16.gmra.mxu2 %vm13323_vm10, %v6905_v5 }
0x1854   : > { %7019 = vst [vmem:[%s12637_s25 + $0x38] sm:$0xff] %v6990_v54 }
0x1859   : > { %v6992_v40 = vpop.f32.mrf.mxu2 }
0x185a   : > { %v6993_v63 = vadd.f32 %v6992_v40, %v12629_v53 }
0x185c   : > { %7020 = vst [vmem:[%s12637_s25 + $0x40] sm:$0xff] %v6993_v63 }
0x1861   : > { %v6994_v0 = vpop.f32.mrf.mxu2 }
0x1862   : > { %v6995_v45 = vadd.f32 %v6994_v0, %v12629_v53 }
0x1864   : > { %7021 = vst [vmem:[%s12637_s25 + $0x48] sm:$0xff] %v6995_v45 }
0x1869   : > { %v6997_v37 = vpop.f32.mrf.mxu2 }
0x186a   : > { %v6998_v41 = vadd.f32 %v6997_v37, %v12629_v53 }
0x186c   : > { %7022 = vst [vmem:[%s12637_s25 + $0x50] sm:$0xff] %v6998_v41 }
0x1871   : > { %v6999_v48 = vpop.f32.mrf.mxu2 }
0x1872   : > { %v7000_v25 = vadd.f32 %v6999_v48, %v12629_v53 }
0x1874   : > { %7023 = vst [vmem:[%s12637_s25 + $0x58] sm:$0xff] %v7000_v25 }
0x18c4   : > { %v7002_v58 = vpop.f32.mrf.mxu2 }
0x18c5   : > { %v7003_v10 = vadd.f32 %v7002_v58, %v12629_v53 }
0x18c7   : > { %7024 = vst [vmem:[%s12637_s25 + $0x60] sm:$0xff] %v7003_v10 }
0x18cc   : > { %v7004_v1 = vpop.f32.mrf.mxu2 }
0x18cd   : > { %v7005_v57 = vadd.f32 %v7004_v1, %v12629_v53 }
0x18cf   : > { %7025 = vst [vmem:[%s12637_s25 + $0x68] sm:$0xff] %v7005_v57 }
0x18d5   : > { %v7007_v20 = vpop.f32.mrf.mxu2 }
0x18d6   : > { %v7008_v13 = vadd.f32 %v7007_v20, %v12629_v53 }
0x18d8   : > { %7026 = vst [vmem:[%s12637_s25 + $0x70] sm:$0xff] %v7008_v13 }
0x18dd   : > { %v7009_v7 = vpop.f32.mrf.mxu2 }
0x18de   : > { %v7010_v8 = vadd.f32 %v7009_v7, %v12629_v53 }
0x18e0   : > { %7027 = vst [vmem:[%s12637_s25 + $0x78] sm:$0xff] %v7010_v8 }
0x18e1 PF: > { %s13_s12 = sadd.s32 1, %s8263_s12  }
0x18e2   : > { %p10_p4 = scmp.ge.s32.totalorder %s13_s12, 4  }
0x18e4   :  { %12 = sbr.rel (!%p10_p4) target bundleno = 1 (0x1), region = 62 }

</bundles_post_ra>
